<compile_context>
chip_gen: v7x
topology: tpu7x:2x2x1
jax: 0.10.0
libtpu: 0.0.40
codegen_flags: <defaults>
</compile_context>

<pallas_src>
import jax
import jax.numpy as jnp
from jax.experimental import pallas as pl
from jax.experimental.pallas import tpu as pltpu

EPS = 1e-5  # nn.InstanceNorm2d default eps


# ----------------------------- fused Pallas kernel -----------------------------

def _dec_block_kernel(x1_ref, skip_ref, scat_ref,
                      wup_ref, bup_ref,
                      w1_ref, b1_ref, g1_ref, bt1_ref,
                      w2_ref, b2_ref, g2_ref, bt2_ref,
                      out_ref,
                      xp_ref, cat_ref, h1p_ref):
    _, H, W, Cin = x1_ref.shape
    _, H2, W2, Cout = out_ref.shape
    f32, bf16 = jnp.float32, jnp.bfloat16

    # zero-init scratch every step (halo regions must be zero for the 3x3 convs)
    xp_ref[...] = jnp.zeros(xp_ref.shape, f32)
    cat_ref[...] = jnp.zeros(cat_ref.shape, f32)
    h1p_ref[...] = jnp.zeros(h1p_ref.shape, f32)

    # ---- ConvTranspose2d(k=2, s=2, dilation=2, padding=1, output_padding=1) ----
    # Output index: oh = 2*ih - 1 + 2*kh  => only odd (2j+1, 2l+1) positions get
    # kernel contributions; the rest of the 2Hx2W map is bias only.
    xp_ref[0:H, 0:W, :] = x1_ref[0]              # zero halo on the high side
    xp = xp_ref[...]
    t = jnp.concatenate([
        xp[1:H + 1, 1:W + 1, :].reshape(H * W, Cin),   # x[j+1, l+1] -> Wt[:, :, 0, 0]
        xp[1:H + 1, 0:W,     :].reshape(H * W, Cin),   # x[j+1, l  ] -> Wt[:, :, 0, 1]
        xp[0:H,     1:W + 1, :].reshape(H * W, Cin),   # x[j,   l+1] -> Wt[:, :, 1, 0]
        xp[0:H,     0:W,     :].reshape(H * W, Cin),   # x[j,   l  ] -> Wt[:, :, 1, 1]
    ], axis=1)                                          # (H*W, 4*Cin) im2col
    u = jnp.dot(t.astype(bf16), wup_ref[...],
                preferred_element_type=f32)             # (H*W, Cin) odd/odd values

    # scatter odd/odd values onto the 2Hx2W grid via a constant 0/1 matrix (MXU),
    # add the transposed-conv bias everywhere, and channel-concat with the skip.
    up = jnp.dot(scat_ref[...], u, preferred_element_type=f32) + bup_ref[...]
    cat = jnp.concatenate([up.reshape(H2, W2, Cin), skip_ref[0]], axis=-1)
    cat_ref[1:H2 + 1, 1:W2 + 1, :] = cat                # zero halo all around

    def conv_in_relu(src_ref, w_ref, b_ref, g_ref, bt_ref, cin):
        # 3x3 conv as ONE im2col matmul (bf16 operands, f32 accumulation),
        # fused with InstanceNorm(affine) + ReLU in f32.
        xpad = src_ref[...]
        cols = [xpad[ky:ky + H2, kx:kx + W2, :].reshape(H2 * W2, cin)
                for ky in range(3) for kx in range(3)]
        patches = jnp.concatenate(cols, axis=1).astype(bf16)     # (H2*W2, 9*cin)
        acc = jnp.dot(patches, w_ref[...], preferred_element_type=f32)
        acc = acc + b_ref[...]   # kept for exact parity with PyTorch (IN cancels it)
        mean = jnp.mean(acc, axis=0, keepdims=True)
        var = jnp.mean((acc - mean) ** 2, axis=0, keepdims=True)
        acc = (acc - mean) * jax.lax.rsqrt(var + EPS)
        acc = acc * g_ref[...] + bt_ref[...]
        return jnp.maximum(acc, 0.0)                              # (H2*W2, Cout)

    h1 = conv_in_relu(cat_ref, w1_ref, b1_ref, g1_ref, bt1_ref, 2 * Cin)
    h1p_ref[1:H2 + 1, 1:W2 + 1, :] = h1.reshape(H2, W2, Cout)
    h2 = conv_in_relu(h1p_ref, w2_ref, b2_ref, g2_ref, bt2_ref, Cout)

    out_ref[0] = h2.reshape(H2, W2, Cout)


# ----------------------------- wrapper -----------------------------

def dec_block_forward(params, x1_nchw, skip_nchw):
    # TODO(synk): upsample=False variant (concat at equal resolution) not implemented;
    # the PyTorch module default (upsample=True) is what is implemented here.
    N, Cin, H, W = x1_nchw.shape
    H2, W2 = 2 * H, 2 * W
    Cout = params["w1"].shape[0]
    assert skip_nchw.shape == (N, Cin, H2, W2), skip_nchw.shape

    x1 = jnp.transpose(x1_nchw, (0, 2, 3, 1)).astype(jnp.float32)     # NCHW -> NHWC
    skip = jnp.transpose(skip_nchw, (0, 2, 3, 1)).astype(jnp.float32)

    # constant 0/1 scatter matrix: puts upsample value (j, l) at output (2j+1, 2l+1)
    pq = jnp.arange(H2 * W2)
    jl = jnp.arange(H * W)
    scat = ((pq[:, None] // W2 == 2 * (jl[None, :] // W) + 1)
            & (pq[:, None] % W2 == 2 * (jl[None, :] % W) + 1)).astype(jnp.float32)

    # weights in im2col layout, bf16 for the MXU (accumulation stays f32)
    wup = jnp.transpose(params["up_w"], (2, 3, 0, 1)).reshape(4 * Cin, Cin).astype(jnp.bfloat16)
    w1 = jnp.transpose(params["w1"], (2, 3, 1, 0)).reshape(9 * 2 * Cin, Cout).astype(jnp.bfloat16)
    w2 = jnp.transpose(params["w2"], (2, 3, 1, 0)).reshape(9 * Cout, Cout).astype(jnp.bfloat16)

    row = lambda v: v.reshape(1, -1).astype(jnp.float32)

    out = pl.pallas_call(
        _dec_block_kernel,
        out_shape=jax.ShapeDtypeStruct((N, H2, W2, Cout), jnp.float32),
        grid=(N,),
        in_specs=[
            pl.BlockSpec((1, H, W, Cin), lambda n: (n, 0, 0, 0)),      # x1
            pl.BlockSpec((1, H2, W2, Cin), lambda n: (n, 0, 0, 0)),    # skip
            pl.BlockSpec((H2 * W2, H * W), lambda n: (0, 0)),          # scatter matrix
            pl.BlockSpec((4 * Cin, Cin), lambda n: (0, 0)),            # up weight
            pl.BlockSpec((1, Cin), lambda n: (0, 0)),                  # up bias
            pl.BlockSpec((9 * 2 * Cin, Cout), lambda n: (0, 0)),       # conv1 weight
            pl.BlockSpec((1, Cout), lambda n: (0, 0)),                 # conv1 bias
            pl.BlockSpec((1, Cout), lambda n: (0, 0)),                 # IN1 gamma
            pl.BlockSpec((1, Cout), lambda n: (0, 0)),                 # IN1 beta
            pl.BlockSpec((9 * Cout, Cout), lambda n: (0, 0)),          # conv2 weight
            pl.BlockSpec((1, Cout), lambda n: (0, 0)),                 # conv2 bias
            pl.BlockSpec((1, Cout), lambda n: (0, 0)),                 # IN2 gamma
            pl.BlockSpec((1, Cout), lambda n: (0, 0)),                 # IN2 beta
        ],
        out_specs=pl.BlockSpec((1, H2, W2, Cout), lambda n: (n, 0, 0, 0)),
        scratch_shapes=[
            pltpu.VMEM((H + 1, W + 1, Cin), jnp.float32),              # padded x1
            pltpu.VMEM((H2 + 2, W2 + 2, 2 * Cin), jnp.float32),        # padded [up|skip]
            pltpu.VMEM((H2 + 2, W2 + 2, Cout), jnp.float32),           # padded conv1 out
        ],
        compiler_params=pltpu.CompilerParams(dimension_semantics=("parallel",)),
    )(x1, skip, scat, wup, row(params["up_b"]),
      w1, row(params["b1"]), row(params["g1"]), row(params["bt1"]),
      w2, row(params["b2"]), row(params["g2"]), row(params["bt2"]))

    return jnp.transpose(out, (0, 3, 1, 2))                            # back to NCHW


# ----------------------------- reference (plain XLA, PyTorch semantics) -----------------------------

def dec_block_ref(params, x1_nchw, skip_nchw):
    f32, bf16 = jnp.float32, jnp.bfloat16

    # ConvTranspose2d(k=2, s=2, dilation=2, padding=1, output_padding=1) via lhs dilation
    wt = params["up_w"]                                                # (Cin, Cout, kh, kw)
    w_eq = jnp.transpose(wt, (1, 0, 2, 3))[:, :, ::-1, ::-1]
    up = jax.lax.conv_general_dilated(
        x1_nchw.astype(bf16), w_eq.astype(bf16),
        window_strides=(1, 1), padding=((1, 2), (1, 2)),
        lhs_dilation=(2, 2), rhs_dilation=(2, 2),
        dimension_numbers=("NCHW", "OIHW", "NCHW"),
        preferred_element_type=f32)
    up = up + params["up_b"].reshape(1, -1, 1, 1)

    x = jnp.concatenate([up, skip_nchw.astype(f32)], axis=1)

    def block(x, w, b, g, bt):
        y = jax.lax.conv_general_dilated(
            x.astype(bf16), w.astype(bf16),
            window_strides=(1, 1), padding=((1, 1), (1, 1)),
            dimension_numbers=("NCHW", "OIHW", "NCHW"),
            preferred_element_type=f32)
        y = y + b.reshape(1, -1, 1, 1)
        mean = jnp.mean(y, axis=(2, 3), keepdims=True)
        var = jnp.mean((y - mean) ** 2, axis=(2, 3), keepdims=True)
        y = (y - mean) * jax.lax.rsqrt(var + EPS)
        y = y * g.reshape(1, -1, 1, 1) + bt.reshape(1, -1, 1, 1)
        return jnp.maximum(y, 0.0)

    x = block(x, params["w1"], params["b1"], params["g1"], params["bt1"])
    x = block(x, params["w2"], params["b2"], params["g2"], params["bt2"])
    return x


# ----------------------------- parameters -----------------------------

def init_params(key, ch_in, ch_out):
    ks = jax.random.split(key, 10)

    def nrm(k, shape, std):
        return (std * jax.random.normal(k, shape, jnp.float32)).astype(jnp.float32)

    return {
        "up_w": nrm(ks[0], (ch_in, ch_in, 2, 2), (ch_in * 4) ** -0.5),   # PyTorch (Cin, Cout, kh, kw)
        "up_b": nrm(ks[1], (ch_in,), 0.05),
        "w1": nrm(ks[2], (ch_out, 2 * ch_in, 3, 3), (2 * ch_in * 9) ** -0.5),  # OIHW
        "b1": nrm(ks[3], (ch_out,), 0.05),
        "g1": 1.0 + 0.1 * jax.random.normal(ks[4], (ch_out,), jnp.float32),
        "bt1": 0.1 * jax.random.normal(ks[5], (ch_out,), jnp.float32),
        "w2": nrm(ks[6], (ch_out, ch_out, 3, 3), (ch_out * 9) ** -0.5),        # OIHW
        "b2": nrm(ks[7], (ch_out,), 0.05),
        "g2": 1.0 + 0.1 * jax.random.normal(ks[8], (ch_out,), jnp.float32),
        "bt2": 0.1 * jax.random.normal(ks[9], (ch_out,), jnp.float32),
    }


# ----------------------------- main -----------------------------

if __name__ == "__main__":
    key = jax.random.PRNGKey(0)
    kx1, ksk, kp = jax.random.split(key, 3)

    N, CH_IN, CH_OUT, H, W = 2, 64, 32, 8, 8
    x1 = jax.random.normal(kx1, (N, CH_IN, H, W), jnp.float32)           # NCHW like PyTorch
    skip = jax.random.normal(ksk, (N, CH_IN, 2 * H, 2 * W), jnp.float32)
    params = init_params(kp, CH_IN, CH_OUT)

    fwd = jax.jit(dec_block_forward)
    out = jax.block_until_ready(fwd(params, x1, skip))
    assert out.shape == (N, CH_OUT, 2 * H, 2 * W), out.shape
    assert bool(jnp.all(jnp.isfinite(out)))

    ref = dec_block_ref(params, x1, skip)
    err = float(jnp.max(jnp.abs(out - ref)))
    assert err < 2e-2, f"max abs err vs reference: {err}"

    print("KERNEL_OK")
</pallas_src>

<mosaic_0001>
module attributes {stable_mosaic.version = 11 : i64} {
  func.func @_dec_block_kernel(%arg0: i32, %arg1: memref<1x8x8x64xf32, #tpu.memory_space<vmem>>, %arg2: memref<1x16x16x64xf32, #tpu.memory_space<vmem>>, %arg3: memref<256x64xf32, #tpu.memory_space<vmem>>, %arg4: memref<256x64xbf16, #tpu.memory_space<vmem>>, %arg5: memref<1x64xf32, #tpu.memory_space<vmem>>, %arg6: memref<1152x32xbf16, #tpu.memory_space<vmem>>, %arg7: memref<1x32xf32, #tpu.memory_space<vmem>>, %arg8: memref<1x32xf32, #tpu.memory_space<vmem>>, %arg9: memref<1x32xf32, #tpu.memory_space<vmem>>, %arg10: memref<288x32xbf16, #tpu.memory_space<vmem>>, %arg11: memref<1x32xf32, #tpu.memory_space<vmem>>, %arg12: memref<1x32xf32, #tpu.memory_space<vmem>>, %arg13: memref<1x32xf32, #tpu.memory_space<vmem>>, %arg14: memref<1x16x16x32xf32, #tpu.memory_space<vmem>>, %arg15: memref<9x9x64xf32, #tpu.memory_space<vmem>>, %arg16: memref<18x18x128xf32, #tpu.memory_space<vmem>>, %arg17: memref<18x18x32xf32, #tpu.memory_space<vmem>>) attributes {dimension_semantics = [#tpu.dimension_semantics<parallel>], iteration_bounds = array<i64: 2>, scalar_prefetch = 0 : i64, scratch_operands = 3 : i64, tpu.core_type = #tpu.core_type<tc>, window_params = [{transform_indices = @transform_0, window_bounds = array<i64: 1, 8, 8, 64>}, {transform_indices = @transform_1, window_bounds = array<i64: 1, 16, 16, 64>}, {pipeline_mode = #tpu.pipeline_mode<synchronous>, transform_indices = @transform_2, window_bounds = array<i64: 256, 64>}, {pipeline_mode = #tpu.pipeline_mode<synchronous>, transform_indices = @transform_3, window_bounds = array<i64: 256, 64>}, {pipeline_mode = #tpu.pipeline_mode<synchronous>, transform_indices = @transform_4, window_bounds = array<i64: 1, 64>}, {pipeline_mode = #tpu.pipeline_mode<synchronous>, transform_indices = @transform_5, window_bounds = array<i64: 1152, 32>}, {pipeline_mode = #tpu.pipeline_mode<synchronous>, transform_indices = @transform_6, window_bounds = array<i64: 1, 32>}, {pipeline_mode = #tpu.pipeline_mode<synchronous>, transform_indices = @transform_7, window_bounds = array<i64: 1, 32>}, {pipeline_mode = #tpu.pipeline_mode<synchronous>, transform_indices = @transform_8, window_bounds = array<i64: 1, 32>}, {pipeline_mode = #tpu.pipeline_mode<synchronous>, transform_indices = @transform_9, window_bounds = array<i64: 288, 32>}, {pipeline_mode = #tpu.pipeline_mode<synchronous>, transform_indices = @transform_10, window_bounds = array<i64: 1, 32>}, {pipeline_mode = #tpu.pipeline_mode<synchronous>, transform_indices = @transform_11, window_bounds = array<i64: 1, 32>}, {pipeline_mode = #tpu.pipeline_mode<synchronous>, transform_indices = @transform_12, window_bounds = array<i64: 1, 32>}, {transform_indices = @transform_13, window_bounds = array<i64: 1, 16, 16, 32>}]} {
    %cst = arith.constant 0.000000e+00 : f32
    %0 = vector.broadcast %cst : f32 to vector<9x9x64xf32>
    %c0 = arith.constant 0 : index
    %c0_0 = arith.constant 0 : index
    %c0_1 = arith.constant 0 : index
    %1 = vector.load %arg15[%c0, %c0_0, %c0_1] : memref<9x9x64xf32, #tpu.memory_space<vmem>>, vector<9x9x64xf32>
    tpu.vector_store %arg15[%c0, %c0_0, %c0_1], %0 {strides = array<i32>} : memref<9x9x64xf32, #tpu.memory_space<vmem>>, vector<9x9x64xf32>,
    %cst_2 = arith.constant 0.000000e+00 : f32
    %2 = vector.broadcast %cst_2 : f32 to vector<18x18x128xf32>
    %c0_3 = arith.constant 0 : index
    %c0_4 = arith.constant 0 : index
    %c0_5 = arith.constant 0 : index
    %3 = vector.load %arg16[%c0_3, %c0_4, %c0_5] : memref<18x18x128xf32, #tpu.memory_space<vmem>>, vector<18x18x128xf32>
    tpu.vector_store %arg16[%c0_3, %c0_4, %c0_5], %2 {strides = array<i32>} : memref<18x18x128xf32, #tpu.memory_space<vmem>>, vector<18x18x128xf32>,
    %cst_6 = arith.constant 0.000000e+00 : f32
    %4 = vector.broadcast %cst_6 : f32 to vector<18x18x32xf32>
    %c0_7 = arith.constant 0 : index
    %c0_8 = arith.constant 0 : index
    %c0_9 = arith.constant 0 : index
    %5 = vector.load %arg17[%c0_7, %c0_8, %c0_9] : memref<18x18x32xf32, #tpu.memory_space<vmem>>, vector<18x18x32xf32>
    tpu.vector_store %arg17[%c0_7, %c0_8, %c0_9], %4 {strides = array<i32>} : memref<18x18x32xf32, #tpu.memory_space<vmem>>, vector<18x18x32xf32>,
    %c0_10 = arith.constant 0 : index
    %c0_11 = arith.constant 0 : index
    %c0_12 = arith.constant 0 : index
    %c0_13 = arith.constant 0 : index
    %6 = vector.load %arg1[%c0_10, %c0_11, %c0_12, %c0_13] : memref<1x8x8x64xf32, #tpu.memory_space<vmem>>, vector<1x8x8x64xf32>
    %7 = vector.shape_cast %6 : vector<1x8x8x64xf32> to vector<8x8x64xf32>
    %c0_14 = arith.constant 0 : index
    %c0_15 = arith.constant 0 : index
    %c0_16 = arith.constant 0 : index
    %8 = vector.load %arg15[%c0_14, %c0_15, %c0_16] : memref<9x9x64xf32, #tpu.memory_space<vmem>>, vector<8x8x64xf32>
    tpu.vector_store %arg15[%c0_14, %c0_15, %c0_16], %7 {strides = array<i32>} : memref<9x9x64xf32, #tpu.memory_space<vmem>>, vector<8x8x64xf32>,
    %c0_17 = arith.constant 0 : index
    %c0_18 = arith.constant 0 : index
    %c0_19 = arith.constant 0 : index
    %9 = vector.load %arg15[%c0_17, %c0_18, %c0_19] : memref<9x9x64xf32, #tpu.memory_space<vmem>>, vector<9x9x64xf32>
    %10 = vector.extract_strided_slice %9 {offsets = [1, 1, 0], sizes = [8, 8, 64], strides = [1, 1, 1]} : vector<9x9x64xf32> to vector<8x8x64xf32>
    %11 = vector.shape_cast %10 : vector<8x8x64xf32> to vector<64x64xf32>
    %12 = vector.extract_strided_slice %9 {offsets = [1, 0, 0], sizes = [8, 8, 64], strides = [1, 1, 1]} : vector<9x9x64xf32> to vector<8x8x64xf32>
    %13 = vector.shape_cast %12 : vector<8x8x64xf32> to vector<64x64xf32>
    %14 = vector.extract_strided_slice %9 {offsets = [0, 1, 0], sizes = [8, 8, 64], strides = [1, 1, 1]} : vector<9x9x64xf32> to vector<8x8x64xf32>
    %15 = vector.shape_cast %14 : vector<8x8x64xf32> to vector<64x64xf32>
    %16 = vector.extract_strided_slice %9 {offsets = [0, 0, 0], sizes = [8, 8, 64], strides = [1, 1, 1]} : vector<9x9x64xf32> to vector<8x8x64xf32>
    %17 = vector.shape_cast %16 : vector<8x8x64xf32> to vector<64x64xf32>
    %18 = tpu.concatenate %11, %13, %15, %17 in 1 : vector<64x64xf32>, vector<64x64xf32>, vector<64x64xf32>, vector<64x64xf32> -> vector<64x256xf32>
    %19 = arith.truncf %18 : vector<64x256xf32> to vector<64x256xbf16>
    %c0_20 = arith.constant 0 : index
    %c0_21 = arith.constant 0 : index
    %20 = vector.load %arg4[%c0_20, %c0_21] : memref<256x64xbf16, #tpu.memory_space<vmem>>, vector<256x64xbf16>
    %cst_22 = arith.constant dense<0.000000e+00> : vector<64x64xf32>
    %21 = tpu.matmul %19, %20, %cst_22 {dimension_numbers = #tpu.dot_dimension_numbers<[1], [0], [0], [1], [0, 0, 1, 1], [], []>} : vector<64x256xbf16>, vector<256x64xbf16>, vector<64x64xf32> -> vector<64x64xf32>
    %c0_23 = arith.constant 0 : index
    %c0_24 = arith.constant 0 : index
    %22 = vector.load %arg3[%c0_23, %c0_24] : memref<256x64xf32, #tpu.memory_space<vmem>>, vector<256x64xf32>
    %cst_25 = arith.constant dense<0.000000e+00> : vector<256x64xf32>
    %23 = tpu.matmul %22, %21, %cst_25 {dimension_numbers = #tpu.dot_dimension_numbers<[1], [0], [0], [1], [0, 0, 1, 1], [], []>} : vector<256x64xf32>, vector<64x64xf32>, vector<256x64xf32> -> vector<256x64xf32>
    %c0_26 = arith.constant 0 : index
    %c0_27 = arith.constant 0 : index
    %24 = vector.load %arg5[%c0_26, %c0_27] : memref<1x64xf32, #tpu.memory_space<vmem>>, vector<1x64xf32>
    %25 = vector.broadcast %24 : vector<1x64xf32> to vector<256x64xf32>
    %26 = arith.addf %23, %25 : vector<256x64xf32>
    %27 = vector.shape_cast %26 : vector<256x64xf32> to vector<16x16x64xf32>
    %c0_28 = arith.constant 0 : index
    %c0_29 = arith.constant 0 : index
    %c0_30 = arith.constant 0 : index
    %c0_31 = arith.constant 0 : index
    %28 = vector.load %arg2[%c0_28, %c0_29, %c0_30, %c0_31] : memref<1x16x16x64xf32, #tpu.memory_space<vmem>>, vector<1x16x16x64xf32>
    %29 = vector.shape_cast %28 : vector<1x16x16x64xf32> to vector<16x16x64xf32>
    %30 = tpu.concatenate %27, %29 in 2 : vector<16x16x64xf32>, vector<16x16x64xf32> -> vector<16x16x128xf32>
    %c1 = arith.constant 1 : index
    %c1_32 = arith.constant 1 : index
    %c0_33 = arith.constant 0 : index
    %31 = vector.load %arg16[%c1, %c1_32, %c0_33] : memref<18x18x128xf32, #tpu.memory_space<vmem>>, vector<16x16x128xf32>
    tpu.vector_store %arg16[%c1, %c1_32, %c0_33], %30 {strides = array<i32>} : memref<18x18x128xf32, #tpu.memory_space<vmem>>, vector<16x16x128xf32>,
    %c0_34 = arith.constant 0 : index
    %c0_35 = arith.constant 0 : index
    %c0_36 = arith.constant 0 : index
    %32 = vector.load %arg16[%c0_34, %c0_35, %c0_36] : memref<18x18x128xf32, #tpu.memory_space<vmem>>, vector<18x18x128xf32>
    %33 = vector.extract_strided_slice %32 {offsets = [0, 0, 0], sizes = [16, 16, 128], strides = [1, 1, 1]} : vector<18x18x128xf32> to vector<16x16x128xf32>
    %34 = vector.shape_cast %33 : vector<16x16x128xf32> to vector<256x128xf32>
    %35 = vector.extract_strided_slice %32 {offsets = [0, 1, 0], sizes = [16, 16, 128], strides = [1, 1, 1]} : vector<18x18x128xf32> to vector<16x16x128xf32>
    %36 = vector.shape_cast %35 : vector<16x16x128xf32> to vector<256x128xf32>
    %37 = vector.extract_strided_slice %32 {offsets = [0, 2, 0], sizes = [16, 16, 128], strides = [1, 1, 1]} : vector<18x18x128xf32> to vector<16x16x128xf32>
    %38 = vector.shape_cast %37 : vector<16x16x128xf32> to vector<256x128xf32>
    %39 = vector.extract_strided_slice %32 {offsets = [1, 0, 0], sizes = [16, 16, 128], strides = [1, 1, 1]} : vector<18x18x128xf32> to vector<16x16x128xf32>
    %40 = vector.shape_cast %39 : vector<16x16x128xf32> to vector<256x128xf32>
    %41 = vector.extract_strided_slice %32 {offsets = [1, 1, 0], sizes = [16, 16, 128], strides = [1, 1, 1]} : vector<18x18x128xf32> to vector<16x16x128xf32>
    %42 = vector.shape_cast %41 : vector<16x16x128xf32> to vector<256x128xf32>
    %43 = vector.extract_strided_slice %32 {offsets = [1, 2, 0], sizes = [16, 16, 128], strides = [1, 1, 1]} : vector<18x18x128xf32> to vector<16x16x128xf32>
    %44 = vector.shape_cast %43 : vector<16x16x128xf32> to vector<256x128xf32>
    %45 = vector.extract_strided_slice %32 {offsets = [2, 0, 0], sizes = [16, 16, 128], strides = [1, 1, 1]} : vector<18x18x128xf32> to vector<16x16x128xf32>
    %46 = vector.shape_cast %45 : vector<16x16x128xf32> to vector<256x128xf32>
    %47 = vector.extract_strided_slice %32 {offsets = [2, 1, 0], sizes = [16, 16, 128], strides = [1, 1, 1]} : vector<18x18x128xf32> to vector<16x16x128xf32>
    %48 = vector.shape_cast %47 : vector<16x16x128xf32> to vector<256x128xf32>
    %49 = vector.extract_strided_slice %32 {offsets = [2, 2, 0], sizes = [16, 16, 128], strides = [1, 1, 1]} : vector<18x18x128xf32> to vector<16x16x128xf32>
    %50 = vector.shape_cast %49 : vector<16x16x128xf32> to vector<256x128xf32>
    %51 = tpu.concatenate %34, %36, %38, %40, %42, %44, %46, %48, %50 in 1 : vector<256x128xf32>, vector<256x128xf32>, vector<256x128xf32>, vector<256x128xf32>, vector<256x128xf32>, vector<256x128xf32>, vector<256x128xf32>, vector<256x128xf32>, vector<256x128xf32> -> vector<256x1152xf32>
    %52 = arith.truncf %51 : vector<256x1152xf32> to vector<256x1152xbf16>
    %c0_37 = arith.constant 0 : index
    %c0_38 = arith.constant 0 : index
    %53 = vector.load %arg6[%c0_37, %c0_38] : memref<1152x32xbf16, #tpu.memory_space<vmem>>, vector<1152x32xbf16>
    %cst_39 = arith.constant dense<0.000000e+00> : vector<256x32xf32>
    %54 = tpu.matmul %52, %53, %cst_39 {dimension_numbers = #tpu.dot_dimension_numbers<[1], [0], [0], [1], [0, 0, 1, 1], [], []>} : vector<256x1152xbf16>, vector<1152x32xbf16>, vector<256x32xf32> -> vector<256x32xf32>
    %c0_40 = arith.constant 0 : index
    %c0_41 = arith.constant 0 : index
    %55 = vector.load %arg7[%c0_40, %c0_41] : memref<1x32xf32, #tpu.memory_space<vmem>>, vector<1x32xf32>
    %56 = vector.broadcast %55 : vector<1x32xf32> to vector<256x32xf32>
    %57 = arith.addf %54, %56 : vector<256x32xf32>
    %cst_42 = arith.constant dense<0.000000e+00> : vector<32xf32>
    %58 = vector.multi_reduction <add>, %57, %cst_42 [0] : vector<256x32xf32> to vector<32xf32>
    %59 = vector.shape_cast %58 : vector<32xf32> to vector<1x32xf32>
    %cst_43 = arith.constant 2.560000e+02 : f32
    %60 = vector.broadcast %cst_43 : f32 to vector<1x32xf32>
    %61 = arith.divf %59, %60 : vector<1x32xf32>
    %62 = vector.broadcast %61 : vector<1x32xf32> to vector<256x32xf32>
    %63 = arith.subf %57, %62 : vector<256x32xf32>
    %64 = arith.mulf %63, %63 : vector<256x32xf32>
    %cst_44 = arith.constant dense<0.000000e+00> : vector<32xf32>
    %65 = vector.multi_reduction <add>, %64, %cst_44 [0] : vector<256x32xf32> to vector<32xf32>
    %66 = vector.shape_cast %65 : vector<32xf32> to vector<1x32xf32>
    %cst_45 = arith.constant 2.560000e+02 : f32
    %67 = vector.broadcast %cst_45 : f32 to vector<1x32xf32>
    %68 = arith.divf %66, %67 : vector<1x32xf32>
    %69 = vector.broadcast %61 : vector<1x32xf32> to vector<256x32xf32>
    %70 = arith.subf %57, %69 : vector<256x32xf32>
    %cst_46 = arith.constant 9.99999974E-6 : f32
    %71 = vector.broadcast %cst_46 : f32 to vector<1x32xf32>
    %72 = arith.addf %68, %71 : vector<1x32xf32>
    %73 = math.rsqrt %72 : vector<1x32xf32>
    %74 = vector.broadcast %73 : vector<1x32xf32> to vector<256x32xf32>
    %75 = arith.mulf %70, %74 : vector<256x32xf32>
    %c0_47 = arith.constant 0 : index
    %c0_48 = arith.constant 0 : index
    %76 = vector.load %arg8[%c0_47, %c0_48] : memref<1x32xf32, #tpu.memory_space<vmem>>, vector<1x32xf32>
    %77 = vector.broadcast %76 : vector<1x32xf32> to vector<256x32xf32>
    %78 = arith.mulf %75, %77 : vector<256x32xf32>
    %c0_49 = arith.constant 0 : index
    %c0_50 = arith.constant 0 : index
    %79 = vector.load %arg9[%c0_49, %c0_50] : memref<1x32xf32, #tpu.memory_space<vmem>>, vector<1x32xf32>
    %80 = vector.broadcast %79 : vector<1x32xf32> to vector<256x32xf32>
    %81 = arith.addf %78, %80 : vector<256x32xf32>
    %cst_51 = arith.constant 0.000000e+00 : f32
    %82 = vector.broadcast %cst_51 : f32 to vector<256x32xf32>
    %83 = arith.maximumf %81, %82 : vector<256x32xf32>
    %84 = vector.shape_cast %83 : vector<256x32xf32> to vector<16x16x32xf32>
    %c1_52 = arith.constant 1 : index
    %c1_53 = arith.constant 1 : index
    %c0_54 = arith.constant 0 : index
    %85 = vector.load %arg17[%c1_52, %c1_53, %c0_54] : memref<18x18x32xf32, #tpu.memory_space<vmem>>, vector<16x16x32xf32>
    tpu.vector_store %arg17[%c1_52, %c1_53, %c0_54], %84 {strides = array<i32>} : memref<18x18x32xf32, #tpu.memory_space<vmem>>, vector<16x16x32xf32>,
    %c0_55 = arith.constant 0 : index
    %c0_56 = arith.constant 0 : index
    %c0_57 = arith.constant 0 : index
    %86 = vector.load %arg17[%c0_55, %c0_56, %c0_57] : memref<18x18x32xf32, #tpu.memory_space<vmem>>, vector<18x18x32xf32>
    %87 = vector.extract_strided_slice %86 {offsets = [0, 0, 0], sizes = [16, 16, 32], strides = [1, 1, 1]} : vector<18x18x32xf32> to vector<16x16x32xf32>
    %88 = vector.shape_cast %87 : vector<16x16x32xf32> to vector<256x32xf32>
    %89 = vector.extract_strided_slice %86 {offsets = [0, 1, 0], sizes = [16, 16, 32], strides = [1, 1, 1]} : vector<18x18x32xf32> to vector<16x16x32xf32>
    %90 = vector.shape_cast %89 : vector<16x16x32xf32> to vector<256x32xf32>
    %91 = vector.extract_strided_slice %86 {offsets = [0, 2, 0], sizes = [16, 16, 32], strides = [1, 1, 1]} : vector<18x18x32xf32> to vector<16x16x32xf32>
    %92 = vector.shape_cast %91 : vector<16x16x32xf32> to vector<256x32xf32>
    %93 = vector.extract_strided_slice %86 {offsets = [1, 0, 0], sizes = [16, 16, 32], strides = [1, 1, 1]} : vector<18x18x32xf32> to vector<16x16x32xf32>
    %94 = vector.shape_cast %93 : vector<16x16x32xf32> to vector<256x32xf32>
    %95 = vector.extract_strided_slice %86 {offsets = [1, 1, 0], sizes = [16, 16, 32], strides = [1, 1, 1]} : vector<18x18x32xf32> to vector<16x16x32xf32>
    %96 = vector.shape_cast %95 : vector<16x16x32xf32> to vector<256x32xf32>
    %97 = vector.extract_strided_slice %86 {offsets = [1, 2, 0], sizes = [16, 16, 32], strides = [1, 1, 1]} : vector<18x18x32xf32> to vector<16x16x32xf32>
    %98 = vector.shape_cast %97 : vector<16x16x32xf32> to vector<256x32xf32>
    %99 = vector.extract_strided_slice %86 {offsets = [2, 0, 0], sizes = [16, 16, 32], strides = [1, 1, 1]} : vector<18x18x32xf32> to vector<16x16x32xf32>
    %100 = vector.shape_cast %99 : vector<16x16x32xf32> to vector<256x32xf32>
    %101 = vector.extract_strided_slice %86 {offsets = [2, 1, 0], sizes = [16, 16, 32], strides = [1, 1, 1]} : vector<18x18x32xf32> to vector<16x16x32xf32>
    %102 = vector.shape_cast %101 : vector<16x16x32xf32> to vector<256x32xf32>
    %103 = vector.extract_strided_slice %86 {offsets = [2, 2, 0], sizes = [16, 16, 32], strides = [1, 1, 1]} : vector<18x18x32xf32> to vector<16x16x32xf32>
    %104 = vector.shape_cast %103 : vector<16x16x32xf32> to vector<256x32xf32>
    %105 = tpu.concatenate %88, %90, %92, %94, %96, %98, %100, %102, %104 in 1 : vector<256x32xf32>, vector<256x32xf32>, vector<256x32xf32>, vector<256x32xf32>, vector<256x32xf32>, vector<256x32xf32>, vector<256x32xf32>, vector<256x32xf32>, vector<256x32xf32> -> vector<256x288xf32>
    %106 = arith.truncf %105 : vector<256x288xf32> to vector<256x288xbf16>
    %c0_58 = arith.constant 0 : index
    %c0_59 = arith.constant 0 : index
    %107 = vector.load %arg10[%c0_58, %c0_59] : memref<288x32xbf16, #tpu.memory_space<vmem>>, vector<288x32xbf16>
    %cst_60 = arith.constant dense<0.000000e+00> : vector<256x32xf32>
    %108 = tpu.matmul %106, %107, %cst_60 {dimension_numbers = #tpu.dot_dimension_numbers<[1], [0], [0], [1], [0, 0, 1, 1], [], []>} : vector<256x288xbf16>, vector<288x32xbf16>, vector<256x32xf32> -> vector<256x32xf32>
    %c0_61 = arith.constant 0 : index
    %c0_62 = arith.constant 0 : index
    %109 = vector.load %arg11[%c0_61, %c0_62] : memref<1x32xf32, #tpu.memory_space<vmem>>, vector<1x32xf32>
    %110 = vector.broadcast %109 : vector<1x32xf32> to vector<256x32xf32>
    %111 = arith.addf %108, %110 : vector<256x32xf32>
    %cst_63 = arith.constant dense<0.000000e+00> : vector<32xf32>
    %112 = vector.multi_reduction <add>, %111, %cst_63 [0] : vector<256x32xf32> to vector<32xf32>
    %113 = vector.shape_cast %112 : vector<32xf32> to vector<1x32xf32>
    %cst_64 = arith.constant 2.560000e+02 : f32
    %114 = vector.broadcast %cst_64 : f32 to vector<1x32xf32>
    %115 = arith.divf %113, %114 : vector<1x32xf32>
    %116 = vector.broadcast %115 : vector<1x32xf32> to vector<256x32xf32>
    %117 = arith.subf %111, %116 : vector<256x32xf32>
    %118 = arith.mulf %117, %117 : vector<256x32xf32>
    %cst_65 = arith.constant dense<0.000000e+00> : vector<32xf32>
    %119 = vector.multi_reduction <add>, %118, %cst_65 [0] : vector<256x32xf32> to vector<32xf32>
    %120 = vector.shape_cast %119 : vector<32xf32> to vector<1x32xf32>
    %cst_66 = arith.constant 2.560000e+02 : f32
    %121 = vector.broadcast %cst_66 : f32 to vector<1x32xf32>
    %122 = arith.divf %120, %121 : vector<1x32xf32>
    %123 = vector.broadcast %115 : vector<1x32xf32> to vector<256x32xf32>
    %124 = arith.subf %111, %123 : vector<256x32xf32>
    %cst_67 = arith.constant 9.99999974E-6 : f32
    %125 = vector.broadcast %cst_67 : f32 to vector<1x32xf32>
    %126 = arith.addf %122, %125 : vector<1x32xf32>
    %127 = math.rsqrt %126 : vector<1x32xf32>
    %128 = vector.broadcast %127 : vector<1x32xf32> to vector<256x32xf32>
    %129 = arith.mulf %124, %128 : vector<256x32xf32>
    %c0_68 = arith.constant 0 : index
    %c0_69 = arith.constant 0 : index
    %130 = vector.load %arg12[%c0_68, %c0_69] : memref<1x32xf32, #tpu.memory_space<vmem>>, vector<1x32xf32>
    %131 = vector.broadcast %130 : vector<1x32xf32> to vector<256x32xf32>
    %132 = arith.mulf %129, %131 : vector<256x32xf32>
    %c0_70 = arith.constant 0 : index
    %c0_71 = arith.constant 0 : index
    %133 = vector.load %arg13[%c0_70, %c0_71] : memref<1x32xf32, #tpu.memory_space<vmem>>, vector<1x32xf32>
    %134 = vector.broadcast %133 : vector<1x32xf32> to vector<256x32xf32>
    %135 = arith.addf %132, %134 : vector<256x32xf32>
    %cst_72 = arith.constant 0.000000e+00 : f32
    %136 = vector.broadcast %cst_72 : f32 to vector<256x32xf32>
    %137 = arith.maximumf %135, %136 : vector<256x32xf32>
    %138 = vector.shape_cast %137 : vector<256x32xf32> to vector<16x16x32xf32>
    %c0_73 = arith.constant 0 : index
    %c0_74 = arith.constant 0 : index
    %c0_75 = arith.constant 0 : index
    %c0_76 = arith.constant 0 : index
    %139 = vector.load %arg14[%c0_73, %c0_74, %c0_75, %c0_76] : memref<1x16x16x32xf32, #tpu.memory_space<vmem>>, vector<1x16x16x32xf32>
    %140 = vector.shape_cast %139 : vector<1x16x16x32xf32> to vector<16x16x32xf32>
    %141 = vector.shape_cast %138 : vector<16x16x32xf32> to vector<1x16x16x32xf32>
    tpu.vector_store %arg14[%c0_73, %c0_74, %c0_75, %c0_76], %141 {strides = array<i32>} : memref<1x16x16x32xf32, #tpu.memory_space<vmem>>, vector<1x16x16x32xf32>,
    return
  }
  func.func @transform_0(%arg0: i32) -> (i32, i32, i32, i32) {
    %c0_i32 = arith.constant 0 : i32
    %c0_i32_0 = arith.constant 0 : i32
    %c0_i32_1 = arith.constant 0 : i32
    %c0_i32_2 = arith.constant 0 : i32
    return %arg0, %c0_i32, %c0_i32_0, %c0_i32_1 : i32, i32, i32, i32
  }
  func.func @transform_1(%arg0: i32) -> (i32, i32, i32, i32) {
    %c0_i32 = arith.constant 0 : i32
    %c0_i32_0 = arith.constant 0 : i32
    %c0_i32_1 = arith.constant 0 : i32
    %c0_i32_2 = arith.constant 0 : i32
    return %arg0, %c0_i32, %c0_i32_0, %c0_i32_1 : i32, i32, i32, i32
  }
  func.func @transform_2(%arg0: i32) -> (i32, i32) {
    %c0_i32 = arith.constant 0 : i32
    %c0_i32_0 = arith.constant 0 : i32
    %c0_i32_1 = arith.constant 0 : i32
    return %c0_i32, %c0_i32_0 : i32, i32
  }
  func.func @transform_3(%arg0: i32) -> (i32, i32) {
    %c0_i32 = arith.constant 0 : i32
    %c0_i32_0 = arith.constant 0 : i32
    %c0_i32_1 = arith.constant 0 : i32
    return %c0_i32, %c0_i32_0 : i32, i32
  }
  func.func @transform_4(%arg0: i32) -> (i32, i32) {
    %c0_i32 = arith.constant 0 : i32
    %c0_i32_0 = arith.constant 0 : i32
    %c0_i32_1 = arith.constant 0 : i32
    return %c0_i32, %c0_i32_0 : i32, i32
  }
  func.func @transform_5(%arg0: i32) -> (i32, i32) {
    %c0_i32 = arith.constant 0 : i32
    %c0_i32_0 = arith.constant 0 : i32
    %c0_i32_1 = arith.constant 0 : i32
    return %c0_i32, %c0_i32_0 : i32, i32
  }
  func.func @transform_6(%arg0: i32) -> (i32, i32) {
    %c0_i32 = arith.constant 0 : i32
    %c0_i32_0 = arith.constant 0 : i32
    %c0_i32_1 = arith.constant 0 : i32
    return %c0_i32, %c0_i32_0 : i32, i32
  }
  func.func @transform_7(%arg0: i32) -> (i32, i32) {
    %c0_i32 = arith.constant 0 : i32
    %c0_i32_0 = arith.constant 0 : i32
    %c0_i32_1 = arith.constant 0 : i32
    return %c0_i32, %c0_i32_0 : i32, i32
  }
  func.func @transform_8(%arg0: i32) -> (i32, i32) {
    %c0_i32 = arith.constant 0 : i32
    %c0_i32_0 = arith.constant 0 : i32
    %c0_i32_1 = arith.constant 0 : i32
    return %c0_i32, %c0_i32_0 : i32, i32
  }
  func.func @transform_9(%arg0: i32) -> (i32, i32) {
    %c0_i32 = arith.constant 0 : i32
    %c0_i32_0 = arith.constant 0 : i32
    %c0_i32_1 = arith.constant 0 : i32
    return %c0_i32, %c0_i32_0 : i32, i32
  }
  func.func @transform_10(%arg0: i32) -> (i32, i32) {
    %c0_i32 = arith.constant 0 : i32
    %c0_i32_0 = arith.constant 0 : i32
    %c0_i32_1 = arith.constant 0 : i32
    return %c0_i32, %c0_i32_0 : i32, i32
  }
  func.func @transform_11(%arg0: i32) -> (i32, i32) {
    %c0_i32 = arith.constant 0 : i32
    %c0_i32_0 = arith.constant 0 : i32
    %c0_i32_1 = arith.constant 0 : i32
    return %c0_i32, %c0_i32_0 : i32, i32
  }
  func.func @transform_12(%arg0: i32) -> (i32, i32) {
    %c0_i32 = arith.constant 0 : i32
    %c0_i32_0 = arith.constant 0 : i32
    %c0_i32_1 = arith.constant 0 : i32
    return %c0_i32, %c0_i32_0 : i32, i32
  }
  func.func @transform_13(%arg0: i32) -> (i32, i32, i32, i32) {
    %c0_i32 = arith.constant 0 : i32
    %c0_i32_0 = arith.constant 0 : i32
    %c0_i32_1 = arith.constant 0 : i32
    %c0_i32_2 = arith.constant 0 : i32
    return %arg0, %c0_i32, %c0_i32_0, %c0_i32_1 : i32, i32, i32, i32
  }
}

</mosaic_0001>

<bundles_post_ra>
// kernel: dec_block_forward.1
= control target key start
LH: loop header
LB: loop body
LE: loop exit
PB: predicated region body
PF: predicated region fallthrough
CT: control target
= control target key end

     0   :  { %18 = vsyncpa [#allocation6], 0  ;;  %s11580_s0 = inlined_call_operand.vmem [shape: f32[2,8,8,64], index: 0, kind: input, shape index: {}]   ;;  %s11581_s1 = inlined_call_operand.vmem [shape: f32[2,16,16,64], index: 1, kind: input, shape index: {}]   ;;  %s11582_s2 = inlined_call_operand.vmem [shape: f32[256,64], index: 2, kind: input, shape index: {}]   ;;  %s11583_s3 = inlined_call_operand.vmem [shape: bf16[256,64], index: 3, kind: input, shape index: {}]   ;;  %s11584_s4 = inlined_call_operand.vmem [shape: f32[1,64], index: 4, kind: input, shape index: {}]   ;;  %s11585_s5 = inlined_call_operand.vmem [shape: bf16[1152,32], index: 5, kind: input, shape index: {}]   ;;  %s11586_s6 = inlined_call_operand.vmem [shape: f32[1,32], index: 6, kind: input, shape index: {}]   ;;  %s11587_s7 = inlined_call_operand.vmem [shape: f32[1,32], index: 7, kind: input, shape index: {}]   ;;  %s11588_s8 = inlined_call_operand.vmem [shape: f32[1,32], index: 8, kind: input, shape index: {}]   ;;  %s11589_s9 = inlined_call_operand.vmem [shape: bf16[288,32], index: 9, kind: input, shape index: {}]   ;;  %s11590_s10 = inlined_call_operand.vmem [shape: f32[1,32], index: 10, kind: input, shape index: {}]   ;;  %s11591_s11 = inlined_call_operand.vmem [shape: f32[1,32], index: 11, kind: input, shape index: {}]   ;;  %s11592_s12 = inlined_call_operand.vmem [shape: f32[1,32], index: 12, kind: input, shape index: {}]   ;;  %s11593_s13 = inlined_call_operand.hbm [shape: f32[2,16,16,32], index: 13, kind: output, shape index: {}]  }
   0x1   :  { %20 = vsyncpa [#allocation6 + $0x1], 0  ;;  %s7712_s25 = smov 0   ;;  %s7714_s26 = smov 0  }
   0x2   :  { %s7716_s27 = smov 0   ;;  %s7718_s28 = smov 0  }
   0x3 LB: > { %11685 = sst [smem:[#allocation8_spill]] %s7629_s27  ;;  %s7733_s29 = sadd.s32 4294967295, %s7633_s28   ;;  %s7633_s28 = sphi %s7718_s28, %s11905_s28   ;;  %s7629_s27 = sphi %s7716_s27, %s11907_s27   ;;  %s7625_s26 = sphi %s7714_s26, %s11909_s26   ;;  %s7621_s25 = sphi %s7712_s25, %s11908_s25  }
   0x4   : > { %s5844_s30 = sadd.s32 4294967294, %s7633_s28   ;;  %s7737_s14 = sadd.s32 1, %s7633_s28  }
   0x5   : > { %11686 = sst [smem:[#allocation9_spill]] %s7737_s14  ;;  %s316_s15 = sadd.s32 1, %s7629_s27 }
   0x6   : > { %s313_s16 = ssub.s32 %s7633_s28, %s7737_s14  ;;  %p326_p0 = scmp.ne.s32.totalorder %s7629_s27, %s7625_s26 }
   0x7   : > { %p314_p1 = scmp.eq.s32.totalorder %s313_s16, 0  ;;  %p327_p2 = scmp.eq.s32.totalorder %s7733_s29, 1 }
   0x8   : > { %p332_p3 = scmp.ne.s32.totalorder %s7625_s26, %s7621_s25  ;;  %p333_p4 = scmp.eq.s32.totalorder %s5844_s30, 1 }
   0x9   : > { %s7748_s17 = scalar_select %p314_p1, %s7629_s27, %s316_s15  }
   0xa   : > { %p7750_p5 = por %p327_p2, %p326_p0  ;;  %p7754_p6 = por %p333_p4, %p332_p3 }
   0xb   : > { %11687 = sst [smem:[#allocation10_spill]] %s7748_s17  ;;  %p5847_p7 = scmp.ge.s32.totalorder %s7633_s28, 1 }
   0xc   : > { %p400_p8 = scmp.lt.s32.totalorder %s7633_s28, 3 }
   0xe   : > { %p401_p9 = pnand %p5847_p7, %p400_p8 }
  0x10   : > { %404 = sbr.rel (%p401_p9) target bundleno = 2047 (0x7ff), region = 72 }
  0x17   : > { %p449_p10 = scmp.lt.s32.totalorder %s7733_s29, 1  ;;  %vm460_vm0 = vcmask 523264   ;;  %v7635_v0 = vmov 0.0   ;;  %v7429_v1 = vld [vmem:[%s11583_s3 + $0x40] sm:$0xff]   ;;  %vm462_vm1 = vcmask 516096   ;;  %v7431_v3 = vld [vmem:[%s11583_s3 + $0x48] sm:$0xff]  }
  0x18   : > { %461 = vst.msk [vmem:[#allocation2] sm:$0xff] %vm460_vm0, %v7635_v0  ;;  %464 = vst.msk [vmem:[#allocation2 + $0x10] sm:$0xff] %vm460_vm0, %v7635_v0  ;;  %v7430_v2 = vld [vmem:[%s11583_s3] sm:$0xff]   ;;  %6022 = vmatprep.subr.bf16.mxu0 %v7429_v1  ;;  %v7432_v4 = vld [vmem:[%s11583_s3 + $0x8] sm:$0xff]   ;;  %s11597_s27 = smov 64   ;;  %vm640_vm2 = vcmask 1046528  }
  0x19   : > { %466 = vst.msk [vmem:[#allocation2 + $0x20] sm:$0xff] %vm460_vm0, %v7635_v0  ;;  %468 = vst.msk [vmem:[#allocation2 + $0x30] sm:$0xff] %vm460_vm0, %v7635_v0  ;;  %s7836_s22 = scalar_select %p449_p10, %s7733_s29, 1  ;;  %6023 = vmatpush3.bf16.msra.mxu0 %v7430_v2  ;;  %v7433_v5 = vld [vmem:[%s11583_s3 + $0x50] sm:$0xff]   ;;  %v7435_v15 = vld [vmem:[%s11583_s3 + $0x58] sm:$0xff]   ;;  %vm1715_vm3 = vcmask 1045504  }
  0x1a   : > { %470 = vst.msk [vmem:[#allocation2 + $0x40] sm:$0xff] %vm460_vm0, %v7635_v0  ;;  %472 = vst.msk [vmem:[#allocation2 + $0x50] sm:$0xff] %vm460_vm0, %v7635_v0  ;;  %6024 = vmatprep.subr.bf16.mxu0 %v7431_v3  ;;  %v7434_v14 = vld [vmem:[%s11583_s3 + $0x10] sm:$0xff]   ;;  %v7436_v16 = vld [vmem:[%s11583_s3 + $0x18] sm:$0xff]   ;;  %vm534_vm4 = vcmask 261120   ;;  %vm537_vm5 = vcmask 254976  }
  0x1b   : > { %474 = vst.msk [vmem:[#allocation2 + $0x60] sm:$0xff] %vm460_vm0, %v7635_v0  ;;  %476 = vst.msk [vmem:[#allocation2 + $0x70] sm:$0xff] %vm460_vm0, %v7635_v0  ;;  %s6019_s16 = sshll.u32 %s7836_s22, 6  ;;  %v7437_v17 = vld [vmem:[%s11583_s3 + $0x60] sm:$0xff]   ;;  %v7439_v29 = vld [vmem:[%s11583_s3 + $0x68] sm:$0xff]   ;;  %s7637_s15 = smov 32  }
  0x1c   : > { %478 = vst.msk [vmem:[#allocation2 + $0x80] sm:$0xff] %vm460_vm0, %v7635_v0  ;;  %480 = vst [vmem:[#allocation3] sm:$0xff] %v7635_v0  ;;  %s453_s14 = scalar_lea.vmem %s11580_s0, %s6019_s16  ;;  %v7438_v28 = vld [vmem:[%s11583_s3 + $0x20] sm:$0xff]   ;;  %v7440_v32 = vld [vmem:[%s11583_s3 + $0x28] sm:$0xff]   ;;  %vm4678_vm6 = vcmask 785408   ;;  %s7639_s16 = smov [#allocation5]  }
  0x1d   : > { %482 = vst [vmem:[#allocation3 + $0x10] sm:$0x3] %v7635_v0  ;;  %483 = vst [vmem:[#allocation3 + $0x18] sm:$0xff] %v7635_v0  ;;  %v590_v6 = vld [vmem:[%s453_s14] sm:$0xff]  ;;  %v591_v7 = vld [vmem:[%s453_s14 + $0x8] sm:$0xff]  ;;  %6025 = vmatpush3.bf16.msra.mxu0 %v7432_v4  ;;  %s7575_s20 = sshll.u32 %s7639_s16, 4  ;;  %s7576_s20 = int_to_ptr.vmem [resolvable:$false] %s7575_s20 }
  0x1e   : > { %484 = vst [vmem:[#allocation3 + $0x20] sm:$0xff] %v7635_v0  ;;  %485 = vst [vmem:[#allocation3 + $0x28] sm:$0x3] %v7635_v0  ;;  %v593_v8 = vld [vmem:[%s453_s14 + $0x18] sm:$0xff]  ;;  %v594_v9 = vld [vmem:[%s453_s14 + $0x20] sm:$0xff]  ;;  %6026 = vmatprep.subr.bf16.mxu0 %v7433_v5 }
  0x1f   : > { %486 = vst [vmem:[#allocation3 + $0x30] sm:$0xff] %v7635_v0  ;;  %487 = vst [vmem:[#allocation3 + $0x38] sm:$0xff] %v7635_v0  ;;  %v592_v10 = vld [vmem:[%s453_s14 + $0x10] sm:$0xff]  ;;  %v595_v11 = vld [vmem:[%s453_s14 + $0x28] sm:$0xff] }
  0x20   : > { %488 = vst [vmem:[#allocation3 + $0x40] sm:$0x3] %v7635_v0  ;;  %489 = vst [vmem:[#allocation3 + $0x48] sm:$0xff] %v7635_v0  ;;  %v596_v12 = vld [vmem:[%s453_s14 + $0x30] sm:$0xff]  ;;  %v597_v13 = vld [vmem:[%s453_s14 + $0x38] sm:$0xff]  ;;  %s6020_s14 = sshll.u32 %s7836_s22, 8 }
  0x21   : > { %490 = vst [vmem:[#allocation3 + $0x50] sm:$0xff] %v7635_v0  ;;  %491 = vst [vmem:[#allocation3 + $0x58] sm:$0x3] %v7635_v0  ;;  %6027 = vmatpush3.bf16.msra.mxu0 %v7434_v14  ;;  %v7441_v34 = vld [vmem:[%s11583_s3 + $0x70] sm:$0xff]   ;;  %v7443_v36 = vld [vmem:[%s11583_s3 + $0x78] sm:$0xff]   ;;  %s7955_s24 = scalar_lea.vmem %s11581_s1, %s6020_s14  ;;  %s7638_s14 = smov 96  }
  0x22   : > { %492 = vst [vmem:[#allocation3 + $0x60] sm:$0xff] %v7635_v0  ;;  %493 = vst [vmem:[#allocation3 + $0x68] sm:$0xff] %v7635_v0  ;;  %6028 = vmatprep.subr.bf16.mxu0 %v7435_v15  ;;  %v7442_v35 = vld [vmem:[%s11583_s3 + $0x30] sm:$0xff]   ;;  %v7444_v37 = vld [vmem:[%s11583_s3 + $0x38] sm:$0xff]   ;;  %s446_s22 = sand.u32 1, %s7625_s26  }
  0x23   : > { %494 = vst [vmem:[#allocation3 + $0x70] sm:$0x3] %v7635_v0  ;;  %495 = vst [vmem:[#allocation3 + $0x78] sm:$0xff] %v7635_v0  ;;  %v7889_v27 = vld [vmem:[#allocation2 + $0x80] sm:$0xff]  ;;  %s5848_s21 = sshll.u32 %s446_s22, 8  ;;  %s11539_s17 = scalar_lea.sflag [#allocation6], %s446_s22 }
  0x24   : > { %496 = vst [vmem:[#allocation3 + $0x80] sm:$0xff] %v7635_v0  ;;  %497 = vst [vmem:[#allocation3 + $0x88] sm:$0x3] %v7635_v0  ;;  %v662_v5 = vrot.slane %v7889_v27, 1  ;;  %s11361_s23 = scalar_lea.vmem [#allocation5], %s5848_s21  ;;  %s7577_s21 = scalar_lea.vmem %s7576_s20, 8192 }
  0x25   : > { %498 = vst [vmem:[#allocation3 + $0x90] sm:$0xff] %v7635_v0  ;;  %499 = vst [vmem:[#allocation3 + $0x98] sm:$0xff] %v7635_v0  ;;  %6029 = vmatpush3.bf16.msra.mxu0 %v7436_v16 }
  0x26   : > { %500 = vst [vmem:[#allocation3 + $0xa0] sm:$0x3] %v7635_v0  ;;  %501 = vst [vmem:[#allocation3 + $0xa8] sm:$0xff] %v7635_v0  ;;  %6030 = vmatprep.subr.bf16.mxu0 %v7437_v17 }
  0x27   : > { %502 = vst [vmem:[#allocation3 + $0xb0] sm:$0xff] %v7635_v0  ;;  %503 = vst [vmem:[#allocation3 + $0xb8] sm:$0x3] %v7635_v0 }
  0x28   : > { %504 = vst [vmem:[#allocation3 + $0xc0] sm:$0xff] %v7635_v0  ;;  %505 = vst [vmem:[#allocation3 + $0xc8] sm:$0xff] %v7635_v0 }
  0x29   : > { %506 = vst [vmem:[#allocation3 + $0xd0] sm:$0x3] %v7635_v0  ;;  %507 = vst [vmem:[#allocation3 + $0xd8] sm:$0xff] %v7635_v0  ;;  %6031 = vmatpush3.bf16.msra.mxu0 %v7438_v28 }
  0x2a   : > { %508 = vst [vmem:[#allocation3 + $0xe0] sm:$0xff] %v7635_v0  ;;  %509 = vst [vmem:[#allocation3 + $0xe8] sm:$0x3] %v7635_v0  ;;  %6032 = vmatprep.subr.bf16.mxu0 %v7439_v29 }
  0x2b   : > { %510 = vst [vmem:[#allocation3 + $0xf0] sm:$0xff] %v7635_v0  ;;  %511 = vst [vmem:[#allocation3 + $0xf8] sm:$0xff] %v7635_v0 }
  0x2c   : > { %512 = vst [vmem:[#allocation3 + $0x100] sm:$0x3] %v7635_v0  ;;  %513 = vst [vmem:[#allocation3 + $0x108] sm:$0xff] %v7635_v0 }
  0x2d   : > { %514 = vst [vmem:[#allocation3 + $0x110] sm:$0xff] %v7635_v0  ;;  %515 = vst [vmem:[#allocation3 + $0x118] sm:$0x3] %v7635_v0  ;;  %6033 = vmatpush3.bf16.msra.mxu0 %v7440_v32 }
  0x2e   : > { %516 = vst [vmem:[#allocation3 + $0x120] sm:$0xff] %v7635_v0  ;;  %517 = vst [vmem:[#allocation3 + $0x128] sm:$0xff] %v7635_v0  ;;  %6034 = vmatprep.subr.bf16.mxu0 %v7441_v34 }
  0x2f   : > { %518 = vst [vmem:[#allocation3 + $0x130] sm:$0x3] %v7635_v0  ;;  %519 = vst [vmem:[#allocation3 + $0x138] sm:$0xff] %v7635_v0 }
  0x30   : > { %520 = vst [vmem:[#allocation3 + $0x140] sm:$0xff] %v7635_v0  ;;  %521 = vst [vmem:[#allocation3 + $0x148] sm:$0x3] %v7635_v0 }
  0x31   : > { %522 = vst [vmem:[#allocation3 + $0x150] sm:$0xff] %v7635_v0  ;;  %523 = vst [vmem:[#allocation3 + $0x158] sm:$0xff] %v7635_v0  ;;  %6035 = vmatpush3.bf16.msra.mxu0 %v7442_v35 }
  0x32   : > { %524 = vst [vmem:[#allocation3 + $0x160] sm:$0x3] %v7635_v0  ;;  %525 = vst [vmem:[#allocation3 + $0x168] sm:$0xff] %v7635_v0  ;;  %6036 = vmatprep.subr.bf16.mxu0 %v7443_v36 }
  0x33   : > { %526 = vst [vmem:[#allocation3 + $0x170] sm:$0xff] %v7635_v0  ;;  %527 = vst [vmem:[#allocation3 + $0x178] sm:$0x3] %v7635_v0 }
  0x34   : > { %528 = vst [vmem:[#allocation3 + $0x180] sm:$0xff] %v7635_v0  ;;  %529 = vst [vmem:[#allocation3 + $0x188] sm:$0xff] %v7635_v0 }
  0x35   : > { %530 = vst [vmem:[#allocation3 + $0x190] sm:$0x3] %v7635_v0  ;;  %533 = vst [vmem:[#allocation3 + $0x1a8] sm:$0x3] %v7635_v0  ;;  %6037 = vmatpush3.bf16.msra.mxu0 %v7444_v37 }
  0x36   : > { %467 = vst.msk [vmem:[#allocation2 + $0x28] sm:$0x1] %vm462_vm1, %v7635_v0  ;;  %469 = vst.msk [vmem:[#allocation2 + $0x38] sm:$0x1] %vm462_vm1, %v7635_v0 }
  0x37   : > { %463 = vst.msk [vmem:[#allocation2 + $0x8] sm:$0x1] %vm462_vm1, %v7635_v0  ;;  %465 = vst.msk [vmem:[#allocation2 + $0x18] sm:$0x1] %vm462_vm1, %v7635_v0 }
  0x38   : > { %471 = vst.msk [vmem:[#allocation2 + $0x48] sm:$0x1] %vm462_vm1, %v7635_v0  ;;  %473 = vst.msk [vmem:[#allocation2 + $0x58] sm:$0x1] %vm462_vm1, %v7635_v0 }
  0x39   : > { %475 = vst.msk [vmem:[#allocation2 + $0x68] sm:$0x1] %vm462_vm1, %v7635_v0  ;;  %477 = vst.msk [vmem:[#allocation2 + $0x78] sm:$0x1] %vm462_vm1, %v7635_v0 }
  0x3a   : > { %479 = vst.msk [vmem:[#allocation2 + $0x88] sm:$0x1] %vm462_vm1, %v7635_v0 }
  0x3b   : > { %598 = vst.msk [vmem:[#allocation2] sm:$0xff] %vm460_vm0, %v590_v6  ;;  %599 = vst.msk [vmem:[#allocation2 + $0x10] sm:$0xff] %vm460_vm0, %v591_v7 }
  0x3c   : > { %601 = vst.msk [vmem:[#allocation2 + $0x30] sm:$0xff] %vm460_vm0, %v593_v8  ;;  %602 = vst.msk [vmem:[#allocation2 + $0x40] sm:$0xff] %vm460_vm0, %v594_v9 }
  0x3d   : > { %600 = vst.msk [vmem:[#allocation2 + $0x20] sm:$0xff] %vm460_vm0, %v592_v10  ;;  %603 = vst.msk [vmem:[#allocation2 + $0x50] sm:$0xff] %vm460_vm0, %v595_v11  ;;  %v613_v38 = vld [vmem:[#allocation2 + $0x38] sm:$0x1]  ;;  %v611_v44 = vld [vmem:[#allocation2 + $0x28] sm:$0x1] }
  0x3e   : > { %604 = vst.msk [vmem:[#allocation2 + $0x60] sm:$0xff] %vm460_vm0, %v596_v12  ;;  %605 = vst.msk [vmem:[#allocation2 + $0x70] sm:$0xff] %vm460_vm0, %v597_v13  ;;  %v607_v39 = vld [vmem:[#allocation2 + $0x8] sm:$0x1]  ;;  %v609_v40 = vld [vmem:[#allocation2 + $0x18] sm:$0x1] }
  0x3f   : > { %v615_v41 = vld [vmem:[#allocation2 + $0x48] sm:$0x1]  ;;  %v648_v46 = vrot.slane %v613_v38, 1  ;;  %v642_v47 = vrot.slane %v609_v40, 1  ;;  %v676_v48 = vrot.slane %v607_v39, 1  ;;  %v645_v53 = vrot.slane %v611_v44, 1 }
  0x40   : > { %v651_v50 = vrot.slane %v615_v41, 1  ;;  %v617_v51 = vld [vmem:[#allocation2 + $0x58] sm:$0x1]  ;;  %v619_v54 = vld [vmem:[#allocation2 + $0x68] sm:$0x1]  ;;  %v916_v40 = vld [vmem:[%s11582_s2] sm:$0xff] }
  0x41   : > { %v654_v61 = vrot.slane %v617_v51, 1  ;;  %v621_v62 = vld [vmem:[#allocation2 + $0x78] sm:$0x1]  ;;  %v657_v3 = vrot.slane %v619_v54, 1  ;;  %v623_v4 = vld [vmem:[#allocation2 + $0x88] sm:$0x1]  ;;  %6720 = vmatprep.mubr.msk.f32.mxu1 %vm460_vm0, %v916_v40 }
  0x42   : > { %v606_v18 = vld [vmem:[#allocation2] sm:$0xff]  ;;  %v608_v19 = vld [vmem:[#allocation2 + $0x10] sm:$0xff]  ;;  %v660_v12 = vrot.slane %v621_v62, 1  ;;  %v663_v17 = vrot.slane %v623_v4, 1  ;;  %v1277_v41 = vld [vmem:[%s7955_s24 + $0x8] sm:$0xff] }
  0x43   : > { %v612_v20 = vld [vmem:[#allocation2 + $0x30] sm:$0xff]  ;;  %v6929_v21 = vpack.i.bf16 %v606_v18, %v608_v19  ;;  %v614_v22 = vld [vmem:[#allocation2 + $0x40] sm:$0xff]  ;;  %v641_v42 = vrot.slane %v608_v19, 1  ;;  %v675_v43 = vrot.slane %v606_v18, 1  ;;  %v1279_v44 = vld [vmem:[%s7955_s24 + $0x18] sm:$0xff] }
  0x44   : > { %v7883_v23 = vld [vmem:[#allocation2 + $0x50] sm:$0xff]  ;;  %v6934_v24 = vpack.i.bf16 %v614_v22, %v612_v20  ;;  %v7885_v25 = vld [vmem:[#allocation2 + $0x20] sm:$0xff]  ;;  %v647_v45 = vrot.slane %v612_v20, 1  ;;  %v650_v49 = vrot.slane %v614_v22, 1 }
  0x45   : > { %v7887_v26 = vld [vmem:[#allocation2 + $0x60] sm:$0xff]  ;;  %6930 = vrot.lane.b32.xlu0 %v6929_v21, %s11597_s27  ;;  %v7901_v31 = vld [vmem:[#allocation2 + $0x70] sm:$0xff]  ;;  %v644_v52 = vrot.slane %v7885_v25, 1  ;;  %v653_v56 = vrot.slane %v7883_v23, 1  ;;  %v643_v59 = vsel %vm640_vm2, %v641_v42, %v642_v47  ;;  %v677_v60 = vsel %vm640_vm2, %v675_v43, %v676_v48  ;;  %v1283_v48 = vld [vmem:[%s7955_s24 + $0x38] sm:$0xff] }
  0x46   : > { %6935 = vrot.lane.b32.xlu1 %v6934_v24, %s11597_s27  ;;  %v6939_v30 = vpack.i.bf16 %v7887_v26, %v7883_v23  ;;  %v6944_v33 = vpack.i.bf16 %v7889_v27, %v7901_v31  ;;  %v656_v55 = vrot.slane %v7887_v26, 1  ;;  %v649_v58 = vsel %vm640_vm2, %v647_v45, %v648_v46  ;;  %v1276_v42 = vld [vmem:[%s7955_s24] sm:$0xff]  ;;  %v1278_v43 = vld [vmem:[%s7955_s24 + $0x10] sm:$0xff]  ;;  %v1281_v46 = vld [vmem:[%s7955_s24 + $0x28] sm:$0xff] }
  0x47   : > { %v652_v2 = vsel %vm640_vm2, %v650_v49, %v651_v50  ;;  %v646_v8 = vsel %vm640_vm2, %v644_v52, %v645_v53  ;;  %v659_v9 = vrot.slane %v7901_v31, 1  ;;  %v655_v21 = vsel %vm640_vm2, %v653_v56, %v654_v61  ;;  %v1280_v45 = vld [vmem:[%s7955_s24 + $0x20] sm:$0xff]  ;;  %v1282_v47 = vld [vmem:[%s7955_s24 + $0x30] sm:$0xff]  ;;  %v1285_v50 = vld [vmem:[%s7955_s24 + $0x48] sm:$0xff] }
  0x48   : > { %v658_v22 = vsel %vm640_vm2, %v656_v55, %v657_v3  ;;  %v664_v31 = vsel %vm640_vm2, %v662_v5, %v663_v17  ;;  %v1284_v49 = vld [vmem:[%s7955_s24 + $0x40] sm:$0xff]  ;;  %v1286_v51 = vld [vmem:[%s7955_s24 + $0x50] sm:$0xff]  ;;  %v1287_v52 = vld [vmem:[%s7955_s24 + $0x58] sm:$0xff] }
  0x49   : > { %681 = vrot.lane.b32.xlu0 %v7885_v25, %s11597_s27  ;;  %v7445_v53 = vld [vmem:[%s11585_s5 + $0x40] sm:$0xff]   ;;  %v7447_v55 = vld [vmem:[%s11585_s5 + $0x48] sm:$0xff]   ;;  %v1291_v61 = vld [vmem:[%s7955_s24 + $0x78] sm:$0xff] }
  0x4a   : > { %6940 = vrot.lane.b32.xlu1 %v6939_v30, %s11597_s27  ;;  %v661_v30 = vsel %vm640_vm2, %v659_v9, %v660_v12  ;;  %v7446_v54 = vld [vmem:[%s11585_s5] sm:$0xff]   ;;  %6102 = vmatprep.subr.bf16.mxu0 %v7445_v53  ;;  %v7451_v62 = vld [vmem:[%s11585_s5 + $0x10] sm:$0xff]   ;;  %v1295_v5 = vld [vmem:[%s7955_s24 + $0x98] sm:$0xff] }
  0x4b   : > { %v1288_v56 = vld [vmem:[%s7955_s24 + $0x60] sm:$0xff]  ;;  %v1294_v4 = vld [vmem:[%s7955_s24 + $0x90] sm:$0xff]  ;;  %v1297_v9 = vld [vmem:[%s7955_s24 + $0xa8] sm:$0xff] }
  0x4c   : > { %v7457_v3 = vld [vmem:[%s11585_s5 + $0x60] sm:$0xff]   ;;  %v1299_v12 = vld [vmem:[%s7955_s24 + $0xb8] sm:$0xff]  ;;  %v7456_v53 = vld [vmem:[%s11585_s5 + $0x88] sm:$0xff]  }
  0x4d   : > { %6945 = vrot.lane.b32.xlu0 %v6944_v33, %s11597_s27  ;;  %v1300_v17 = vld [vmem:[%s7955_s24 + $0xc0] sm:$0xff] }
  0x4e   : > { %1340 = vrot.lane.b32.xlu1 %v1276_v42, %s11597_s27 }
  0x51   : > { %1342 = vrot.lane.b32.xlu0 %v1277_v41, %s11597_s27 }
  0x52   : > { %1344 = vrot.lane.b32.xlu1 %v1278_v43, %s11597_s27 }
  0x55   : > { %1346 = vrot.lane.b32.xlu0 %v1279_v44, %s11597_s27 }
  0x56   : > { %1348 = vrot.lane.b32.xlu1 %v1280_v45, %s11597_s27 }
  0x59   : > { %1350 = vrot.lane.b32.xlu0 %v1281_v46, %s11597_s27 }
  0x5a   : > { %1352 = vrot.lane.b32.xlu1 %v1282_v47, %s11597_s27  ;;  %v7450_v47 = vld [vmem:[%s11585_s5 + $0xc0] sm:$0xff]  }
  0x5d   : > { %1354 = vrot.lane.b32.xlu0 %v1283_v48, %s11597_s27  ;;  %v917_v48 = vld [vmem:[%s11582_s2 + $0x8] sm:$0xff] }
  0x5e   : > { %1356 = vrot.lane.b32.xlu1 %v1284_v49, %s11597_s27  ;;  %v7452_v49 = vld [vmem:[%s11585_s5 + $0x80] sm:$0xff]  }
  0x61   : > { %1358 = vrot.lane.b32.xlu0 %v1285_v50, %s11597_s27  ;;  %v918_v50 = vld [vmem:[%s11582_s2 + $0x10] sm:$0xff] }
  0x62   : > { %1360 = vrot.lane.b32.xlu1 %v1286_v51, %s11597_s27  ;;  %v7454_v51 = vld [vmem:[%s11585_s5 + $0xc8] sm:$0xff]  }
  0x65   : > { %1362 = vrot.lane.b32.xlu0 %v1287_v52, %s11597_s27  ;;  %v919_v52 = vld [vmem:[%s11582_s2 + $0x18] sm:$0xff] }
  0x66   : > { %1364 = vrot.lane.b32.xlu1 %v1288_v56, %s11597_s27  ;;  %v921_v56 = vld [vmem:[%s11582_s2 + $0x28] sm:$0xff] }
  0xb7   : > { %v6931_v57 = vpop.permute.xlu0 %6930 }
  0xb8   : > { %v6933_v63 = vunpack.i.h.bf16 %v6931_v57  ;;  %v6932_v0 = vunpack.i.l.bf16 %v6931_v57  ;;  %v6936_v1 = vpop.permute.xlu1 %6935  ;;  %v1289_v57 = vld [vmem:[%s7955_s24 + $0x68] sm:$0xff] }
  0xb9   : > { %v6938_v6 = vunpack.i.h.bf16 %v6936_v1  ;;  %v6937_v7 = vunpack.i.l.bf16 %v6936_v1  ;;  %1366 = vrot.lane.b32.xlu0 %v1289_v57, %s11597_s27  ;;  %v1293_v1 = vld [vmem:[%s7955_s24 + $0x88] sm:$0xff]  ;;  %v7460_v57 = vld [vmem:[%s11585_s5 + $0x90] sm:$0xff]  }
  0xba   : > { %v706_v10 = vsel %vm460_vm0, %v643_v59, %v6932_v0  ;;  %v714_v11 = vsel %vm460_vm0, %v677_v60, %v6933_v63  ;;  %v7449_v59 = vld [vmem:[%s11585_s5 + $0x50] sm:$0xff]   ;;  %v7453_v63 = vld [vmem:[%s11585_s5 + $0x58] sm:$0xff]   ;;  %v1292_v0 = vld [vmem:[%s7955_s24 + $0x80] sm:$0xff] }
  0xbb   : > { %v708_v13 = vsel %vm460_vm0, %v649_v58, %v6937_v7  ;;  %v682_v14 = vpop.permute.xlu0 %681  ;;  %v716_v15 = vpack.c.bf16 %v706_v10, %v714_v11  ;;  %v709_v16 = vsel %vm460_vm0, %v652_v2, %v6938_v6  ;;  %v7448_v58 = vld [vmem:[%s11585_s5 + $0x8] sm:$0xff]   ;;  %v1290_v60 = vld [vmem:[%s7955_s24 + $0x70] sm:$0xff]  ;;  %v7455_v2 = vld [vmem:[%s11585_s5 + $0x18] sm:$0xff]  }
  0xbc   : > { %v707_v18 = vsel %vm460_vm0, %v646_v8, %v682_v14  ;;  %v6941_v19 = vpop.permute.xlu1 %6940  ;;  %v717_v20 = vpack.c.bf16 %v709_v16, %v708_v13  ;;  %1368 = vrot.lane.b32.xlu1 %v1290_v60, %s11597_s27  ;;  %v7459_v6 = vld [vmem:[%s11585_s5 + $0x20] sm:$0xff]   ;;  %v7461_v7 = vld [vmem:[%s11585_s5 + $0x68] sm:$0xff]   ;;  %v1298_v11 = vld [vmem:[%s7955_s24 + $0xb0] sm:$0xff] }
  0xbd   : > { %v718_v23 = vpack.c.bf16 %v708_v13, %v707_v18  ;;  %v715_v24 = vpack.c.bf16 %v707_v18, %v706_v10  ;;  %883 = vmatprep.mubr.bf16.mxu0 %v716_v15  ;;  %v6943_v25 = vunpack.i.h.bf16 %v6941_v19  ;;  %v6942_v26 = vunpack.i.l.bf16 %v6941_v19  ;;  %1370 = vrot.lane.b32.xlu0 %v1291_v61, %s11597_s27  ;;  %v1296_v8 = vld [vmem:[%s7955_s24 + $0xa0] sm:$0xff]  ;;  %v7463_v10 = vld [vmem:[%s11585_s5 + $0x28] sm:$0xff]   ;;  %v923_v60 = vld [vmem:[%s11582_s2 + $0x38] sm:$0xff] }
  0xbe   : > { %v1301_v18 = vld [vmem:[%s7955_s24 + $0xc8] sm:$0xff]  ;;  %v7464_v61 = vld [vmem:[%s11585_s5 + $0x98] sm:$0xff]  }
  0xbf   : > { %884 = vmatmul.mubr.bf16.vlgmr.msra.gmra.mrb[0].mxu0 %v715_v24  ;;  %v6946_v27 = vpop.permute.xlu0 %6945  ;;  %v710_v28 = vsel %vm460_vm0, %v655_v21, %v6942_v26  ;;  %v711_v29 = vsel %vm460_vm0, %v658_v22, %v6943_v25  ;;  %v1302_v22 = vld [vmem:[%s7955_s24 + $0xd0] sm:$0xff] }
  0xc0   : > { %891 = vmatprep.mubr.bf16.mxu0 %v718_v23  ;;  %v6948_v32 = vunpack.i.h.bf16 %v6946_v27  ;;  %v6947_v33 = vunpack.i.l.bf16 %v6946_v27  ;;  %v720_v34 = vpack.c.bf16 %v710_v28, %v709_v16  ;;  %v719_v35 = vpack.c.bf16 %v711_v29, %v710_v28  ;;  %6103 = vmatpush3.bf16.msra.mxu0 %v7446_v54  ;;  %v1303_v23 = vld [vmem:[%s7955_s24 + $0xd8] sm:$0xff]  ;;  %v1304_v28 = vld [vmem:[%s7955_s24 + $0xe0] sm:$0xff] }
  0xc1   : > { %6104 = vmatprep.subr.bf16.mxu0 %v7447_v55  ;;  %1372 = vrot.lane.b32.xlu1 %v1292_v0, %s11597_s27  ;;  %v920_v54 = vld [vmem:[%s11582_s2 + $0x20] sm:$0xff]  ;;  %v7458_v55 = vld [vmem:[%s11585_s5 + $0xd0] sm:$0xff]  }
  0xc2   : > { %v712_v36 = vsel %vm460_vm0, %v661_v30, %v6947_v33  ;;  %v713_v37 = vsel %vm460_vm0, %v664_v31, %v6948_v32  ;;  %1374 = vrot.lane.b32.xlu0 %v1293_v1, %s11597_s27  ;;  %v1305_v30 = vld [vmem:[%s7955_s24 + $0xe8] sm:$0xff]  ;;  %v926_v0 = vld [vmem:[%s11582_s2 + $0x50] sm:$0xff]  ;;  %v927_v1 = vld [vmem:[%s11582_s2 + $0x58] sm:$0xff] }
  0xc3   : > { %v722_v38 = vpack.c.bf16 %v712_v36, %v711_v29  ;;  %v721_v39 = vpack.c.bf16 %v713_v37, %v712_v36 }
  0xc4   : > { %6105 = vmatpush3.bf16.msra.mxu0 %v7448_v58  ;;  %v922_v58 = vld [vmem:[%s11582_s2 + $0x30] sm:$0xff] }
  0xc5   : > { %6106 = vmatprep.subr.bf16.mxu0 %v7449_v59  ;;  %1376 = vrot.lane.b32.xlu1 %v1294_v4, %s11597_s27  ;;  %v7462_v59 = vld [vmem:[%s11585_s5 + $0xd8] sm:$0xff]   ;;  %v930_v4 = vld [vmem:[%s11582_s2 + $0x70] sm:$0xff] }
  0xc6   : > { %1378 = vrot.lane.b32.xlu0 %v1295_v5, %s11597_s27  ;;  %v931_v5 = vld [vmem:[%s11582_s2 + $0x78] sm:$0xff] }
  0xc7   : > { %892 = vmatmul.mubr.bf16.gmra.mrb[4].mxu0 %v717_v20 }
  0xc8   : > { %899 = vmatprep.mubr.bf16.mxu0 %v720_v34  ;;  %6107 = vmatpush3.bf16.msra.mxu0 %v7451_v62  ;;  %v924_v62 = vld [vmem:[%s11582_s2 + $0x40] sm:$0xff] }
  0xc9   : > { %6108 = vmatprep.subr.bf16.mxu0 %v7453_v63  ;;  %1380 = vrot.lane.b32.xlu1 %v1296_v8, %s11597_s27  ;;  %v925_v63 = vld [vmem:[%s11582_s2 + $0x48] sm:$0xff]  ;;  %v934_v8 = vld [vmem:[%s11582_s2 + $0x90] sm:$0xff] }
  0xca   : > { %1382 = vrot.lane.b32.xlu0 %v1297_v9, %s11597_s27  ;;  %v935_v9 = vld [vmem:[%s11582_s2 + $0x98] sm:$0xff] }
  0xcc   : > { %6109 = vmatpush3.bf16.msra.mxu0 %v7455_v2  ;;  %v928_v2 = vld [vmem:[%s11582_s2 + $0x60] sm:$0xff] }
  0xcd   : > { %6110 = vmatprep.subr.bf16.mxu0 %v7457_v3  ;;  %1384 = vrot.lane.b32.xlu1 %v1298_v11, %s11597_s27  ;;  %v929_v3 = vld [vmem:[%s11582_s2 + $0x68] sm:$0xff] }
  0xce   : > { %1386 = vrot.lane.b32.xlu0 %v1299_v12, %s11597_s27  ;;  %v937_v11 = vld [vmem:[%s11582_s2 + $0xa8] sm:$0xff]  ;;  %v938_v12 = vld [vmem:[%s11582_s2 + $0xb0] sm:$0xff] }
  0xcf   : > { %900 = vmatmul.mubr.bf16.gmra.mrb[8].mxu0 %v719_v35 }
  0xd0   : > { %907 = vmatprep.mubr.bf16.mxu0 %v722_v38  ;;  %6111 = vmatpush3.bf16.msra.mxu0 %v7459_v6  ;;  %v932_v6 = vld [vmem:[%s11582_s2 + $0x80] sm:$0xff] }
  0xd1   : > { %6112 = vmatprep.subr.bf16.mxu0 %v7461_v7  ;;  %1388 = vrot.lane.b32.xlu1 %v1300_v17, %s11597_s27  ;;  %v933_v7 = vld [vmem:[%s11582_s2 + $0x88] sm:$0xff]  ;;  %v943_v17 = vld [vmem:[%s11582_s2 + $0xd8] sm:$0xff] }
  0xd2   : > { %1390 = vrot.lane.b32.xlu0 %v1301_v18, %s11597_s27  ;;  %v944_v18 = vld [vmem:[%s11582_s2 + $0xe0] sm:$0xff] }
  0xd4   : > { %6113 = vmatpush3.bf16.msra.mxu0 %v7463_v10  ;;  %v936_v10 = vld [vmem:[%s11582_s2 + $0xa0] sm:$0xff] }
  0xd5   : > { %1392 = vrot.lane.b32.xlu1 %v1302_v22, %s11597_s27  ;;  %v7465_v22 = vld [vmem:[%s11585_s5 + $0x70] sm:$0xff]  }
  0xd6   : > { %1394 = vrot.lane.b32.xlu0 %v1303_v23, %s11597_s27  ;;  %v7466_v23 = vld [vmem:[%s11585_s5 + $0xe0] sm:$0xff]   ;;  %6114 = vmatprep.subr.bf16.mxu0 %v7465_v22 }
  0xd7   : > { %908 = vmatmul.mubr.bf16.gmra.mrb[12].mxu0 %v721_v39  ;;  %v8322_v22 = vld [vmem:[%s11585_s5 + $0x200] sm:$0xff]  }
  0xd9   : > { %1396 = vrot.lane.b32.xlu1 %v1304_v28, %s11597_s27  ;;  %v7470_v28 = vld [vmem:[%s11585_s5 + $0xe8] sm:$0xff]  }
  0xda   : > { %1398 = vrot.lane.b32.xlu0 %v1305_v30, %s11597_s27  ;;  %s11690_s27 = smov 64  }
 0x192   : > { %v6038_v13 = vpop.f32.mrb[0].mxu0 }
 0x193   : > { %v6039_v14 = vpop.f32.mrb[1].mxu0 }
 0x194   : > { %v6040_v15 = vadd.f32 %v6039_v14, %v6038_v13  ;;  %v6041_v16 = vpop.f32.mrb[2].mxu0  ;;  %v939_v13 = vld [vmem:[%s11582_s2 + $0xb8] sm:$0xff]  ;;  %v940_v14 = vld [vmem:[%s11582_s2 + $0xc0] sm:$0xff] }
 0x195   : > { %v6042_v19 = vpop.f32.mrb[3].mxu0 }
 0x196   : > { %v6043_v20 = vadd.f32 %v6042_v19, %v6041_v16  ;;  %v942_v16 = vld [vmem:[%s11582_s2 + $0xd0] sm:$0xff]  ;;  %v945_v19 = vld [vmem:[%s11582_s2 + $0xe8] sm:$0xff] }
 0x198   : > { %v6852_v21 = vpack.c.bf16 %v6043_v20, %v6040_v15  ;;  %v941_v15 = vld [vmem:[%s11582_s2 + $0xc8] sm:$0xff]  ;;  %v946_v20 = vld [vmem:[%s11582_s2 + $0xf0] sm:$0xff] }
 0x19a   : > { %v6044_v24 = vpop.f32.mrb[4].mxu0  ;;  %6853 = vmatprep.subr.bf16.mxu1 %v6852_v21 }
 0x19b   : > { %v6045_v25 = vpop.f32.mrb[5].mxu0  ;;  %6855 = vmatpush3.bf16.msra.mxu1 %v6852_v21  ;;  %v947_v21 = vld [vmem:[%s11582_s2 + $0xf8] sm:$0xff] }
 0x19c   : > { %v6046_v26 = vadd.f32 %v6045_v25, %v6044_v24  ;;  %v6047_v27 = vpop.f32.mrb[6].mxu0  ;;  %v7467_v24 = vld [vmem:[%s11585_s5 + $0x30] sm:$0xff]   ;;  %v7468_v25 = vld [vmem:[%s11585_s5 + $0xa0] sm:$0xff]  }
 0x19d   : > { %v6048_v29 = vpop.f32.mrb[7].mxu0  ;;  %6115 = vmatpush3.bf16.msra.mxu0 %v7467_v24 }
 0x19e   : > { %v6049_v31 = vadd.f32 %v6048_v29, %v6047_v27  ;;  %v7469_v27 = vld [vmem:[%s11585_s5 + $0x78] sm:$0xff]   ;;  %v8221_v29 = vld [vmem:[#allocation3] sm:$0xff] }
 0x19f   : > { %v1603_v30 = vrot.slane %v8221_v29, 1  ;;  %6116 = vmatprep.subr.bf16.mxu0 %v7469_v27 }
 0x1a0   : > { %v6856_v32 = vpack.c.bf16 %v6049_v31, %v6046_v26  ;;  %v8213_v26 = vld [vmem:[#allocation3 + $0x10] sm:$0x3] }
 0x1a1   : > { %v1606_v31 = vrot.slane %v8213_v26, 1 }
 0x1a2   : > { %v6050_v33 = vpop.f32.mrb[8].mxu0  ;;  %6857 = vmatprep.subr.bf16.mxu1 %v6856_v32 }
 0x1a3   : > { %v6051_v34 = vpop.f32.mrb[9].mxu0  ;;  %6859 = vmatpush3.bf16.msra.mxu1 %v6856_v32  ;;  %v7471_v32 = vld [vmem:[%s11585_s5 + $0x38] sm:$0xff]  }
 0x1a4   : > { %v6052_v35 = vadd.f32 %v6051_v34, %v6050_v33  ;;  %v6053_v36 = vpop.f32.mrb[10].mxu0  ;;  %v7472_v33 = vld [vmem:[%s11585_s5 + $0xa8] sm:$0xff]   ;;  %v1607_v34 = vsel %vm640_vm2, %v1603_v30, %v1606_v31  ;;  %6117 = vmatpush3.bf16.msra.mxu0 %v7471_v32 }
 0x1a5   : > { %v6054_v37 = vpop.f32.mrb[11].mxu0 }
 0x1a6   : > { %v6055_v38 = vadd.f32 %v6054_v37, %v6053_v36  ;;  %v1862_v36 = vpack.c.bf16 %v8221_v29, %v8221_v29  ;;  %v7473_v37 = vld [vmem:[%s11585_s5 + $0xf0] sm:$0xff]  }
 0x1a8   : > { %v6860_v39 = vpack.c.bf16 %v6055_v38, %v6052_v35  ;;  %v1863_v35 = vpack.c.bf16 %v1607_v34, %v1603_v30  ;;  %v1306_v38 = vld [vmem:[%s7955_s24 + $0xf0] sm:$0xff] }
 0x1a9   : > { %1400 = vrot.lane.b32.xlu1 %v1306_v38, %s11690_s27 }
 0x1aa   : > { %v6056_v40 = vpop.f32.mrb[12].mxu0  ;;  %6861 = vmatprep.subr.bf16.mxu1 %v6860_v39  ;;  %2531 = vmatprep.mubr.bf16.mxu0 %v1863_v35 }
 0x1ab   : > { %v6057_v41 = vpop.f32.mrb[13].mxu0  ;;  %6863 = vmatpush3.bf16.msra.mxu1 %v6860_v39  ;;  %v1307_v39 = vld [vmem:[%s7955_s24 + $0xf8] sm:$0xff]  ;;  %2532 = vmatmul.mubr.bf16.vlgmr.msra.gmra.mrb[16].mxu0 %v1862_v36 }
 0x1ac   : > { %v6058_v42 = vadd.f32 %v6057_v41, %v6056_v40  ;;  %v6059_v43 = vpop.f32.mrb[14].mxu0  ;;  %v7474_v40 = vld [vmem:[%s11585_s5 + $0xb0] sm:$0xff]   ;;  %1402 = vrot.lane.b32.xlu0 %v1307_v39, %s11690_s27  ;;  %v7475_v41 = vld [vmem:[%s11585_s5 + $0x140] sm:$0xff]  }
 0x1ad   : > { %v6060_v44 = vpop.f32.mrb[15].mxu0  ;;  %6326 = vmatprep.subr.bf16.mxu0 %v7475_v41 }
 0x1ae   : > { %v6061_v45 = vadd.f32 %v6060_v44, %v6059_v43  ;;  %v7477_v43 = vld [vmem:[%s11585_s5 + $0xf8] sm:$0xff]  }
 0x1af   : > { %v7478_v44 = vld [vmem:[%s11585_s5 + $0xb8] sm:$0xff]  }
 0x1b0   : > { %v6864_v46 = vpack.c.bf16 %v6061_v45, %v6058_v42  ;;  %v7476_v42 = vld [vmem:[%s11585_s5 + $0x100] sm:$0xff]   ;;  %v7479_v45 = vld [vmem:[%s11585_s5 + $0x148] sm:$0xff]  }
 0x1b1   : > { %6327 = vmatpush3.bf16.msra.mxu0 %v7476_v42 }
 0x1b2   : > { %6865 = vmatprep.subr.bf16.mxu1 %v6864_v46  ;;  %6328 = vmatprep.subr.bf16.mxu0 %v7479_v45  ;;  %v7488_v45 = vld [vmem:[%s11585_s5 + $0x180] sm:$0xff]  }
 0x1b3   : > { %6867 = vmatpush3.bf16.msra.mxu1 %v6864_v46  ;;  %v7480_v46 = vld [vmem:[%s11585_s5 + $0x108] sm:$0xff]  }
 0x1b4   : > { %6214 = vmatprep.subr.bf16.mxu1 %v7450_v47  ;;  %v7481_v47 = vld [vmem:[%s11585_s5 + $0x150] sm:$0xff]  }
 0x1b5   : > { %6329 = vmatpush3.bf16.msra.mxu0 %v7480_v46 }
 0x1b6   : > { %6721 = vmatmul.mubr.msk.f32.vlgmr.msra.gmra.mrb[0].mxu1 %vm460_vm0, %v917_v48  ;;  %6330 = vmatprep.subr.bf16.mxu0 %v7481_v47  ;;  %v7482_v48 = vld [vmem:[%s11585_s5 + $0x110] sm:$0xff]  }
 0x1b7   : > { %6723 = vmatprep.mubr.msk.f32.mxu1 %vm460_vm0, %v918_v50  ;;  %6215 = vmatpush3.bf16.msra.mxu1 %v7452_v49  ;;  %v7483_v49 = vld [vmem:[%s11585_s5 + $0x158] sm:$0xff]  }
 0x1b8   : > { %6216 = vmatprep.subr.bf16.mxu1 %v7454_v51  ;;  %v7484_v50 = vld [vmem:[%s11585_s5 + $0x118] sm:$0xff]   ;;  %v7485_v51 = vld [vmem:[%s11585_s5 + $0x160] sm:$0xff]  }
 0x1b9   : > { %6331 = vmatpush3.bf16.msra.mxu0 %v7482_v48 }
 0x1ba   : > { %6724 = vmatmul.mubr.msk.f32.gmra.mrb[2].mxu1 %vm460_vm0, %v919_v52  ;;  %6332 = vmatprep.subr.bf16.mxu0 %v7483_v49  ;;  %v7486_v52 = vld [vmem:[%s11585_s5 + $0x1c0] sm:$0xff]  }
 0x1bb   : > { %6726 = vmatprep.mubr.msk.f32.mxu1 %vm460_vm0, %v920_v54  ;;  %6217 = vmatpush3.bf16.msra.mxu1 %v7456_v53  ;;  %v7487_v53 = vld [vmem:[%s11585_s5 + $0x120] sm:$0xff]   ;;  %v7489_v54 = vld [vmem:[%s11585_s5 + $0x168] sm:$0xff]  }
 0x1bc   : > { %6218 = vmatprep.subr.bf16.mxu1 %v7458_v55  ;;  %v7491_v55 = vld [vmem:[%s11585_s5 + $0x128] sm:$0xff]  }
 0x1bd   : > { %6333 = vmatpush3.bf16.msra.mxu0 %v7484_v50 }
 0x1be   : > { %6727 = vmatmul.mubr.msk.f32.gmra.mrb[4].mxu1 %vm460_vm0, %v921_v56  ;;  %6334 = vmatprep.subr.bf16.mxu0 %v7485_v51  ;;  %v7493_v56 = vld [vmem:[%s11585_s5 + $0x170] sm:$0xff]  }
 0x1bf   : > { %6729 = vmatprep.mubr.msk.f32.mxu1 %vm460_vm0, %v922_v58  ;;  %6219 = vmatpush3.bf16.msra.mxu1 %v7460_v57  ;;  %v7495_v57 = vld [vmem:[%s11585_s5 + $0x130] sm:$0xff]   ;;  %v7497_v58 = vld [vmem:[%s11585_s5 + $0x178] sm:$0xff]  }
 0x1c0   : > { %6220 = vmatprep.subr.bf16.mxu1 %v7462_v59  ;;  %v7499_v59 = vld [vmem:[%s11585_s5 + $0x138] sm:$0xff]  }
 0x1c1   : > { %6335 = vmatpush3.bf16.msra.mxu0 %v7487_v53  ;;  %v7490_v53 = vld [vmem:[%s11585_s5 + $0x1c8] sm:$0xff]  }
 0x1c2   : > { %6730 = vmatmul.mubr.msk.f32.gmra.mrb[6].mxu1 %vm460_vm0, %v923_v60  ;;  %6336 = vmatprep.subr.bf16.mxu0 %v7489_v54  ;;  %v8304_v60 = vld [vmem:[%s11584_s4] ss:$0 sm:$0xff] }
 0x1c3   : > { %6732 = vmatprep.mubr.msk.f32.mxu1 %vm460_vm0, %v924_v62  ;;  %6221 = vmatpush3.bf16.msra.mxu1 %v7464_v61  ;;  %v1343_v62 = vpop.permute.xlu0 %1342 }
 0x1c4   : > { %6222 = vmatprep.subr.bf16.mxu1 %v7466_v23 }
 0x1c5   : > { %6337 = vmatpush3.bf16.msra.mxu0 %v7491_v55 }
 0x1c6   : > { %6733 = vmatmul.mubr.msk.f32.gmra.mrb[8].mxu1 %vm460_vm0, %v925_v63  ;;  %6338 = vmatprep.subr.bf16.mxu0 %v7493_v56 }
 0x1c7   : > { %6735 = vmatprep.mubr.msk.f32.mxu1 %vm460_vm0, %v926_v0  ;;  %6223 = vmatpush3.bf16.msra.mxu1 %v7468_v25 }
 0x1c8   : > { %6224 = vmatprep.subr.bf16.mxu1 %v7470_v28 }
 0x1c9   : > { %6339 = vmatpush3.bf16.msra.mxu0 %v7495_v57 }
 0x1ca   : > { %6736 = vmatmul.mubr.msk.f32.gmra.mrb[10].mxu1 %vm460_vm0, %v927_v1  ;;  %6340 = vmatprep.subr.bf16.mxu0 %v7497_v58  ;;  %v1341_v1 = vpop.permute.xlu1 %1340 }
 0x1cb   : > { %6738 = vmatprep.mubr.msk.f32.mxu1 %vm460_vm0, %v928_v2  ;;  %6225 = vmatpush3.bf16.msra.mxu1 %v7472_v33 }
 0x1cc   : > { %6226 = vmatprep.subr.bf16.mxu1 %v7473_v37 }
 0x1cd   : > { %6341 = vmatpush3.bf16.msra.mxu0 %v7499_v59 }
 0x1ce   : > { %6739 = vmatmul.mubr.msk.f32.gmra.mrb[12].mxu1 %vm460_vm0, %v929_v3  ;;  %6768 = vmatprep.subr.bf16.mxu0 %v8322_v22 }
 0x1cf   : > { %6741 = vmatprep.mubr.msk.f32.mxu1 %vm460_vm0, %v930_v4  ;;  %6227 = vmatpush3.bf16.msra.mxu1 %v7474_v40 }
 0x1d0   : > { %6228 = vmatprep.subr.bf16.mxu1 %v7477_v43 }
 0x1d2   : > { %6742 = vmatmul.mubr.msk.f32.gmra.mrb[14].mxu1 %vm460_vm0, %v931_v5 }
 0x1d3   : > { %6744 = vmatprep.mubr.msk.f32.mxu1 %vm460_vm0, %v932_v6  ;;  %6229 = vmatpush3.bf16.msra.mxu1 %v7478_v44  ;;  %v1347_v6 = vpop.permute.xlu0 %1346 }
 0x1d4   : > { %6438 = vmatprep.subr.bf16.mxu1 %v7486_v52 }
 0x1d6   : > { %6745 = vmatmul.mubr.msk.f32.gmra.mrb[16].mxu1 %vm460_vm0, %v933_v7 }
 0x1d7   : > { %6747 = vmatprep.mubr.msk.f32.mxu1 %vm460_vm0, %v934_v8  ;;  %v1716_v8 = vrot.slane %v8221_v29, 2 }
 0x1da   : > { %6748 = vmatmul.mubr.msk.f32.gmra.mrb[18].mxu1 %vm460_vm0, %v935_v9  ;;  %v1719_v9 = vrot.slane %v8213_v26, 2 }
 0x1db   : > { %6750 = vmatprep.mubr.msk.f32.mxu1 %vm460_vm0, %v936_v10 }
 0x1de   : > { %6751 = vmatmul.mubr.msk.f32.gmra.mrb[20].mxu1 %vm460_vm0, %v937_v11  ;;  %v1345_v11 = vpop.permute.xlu1 %1344 }
 0x1df   : > { %6753 = vmatprep.mubr.msk.f32.mxu1 %vm460_vm0, %v938_v12 }
 0x1e2   : > { %6754 = vmatmul.mubr.msk.f32.gmra.mrb[22].mxu1 %vm460_vm0, %v939_v13 }
 0x1e3   : > { %6756 = vmatprep.mubr.msk.f32.mxu1 %vm460_vm0, %v940_v14 }
 0x1e6   : > { %6757 = vmatmul.mubr.msk.f32.gmra.mrb[24].mxu1 %vm460_vm0, %v941_v15 }
 0x1e7   : > { %6759 = vmatprep.mubr.msk.f32.mxu1 %vm460_vm0, %v942_v16  ;;  %v1351_v16 = vpop.permute.xlu0 %1350 }
 0x1ea   : > { %6760 = vmatmul.mubr.msk.f32.gmra.mrb[26].mxu1 %vm460_vm0, %v943_v17 }
 0x1eb   : > { %6762 = vmatprep.mubr.msk.f32.mxu1 %vm460_vm0, %v944_v18  ;;  %v1355_v31 = vpop.permute.xlu0 %1354 }
 0x1ee   : > { %6763 = vmatmul.mubr.msk.f32.gmra.mrb[28].mxu1 %vm460_vm0, %v945_v19  ;;  %v1720_v19 = vsel %vm1715_vm3, %v1716_v8, %v1719_v9 }
 0x1ef   : > { %6765 = vmatprep.mubr.msk.f32.mxu1 %vm460_vm0, %v946_v20  ;;  %v1349_v20 = vpop.permute.xlu1 %1348  ;;  %v1864_v27 = vpack.c.bf16 %v1720_v19, %v1716_v8  ;;  %v1359_v52 = vpop.permute.xlu0 %1358 }
 0x1f2   : > { %6766 = vmatmul.mubr.msk.f32.gmra.mrb[30].mxu1 %vm460_vm0, %v947_v21 }
 0x1f3   : > { %v1353_v37 = vpop.permute.xlu1 %1352 }
 0x1f7   : > { %v1357_v58 = vpop.permute.xlu1 %1356 }
 0x289   : > { %v6722_v61 = vpop.f32.mrb[0].mxu1 }
 0x28a   : > { %v1123_v63 = vadd.f32 %v6722_v61, %v8304_v60  ;;  %v1117_v0 = vpop.f32.mrb[1].mxu1 }
 0x28b   : > { %v1118_v2 = vadd.f32 %v8304_v60, %v1117_v0 }
 0x28c   : > { %v1437_v3 = vsel %vm460_vm0, %v1123_v63, %v1343_v62 }
 0x28d   : > { %1470 = vst [vmem:[#allocation3 + $0x21] sm:$0xff] %v1437_v3  ;;  %v1436_v4 = vsel %vm460_vm0, %v1118_v2, %v1341_v1  ;;  %v6725_v5 = vpop.f32.mrb[2].mxu1 }
 0x28e   : > { %1469 = vst [vmem:[#allocation3 + $0x19] sm:$0xff] %v1436_v4  ;;  %v1133_v7 = vadd.f32 %v6725_v5, %v8304_v60  ;;  %v1127_v10 = vpop.f32.mrb[3].mxu1  ;;  %v7492_v4 = vld [vmem:[%s11585_s5 + $0x188] sm:$0xff]  }
 0x28f   : > { %v1128_v12 = vadd.f32 %v8304_v60, %v1127_v10 }
 0x290   : > { %v1439_v13 = vsel %vm460_vm0, %v1133_v7, %v1347_v6 }
 0x291   : > { %v1438_v14 = vsel %vm460_vm0, %v1128_v12, %v1345_v11  ;;  %1472 = vst [vmem:[#allocation3 + $0x39] sm:$0xff] %v1439_v13  ;;  %v6728_v15 = vpop.f32.mrb[4].mxu1  ;;  %v1363_v12 = vpop.permute.xlu0 %1362  ;;  %v7494_v13 = vld [vmem:[%s11585_s5 + $0x1d0] sm:$0xff]  }
 0x292   : > { %1471 = vst [vmem:[#allocation3 + $0x31] sm:$0xff] %v1438_v14  ;;  %v1143_v17 = vadd.f32 %v6728_v15, %v8304_v60  ;;  %v1137_v18 = vpop.f32.mrb[5].mxu1 }
 0x293   : > { %v1138_v21 = vadd.f32 %v8304_v60, %v1137_v18 }
 0x294   : > { %v1441_v23 = vsel %vm460_vm0, %v1143_v17, %v1351_v16  ;;  %v1506_v24 = vld [vmem:[#allocation3 + $0x28] sm:$0x3]  ;;  %v1361_v17 = vpop.permute.xlu1 %1360 }
 0x295   : > { %v1504_v25 = vld [vmem:[#allocation3 + $0x18] sm:$0xff]  ;;  %v1505_v26 = vld [vmem:[#allocation3 + $0x20] sm:$0xff]  ;;  %v1440_v28 = vsel %vm460_vm0, %v1138_v21, %v1349_v20  ;;  %1474 = vst [vmem:[#allocation3 + $0x51] sm:$0xff] %v1441_v23  ;;  %v1611_v29 = vrot.slane %v1506_v24, 1  ;;  %v6731_v30 = vpop.f32.mrb[6].mxu1  ;;  %v1724_v43 = vrot.slane %v1506_v24, 2 }
 0x296   : > { %v1608_v32 = vrot.slane %v1504_v25, 1  ;;  %v1609_v33 = vrot.slane %v1505_v26, 1  ;;  %v1721_v34 = vrot.slane %v1504_v25, 2  ;;  %v1722_v35 = vrot.slane %v1505_v26, 2  ;;  %1473 = vst [vmem:[#allocation3 + $0x49] sm:$0xff] %v1440_v28  ;;  %v1147_v36 = vpop.f32.mrb[7].mxu1 }
 0x297   : > { %v1865_v38 = vpack.c.bf16 %v1505_v26, %v1504_v25  ;;  %v1153_v39 = vadd.f32 %v6731_v30, %v8304_v60  ;;  %v1148_v40 = vadd.f32 %v8304_v60, %v1147_v36 }
 0x298   : > { %v1610_v41 = vsel %vm640_vm2, %v1608_v32, %v1609_v33  ;;  %v1612_v42 = vsel %vm640_vm2, %v1609_v33, %v1611_v29  ;;  %v8331_v44 = vld [vmem:[#allocation3 + $0x40] sm:$0x3]  ;;  %v1723_v56 = vsel %vm1715_vm3, %v1721_v34, %v1722_v35  ;;  %v1725_v0 = vsel %vm1715_vm3, %v1722_v35, %v1724_v43  ;;  %v1367_v34 = vpop.permute.xlu0 %1366  ;;  %v7498_v35 = vld [vmem:[%s11585_s5 + $0x1d8] sm:$0xff]  }
 0x299   : > { %2692 = vmatprep.mubr.bf16.mxu1 %v1865_v38  ;;  %v8336_v46 = vpack.c.bf16 %v1612_v42, %v1610_v41  ;;  %v8338_v47 = vld [vmem:[#allocation3 + $0x30] sm:$0xff]  ;;  %v8340_v48 = vld [vmem:[#allocation3 + $0x38] sm:$0xff]  ;;  %v1616_v49 = vrot.slane %v8331_v44, 1  ;;  %v1442_v50 = vsel %vm460_vm0, %v1148_v40, %v1353_v37  ;;  %v6734_v51 = vpop.f32.mrb[8].mxu1  ;;  %v1443_v61 = vsel %vm460_vm0, %v1153_v39, %v1355_v31  ;;  %v1365_v39 = vpop.permute.xlu1 %1364 }
 0x29a   : > { %2693 = vmatmul.mubr.bf16.vlgmr.msra.gmra.mrb[32].mxu1 %v1864_v27  ;;  %v1613_v54 = vrot.slane %v8338_v47, 1  ;;  %v1614_v55 = vrot.slane %v8340_v48, 1  ;;  %1475 = vst [vmem:[#allocation3 + $0x61] sm:$0xff] %v1442_v50  ;;  %v1157_v57 = vpop.f32.mrb[9].mxu1  ;;  %v8353_v59 = vpack.c.bf16 %v8340_v48, %v8338_v47  ;;  %v1163_v62 = vadd.f32 %v6734_v51, %v8304_v60  ;;  %1476 = vst [vmem:[#allocation3 + $0x69] sm:$0xff] %v1443_v61  ;;  %v7496_v27 = vld [vmem:[%s11585_s5 + $0x190] sm:$0xff]  }
 0x29b   : > { %2539 = vmatprep.mubr.bf16.mxu0 %v8336_v46  ;;  %v1158_v63 = vadd.f32 %v8304_v60, %v1157_v57  ;;  %6439 = vmatpush3.bf16.msra.mxu1 %v7488_v45  ;;  %v8381_v18 = vpack.c.bf16 %v1725_v0, %v1723_v56  ;;  %v1726_v23 = vrot.slane %v8338_v47, 2  ;;  %v1727_v24 = vrot.slane %v8340_v48, 2  ;;  %v7500_v45 = vld [vmem:[%s11585_s5 + $0x198] sm:$0xff]  }
 0x29c   : > { %2540 = vmatmul.mubr.bf16.gmra.mrb[20].mxu0 %v1865_v38  ;;  %v1615_v1 = vsel %vm640_vm2, %v1613_v54, %v1614_v55  ;;  %v1617_v2 = vsel %vm640_vm2, %v1614_v55, %v1616_v49  ;;  %v8361_v3 = vld [vmem:[#allocation3 + $0x58] sm:$0x3]  ;;  %2700 = vmatprep.mubr.bf16.mxu1 %v8353_v59  ;;  %v1445_v10 = vsel %vm460_vm0, %v1163_v62, %v1359_v52  ;;  %v1729_v28 = vrot.slane %v8331_v44, 2  ;;  %v1371_v51 = vpop.permute.xlu0 %1370  ;;  %v7501_v52 = vld [vmem:[%s11585_s5 + $0x1e0] sm:$0xff]  }
 0x29d   : > { %v8367_v5 = vpack.c.bf16 %v1617_v2, %v1615_v1  ;;  %v8369_v6 = vld [vmem:[#allocation3 + $0x48] sm:$0xff]  ;;  %v8371_v7 = vld [vmem:[#allocation3 + $0x50] sm:$0xff]  ;;  %v1621_v8 = vrot.slane %v8361_v3, 1  ;;  %v1444_v9 = vsel %vm460_vm0, %v1158_v63, %v1357_v58  ;;  %v6737_v11 = vpop.f32.mrb[10].mxu1  ;;  %6440 = vmatprep.subr.bf16.mxu1 %v7490_v53  ;;  %1478 = vst [vmem:[#allocation3 + $0x81] sm:$0xff] %v1445_v10  ;;  %v1728_v43 = vsel %vm1715_vm3, %v1726_v23, %v1727_v24  ;;  %v1369_v2 = vpop.permute.xlu1 %1368 }
 0x29e   : > { %v1618_v14 = vrot.slane %v8369_v6, 1  ;;  %v1619_v15 = vrot.slane %v8371_v7, 1  ;;  %1477 = vst [vmem:[#allocation3 + $0x79] sm:$0xff] %v1444_v9  ;;  %v1167_v16 = vpop.f32.mrb[11].mxu1  ;;  %v8386_v19 = vpack.c.bf16 %v8371_v7, %v8369_v6  ;;  %v1173_v20 = vadd.f32 %v6737_v11, %v8304_v60 }
 0x29f   : > { %2547 = vmatprep.mubr.bf16.mxu0 %v8367_v5  ;;  %v1168_v21 = vadd.f32 %v8304_v60, %v1167_v16  ;;  %6441 = vmatpush3.bf16.msra.mxu1 %v7492_v4  ;;  %v1730_v47 = vsel %vm1715_vm3, %v1727_v24, %v1729_v28  ;;  %v1731_v63 = vrot.slane %v8369_v6, 2  ;;  %v1732_v0 = vrot.slane %v8371_v7, 2  ;;  %v7502_v4 = vld [vmem:[%s11585_s5 + $0x1a0] sm:$0xff]  }
 0x2a0   : > { %v1620_v25 = vsel %vm640_vm2, %v1618_v14, %v1619_v15  ;;  %v1622_v26 = vsel %vm640_vm2, %v1619_v15, %v1621_v8  ;;  %v1447_v32 = vsel %vm460_vm0, %v1173_v20, %v1363_v12  ;;  %6442 = vmatprep.subr.bf16.mxu1 %v7494_v13  ;;  %v8444_v1 = vpack.c.bf16 %v1730_v47, %v1728_v43  ;;  %v1375_v6 = vpop.permute.xlu0 %1374 }
 0x2a1   : > { %v8398_v29 = vpack.c.bf16 %v1622_v26, %v1620_v25  ;;  %v8400_v30 = vld [vmem:[#allocation3 + $0x60] sm:$0xff]  ;;  %v1446_v31 = vsel %vm460_vm0, %v1168_v21, %v1361_v17  ;;  %v6740_v33 = vpop.f32.mrb[12].mxu1  ;;  %1480 = vst [vmem:[#allocation3 + $0x99] sm:$0xff] %v1447_v32  ;;  %v8411_v40 = vld [vmem:[#allocation3 + $0x68] sm:$0xff]  ;;  %v8413_v41 = vld [vmem:[#allocation3 + $0x70] sm:$0x3]  ;;  %v1373_v20 = vpop.permute.xlu1 %1372  ;;  %v1733_v23 = vsel %vm1715_vm3, %v1731_v63, %v1732_v0 }
 0x2a2   : > { %2701 = vmatmul.mubr.bf16.gmra.mrb[36].mxu1 %v8381_v18  ;;  %v1623_v36 = vrot.slane %v8400_v30, 1  ;;  %1479 = vst [vmem:[#allocation3 + $0x91] sm:$0xff] %v1446_v31  ;;  %v1183_v37 = vadd.f32 %v6740_v33, %v8304_v60  ;;  %v1177_v38 = vpop.f32.mrb[13].mxu1  ;;  %v1624_v44 = vrot.slane %v8411_v40, 1  ;;  %v1626_v48 = vrot.slane %v8413_v41, 1  ;;  %v7504_v21 = vld [vmem:[%s11585_s5 + $0x1a8] sm:$0xff]  }
 0x2a3   : > { %2708 = vmatprep.mubr.bf16.mxu1 %v8386_v19  ;;  %v1178_v42 = vadd.f32 %v8304_v60, %v1177_v38  ;;  %6443 = vmatpush3.bf16.msra.mxu1 %v7496_v27  ;;  %v8433_v55 = vpack.c.bf16 %v8411_v40, %v8400_v30  ;;  %v1734_v8 = vrot.slane %v8361_v3, 2  ;;  %v7503_v3 = vld [vmem:[%s11585_s5 + $0x1e8] sm:$0xff]   ;;  %v7505_v31 = vld [vmem:[%s11585_s5 + $0x1f0] sm:$0xff]  }
 0x2a4   : > { %2548 = vmatmul.mubr.bf16.gmra.mrb[24].mxu0 %v8353_v59  ;;  %v1449_v50 = vsel %vm460_vm0, %v1183_v37, %v1367_v34  ;;  %6444 = vmatprep.subr.bf16.mxu1 %v7498_v35  ;;  %v1625_v53 = vsel %vm640_vm2, %v1623_v36, %v1624_v44  ;;  %v1627_v56 = vsel %vm640_vm2, %v1624_v44, %v1626_v48  ;;  %v8440_v61 = vld [vmem:[#allocation3 + $0x88] sm:$0x3]  ;;  %v1379_v28 = vpop.permute.xlu0 %1378  ;;  %v1736_v35 = vrot.slane %v8400_v30, 2  ;;  %v7506_v30 = vld [vmem:[%s11585_s5 + $0x1b0] sm:$0xff]  }
 0x2a5   : > { %2555 = vmatprep.mubr.bf16.mxu0 %v8398_v29  ;;  %v1448_v49 = vsel %vm460_vm0, %v1178_v42, %v1365_v39  ;;  %1482 = vst [vmem:[#allocation3 + $0xb1] sm:$0xff] %v1449_v50  ;;  %v6743_v54 = vpop.f32.mrb[14].mxu1  ;;  %v8436_v57 = vld [vmem:[#allocation3 + $0x78] sm:$0xff]  ;;  %v8438_v58 = vld [vmem:[#allocation3 + $0x80] sm:$0xff]  ;;  %v8450_v9 = vpack.c.bf16 %v1627_v56, %v1625_v53  ;;  %v1631_v14 = vrot.slane %v8440_v61, 1  ;;  %v1735_v24 = vsel %vm1715_vm3, %v1732_v0, %v1734_v8  ;;  %v1377_v47 = vpop.permute.xlu1 %1376 }
 0x2a6   : > { %1481 = vst [vmem:[#allocation3 + $0xa9] sm:$0xff] %v1448_v49  ;;  %v1187_v62 = vpop.f32.mrb[15].mxu1  ;;  %v1193_v10 = vadd.f32 %v6743_v54, %v8304_v60  ;;  %v1628_v7 = vrot.slane %v8436_v57, 1  ;;  %v1629_v13 = vrot.slane %v8438_v58, 1  ;;  %v8481_v36 = vpack.c.bf16 %v8438_v58, %v8436_v57 }
 0x2a7   : > { %6445 = vmatpush3.bf16.msra.mxu1 %v7500_v45  ;;  %v1188_v11 = vadd.f32 %v8304_v60, %v1187_v62  ;;  %v1737_v42 = vrot.slane %v8411_v40, 2  ;;  %v8490_v43 = vpack.c.bf16 %v1735_v24, %v1733_v23  ;;  %v1739_v44 = vrot.slane %v8413_v41, 2  ;;  %v7508_v41 = vld [vmem:[%s11585_s5 + $0x1f8] sm:$0xff]  }
 0x2a8   : > { %6446 = vmatprep.subr.bf16.mxu1 %v7501_v52  ;;  %v1451_v17 = vsel %vm460_vm0, %v1193_v10, %v1371_v51  ;;  %v1630_v32 = vsel %vm640_vm2, %v1628_v7, %v1629_v13  ;;  %v1632_v33 = vsel %vm640_vm2, %v1629_v13, %v1631_v14  ;;  %v8487_v39 = vld [vmem:[#allocation3 + $0xa0] sm:$0x3]  ;;  %v1383_v52 = vpop.permute.xlu0 %1382 }
 0x2a9   : > { %v6746_v12 = vpop.f32.mrb[16].mxu1  ;;  %v1450_v16 = vsel %vm460_vm0, %v1188_v11, %v1369_v2  ;;  %1484 = vst [vmem:[#allocation3 + $0xc9] sm:$0xff] %v1451_v17  ;;  %v8483_v37 = vld [vmem:[#allocation3 + $0x90] sm:$0xff]  ;;  %v8485_v38 = vld [vmem:[#allocation3 + $0x98] sm:$0xff]  ;;  %v8497_v48 = vpack.c.bf16 %v1632_v33, %v1630_v32  ;;  %v1636_v56 = vrot.slane %v8487_v39, 1  ;;  %v1381_v8 = vpop.permute.xlu1 %1380  ;;  %v7509_v11 = vld [vmem:[%s11585_s5 + $0x1b8] sm:$0xff]  }
 0x2aa   : > { %2709 = vmatmul.mubr.bf16.gmra.mrb[40].mxu1 %v8444_v1  ;;  %v1197_v15 = vpop.f32.mrb[17].mxu1  ;;  %1483 = vst [vmem:[#allocation3 + $0xc1] sm:$0xff] %v1450_v16  ;;  %v1203_v25 = vadd.f32 %v6746_v12, %v8304_v60  ;;  %v1633_v53 = vrot.slane %v8483_v37, 1  ;;  %v1634_v54 = vrot.slane %v8485_v38, 1  ;;  %v1738_v12 = vsel %vm1715_vm3, %v1736_v35, %v1737_v42 }
 0x2ab   : > { %2716 = vmatprep.mubr.bf16.mxu1 %v8433_v55  ;;  %6447 = vmatpush3.bf16.msra.mxu1 %v7502_v4  ;;  %v1198_v26 = vadd.f32 %v8304_v60, %v1197_v15  ;;  %v1744_v32 = vrot.slane %v8440_v61, 2 }
 0x2ac   : > { %2556 = vmatmul.mubr.bf16.gmra.mrb[28].mxu0 %v8386_v19  ;;  %6448 = vmatprep.subr.bf16.mxu1 %v7503_v3  ;;  %v1453_v49 = vsel %vm460_vm0, %v1203_v25, %v1375_v6  ;;  %v1740_v6 = vsel %vm1715_vm3, %v1737_v42, %v1739_v44  ;;  %v1635_v13 = vsel %vm640_vm2, %v1633_v53, %v1634_v54  ;;  %v1387_v24 = vpop.permute.xlu0 %1386 }
 0x2ad   : > { %2563 = vmatprep.mubr.bf16.mxu0 %v8450_v9  ;;  %v6749_v27 = vpop.f32.mrb[18].mxu1  ;;  %v1452_v45 = vsel %vm460_vm0, %v1198_v26, %v1373_v20  ;;  %1486 = vst [vmem:[#allocation3 + $0xe1] sm:$0xff] %v1453_v49  ;;  %v1637_v14 = vsel %vm640_vm2, %v1634_v54, %v1636_v56  ;;  %v8526_v3 = vpack.c.bf16 %v8485_v38, %v8483_v37  ;;  %v8528_v16 = vld [vmem:[#allocation3 + $0xa8] sm:$0xff]  ;;  %v8530_v17 = vld [vmem:[#allocation3 + $0xb0] sm:$0xff]  ;;  %v8532_v20 = vld [vmem:[#allocation3 + $0xb8] sm:$0x3] }
 0x2ae   : > { %v1207_v34 = vpop.f32.mrb[19].mxu1  ;;  %1485 = vst [vmem:[#allocation3 + $0xd9] sm:$0xff] %v1452_v45  ;;  %v1213_v50 = vadd.f32 %v6749_v27, %v8304_v60  ;;  %v8536_v25 = vpack.c.bf16 %v1740_v6, %v1738_v12  ;;  %v1385_v27 = vpop.permute.xlu1 %1384  ;;  %v8542_v33 = vpack.c.bf16 %v1637_v14, %v1635_v13  ;;  %v1638_v35 = vrot.slane %v8528_v16, 1 }
 0x2af   : > { %6449 = vmatpush3.bf16.msra.mxu1 %v7504_v21  ;;  %v1208_v40 = vadd.f32 %v8304_v60, %v1207_v34  ;;  %v1639_v42 = vrot.slane %v8530_v17, 1  ;;  %v1641_v44 = vrot.slane %v8532_v20, 1 }
 0x2b0   : > { %6450 = vmatprep.subr.bf16.mxu1 %v7505_v31  ;;  %v1455_v2 = vsel %vm460_vm0, %v1213_v50, %v1379_v28  ;;  %v1741_v28 = vrot.slane %v8436_v57, 2  ;;  %v1742_v31 = vrot.slane %v8438_v58, 2  ;;  %v8565_v56 = vld [vmem:[#allocation3 + $0xd0] sm:$0x3] }
 0x2b1   : > { %v6752_v51 = vpop.f32.mrb[20].mxu1  ;;  %v1454_v0 = vsel %vm460_vm0, %v1208_v40, %v1377_v47  ;;  %1488 = vst [vmem:[#allocation3 + $0xf9] sm:$0xff] %v1455_v2  ;;  %v1391_v47 = vpop.permute.xlu0 %1390  ;;  %v1640_v40 = vsel %vm640_vm2, %v1638_v35, %v1639_v42  ;;  %v8561_v53 = vld [vmem:[#allocation3 + $0xc0] sm:$0xff]  ;;  %v8563_v54 = vld [vmem:[#allocation3 + $0xc8] sm:$0xff]  ;;  %v1646_v14 = vrot.slane %v8565_v56, 1 }
 0x2b2   : > { %2717 = vmatmul.mubr.bf16.gmra.mrb[44].mxu1 %v8490_v43  ;;  %v1223_v62 = vadd.f32 %v6752_v51, %v8304_v60  ;;  %v1217_v63 = vpop.f32.mrb[21].mxu1  ;;  %1487 = vst [vmem:[#allocation3 + $0xf1] sm:$0xff] %v1454_v0  ;;  %v1389_v61 = vpop.permute.xlu1 %1388  ;;  %v1745_v49 = vsel %vm1715_vm3, %v1742_v31, %v1744_v32  ;;  %v1642_v51 = vsel %vm640_vm2, %v1639_v42, %v1641_v44  ;;  %v1644_v13 = vrot.slane %v8563_v54, 1 }
 0x2b3   : > { %2724 = vmatprep.mubr.bf16.mxu1 %v8481_v36  ;;  %v1218_v4 = vadd.f32 %v8304_v60, %v1217_v63  ;;  %6451 = vmatpush3.bf16.msra.mxu1 %v7506_v30  ;;  %v1743_v30 = vsel %vm1715_vm3, %v1741_v28, %v1742_v31  ;;  %v8574_v12 = vpack.c.bf16 %v1642_v51, %v1640_v40  ;;  %v1751_v44 = vrot.slane %v8528_v16, 2 }
 0x2b4   : > { %2564 = vmatmul.mubr.bf16.gmra.mrb[32].mxu0 %v8433_v55  ;;  %v1457_v10 = vsel %vm460_vm0, %v1223_v62, %v1383_v52  ;;  %6452 = vmatprep.subr.bf16.mxu1 %v7508_v41  ;;  %v8559_v41 = vpack.c.bf16 %v8530_v17, %v8528_v16  ;;  %v8569_v2 = vpack.c.bf16 %v1745_v49, %v1743_v30  ;;  %v1754_v40 = vrot.slane %v8532_v20, 2 }
 0x2b5   : > { %2571 = vmatprep.mubr.bf16.mxu0 %v8497_v48  ;;  %1490 = vst [vmem:[#allocation3 + $0x111] sm:$0xff] %v1457_v10  ;;  %v6755_v7 = vpop.f32.mrb[22].mxu1  ;;  %v1456_v21 = vsel %vm460_vm0, %v1218_v4, %v1381_v8  ;;  %v1395_v0 = vpop.permute.xlu0 %1394  ;;  %v1746_v8 = vrot.slane %v8483_v37, 2  ;;  %v1747_v10 = vrot.slane %v8485_v38, 2  ;;  %v1647_v32 = vsel %vm640_vm2, %v1644_v13, %v1646_v14 }
 0x2b6   : > { %v1227_v15 = vpop.f32.mrb[23].mxu1  ;;  %v1233_v23 = vadd.f32 %v6755_v7, %v8304_v60  ;;  %1489 = vst [vmem:[#allocation3 + $0x109] sm:$0xff] %v1456_v21  ;;  %v1393_v4 = vpop.permute.xlu1 %1392  ;;  %v1643_v7 = vrot.slane %v8561_v53, 1 }
 0x2b7   : > { %v1228_v26 = vadd.f32 %v8304_v60, %v1227_v15  ;;  %6453 = vmatpush3.bf16.msra.mxu1 %v7509_v11  ;;  %v1749_v11 = vrot.slane %v8487_v39, 2 }
 0x2b8   : > { %v1459_v58 = vsel %vm460_vm0, %v1233_v23, %v1387_v24  ;;  %v1645_v31 = vsel %vm640_vm2, %v1643_v7, %v1644_v13 }
 0x2b9   : > { %v6758_v34 = vpop.f32.mrb[24].mxu1  ;;  %v1458_v57 = vsel %vm460_vm0, %v1228_v26, %v1385_v27  ;;  %1492 = vst [vmem:[#allocation3 + $0x129] sm:$0xff] %v1459_v58  ;;  %v1399_v23 = vpop.permute.xlu0 %1398  ;;  %v1748_v26 = vsel %vm1715_vm3, %v1746_v8, %v1747_v10  ;;  %v1750_v27 = vsel %vm1715_vm3, %v1747_v10, %v1749_v11  ;;  %v8600_v58 = vld [vmem:[#allocation3 + $0xe0] sm:$0xff] }
 0x2ba   : > { %2725 = vmatmul.mubr.bf16.gmra.mrb[48].mxu1 %v8536_v25  ;;  %v1237_v45 = vpop.f32.mrb[25].mxu1  ;;  %1491 = vst [vmem:[#allocation3 + $0x121] sm:$0xff] %v1458_v57  ;;  %v1243_v62 = vadd.f32 %v6758_v34, %v8304_v60  ;;  %v1397_v24 = vpop.permute.xlu1 %1396  ;;  %v8598_v57 = vld [vmem:[#allocation3 + $0xd8] sm:$0xff]  ;;  %v8607_v16 = vpack.c.bf16 %v1750_v27, %v1748_v26 }
 0x2bb   : > { %2732 = vmatprep.mubr.bf16.mxu1 %v8526_v3  ;;  %v1238_v63 = vadd.f32 %v8304_v60, %v1237_v45  ;;  %v8596_v45 = vpack.c.bf16 %v8563_v54, %v8561_v53  ;;  %v1648_v8 = vrot.slane %v8598_v57, 1  ;;  %v8631_v14 = vpack.c.bf16 %v8600_v58, %v8598_v57 }
 0x2bc   : > { %2572 = vmatmul.mubr.bf16.gmra.mrb[36].mxu0 %v8481_v36  ;;  %v1461_v37 = vsel %vm460_vm0, %v1243_v62, %v1391_v47  ;;  %v8602_v47 = vld [vmem:[#allocation3 + $0xe8] sm:$0x3]  ;;  %v8611_v62 = vpack.c.bf16 %v1647_v32, %v1645_v31 }
 0x2bd   : > { %2579 = vmatprep.mubr.bf16.mxu0 %v8542_v33  ;;  %v6761_v50 = vpop.f32.mrb[26].mxu1  ;;  %v1460_v15 = vsel %vm460_vm0, %v1238_v63, %v1389_v61  ;;  %1494 = vst [vmem:[#allocation3 + $0x141] sm:$0xff] %v1461_v37  ;;  %v1403_v49 = vpop.permute.xlu0 %1402  ;;  %v1651_v10 = vrot.slane %v8602_v47, 1  ;;  %v8637_v37 = vld [vmem:[#allocation3 + $0x100] sm:$0x3] }
 0x2be   : > { %v1247_v52 = vpop.f32.mrb[27].mxu1  ;;  %1493 = vst [vmem:[#allocation3 + $0x139] sm:$0xff] %v1460_v15  ;;  %v1253_v38 = vadd.f32 %v6761_v50, %v8304_v60  ;;  %v1752_v50 = vrot.slane %v8530_v17, 2  ;;  %v1649_v17 = vrot.slane %v8600_v58, 1  ;;  %v8633_v15 = vld [vmem:[#allocation3 + $0xf0] sm:$0xff]  ;;  %v1656_v31 = vrot.slane %v8637_v37, 1 }
 0x2bf   : > { %v1248_v39 = vadd.f32 %v8304_v60, %v1247_v52  ;;  %v1401_v52 = vpop.permute.xlu1 %1400  ;;  %v1653_v27 = vrot.slane %v8633_v15, 1 }
 0x2c0   : > { %v1463_v35 = vsel %vm460_vm0, %v1253_v38, %v1395_v0  ;;  %v1650_v7 = vsel %vm640_vm2, %v1648_v8, %v1649_v17  ;;  %v1652_v13 = vsel %vm640_vm2, %v1649_v17, %v1651_v10  ;;  %v1756_v38 = vrot.slane %v8561_v53, 2 }
 0x2c1   : > { %v6764_v6 = vpop.f32.mrb[28].mxu1  ;;  %v1462_v34 = vsel %vm460_vm0, %v1248_v39, %v1393_v4  ;;  %1496 = vst [vmem:[#allocation3 + $0x159] sm:$0xff] %v1463_v35  ;;  %v1757_v39 = vrot.slane %v8563_v54, 2  ;;  %v8644_v26 = vpack.c.bf16 %v1652_v13, %v1650_v7  ;;  %v1761_v8 = vrot.slane %v8598_v57, 2 }
 0x2c2   : > { %2733 = vmatmul.mubr.bf16.gmra.mrb[52].mxu1 %v8569_v2  ;;  %v1257_v21 = vpop.f32.mrb[29].mxu1  ;;  %1495 = vst [vmem:[#allocation3 + $0x151] sm:$0xff] %v1462_v34  ;;  %v1263_v61 = vadd.f32 %v6764_v6, %v8304_v60  ;;  %v1755_v6 = vsel %vm1715_vm3, %v1752_v50, %v1754_v40  ;;  %v1762_v17 = vrot.slane %v8600_v58, 2 }
 0x2c3   : > { %2740 = vmatprep.mubr.bf16.mxu1 %v8559_v41  ;;  %v1258_v30 = vadd.f32 %v8304_v60, %v1257_v21  ;;  %v8635_v21 = vld [vmem:[#allocation3 + $0xf8] sm:$0xff]  ;;  %v1758_v53 = vsel %vm1715_vm3, %v1756_v38, %v1757_v39 }
 0x2c4   : > { %2580 = vmatmul.mubr.bf16.gmra.mrb[40].mxu0 %v8526_v3  ;;  %v1465_v0 = vsel %vm460_vm0, %v1263_v61, %v1399_v23  ;;  %v8669_v40 = vpack.c.bf16 %v8635_v21, %v8633_v15 }
 0x2c5   : > { %2587 = vmatprep.mubr.bf16.mxu0 %v8574_v12  ;;  %v6767_v28 = vpop.f32.mrb[30].mxu1  ;;  %v1464_v63 = vsel %vm460_vm0, %v1258_v30, %v1397_v24  ;;  %1498 = vst [vmem:[#allocation3 + $0x171] sm:$0xff] %v1465_v0  ;;  %v1759_v24 = vrot.slane %v8565_v56, 2 }
 0x2c6   : > { %v1267_v42 = vpop.f32.mrb[31].mxu1  ;;  %v1273_v51 = vadd.f32 %v6767_v28, %v8304_v60  ;;  %1497 = vst [vmem:[#allocation3 + $0x169] sm:$0xff] %v1464_v63  ;;  %v1654_v28 = vrot.slane %v8635_v21, 1 }
 0x2c7   : > { %v1268_v4 = vadd.f32 %v8304_v60, %v1267_v42  ;;  %v1753_v60 = vsel %vm1715_vm3, %v1751_v44, %v1752_v50  ;;  %v1760_v35 = vsel %vm1715_vm3, %v1757_v39, %v1759_v24  ;;  %v8665_v50 = vld [vmem:[#allocation3 + $0x108] sm:$0xff] }
 0x2c8   : > { %v1467_v20 = vsel %vm460_vm0, %v1273_v51, %v1403_v49  ;;  %v8641_v23 = vpack.c.bf16 %v1755_v6, %v1753_v60  ;;  %v1655_v30 = vsel %vm640_vm2, %v1653_v27, %v1654_v28  ;;  %v1657_v49 = vsel %vm640_vm2, %v1654_v28, %v1656_v31  ;;  %v8671_v51 = vld [vmem:[#allocation3 + $0x110] sm:$0xff] }
 0x2c9   : > { %v1466_v11 = vsel %vm460_vm0, %v1268_v4, %v1401_v52  ;;  %1500 = vst [vmem:[#allocation3 + $0x189] sm:$0xff] %v1467_v20  ;;  %v8673_v52 = vld [vmem:[#allocation3 + $0x118] sm:$0x3]  ;;  %v8679_v10 = vpack.c.bf16 %v1760_v35, %v1758_v53  ;;  %v8682_v60 = vpack.c.bf16 %v1657_v49, %v1655_v30  ;;  %v1658_v6 = vrot.slane %v8665_v50, 1  ;;  %v1537_v53 = vld [vmem:[#allocation3 + $0x120] sm:$0xff] }
 0x2ca   : > { %2741 = vmatmul.mubr.bf16.gmra.mrb[56].mxu1 %v8607_v16  ;;  %1499 = vst [vmem:[#allocation3 + $0x181] sm:$0xff] %v1466_v11  ;;  %v1764_v11 = vrot.slane %v8602_v47, 2  ;;  %v1659_v13 = vrot.slane %v8671_v51, 1  ;;  %v1661_v38 = vrot.slane %v8673_v52, 1  ;;  %v1763_v47 = vsel %vm1715_vm3, %v1761_v8, %v1762_v17 }
 0x2cb   : > { %2748 = vmatprep.mubr.bf16.mxu1 %v8596_v45  ;;  %v8703_v31 = vpack.c.bf16 %v8671_v51, %v8665_v50  ;;  %v1663_v49 = vrot.slane %v1537_v53, 1 }
 0x2cc   : > { %2588 = vmatmul.mubr.bf16.gmra.mrb[44].mxu0 %v8559_v41  ;;  %v1765_v24 = vsel %vm1715_vm3, %v1762_v17, %v1764_v11  ;;  %v1660_v27 = vsel %vm640_vm2, %v1658_v6, %v1659_v13  ;;  %v1662_v28 = vsel %vm640_vm2, %v1659_v13, %v1661_v38  ;;  %v1541_v13 = vld [vmem:[#allocation3 + $0x140] sm:$0xff]  ;;  %v1542_v38 = vld [vmem:[#allocation3 + $0x148] sm:$0x3] }
 0x2cd   : > { %2595 = vmatprep.mubr.bf16.mxu0 %v8611_v62  ;;  %v8705_v35 = vpack.c.bf16 %v1765_v24, %v1763_v47  ;;  %v8710_v30 = vpack.c.bf16 %v1662_v28, %v1660_v27  ;;  %v1771_v27 = vrot.slane %v8665_v50, 2  ;;  %v1772_v28 = vrot.slane %v8671_v51, 2 }
 0x2d0   : > { %v1551_v34 = vld [vmem:[#allocation3 + $0x190] sm:$0x3] }
 0x2d1   : > { %v8651_v32 = vld [vmem:[#allocation3 + $0x180] sm:$0xff]  ;;  %v8655_v54 = vld [vmem:[#allocation3 + $0x188] sm:$0xff]  ;;  %v1834_v0 = vrot.slane %v1551_v34, 1  ;;  %v1841_v20 = vrot.slane %v1551_v34, 2  ;;  %v1539_v34 = vld [vmem:[#allocation3 + $0x130] sm:$0x3] }
 0x2d2   : > { %2749 = vmatmul.mubr.bf16.gmra.mrb[60].mxu1 %v8641_v23  ;;  %v1831_v56 = vrot.slane %v8651_v32, 1  ;;  %v1832_v42 = vrot.slane %v8655_v54, 1  ;;  %v1838_v44 = vrot.slane %v8651_v32, 2  ;;  %v1839_v61 = vrot.slane %v8655_v54, 2 }
 0x2d3   : > { %2756 = vmatprep.mubr.bf16.mxu1 %v8631_v14 }
 0x2d4   : > { %2596 = vmatmul.mubr.bf16.gmra.mrb[48].mxu0 %v8596_v45  ;;  %v1833_v63 = vsel %vm640_vm2, %v1831_v56, %v1832_v42  ;;  %v1840_v4 = vsel %vm1715_vm3, %v1838_v44, %v1839_v61  ;;  %v1835_v7 = vsel %vm640_vm2, %v1832_v42, %v1834_v0  ;;  %v1842_v58 = vsel %vm1715_vm3, %v1839_v61, %v1841_v20  ;;  %v1538_v56 = vld [vmem:[#allocation3 + $0x128] sm:$0xff] }
 0x2d5   : > { %2603 = vmatprep.mubr.bf16.mxu0 %v8644_v26  ;;  %v8689_v57 = vpack.c.bf16 %v1835_v7, %v1833_v63  ;;  %v8693_v39 = vpack.c.bf16 %v1842_v58, %v1840_v4  ;;  %v1766_v42 = vrot.slane %v8633_v15, 2  ;;  %v1767_v44 = vrot.slane %v8635_v21, 2  ;;  %v6118_v4 = vpop.f32.mrb[16].mxu0  ;;  %v1540_v7 = vld [vmem:[#allocation3 + $0x138] sm:$0xff] }
 0x2d6   : > { %v1769_v61 = vrot.slane %v8637_v37, 2  ;;  %v1664_v63 = vrot.slane %v1538_v56, 1  ;;  %v1666_v0 = vrot.slane %v1539_v34, 1  ;;  %v6119_v21 = vpop.f32.mrb[17].mxu0  ;;  %v8722_v6 = vpack.c.bf16 %v1538_v56, %v1537_v53 }
 0x2d7   : > { %11691 = vst [vmem:[#allocation11_spill] sm:$0xff] %v8689_v57  ;;  %11692 = vst [vmem:[#allocation12_spill] sm:$0xff] %v8693_v39  ;;  %v1768_v8 = vsel %vm1715_vm3, %v1766_v42, %v1767_v44  ;;  %v8720_v20 = vadd.f32 %v6119_v21, %v6118_v4  ;;  %v6121_v11 = vpop.f32.mrb[18].mxu0  ;;  %v1774_v42 = vrot.slane %v8673_v52, 2  ;;  %v8741_v52 = vpack.c.bf16 %v1541_v13, %v1540_v7  ;;  %v1545_v21 = vld [vmem:[#allocation3 + $0x160] sm:$0x3] }
 0x2d8   : > { %v1770_v15 = vsel %vm1715_vm3, %v1767_v44, %v1769_v61  ;;  %v1665_v37 = vsel %vm640_vm2, %v1663_v49, %v1664_v63  ;;  %v1667_v17 = vsel %vm640_vm2, %v1664_v63, %v1666_v0  ;;  %v6122_v58 = vpop.f32.mrb[19].mxu0  ;;  %v1668_v61 = vrot.slane %v1540_v7, 1 }
 0x2d9   : > { %11693 = vst [vmem:[#allocation13_spill] sm:$0xff] %v8720_v20  ;;  %v8724_v47 = vpack.c.bf16 %v1770_v15, %v1768_v8  ;;  %v8726_v24 = vadd.f32 %v6122_v58, %v6121_v11  ;;  %v8731_v44 = vpack.c.bf16 %v1667_v17, %v1665_v37  ;;  %v1669_v49 = vrot.slane %v1541_v13, 1  ;;  %v1543_v8 = vld [vmem:[#allocation3 + $0x150] sm:$0xff]  ;;  %v1544_v15 = vld [vmem:[#allocation3 + $0x158] sm:$0xff] }
 0x2da   : > { %2757 = vmatmul.mubr.bf16.gmra.mrb[64].mxu1 %v8679_v10  ;;  %v1671_v63 = vrot.slane %v1542_v38, 1  ;;  %v1773_v0 = vsel %vm1715_vm3, %v1771_v27, %v1772_v28  ;;  %v1775_v4 = vsel %vm1715_vm3, %v1772_v28, %v1774_v42  ;;  %v1776_v17 = vrot.slane %v1537_v53, 2 }
 0x2db   : > { %2764 = vmatprep.mubr.bf16.mxu1 %v8669_v40  ;;  %11694 = vst [vmem:[#allocation14_spill] sm:$0xff] %v8726_v24  ;;  %v1670_v50 = vsel %vm640_vm2, %v1668_v61, %v1669_v49  ;;  %v8743_v37 = vpack.c.bf16 %v1775_v4, %v1773_v0  ;;  %v1777_v11 = vrot.slane %v1538_v56, 2  ;;  %v1779_v58 = vrot.slane %v1539_v34, 2  ;;  %v1547_v0 = vld [vmem:[#allocation3 + $0x170] sm:$0xff]  ;;  %v1548_v4 = vld [vmem:[#allocation3 + $0x178] sm:$0x3] }
 0x2dc   : > { %2604 = vmatmul.mubr.bf16.gmra.mrb[52].mxu0 %v8631_v14  ;;  %v1672_v51 = vsel %vm640_vm2, %v1669_v49, %v1671_v63  ;;  %v1673_v27 = vrot.slane %v1543_v8, 1  ;;  %v1674_v28 = vrot.slane %v1544_v15, 1  ;;  %v1676_v42 = vrot.slane %v1545_v21, 1  ;;  %v1546_v63 = vld [vmem:[#allocation3 + $0x168] sm:$0xff] }
 0x2dd   : > { %2611 = vmatprep.mubr.bf16.mxu0 %v8682_v60  ;;  %v8745_v39 = vpack.c.bf16 %v1672_v51, %v1670_v50  ;;  %v1778_v61 = vsel %vm1715_vm3, %v1776_v17, %v1777_v11  ;;  %v1780_v49 = vsel %vm1715_vm3, %v1777_v11, %v1779_v58  ;;  %v8755_v34 = vpack.c.bf16 %v1544_v15, %v1543_v8 }
 0x2de   : > { %v1675_v53 = vsel %vm640_vm2, %v1673_v27, %v1674_v28  ;;  %v1677_v56 = vsel %vm640_vm2, %v1674_v28, %v1676_v42  ;;  %v8757_v50 = vpack.c.bf16 %v1780_v49, %v1778_v61  ;;  %v1781_v51 = vrot.slane %v1540_v7, 2 }
 0x2df   : > { %v1782_v57 = vrot.slane %v1541_v13, 2  ;;  %v1784_v24 = vrot.slane %v1542_v38, 2  ;;  %v8759_v20 = vpack.c.bf16 %v1677_v56, %v1675_v53  ;;  %v1678_v17 = vrot.slane %v1546_v63, 1 }
 0x2e0   : > { %v1679_v11 = vrot.slane %v1547_v0, 1  ;;  %v1681_v58 = vrot.slane %v1548_v4, 1  ;;  %v8769_v38 = vpack.c.bf16 %v1547_v0, %v1546_v63  ;;  %v1786_v61 = vrot.slane %v1543_v8, 2 }
 0x2e1   : > { %v1783_v27 = vsel %vm1715_vm3, %v1781_v51, %v1782_v57  ;;  %v1785_v28 = vsel %vm1715_vm3, %v1782_v57, %v1784_v24  ;;  %v1787_v49 = vrot.slane %v1544_v15, 2  ;;  %v1789_v53 = vrot.slane %v1545_v21, 2 }
 0x2e2   : > { %2765 = vmatmul.mubr.bf16.gmra.mrb[68].mxu1 %v8705_v35  ;;  %v1680_v7 = vsel %vm640_vm2, %v1678_v17, %v1679_v11  ;;  %v1682_v13 = vsel %vm640_vm2, %v1679_v11, %v1681_v58  ;;  %v8771_v42 = vpack.c.bf16 %v1785_v28, %v1783_v27  ;;  %v8783_v51 = vpack.c.bf16 %v8655_v54, %v8651_v32  ;;  %v7510_v32 = vld [vmem:[%s11585_s5 + $0x208] sm:$0xff]   ;;  %v7512_v54 = vld [vmem:[%s11585_s5 + $0x218] sm:$0xff]  }
 0x2e3   : > { %2772 = vmatprep.mubr.bf16.mxu1 %v8703_v31  ;;  %v8773_v56 = vpack.c.bf16 %v1682_v13, %v1680_v7  ;;  %v1788_v57 = vsel %vm1715_vm3, %v1786_v61, %v1787_v49  ;;  %v1790_v24 = vsel %vm1715_vm3, %v1787_v49, %v1789_v53  ;;  %v1791_v15 = vrot.slane %v1546_v63, 2 }
 0x2e4   : > { %2612 = vmatmul.mubr.bf16.gmra.mrb[56].mxu0 %v8669_v40  ;;  %v8785_v8 = vpack.c.bf16 %v1790_v24, %v1788_v57  ;;  %v1792_v21 = vrot.slane %v1547_v0, 2  ;;  %v1794_v17 = vrot.slane %v1548_v4, 2 }
 0x2e5   : > { %2619 = vmatprep.mubr.bf16.mxu0 %v8710_v30 }
 0x2e6   : > { %v1793_v11 = vsel %vm1715_vm3, %v1791_v15, %v1792_v21  ;;  %v1795_v58 = vsel %vm1715_vm3, %v1792_v21, %v1794_v17 }
 0x2e7   : > { %v8793_v27 = vpack.c.bf16 %v1795_v58, %v1793_v11  ;;  %v8892_v11 = vld [vmem:[#allocation3 + $0x1a8] sm:$0x3] }
 0x2ea   : > { %2773 = vmatmul.mubr.bf16.gmra.mrb[72].mxu1 %v8724_v47 }
 0x2eb   : > { %2780 = vmatprep.mubr.bf16.mxu1 %v8722_v6 }
 0x2ec   : > { %2620 = vmatmul.mubr.bf16.gmra.mrb[60].mxu0 %v8703_v31 }
 0x2ed   : > { %2627 = vmatprep.mubr.bf16.mxu0 %v8731_v44 }
 0x2f2   : > { %2781 = vmatmul.mubr.bf16.gmra.mrb[76].mxu1 %v8743_v37 }
 0x2f3   : > { %2788 = vmatprep.mubr.bf16.mxu1 %v8741_v52 }
 0x2f4   : > { %2628 = vmatmul.mubr.bf16.gmra.mrb[64].mxu0 %v8722_v6 }
 0x2f5   : > { %2635 = vmatprep.mubr.bf16.mxu0 %v8745_v39 }
 0x2fa   : > { %2789 = vmatmul.mubr.bf16.gmra.mrb[80].mxu1 %v8757_v50 }
 0x2fb   : > { %2796 = vmatprep.mubr.bf16.mxu1 %v8755_v34 }
 0x2fc   : > { %2636 = vmatmul.mubr.bf16.gmra.mrb[68].mxu0 %v8741_v52 }
 0x2fd   : > { %2643 = vmatprep.mubr.bf16.mxu0 %v8759_v20 }
 0x302   : > { %2797 = vmatmul.mubr.bf16.gmra.mrb[84].mxu1 %v8771_v42 }
 0x303   : > { %2804 = vmatprep.mubr.bf16.mxu1 %v8769_v38 }
 0x304   : > { %2644 = vmatmul.mubr.bf16.gmra.mrb[72].mxu0 %v8755_v34 }
 0x305   : > { %2651 = vmatprep.mubr.bf16.mxu0 %v8773_v56 }
 0x30a   : > { %2805 = vmatmul.mubr.bf16.gmra.mrb[88].mxu1 %v8785_v8 }
 0x30b   : > { %2812 = vmatprep.mubr.bf16.mxu1 %v8783_v51 }
 0x30c   : > { %2652 = vmatmul.mubr.bf16.gmra.mrb[76].mxu0 %v8769_v38 }
 0x30d   : > { %2853 = vmatprep.mubr.bf16.mxu0 %v8381_v18  ;;  %v7511_v18 = vld [vmem:[%s11585_s5 + $0x210] sm:$0xff]  }
 0x312   : > { %2813 = vmatmul.mubr.bf16.gmra.mrb[92].mxu1 %v8793_v27 }
 0x313   : > { %3014 = vmatprep.mubr.bf16.mxu1 %v8367_v5 }
 0x314   : > { %2854 = vmatmul.mubr.bf16.vlgmr.msra.gmra.mrb[80].mxu0 %v8336_v46  ;;  %v7514_v46 = vld [vmem:[%s11585_s5 + $0x228] sm:$0xff]  }
 0x315   : > { %6769 = vmatpush3.bf16.msra.mxu0 %v8322_v22  ;;  %2861 = vmatprep.mubr.bf16.mxu0 %v8444_v1  ;;  %v7513_v22 = vld [vmem:[%s11585_s5 + $0x220] sm:$0xff]  }
 0x316   : > { %6770 = vmatprep.subr.bf16.mxu0 %v7510_v32 }
 0x319   : > { %6771 = vmatpush3.bf16.msra.mxu0 %v7510_v32 }
 0x31a   : > { %3015 = vmatmul.mubr.bf16.vlgmr.msra.gmra.mrb[96].mxu1 %v8353_v59  ;;  %6772 = vmatprep.subr.bf16.mxu0 %v7511_v18  ;;  %v7515_v59 = vld [vmem:[%s11585_s5 + $0x230] sm:$0xff]  }
 0x31b   : > { %3022 = vmatprep.mubr.bf16.mxu1 %v8398_v29 }
 0x31c   : > { %2862 = vmatmul.mubr.bf16.gmra.mrb[84].mxu0 %v8367_v5  ;;  %v7516_v5 = vld [vmem:[%s11585_s5 + $0x238] sm:$0xff]  }
 0x31d   : > { %2869 = vmatprep.mubr.bf16.mxu0 %v8490_v43  ;;  %6773 = vmatpush3.bf16.msra.mxu0 %v7511_v18 }
 0x31e   : > { %6774 = vmatprep.subr.bf16.mxu0 %v7512_v54 }
 0x321   : > { %6775 = vmatpush3.bf16.msra.mxu0 %v7512_v54 }
 0x322   : > { %3023 = vmatmul.mubr.bf16.gmra.mrb[100].mxu1 %v8386_v19  ;;  %6776 = vmatprep.subr.bf16.mxu0 %v7513_v22  ;;  %v8866_v19 = vld [vmem:[%s11586_s6] ss:$0 sm:$0xff] }
 0x323   : > { %3030 = vmatprep.mubr.bf16.mxu1 %v8450_v9 }
 0x324   : > { %2870 = vmatmul.mubr.bf16.gmra.mrb[88].mxu0 %v8398_v29 }
 0x325   : > { %2877 = vmatprep.mubr.bf16.mxu0 %v8536_v25  ;;  %6777 = vmatpush3.bf16.msra.mxu0 %v7513_v22 }
 0x326   : > { %6778 = vmatprep.subr.bf16.mxu0 %v7514_v46 }
 0x329   : > { %6779 = vmatpush3.bf16.msra.mxu0 %v7514_v46 }
 0x32a   : > { %3031 = vmatmul.mubr.bf16.gmra.mrb[104].mxu1 %v8433_v55  ;;  %6780 = vmatprep.subr.bf16.mxu0 %v7515_v59 }
 0x32b   : > { %3038 = vmatprep.mubr.bf16.mxu1 %v8497_v48 }
 0x32c   : > { %2878 = vmatmul.mubr.bf16.gmra.mrb[92].mxu0 %v8450_v9  ;;  %v11695_v9 = vld [vmem:[#allocation13_spill] sm:$0xff] }
 0x32d   : > { %2885 = vmatprep.mubr.bf16.mxu0 %v8569_v2  ;;  %6781 = vmatpush3.bf16.msra.mxu0 %v7515_v59  ;;  %v8895_v59 = vld [vmem:[#allocation3] sm:$0xff] }
 0x32e   : > { %6782 = vmatprep.subr.bf16.mxu0 %v7516_v5  ;;  %542 = vst.msk [vmem:[#allocation4 + $0x30] sm:$0xff] %vm534_vm4, %v8895_v59  ;;  %543 = vst.msk [vmem:[#allocation4 + $0x38] sm:$0xff] %vm534_vm4, %v8895_v59 }
 0x32f   : > { %535 = vst.msk [vmem:[#allocation4] sm:$0xff] %vm534_vm4, %v8895_v59  ;;  %536 = vst.msk [vmem:[#allocation4 + $0x8] sm:$0xff] %vm534_vm4, %v8895_v59 }
 0x330   : > { %539 = vst.msk [vmem:[#allocation4 + $0x18] sm:$0xff] %vm534_vm4, %v8895_v59  ;;  %540 = vst.msk [vmem:[#allocation4 + $0x20] sm:$0xff] %vm534_vm4, %v8895_v59 }
 0x331   : > { %6783 = vmatpush3.bf16.msra.mxu0 %v7516_v5  ;;  %v1848_v5 = vrot.slane %v8895_v59, 1  ;;  %545 = vst.msk [vmem:[#allocation4 + $0x48] sm:$0xff] %vm534_vm4, %v8895_v59  ;;  %546 = vst.msk [vmem:[#allocation4 + $0x50] sm:$0xff] %vm534_vm4, %v8895_v59 }
 0x332   : > { %3039 = vmatmul.mubr.bf16.gmra.mrb[108].mxu1 %v8481_v36  ;;  %v2534_v36 = vadd.f32 %v11695_v9, %v8866_v19  ;;  %548 = vst.msk [vmem:[#allocation4 + $0x60] sm:$0xff] %vm534_vm4, %v8895_v59  ;;  %549 = vst.msk [vmem:[#allocation4 + $0x68] sm:$0xff] %vm534_vm4, %v8895_v59 }
 0x333   : > { %3046 = vmatprep.mubr.bf16.mxu1 %v8542_v33  ;;  %551 = vst.msk [vmem:[#allocation4 + $0x78] sm:$0xff] %vm534_vm4, %v8895_v59  ;;  %552 = vst.msk [vmem:[#allocation4 + $0x80] sm:$0xff] %vm534_vm4, %v8895_v59 }
 0x334   : > { %2886 = vmatmul.mubr.bf16.gmra.mrb[96].mxu0 %v8497_v48  ;;  %554 = vst.msk [vmem:[#allocation4 + $0x90] sm:$0xff] %vm534_vm4, %v8895_v59  ;;  %555 = vst.msk [vmem:[#allocation4 + $0x98] sm:$0xff] %vm534_vm4, %v8895_v59 }
 0x335   : > { %2893 = vmatprep.mubr.bf16.mxu0 %v8607_v16  ;;  %557 = vst.msk [vmem:[#allocation4 + $0xa8] sm:$0xff] %vm534_vm4, %v8895_v59  ;;  %558 = vst.msk [vmem:[#allocation4 + $0xb0] sm:$0xff] %vm534_vm4, %v8895_v59 }
 0x336   : > { %560 = vst.msk [vmem:[#allocation4 + $0xc0] sm:$0xff] %vm534_vm4, %v8895_v59  ;;  %561 = vst.msk [vmem:[#allocation4 + $0xc8] sm:$0xff] %vm534_vm4, %v8895_v59 }
 0x337   : > { %563 = vst.msk [vmem:[#allocation4 + $0xd8] sm:$0xff] %vm534_vm4, %v8895_v59  ;;  %564 = vst.msk [vmem:[#allocation4 + $0xe0] sm:$0xff] %vm534_vm4, %v8895_v59 }
 0x338   : > { %566 = vst.msk [vmem:[#allocation4 + $0xf0] sm:$0xff] %vm534_vm4, %v8895_v59  ;;  %567 = vst.msk [vmem:[#allocation4 + $0xf8] sm:$0xff] %vm534_vm4, %v8895_v59 }
 0x339   : > { %569 = vst.msk [vmem:[#allocation4 + $0x108] sm:$0xff] %vm534_vm4, %v8895_v59  ;;  %570 = vst.msk [vmem:[#allocation4 + $0x110] sm:$0xff] %vm534_vm4, %v8895_v59 }
 0x33a   : > { %3047 = vmatmul.mubr.bf16.gmra.mrb[112].mxu1 %v8526_v3  ;;  %572 = vst.msk [vmem:[#allocation4 + $0x120] sm:$0xff] %vm534_vm4, %v8895_v59  ;;  %573 = vst.msk [vmem:[#allocation4 + $0x128] sm:$0xff] %vm534_vm4, %v8895_v59 }
 0x33b   : > { %3054 = vmatprep.mubr.bf16.mxu1 %v8574_v12  ;;  %575 = vst.msk [vmem:[#allocation4 + $0x138] sm:$0xff] %vm534_vm4, %v8895_v59  ;;  %576 = vst.msk [vmem:[#allocation4 + $0x140] sm:$0xff] %vm534_vm4, %v8895_v59 }
 0x33c   : > { %2894 = vmatmul.mubr.bf16.gmra.mrb[100].mxu0 %v8542_v33  ;;  %578 = vst.msk [vmem:[#allocation4 + $0x150] sm:$0xff] %vm534_vm4, %v8895_v59  ;;  %579 = vst.msk [vmem:[#allocation4 + $0x158] sm:$0xff] %vm534_vm4, %v8895_v59 }
 0x33d   : > { %2901 = vmatprep.mubr.bf16.mxu0 %v8641_v23  ;;  %581 = vst.msk [vmem:[#allocation4 + $0x168] sm:$0xff] %vm534_vm4, %v8895_v59  ;;  %582 = vst.msk [vmem:[#allocation4 + $0x170] sm:$0xff] %vm534_vm4, %v8895_v59 }
 0x33e   : > { %584 = vst.msk [vmem:[#allocation4 + $0x180] sm:$0xff] %vm534_vm4, %v8895_v59  ;;  %585 = vst.msk [vmem:[#allocation4 + $0x188] sm:$0xff] %vm534_vm4, %v8895_v59 }
 0x33f   : > { %587 = vst.msk [vmem:[#allocation4 + $0x198] sm:$0xff] %vm534_vm4, %v8895_v59  ;;  %588 = vst.msk [vmem:[#allocation4 + $0x1a0] sm:$0xff] %vm534_vm4, %v8895_v59 }
 0x340   : > { %544 = vst.msk [vmem:[#allocation4 + $0x40] sm:$0x3] %vm537_vm5, %v8895_v59  ;;  %538 = vst.msk [vmem:[#allocation4 + $0x10] sm:$0x3] %vm537_vm5, %v8895_v59 }
 0x341   : > { %541 = vst.msk [vmem:[#allocation4 + $0x28] sm:$0x3] %vm537_vm5, %v8895_v59  ;;  %547 = vst.msk [vmem:[#allocation4 + $0x58] sm:$0x3] %vm537_vm5, %v8895_v59 }
 0x342   : > { %3055 = vmatmul.mubr.bf16.gmra.mrb[116].mxu1 %v8559_v41  ;;  %550 = vst.msk [vmem:[#allocation4 + $0x70] sm:$0x3] %vm537_vm5, %v8895_v59  ;;  %553 = vst.msk [vmem:[#allocation4 + $0x88] sm:$0x3] %vm537_vm5, %v8895_v59 }
 0x343   : > { %3062 = vmatprep.mubr.bf16.mxu1 %v8611_v62  ;;  %556 = vst.msk [vmem:[#allocation4 + $0xa0] sm:$0x3] %vm537_vm5, %v8895_v59  ;;  %559 = vst.msk [vmem:[#allocation4 + $0xb8] sm:$0x3] %vm537_vm5, %v8895_v59 }
 0x344   : > { %2902 = vmatmul.mubr.bf16.gmra.mrb[104].mxu0 %v8574_v12  ;;  %562 = vst.msk [vmem:[#allocation4 + $0xd0] sm:$0x3] %vm537_vm5, %v8895_v59  ;;  %565 = vst.msk [vmem:[#allocation4 + $0xe8] sm:$0x3] %vm537_vm5, %v8895_v59 }
 0x345   : > { %2909 = vmatprep.mubr.bf16.mxu0 %v8679_v10  ;;  %568 = vst.msk [vmem:[#allocation4 + $0x100] sm:$0x3] %vm537_vm5, %v8895_v59  ;;  %571 = vst.msk [vmem:[#allocation4 + $0x118] sm:$0x3] %vm537_vm5, %v8895_v59 }
 0x346   : > { %574 = vst.msk [vmem:[#allocation4 + $0x130] sm:$0x3] %vm537_vm5, %v8895_v59  ;;  %577 = vst.msk [vmem:[#allocation4 + $0x148] sm:$0x3] %vm537_vm5, %v8895_v59 }
 0x347   : > { %580 = vst.msk [vmem:[#allocation4 + $0x160] sm:$0x3] %vm537_vm5, %v8895_v59  ;;  %583 = vst.msk [vmem:[#allocation4 + $0x178] sm:$0x3] %vm537_vm5, %v8895_v59 }
 0x348   : > { %586 = vst.msk [vmem:[#allocation4 + $0x190] sm:$0x3] %vm537_vm5, %v8895_v59  ;;  %589 = vst.msk [vmem:[#allocation4 + $0x1a8] sm:$0x3] %vm537_vm5, %v8895_v59 }
 0x34a   : > { %3063 = vmatmul.mubr.bf16.gmra.mrb[120].mxu1 %v8596_v45  ;;  %v11696_v45 = vld [vmem:[#allocation14_spill] sm:$0xff] }
 0x34b   : > { %3070 = vmatprep.mubr.bf16.mxu1 %v8644_v26 }
 0x34c   : > { %2910 = vmatmul.mubr.bf16.gmra.mrb[108].mxu0 %v8611_v62  ;;  %v2537_v62 = vadd.f32 %v11696_v45, %v8866_v19 }
 0x34d   : > { %2917 = vmatprep.mubr.bf16.mxu0 %v8705_v35 }
 0x352   : > { %3071 = vmatmul.mubr.bf16.gmra.mrb[124].mxu1 %v8631_v14 }
 0x353   : > { %3078 = vmatprep.mubr.bf16.mxu1 %v8682_v60 }
 0x354   : > { %2918 = vmatmul.mubr.bf16.gmra.mrb[112].mxu0 %v8644_v26 }
 0x355   : > { %2925 = vmatprep.mubr.bf16.mxu0 %v8724_v47 }
 0x35a   : > { %3079 = vmatmul.mubr.bf16.gmra.mrb[128].mxu1 %v8669_v40 }
 0x35b   : > { %3086 = vmatprep.mubr.bf16.mxu1 %v8710_v30 }
 0x35c   : > { %2926 = vmatmul.mubr.bf16.gmra.mrb[116].mxu0 %v8682_v60 }
 0x35d   : > { %2933 = vmatprep.mubr.bf16.mxu0 %v8743_v37 }
 0x362   : > { %3087 = vmatmul.mubr.bf16.gmra.mrb[132].mxu1 %v8703_v31 }
 0x363   : > { %3094 = vmatprep.mubr.bf16.mxu1 %v8731_v44 }
 0x364   : > { %2934 = vmatmul.mubr.bf16.gmra.mrb[120].mxu0 %v8710_v30 }
 0x365   : > { %2941 = vmatprep.mubr.bf16.mxu0 %v8757_v50 }
 0x36a   : > { %3095 = vmatmul.mubr.bf16.gmra.mrb[136].mxu1 %v8722_v6 }
 0x36b   : > { %3102 = vmatprep.mubr.bf16.mxu1 %v8745_v39 }
 0x36c   : > { %2942 = vmatmul.mubr.bf16.gmra.mrb[124].mxu0 %v8731_v44 }
 0x36d   : > { %v6230_v29 = vpop.f32.mrb[32].mxu1  ;;  %2949 = vmatprep.mubr.bf16.mxu0 %v8771_v42 }
 0x36e   : > { %v6231_v55 = vpop.f32.mrb[33].mxu1 }
 0x36f   : > { %v6232_v48 = vadd.f32 %v6231_v55, %v6230_v29  ;;  %v6233_v3 = vpop.f32.mrb[34].mxu1  ;;  %v6124_v33 = vpop.f32.mrb[20].mxu0  ;;  %v1851_v29 = vrot.slane %v8892_v11, 1 }
 0x370   : > { %v6234_v41 = vpop.f32.mrb[35].mxu1  ;;  %v6125_v12 = vpop.f32.mrb[21].mxu0 }
 0x371   : > { %v8874_v14 = vadd.f32 %v6232_v48, %v2534_v36  ;;  %v6235_v26 = vadd.f32 %v6234_v41, %v6233_v3  ;;  %v6126_v40 = vadd.f32 %v6125_v12, %v6124_v33  ;;  %v6127_v60 = vpop.f32.mrb[22].mxu0  ;;  %v11697_v12 = vld [vmem:[#allocation11_spill] sm:$0xff]  ;;  %v1852_v45 = vsel %vm640_vm2, %v1848_v5, %v1851_v29 }
 0x372   : > { %3103 = vmatmul.mubr.bf16.gmra.mrb[140].mxu1 %v8741_v52  ;;  %v6128_v31 = vpop.f32.mrb[23].mxu0 }
 0x373   : > { %v8877_v30 = vadd.f32 %v6235_v26, %v2537_v62  ;;  %v6129_v6 = vadd.f32 %v6128_v31, %v6127_v60  ;;  %3110 = vmatprep.mubr.bf16.mxu1 %v8759_v20  ;;  %v2542_v0 = vadd.f32 %v6126_v40, %v8866_v19  ;;  %v11698_v26 = vld [vmem:[#allocation12_spill] sm:$0xff] }
 0x374   : > { %2950 = vmatmul.mubr.bf16.gmra.mrb[128].mxu0 %v8745_v39 }
 0x375   : > { %v6236_v44 = vpop.f32.mrb[36].mxu1  ;;  %2957 = vmatprep.mubr.bf16.mxu0 %v8785_v8  ;;  %v2545_v52 = vadd.f32 %v6129_v6, %v8866_v19 }
 0x376   : > { %v6237_v63 = vpop.f32.mrb[37].mxu1 }
 0x377   : > { %v6238_v4 = vadd.f32 %v6237_v63, %v6236_v44  ;;  %v6239_v28 = vpop.f32.mrb[38].mxu1  ;;  %v6130_v7 = vpop.f32.mrb[24].mxu0 }
 0x378   : > { %v6240_v13 = vpop.f32.mrb[39].mxu1  ;;  %v6131_v61 = vpop.f32.mrb[25].mxu0 }
 0x379   : > { %v8884_v49 = vadd.f32 %v6238_v4, %v2542_v0  ;;  %v6241_v53 = vadd.f32 %v6240_v13, %v6239_v28  ;;  %v6132_v57 = vadd.f32 %v6131_v61, %v6130_v7  ;;  %v6133_v24 = vpop.f32.mrb[26].mxu0 }
 0x37a   : > { %3111 = vmatmul.mubr.bf16.gmra.mrb[144].mxu1 %v8755_v34  ;;  %v6134_v39 = vpop.f32.mrb[27].mxu0 }
 0x37b   : > { %v8887_v15 = vadd.f32 %v6241_v53, %v2545_v52  ;;  %v6135_v21 = vadd.f32 %v6134_v39, %v6133_v24  ;;  %3118 = vmatprep.mubr.bf16.mxu1 %v8773_v56  ;;  %v2550_v32 = vadd.f32 %v6132_v57, %v8866_v19  ;;  %v1913_v39 = vpack.c.bf16 %v8895_v59, %v8895_v59 }
 0x37c   : > { %2958 = vmatmul.mubr.bf16.gmra.mrb[132].mxu0 %v8759_v20 }
 0x37d   : > { %v6242_v17 = vpop.f32.mrb[40].mxu1  ;;  %2965 = vmatprep.mubr.bf16.mxu0 %v8793_v27  ;;  %v2553_v20 = vadd.f32 %v6135_v21, %v8866_v19 }
 0x37e   : > { %v6243_v58 = vpop.f32.mrb[41].mxu1 }
 0x37f   : > { %v6244_v18 = vadd.f32 %v6243_v58, %v6242_v17  ;;  %v6245_v54 = vpop.f32.mrb[42].mxu1  ;;  %v6136_v22 = vpop.f32.mrb[28].mxu0 }
 0x380   : > { %v6246_v34 = vpop.f32.mrb[43].mxu1  ;;  %v6137_v46 = vpop.f32.mrb[29].mxu0 }
 0x381   : > { %v8900_v55 = vadd.f32 %v6244_v18, %v2550_v32  ;;  %v6247_v9 = vadd.f32 %v6246_v34, %v6245_v54  ;;  %v6138_v36 = vadd.f32 %v6137_v46, %v6136_v22  ;;  %v6139_v48 = vpop.f32.mrb[30].mxu0 }
 0x382   : > { %3119 = vmatmul.mubr.bf16.gmra.mrb[148].mxu1 %v8769_v38  ;;  %v6140_v3 = vpop.f32.mrb[31].mxu0  ;;  %v1914_v38 = vpack.c.bf16 %v1852_v45, %v1848_v5 }
 0x383   : > { %v8903_v33 = vadd.f32 %v6247_v9, %v2553_v20  ;;  %v6141_v41 = vadd.f32 %v6140_v3, %v6139_v48  ;;  %3126 = vmatprep.mubr.bf16.mxu1 %v11697_v12  ;;  %v2558_v60 = vadd.f32 %v6138_v36, %v8866_v19 }
 0x384   : > { %2966 = vmatmul.mubr.bf16.gmra.mrb[136].mxu0 %v8773_v56 }
 0x385   : > { %v6248_v62 = vpop.f32.mrb[44].mxu1  ;;  %2973 = vmatprep.mubr.bf16.mxu0 %v11698_v26  ;;  %v2561_v4 = vadd.f32 %v6141_v41, %v8866_v19 }
 0x386   : > { %v6249_v40 = vpop.f32.mrb[45].mxu1 }
 0x387   : > { %v6250_v31 = vadd.f32 %v6249_v40, %v6248_v62  ;;  %v6251_v6 = vpop.f32.mrb[46].mxu1  ;;  %v6142_v44 = vpop.f32.mrb[32].mxu0 }
 0x388   : > { %v6252_v63 = vpop.f32.mrb[47].mxu1  ;;  %v6143_v0 = vpop.f32.mrb[33].mxu0 }
 0x389   : > { %v8911_v28 = vadd.f32 %v6250_v31, %v2558_v60  ;;  %v6253_v7 = vadd.f32 %v6252_v63, %v6251_v6  ;;  %v6144_v56 = vadd.f32 %v6143_v0, %v6142_v44  ;;  %v6145_v13 = vpop.f32.mrb[34].mxu0 }
 0x38a   : > { %3127 = vmatmul.mubr.bf16.gmra.mrb[152].mxu1 %v8783_v51  ;;  %v6146_v61 = vpop.f32.mrb[35].mxu0 }
 0x38b   : > { %v8914_v52 = vadd.f32 %v6253_v7, %v2561_v4  ;;  %v6147_v53 = vadd.f32 %v6146_v61, %v6145_v13  ;;  %3134 = vmatprep.mubr.bf16.mxu1 %v1914_v38  ;;  %v2566_v21 = vadd.f32 %v6144_v56, %v8866_v19 }
 0x38c   : > { %2974 = vmatmul.mubr.bf16.gmra.mrb[140].mxu0 %v11697_v12 }
 0x38d   : > { %v6254_v57 = vpop.f32.mrb[48].mxu1  ;;  %6784 = vmatprep.mubr.bf16.mxu0 %v8444_v1  ;;  %v2569_v54 = vadd.f32 %v6147_v53, %v8866_v19 }
 0x38e   : > { %v6255_v24 = vpop.f32.mrb[49].mxu1 }
 0x38f   : > { %v6256_v17 = vadd.f32 %v6255_v24, %v6254_v57  ;;  %v6257_v58 = vpop.f32.mrb[50].mxu1  ;;  %v6148_v32 = vpop.f32.mrb[36].mxu0 }
 0x390   : > { %v6258_v51 = vpop.f32.mrb[51].mxu1  ;;  %v6149_v18 = vpop.f32.mrb[37].mxu0 }
 0x391   : > { %v8922_v22 = vadd.f32 %v6256_v17, %v2566_v21  ;;  %v6259_v34 = vadd.f32 %v6258_v51, %v6257_v58  ;;  %v6150_v46 = vadd.f32 %v6149_v18, %v6148_v32  ;;  %v6151_v5 = vpop.f32.mrb[38].mxu0 }
 0x392   : > { %3135 = vmatmul.mubr.bf16.gmra.mrb[156].mxu1 %v1913_v39  ;;  %v6152_v1 = vpop.f32.mrb[39].mxu0 }
 0x393   : > { %v8924_v29 = vadd.f32 %v6259_v34, %v2569_v54  ;;  %v6153_v20 = vadd.f32 %v6152_v1, %v6151_v5  ;;  %v2574_v48 = vadd.f32 %v6150_v46, %v8866_v19 }
 0x394   : > { %6785 = vmatmul.mubr.bf16.vlgmr.msra.gmra.mrb[144].mxu0 %v8490_v43 }
 0x395   : > { %v6260_v9 = vpop.f32.mrb[52].mxu1  ;;  %6788 = vmatprep.mubr.bf16.mxu0 %v8536_v25  ;;  %v2577_v40 = vadd.f32 %v6153_v20, %v8866_v19 }
 0x396   : > { %v6261_v36 = vpop.f32.mrb[53].mxu1 }
 0x397   : > { %v6262_v3 = vadd.f32 %v6261_v36, %v6260_v9  ;;  %v6263_v41 = vpop.f32.mrb[54].mxu1  ;;  %v6154_v12 = vpop.f32.mrb[40].mxu0 }
 0x398   : > { %v6264_v45 = vpop.f32.mrb[55].mxu1  ;;  %v6155_v62 = vpop.f32.mrb[41].mxu0 }
 0x399   : > { %v8930_v60 = vadd.f32 %v6262_v3, %v2574_v48  ;;  %v6265_v31 = vadd.f32 %v6264_v45, %v6263_v41  ;;  %v6156_v6 = vadd.f32 %v6155_v62, %v6154_v12  ;;  %v6157_v44 = vpop.f32.mrb[42].mxu0 }
 0x39a   : > { %v6158_v38 = vpop.f32.mrb[43].mxu0 }
 0x39b   : > { %v8932_v43 = vadd.f32 %v6265_v31, %v2577_v40  ;;  %v6159_v63 = vadd.f32 %v6158_v38, %v6157_v44  ;;  %v2582_v4 = vadd.f32 %v6156_v6, %v8866_v19 }
 0x39c   : > { %6789 = vmatmul.mubr.bf16.gmra.mrb[148].mxu0 %v8569_v2 }
 0x39d   : > { %v6266_v25 = vpop.f32.mrb[56].mxu1  ;;  %6792 = vmatprep.mubr.bf16.mxu0 %v8607_v16  ;;  %v2585_v57 = vadd.f32 %v6159_v63, %v8866_v19 }
 0x39e   : > { %v6267_v0 = vpop.f32.mrb[57].mxu1 }
 0x39f   : > { %v6268_v7 = vadd.f32 %v6267_v0, %v6266_v25  ;;  %v6269_v56 = vpop.f32.mrb[58].mxu1  ;;  %v6160_v13 = vpop.f32.mrb[44].mxu0 }
 0x3a0   : > { %v6270_v61 = vpop.f32.mrb[59].mxu1  ;;  %v6161_v53 = vpop.f32.mrb[45].mxu0 }
 0x3a1   : > { %v8938_v24 = vadd.f32 %v6268_v7, %v2582_v4  ;;  %v6271_v39 = vadd.f32 %v6270_v61, %v6269_v56  ;;  %v6162_v21 = vadd.f32 %v6161_v53, %v6160_v13  ;;  %v6163_v17 = vpop.f32.mrb[46].mxu0 }
 0x3a2   : > { %v6164_v58 = vpop.f32.mrb[47].mxu0 }
 0x3a3   : > { %v8940_v2 = vadd.f32 %v6271_v39, %v2585_v57  ;;  %v6165_v32 = vadd.f32 %v6164_v58, %v6163_v17  ;;  %v2590_v18 = vadd.f32 %v6162_v21, %v8866_v19 }
 0x3a4   : > { %6793 = vmatmul.mubr.bf16.gmra.mrb[152].mxu0 %v8641_v23 }
 0x3a5   : > { %v6272_v16 = vpop.f32.mrb[60].mxu1  ;;  %6796 = vmatprep.mubr.bf16.mxu0 %v8679_v10  ;;  %v2593_v20 = vadd.f32 %v6165_v32, %v8866_v19 }
 0x3a6   : > { %v6273_v51 = vpop.f32.mrb[61].mxu1 }
 0x3a7   : > { %v6274_v54 = vadd.f32 %v6273_v51, %v6272_v16  ;;  %v6275_v34 = vpop.f32.mrb[62].mxu1  ;;  %v6166_v46 = vpop.f32.mrb[48].mxu0 }
 0x3a8   : > { %v6276_v5 = vpop.f32.mrb[63].mxu1  ;;  %v6167_v1 = vpop.f32.mrb[49].mxu0 }
 0x3a9   : > { %v8946_v9 = vadd.f32 %v6274_v54, %v2590_v18  ;;  %v6277_v36 = vadd.f32 %v6276_v5, %v6275_v34  ;;  %v6168_v48 = vadd.f32 %v6167_v1, %v6166_v46  ;;  %v6169_v3 = vpop.f32.mrb[50].mxu0 }
 0x3aa   : > { %v6170_v41 = vpop.f32.mrb[51].mxu0 }
 0x3ab   : > { %v8948_v23 = vadd.f32 %v6277_v36, %v2593_v20  ;;  %v6171_v12 = vadd.f32 %v6170_v41, %v6169_v3  ;;  %v2598_v62 = vadd.f32 %v6168_v48, %v8866_v19 }
 0x3ac   : > { %6797 = vmatmul.mubr.bf16.gmra.mrb[156].mxu0 %v8705_v35 }
 0x3ad   : > { %v6278_v10 = vpop.f32.mrb[64].mxu1  ;;  %6800 = vmatprep.mubr.bf16.mxu0 %v8724_v47  ;;  %v2601_v63 = vadd.f32 %v6171_v12, %v8866_v19  ;;  %v1855_v12 = vrot.slane %v8895_v59, 2 }
 0x3ae   : > { %v6279_v45 = vpop.f32.mrb[65].mxu1 }
 0x3af   : > { %v6280_v40 = vadd.f32 %v6279_v45, %v6278_v10  ;;  %v6281_v31 = vpop.f32.mrb[66].mxu1  ;;  %v6172_v6 = vpop.f32.mrb[52].mxu0  ;;  %v1858_v10 = vrot.slane %v8892_v11, 2 }
 0x3b0   : > { %v6282_v44 = vpop.f32.mrb[67].mxu1  ;;  %v6173_v38 = vpop.f32.mrb[53].mxu0 }
 0x3b1   : > { %v8954_v25 = vadd.f32 %v6280_v40, %v2598_v62  ;;  %v6283_v0 = vadd.f32 %v6282_v44, %v6281_v31  ;;  %v6174_v4 = vadd.f32 %v6173_v38, %v6172_v6  ;;  %v6175_v7 = vpop.f32.mrb[54].mxu0 }
 0x3b2   : > { %v6176_v56 = vpop.f32.mrb[55].mxu0 }
 0x3b3   : > { %v8956_v35 = vadd.f32 %v6283_v0, %v2601_v63  ;;  %v6177_v13 = vadd.f32 %v6176_v56, %v6175_v7  ;;  %v2606_v53 = vadd.f32 %v6174_v4, %v8866_v19  ;;  %v1859_v63 = vsel %vm1715_vm3, %v1855_v12, %v1858_v10 }
 0x3b4   : > { %6801 = vmatmul.mubr.bf16.gmra.mrb[160].mxu0 %v8743_v37 }
 0x3b5   : > { %v6284_v47 = vpop.f32.mrb[68].mxu1  ;;  %6804 = vmatprep.mubr.bf16.mxu0 %v8757_v50  ;;  %v2609_v32 = vadd.f32 %v6177_v13, %v8866_v19 }
 0x3b6   : > { %v6285_v61 = vpop.f32.mrb[69].mxu1 }
 0x3b7   : > { %v6286_v57 = vadd.f32 %v6285_v61, %v6284_v47  ;;  %v6287_v39 = vpop.f32.mrb[70].mxu1  ;;  %v6178_v21 = vpop.f32.mrb[56].mxu0  ;;  %v1915_v61 = vpack.c.bf16 %v1859_v63, %v1855_v12 }
 0x3b8   : > { %v6288_v17 = vpop.f32.mrb[71].mxu1  ;;  %v6179_v58 = vpop.f32.mrb[57].mxu0 }
 0x3b9   : > { %v8962_v16 = vadd.f32 %v6286_v57, %v2606_v53  ;;  %v6289_v51 = vadd.f32 %v6288_v17, %v6287_v39  ;;  %v6180_v18 = vadd.f32 %v6179_v58, %v6178_v21  ;;  %v6181_v54 = vpop.f32.mrb[58].mxu0 }
 0x3ba   : > { %v6182_v34 = vpop.f32.mrb[59].mxu0 }
 0x3bb   : > { %v8964_v37 = vadd.f32 %v6289_v51, %v2609_v32  ;;  %v6183_v46 = vadd.f32 %v6182_v34, %v6181_v54  ;;  %v2614_v1 = vadd.f32 %v6180_v18, %v8866_v19 }
 0x3bc   : > { %6805 = vmatmul.mubr.bf16.gmra.mrb[164].mxu0 %v8771_v42 }
 0x3bd   : > { %v6290_v50 = vpop.f32.mrb[72].mxu1  ;;  %6808 = vmatprep.mubr.bf16.mxu0 %v8785_v8  ;;  %v2617_v45 = vadd.f32 %v6183_v46, %v8866_v19 }
 0x3be   : > { %v6291_v5 = vpop.f32.mrb[73].mxu1 }
 0x3bf   : > { %v6292_v20 = vadd.f32 %v6291_v5, %v6290_v50  ;;  %v6293_v36 = vpop.f32.mrb[74].mxu1  ;;  %v6184_v48 = vpop.f32.mrb[60].mxu0 }
 0x3c0   : > { %v6294_v3 = vpop.f32.mrb[75].mxu1  ;;  %v6185_v41 = vpop.f32.mrb[61].mxu0 }
 0x3c1   : > { %v8972_v62 = vadd.f32 %v6292_v20, %v2614_v1  ;;  %v6295_v42 = vadd.f32 %v6294_v3, %v6293_v36  ;;  %v6186_v40 = vadd.f32 %v6185_v41, %v6184_v48  ;;  %v6187_v31 = vpop.f32.mrb[62].mxu0 }
 0x3c2   : > { %v6188_v8 = vpop.f32.mrb[63].mxu0 }
 0x3c3   : > { %v8974_v6 = vadd.f32 %v6295_v42, %v2617_v45  ;;  %v6189_v44 = vadd.f32 %v6188_v8, %v6187_v31  ;;  %v2622_v11 = vadd.f32 %v6186_v40, %v8866_v19 }
 0x3c4   : > { %6809 = vmatmul.mubr.bf16.gmra.mrb[168].mxu0 %v8793_v27 }
 0x3c5   : > { %v6296_v38 = vpop.f32.mrb[76].mxu1  ;;  %6812 = vmatprep.mubr.bf16.mxu0 %v11698_v26  ;;  %v2625_v53 = vadd.f32 %v6189_v44, %v8866_v19 }
 0x3c6   : > { %v6297_v0 = vpop.f32.mrb[77].mxu1 }
 0x3c7   : > { %v6298_v4 = vadd.f32 %v6297_v0, %v6296_v38  ;;  %v6299_v7 = vpop.f32.mrb[78].mxu1  ;;  %v6190_v56 = vpop.f32.mrb[64].mxu0 }
 0x3c8   : > { %v6300_v13 = vpop.f32.mrb[79].mxu1  ;;  %v6191_v47 = vpop.f32.mrb[65].mxu0 }
 0x3c9   : > { %v8981_v57 = vadd.f32 %v6298_v4, %v2622_v11  ;;  %v6301_v39 = vadd.f32 %v6300_v13, %v6299_v7  ;;  %v6192_v27 = vadd.f32 %v6191_v47, %v6190_v56  ;;  %v6193_v21 = vpop.f32.mrb[66].mxu0 }
 0x3ca   : > { %v6194_v17 = vpop.f32.mrb[67].mxu0 }
 0x3cb   : > { %v8983_v26 = vadd.f32 %v6301_v39, %v2625_v53  ;;  %v6195_v58 = vadd.f32 %v6194_v17, %v6193_v21  ;;  %v2630_v18 = vadd.f32 %v6192_v27, %v8866_v19 }
 0x3cc   : > { %6813 = vmatmul.mubr.bf16.gmra.mrb[172].mxu0 %v1915_v61 }
 0x3cd   : > { %v6302_v32 = vpop.f32.mrb[80].mxu1  ;;  %v2633_v1 = vadd.f32 %v6195_v58, %v8866_v19 }
 0x3ce   : > { %v6303_v51 = vpop.f32.mrb[81].mxu1 }
 0x3cf   : > { %v6304_v54 = vadd.f32 %v6303_v51, %v6302_v32  ;;  %v6305_v34 = vpop.f32.mrb[82].mxu1  ;;  %v6196_v46 = vpop.f32.mrb[68].mxu0 }
 0x3d0   : > { %v6306_v50 = vpop.f32.mrb[83].mxu1  ;;  %v6197_v5 = vpop.f32.mrb[69].mxu0 }
 0x3d1   : > { %v8987_v20 = vadd.f32 %v6304_v54, %v2630_v18  ;;  %v6307_v36 = vadd.f32 %v6306_v50, %v6305_v34  ;;  %v6198_v48 = vadd.f32 %v6197_v5, %v6196_v46  ;;  %v6199_v3 = vpop.f32.mrb[70].mxu0 }
 0x3d2   : > { %v6200_v41 = vpop.f32.mrb[71].mxu0 }
 0x3d3   : > { %v8989_v12 = vadd.f32 %v6307_v36, %v2633_v1  ;;  %v6201_v10 = vadd.f32 %v6200_v41, %v6199_v3  ;;  %v2638_v40 = vadd.f32 %v6198_v48, %v8866_v19 }
 0x3d5   : > { %v6308_v45 = vpop.f32.mrb[84].mxu1  ;;  %v2641_v0 = vadd.f32 %v6201_v10, %v8866_v19 }
 0x3d6   : > { %v6309_v42 = vpop.f32.mrb[85].mxu1 }
 0x3d7   : > { %v6310_v31 = vadd.f32 %v6309_v42, %v6308_v45  ;;  %v6311_v8 = vpop.f32.mrb[86].mxu1  ;;  %v6202_v44 = vpop.f32.mrb[72].mxu0 }
 0x3d8   : > { %v6312_v38 = vpop.f32.mrb[87].mxu1  ;;  %v6203_v63 = vpop.f32.mrb[73].mxu0 }
 0x3d9   : > { %v8993_v11 = vadd.f32 %v6310_v31, %v2638_v40  ;;  %v6313_v4 = vadd.f32 %v6312_v38, %v6311_v8  ;;  %v6204_v7 = vadd.f32 %v6203_v63, %v6202_v44  ;;  %v6205_v56 = vpop.f32.mrb[74].mxu0 }
 0x3da   : > { %v6206_v13 = vpop.f32.mrb[75].mxu0 }
 0x3db   : > { %v8995_v47 = vadd.f32 %v6313_v4, %v2641_v0  ;;  %v6207_v61 = vadd.f32 %v6206_v13, %v6205_v56  ;;  %v2646_v27 = vadd.f32 %v6204_v7, %v8866_v19 }
 0x3dd   : > { %v6314_v53 = vpop.f32.mrb[88].mxu1  ;;  %v2649_v18 = vadd.f32 %v6207_v61, %v8866_v19 }
 0x3de   : > { %v6315_v39 = vpop.f32.mrb[89].mxu1 }
 0x3df   : > { %v6316_v21 = vadd.f32 %v6315_v39, %v6314_v53  ;;  %v6317_v17 = vpop.f32.mrb[90].mxu1  ;;  %v6208_v58 = vpop.f32.mrb[76].mxu0 }
 0x3e0   : > { %v6318_v32 = vpop.f32.mrb[91].mxu1  ;;  %v6209_v51 = vpop.f32.mrb[77].mxu0 }
 0x3e1   : > { %v8999_v54 = vadd.f32 %v6316_v21, %v2646_v27  ;;  %v6319_v34 = vadd.f32 %v6318_v32, %v6317_v17  ;;  %v6210_v46 = vadd.f32 %v6209_v51, %v6208_v58  ;;  %v6211_v50 = vpop.f32.mrb[78].mxu0 }
 0x3e2   : > { %v6212_v5 = vpop.f32.mrb[79].mxu0 }
 0x3e3   : > { %v9001_v1 = vadd.f32 %v6319_v34, %v2649_v18  ;;  %v6213_v36 = vadd.f32 %v6212_v5, %v6211_v50  ;;  %v2654_v41 = vadd.f32 %v6210_v46, %v8866_v19 }
 0x3e5   : > { %v6320_v48 = vpop.f32.mrb[92].mxu1  ;;  %v2657_v40 = vadd.f32 %v6213_v36, %v8866_v19 }
 0x3e6   : > { %v6321_v3 = vpop.f32.mrb[93].mxu1 }
 0x3e7   : > { %v6322_v10 = vadd.f32 %v6321_v3, %v6320_v48  ;;  %v6323_v45 = vpop.f32.mrb[94].mxu1  ;;  %v6342_v42 = vpop.f32.mrb[80].mxu0 }
 0x3e8   : > { %v6324_v31 = vpop.f32.mrb[95].mxu1  ;;  %v6343_v8 = vpop.f32.mrb[81].mxu0 }
 0x3e9   : > { %v9005_v44 = vadd.f32 %v6322_v10, %v2654_v41  ;;  %v6325_v38 = vadd.f32 %v6324_v31, %v6323_v45  ;;  %v6344_v63 = vadd.f32 %v6343_v8, %v6342_v42  ;;  %v6345_v0 = vpop.f32.mrb[82].mxu0 }
 0x3ea   : > { %v6346_v4 = vpop.f32.mrb[83].mxu0 }
 0x3eb   : > { %v9079_v19 = vadd.f32 %v6325_v38, %v2657_v40  ;;  %v2856_v7 = vadd.f32 %v6344_v63, %v8874_v14  ;;  %v6347_v56 = vadd.f32 %v6346_v4, %v6345_v0 }
 0x3ed   : > { %v2859_v14 = vadd.f32 %v6347_v56, %v8877_v30  ;;  %v6454_v13 = vpop.f32.mrb[96].mxu1 }
 0x3ee   : > { %v6455_v61 = vpop.f32.mrb[97].mxu1 }
 0x3ef   : > { %v6456_v53 = vadd.f32 %v6455_v61, %v6454_v13  ;;  %v6457_v39 = vpop.f32.mrb[98].mxu1  ;;  %v6348_v27 = vpop.f32.mrb[84].mxu0 }
 0x3f0   : > { %v6458_v21 = vpop.f32.mrb[99].mxu1  ;;  %v6349_v17 = vpop.f32.mrb[85].mxu0 }
 0x3f1   : > { %v6459_v58 = vadd.f32 %v6458_v21, %v6457_v39  ;;  %v6350_v32 = vadd.f32 %v6349_v17, %v6348_v27  ;;  %v6351_v51 = vpop.f32.mrb[86].mxu0  ;;  %v9119_v18 = vadd.f32 %v6456_v53, %v2856_v7 }
 0x3f2   : > { %v6352_v34 = vpop.f32.mrb[87].mxu0 }
 0x3f3   : > { %v2864_v46 = vadd.f32 %v6350_v32, %v8884_v49  ;;  %v6353_v50 = vadd.f32 %v6352_v34, %v6351_v51  ;;  %v9122_v5 = vadd.f32 %v6459_v58, %v2859_v14 }
 0x3f5   : > { %v2867_v30 = vadd.f32 %v6353_v50, %v8887_v15  ;;  %v6460_v59 = vpop.f32.mrb[100].mxu1 }
 0x3f6   : > { %v6461_v36 = vpop.f32.mrb[101].mxu1 }
 0x3f7   : > { %v6462_v48 = vadd.f32 %v6461_v36, %v6460_v59  ;;  %v6463_v3 = vpop.f32.mrb[102].mxu1  ;;  %v6354_v41 = vpop.f32.mrb[88].mxu0 }
 0x3f8   : > { %v6464_v10 = vpop.f32.mrb[103].mxu1  ;;  %v6355_v45 = vpop.f32.mrb[89].mxu0 }
 0x3f9   : > { %v6465_v42 = vadd.f32 %v6464_v10, %v6463_v3  ;;  %v6356_v40 = vadd.f32 %v6355_v45, %v6354_v41  ;;  %v6357_v31 = vpop.f32.mrb[90].mxu0  ;;  %v9125_v8 = vadd.f32 %v6462_v48, %v2864_v46 }
 0x3fa   : > { %v6358_v38 = vpop.f32.mrb[91].mxu0 }
 0x3fb   : > { %v2872_v49 = vadd.f32 %v6356_v40, %v8900_v55  ;;  %v6359_v63 = vadd.f32 %v6358_v38, %v6357_v31  ;;  %v9128_v0 = vadd.f32 %v6465_v42, %v2867_v30 }
 0x3fd   : > { %v2875_v15 = vadd.f32 %v6359_v63, %v8903_v33  ;;  %v6466_v4 = vpop.f32.mrb[104].mxu1 }
 0x3fe   : > { %v6467_v7 = vpop.f32.mrb[105].mxu1 }
 0x3ff   : > { %v6468_v56 = vadd.f32 %v6467_v7, %v6466_v4  ;;  %v6469_v14 = vpop.f32.mrb[106].mxu1  ;;  %v6360_v13 = vpop.f32.mrb[92].mxu0 }
 0x400   : > { %v6470_v61 = vpop.f32.mrb[107].mxu1  ;;  %v6361_v53 = vpop.f32.mrb[93].mxu0 }
 0x401   : > { %v6471_v39 = vadd.f32 %v6470_v61, %v6469_v14  ;;  %v6362_v27 = vadd.f32 %v6361_v53, %v6360_v13  ;;  %v6363_v21 = vpop.f32.mrb[94].mxu0  ;;  %v9131_v17 = vadd.f32 %v6468_v56, %v2872_v49 }
 0x402   : > { %v6364_v58 = vpop.f32.mrb[95].mxu0 }
 0x403   : > { %v2880_v55 = vadd.f32 %v6362_v27, %v8911_v28  ;;  %v6365_v32 = vadd.f32 %v6364_v58, %v6363_v21  ;;  %v9134_v51 = vadd.f32 %v6471_v39, %v2875_v15 }
 0x405   : > { %v2883_v33 = vadd.f32 %v6365_v32, %v8914_v52  ;;  %v6472_v34 = vpop.f32.mrb[108].mxu1 }
 0x406   : > { %v6473_v46 = vpop.f32.mrb[109].mxu1 }
 0x407   : > { %v6474_v50 = vadd.f32 %v6473_v46, %v6472_v34  ;;  %v6475_v30 = vpop.f32.mrb[110].mxu1  ;;  %v6366_v59 = vpop.f32.mrb[96].mxu0 }
 0x408   : > { %v6476_v36 = vpop.f32.mrb[111].mxu1  ;;  %v6367_v48 = vpop.f32.mrb[97].mxu0 }
 0x409   : > { %v6477_v3 = vadd.f32 %v6476_v36, %v6475_v30  ;;  %v6368_v41 = vadd.f32 %v6367_v48, %v6366_v59  ;;  %v6369_v10 = vpop.f32.mrb[98].mxu0  ;;  %v9137_v45 = vadd.f32 %v6474_v50, %v2880_v55 }
 0x40a   : > { %v6370_v42 = vpop.f32.mrb[99].mxu0 }
 0x40b   : > { %v2888_v28 = vadd.f32 %v6368_v41, %v8922_v22  ;;  %v6371_v40 = vadd.f32 %v6370_v42, %v6369_v10  ;;  %v9140_v31 = vadd.f32 %v6477_v3, %v2883_v33 }
 0x40d   : > { %v2891_v52 = vadd.f32 %v6371_v40, %v8924_v29  ;;  %v6478_v38 = vpop.f32.mrb[112].mxu1 }
 0x40e   : > { %v6479_v49 = vpop.f32.mrb[113].mxu1 }
 0x40f   : > { %v6480_v63 = vadd.f32 %v6479_v49, %v6478_v38  ;;  %v6481_v15 = vpop.f32.mrb[114].mxu1  ;;  %v6372_v4 = vpop.f32.mrb[100].mxu0 }
 0x410   : > { %v6482_v7 = vpop.f32.mrb[115].mxu1  ;;  %v6373_v56 = vpop.f32.mrb[101].mxu0 }
 0x411   : > { %v6483_v14 = vadd.f32 %v6482_v7, %v6481_v15  ;;  %v6374_v13 = vadd.f32 %v6373_v56, %v6372_v4  ;;  %v6375_v61 = vpop.f32.mrb[102].mxu0  ;;  %v9143_v53 = vadd.f32 %v6480_v63, %v2888_v28 }
 0x412   : > { %v6376_v39 = vpop.f32.mrb[103].mxu0 }
 0x413   : > { %v2896_v22 = vadd.f32 %v6374_v13, %v8930_v60  ;;  %v6377_v27 = vadd.f32 %v6376_v39, %v6375_v61  ;;  %v9146_v21 = vadd.f32 %v6483_v14, %v2891_v52 }
 0x415   : > { %v2899_v29 = vadd.f32 %v6377_v27, %v8932_v43  ;;  %v6484_v58 = vpop.f32.mrb[116].mxu1 }
 0x416   : > { %v6485_v55 = vpop.f32.mrb[117].mxu1 }
 0x417   : > { %v6486_v32 = vadd.f32 %v6485_v55, %v6484_v58  ;;  %v6487_v33 = vpop.f32.mrb[118].mxu1  ;;  %v6378_v34 = vpop.f32.mrb[104].mxu0 }
 0x418   : > { %v6488_v46 = vpop.f32.mrb[119].mxu1  ;;  %v6379_v50 = vpop.f32.mrb[105].mxu0 }
 0x419   : > { %v6489_v30 = vadd.f32 %v6488_v46, %v6487_v33  ;;  %v6380_v59 = vadd.f32 %v6379_v50, %v6378_v34  ;;  %v6381_v36 = vpop.f32.mrb[106].mxu0  ;;  %v9149_v48 = vadd.f32 %v6486_v32, %v2896_v22 }
 0x41a   : > { %v6382_v3 = vpop.f32.mrb[107].mxu0 }
 0x41b   : > { %v2904_v60 = vadd.f32 %v6380_v59, %v8938_v24  ;;  %v6383_v41 = vadd.f32 %v6382_v3, %v6381_v36  ;;  %v9152_v10 = vadd.f32 %v6489_v30, %v2899_v29 }
 0x41d   : > { %v2907_v43 = vadd.f32 %v6383_v41, %v8940_v2  ;;  %v6490_v42 = vpop.f32.mrb[120].mxu1 }
 0x41e   : > { %v6491_v28 = vpop.f32.mrb[121].mxu1 }
 0x41f   : > { %v6492_v40 = vadd.f32 %v6491_v28, %v6490_v42  ;;  %v6493_v52 = vpop.f32.mrb[122].mxu1  ;;  %v6384_v38 = vpop.f32.mrb[108].mxu0 }
 0x420   : > { %v6494_v49 = vpop.f32.mrb[123].mxu1  ;;  %v6385_v63 = vpop.f32.mrb[109].mxu0 }
 0x421   : > { %v6495_v15 = vadd.f32 %v6494_v49, %v6493_v52  ;;  %v6386_v4 = vadd.f32 %v6385_v63, %v6384_v38  ;;  %v6387_v7 = vpop.f32.mrb[110].mxu0  ;;  %v9155_v56 = vadd.f32 %v6492_v40, %v2904_v60 }
 0x422   : > { %v6388_v14 = vpop.f32.mrb[111].mxu0 }
 0x423   : > { %v2912_v24 = vadd.f32 %v6386_v4, %v8946_v9  ;;  %v6389_v13 = vadd.f32 %v6388_v14, %v6387_v7  ;;  %v9158_v61 = vadd.f32 %v6495_v15, %v2907_v43 }
 0x425   : > { %v2915_v2 = vadd.f32 %v6389_v13, %v8948_v23  ;;  %v6496_v39 = vpop.f32.mrb[124].mxu1 }
 0x426   : > { %v6497_v22 = vpop.f32.mrb[125].mxu1 }
 0x427   : > { %v6498_v27 = vadd.f32 %v6497_v22, %v6496_v39  ;;  %v6499_v29 = vpop.f32.mrb[126].mxu1  ;;  %v6390_v58 = vpop.f32.mrb[112].mxu0 }
 0x428   : > { %v6500_v55 = vpop.f32.mrb[127].mxu1  ;;  %v6391_v32 = vpop.f32.mrb[113].mxu0 }
 0x429   : > { %v6501_v33 = vadd.f32 %v6500_v55, %v6499_v29  ;;  %v6392_v34 = vadd.f32 %v6391_v32, %v6390_v58  ;;  %v6393_v46 = vpop.f32.mrb[114].mxu0  ;;  %v9161_v50 = vadd.f32 %v6498_v27, %v2912_v24 }
 0x42a   : > { %v6394_v30 = vpop.f32.mrb[115].mxu0 }
 0x42b   : > { %v2920_v9 = vadd.f32 %v6392_v34, %v8954_v25  ;;  %v6395_v59 = vadd.f32 %v6394_v30, %v6393_v46  ;;  %v9164_v36 = vadd.f32 %v6501_v33, %v2915_v2 }
 0x42d   : > { %v2923_v23 = vadd.f32 %v6395_v59, %v8956_v35  ;;  %v6502_v3 = vpop.f32.mrb[128].mxu1 }
 0x42e   : > { %v6503_v60 = vpop.f32.mrb[129].mxu1 }
 0x42f   : > { %v6504_v41 = vadd.f32 %v6503_v60, %v6502_v3  ;;  %v6505_v43 = vpop.f32.mrb[130].mxu1  ;;  %v6396_v42 = vpop.f32.mrb[116].mxu0 }
 0x430   : > { %v6506_v28 = vpop.f32.mrb[131].mxu1  ;;  %v6397_v40 = vpop.f32.mrb[117].mxu0 }
 0x431   : > { %v6507_v52 = vadd.f32 %v6506_v28, %v6505_v43  ;;  %v6398_v38 = vadd.f32 %v6397_v40, %v6396_v42  ;;  %v6399_v49 = vpop.f32.mrb[118].mxu0  ;;  %v9167_v63 = vadd.f32 %v6504_v41, %v2920_v9 }
 0x432   : > { %v6400_v15 = vpop.f32.mrb[119].mxu0 }
 0x433   : > { %v2928_v25 = vadd.f32 %v6398_v38, %v8962_v16  ;;  %v6401_v4 = vadd.f32 %v6400_v15, %v6399_v49  ;;  %v9170_v7 = vadd.f32 %v6507_v52, %v2923_v23 }
 0x435   : > { %v2931_v35 = vadd.f32 %v6401_v4, %v8964_v37  ;;  %v6508_v14 = vpop.f32.mrb[132].mxu1 }
 0x436   : > { %v6509_v24 = vpop.f32.mrb[133].mxu1 }
 0x437   : > { %v6510_v13 = vadd.f32 %v6509_v24, %v6508_v14  ;;  %v6511_v2 = vpop.f32.mrb[134].mxu1  ;;  %v6402_v39 = vpop.f32.mrb[120].mxu0 }
 0x438   : > { %v6512_v22 = vpop.f32.mrb[135].mxu1  ;;  %v6403_v27 = vpop.f32.mrb[121].mxu0 }
 0x439   : > { %v6513_v29 = vadd.f32 %v6512_v22, %v6511_v2  ;;  %v6404_v58 = vadd.f32 %v6403_v27, %v6402_v39  ;;  %v6405_v55 = vpop.f32.mrb[122].mxu0  ;;  %v9173_v32 = vadd.f32 %v6510_v13, %v2928_v25 }
 0x43a   : > { %v6406_v33 = vpop.f32.mrb[123].mxu0 }
 0x43b   : > { %v2936_v16 = vadd.f32 %v6404_v58, %v8972_v62  ;;  %v6407_v34 = vadd.f32 %v6406_v33, %v6405_v55  ;;  %v9176_v46 = vadd.f32 %v6513_v29, %v2931_v35 }
 0x43d   : > { %v2939_v37 = vadd.f32 %v6407_v34, %v8974_v6  ;;  %v6514_v30 = vpop.f32.mrb[136].mxu1 }
 0x43e   : > { %v6515_v9 = vpop.f32.mrb[137].mxu1 }
 0x43f   : > { %v6516_v59 = vadd.f32 %v6515_v9, %v6514_v30  ;;  %v6517_v23 = vpop.f32.mrb[138].mxu1  ;;  %v6408_v3 = vpop.f32.mrb[124].mxu0 }
 0x440   : > { %v6518_v60 = vpop.f32.mrb[139].mxu1  ;;  %v6409_v41 = vpop.f32.mrb[125].mxu0 }
 0x441   : > { %v6519_v43 = vadd.f32 %v6518_v60, %v6517_v23  ;;  %v6410_v42 = vadd.f32 %v6409_v41, %v6408_v3  ;;  %v6411_v28 = vpop.f32.mrb[126].mxu0  ;;  %v9179_v40 = vadd.f32 %v6516_v59, %v2936_v16 }
 0x442   : > { %v6412_v52 = vpop.f32.mrb[127].mxu0 }
 0x443   : > { %v2944_v62 = vadd.f32 %v6410_v42, %v8981_v57  ;;  %v6413_v38 = vadd.f32 %v6412_v52, %v6411_v28  ;;  %v9182_v49 = vadd.f32 %v6519_v43, %v2939_v37 }
 0x445   : > { %v2947_v6 = vadd.f32 %v6413_v38, %v8983_v26  ;;  %v6520_v15 = vpop.f32.mrb[140].mxu1 }
 0x446   : > { %v6521_v25 = vpop.f32.mrb[141].mxu1 }
 0x447   : > { %v6522_v4 = vadd.f32 %v6521_v25, %v6520_v15  ;;  %v6523_v35 = vpop.f32.mrb[142].mxu1  ;;  %v6414_v14 = vpop.f32.mrb[128].mxu0 }
 0x448   : > { %v6524_v24 = vpop.f32.mrb[143].mxu1  ;;  %v6415_v13 = vpop.f32.mrb[129].mxu0 }
 0x449   : > { %v6525_v2 = vadd.f32 %v6524_v24, %v6523_v35  ;;  %v6416_v39 = vadd.f32 %v6415_v13, %v6414_v14  ;;  %v6417_v22 = vpop.f32.mrb[130].mxu0  ;;  %v9185_v27 = vadd.f32 %v6522_v4, %v2944_v62 }
 0x44a   : > { %v6418_v29 = vpop.f32.mrb[131].mxu0 }
 0x44b   : > { %v2952_v57 = vadd.f32 %v6416_v39, %v8987_v20  ;;  %v6419_v58 = vadd.f32 %v6418_v29, %v6417_v22  ;;  %v9188_v55 = vadd.f32 %v6525_v2, %v2947_v6 }
 0x44d   : > { %v2955_v26 = vadd.f32 %v6419_v58, %v8989_v12  ;;  %v6526_v33 = vpop.f32.mrb[144].mxu1 }
 0x44e   : > { %v6527_v16 = vpop.f32.mrb[145].mxu1 }
 0x44f   : > { %v6528_v34 = vadd.f32 %v6527_v16, %v6526_v33  ;;  %v6529_v37 = vpop.f32.mrb[146].mxu1  ;;  %v6420_v30 = vpop.f32.mrb[132].mxu0 }
 0x450   : > { %v6530_v9 = vpop.f32.mrb[147].mxu1  ;;  %v6421_v59 = vpop.f32.mrb[133].mxu0 }
 0x451   : > { %v6531_v23 = vadd.f32 %v6530_v9, %v6529_v37  ;;  %v6422_v3 = vadd.f32 %v6421_v59, %v6420_v30  ;;  %v6423_v60 = vpop.f32.mrb[134].mxu0  ;;  %v9191_v41 = vadd.f32 %v6528_v34, %v2952_v57 }
 0x452   : > { %v6424_v43 = vpop.f32.mrb[135].mxu0 }
 0x453   : > { %v2960_v20 = vadd.f32 %v6422_v3, %v8993_v11  ;;  %v6425_v42 = vadd.f32 %v6424_v43, %v6423_v60  ;;  %v9194_v28 = vadd.f32 %v6531_v23, %v2955_v26 }
 0x455   : > { %v2963_v12 = vadd.f32 %v6425_v42, %v8995_v47  ;;  %v6532_v52 = vpop.f32.mrb[148].mxu1 }
 0x456   : > { %v6533_v62 = vpop.f32.mrb[149].mxu1 }
 0x457   : > { %v6534_v38 = vadd.f32 %v6533_v62, %v6532_v52  ;;  %v6535_v6 = vpop.f32.mrb[150].mxu1  ;;  %v6426_v15 = vpop.f32.mrb[136].mxu0 }
 0x458   : > { %v6536_v25 = vpop.f32.mrb[151].mxu1  ;;  %v6427_v4 = vpop.f32.mrb[137].mxu0 }
 0x459   : > { %v6537_v35 = vadd.f32 %v6536_v25, %v6535_v6  ;;  %v6428_v14 = vadd.f32 %v6427_v4, %v6426_v15  ;;  %v6429_v24 = vpop.f32.mrb[138].mxu0  ;;  %v9197_v13 = vadd.f32 %v6534_v38, %v2960_v20 }
 0x45a   : > { %v6430_v2 = vpop.f32.mrb[139].mxu0 }
 0x45b   : > { %v2968_v11 = vadd.f32 %v6428_v14, %v8999_v54  ;;  %v6431_v39 = vadd.f32 %v6430_v2, %v6429_v24  ;;  %v9200_v22 = vadd.f32 %v6537_v35, %v2963_v12 }
 0x45d   : > { %v2971_v47 = vadd.f32 %v6431_v39, %v9001_v1  ;;  %v6538_v29 = vpop.f32.mrb[152].mxu1 }
 0x45e   : > { %v6539_v57 = vpop.f32.mrb[153].mxu1 }
 0x45f   : > { %v6540_v58 = vadd.f32 %v6539_v57, %v6538_v29  ;;  %v6541_v26 = vpop.f32.mrb[154].mxu1  ;;  %v6432_v33 = vpop.f32.mrb[140].mxu0 }
 0x460   : > { %v6542_v16 = vpop.f32.mrb[155].mxu1  ;;  %v6433_v34 = vpop.f32.mrb[141].mxu0 }
 0x461   : > { %v6543_v37 = vadd.f32 %v6542_v16, %v6541_v26  ;;  %v6434_v30 = vadd.f32 %v6433_v34, %v6432_v33  ;;  %v6435_v9 = vpop.f32.mrb[142].mxu0  ;;  %v9203_v59 = vadd.f32 %v6540_v58, %v2968_v11 }
 0x462   : > { %v6436_v23 = vpop.f32.mrb[143].mxu0 }
 0x463   : > { %v2976_v54 = vadd.f32 %v6434_v30, %v9005_v44  ;;  %v6437_v3 = vadd.f32 %v6436_v23, %v6435_v9  ;;  %v9206_v60 = vadd.f32 %v6543_v37, %v2971_v47 }
 0x465   : > { %v2979_v1 = vadd.f32 %v6437_v3, %v9079_v19  ;;  %v6544_v43 = vpop.f32.mrb[156].mxu1 }
 0x466   : > { %v6545_v20 = vpop.f32.mrb[157].mxu1 }
 0x467   : > { %v6546_v42 = vadd.f32 %v6545_v20, %v6544_v43  ;;  %v6547_v12 = vpop.f32.mrb[158].mxu1  ;;  %v6786_v52 = vpop.f32.mrb[144].mxu0 }
 0x468   : > { %v6548_v62 = vpop.f32.mrb[159].mxu1  ;;  %v9210_v38 = vadd.f32 %v6786_v52, %v9125_v8  ;;  %v3177_v6 = vpop.f32.mrb[145].mxu0 }
 0x469   : > { %v6549_v15 = vadd.f32 %v6548_v62, %v6547_v12  ;;  %v9213_v25 = vadd.f32 %v3177_v6, %v9119_v18  ;;  %v6787_v44 = vpop.f32.mrb[146].mxu0  ;;  %v9215_v4 = vadd.f32 %v6546_v42, %v2976_v54 }
 0x46a   : > { %v9218_v35 = vadd.f32 %v6787_v44, %v9128_v0  ;;  %v3180_v19 = vpop.f32.mrb[147].mxu0  ;;  %v3307_v11 = vsel %vm534_vm4, %v9210_v38, 0.0 }
 0x46b   : > { %v9221_v14 = vadd.f32 %v3180_v19, %v9122_v5  ;;  %v9223_v24 = vadd.f32 %v6549_v15, %v2979_v1  ;;  %v3304_v8 = vsel %vm534_vm4, %v9213_v25, 0.0 }
 0x46c   : > { %v3309_v5 = vsel %vm534_vm4, %v9218_v35, 0.0 }
 0x46d   : > { %v3305_v2 = vsel %vm534_vm4, %v9221_v14, 0.0 }
 0x46e   : > { %v3306_v18 = vadd.f32 %v3305_v2, %v3304_v8 }
 0x46f   : > { %v6790_v39 = vpop.f32.mrb[148].mxu0 }
 0x470   : > { %v3308_v47 = vadd.f32 %v3307_v11, %v3306_v18  ;;  %v9232_v0 = vadd.f32 %v6790_v39, %v9137_v45  ;;  %v3193_v29 = vpop.f32.mrb[149].mxu0 }
 0x471   : > { %v9237_v57 = vadd.f32 %v3193_v29, %v9131_v17  ;;  %v6791_v58 = vpop.f32.mrb[150].mxu0 }
 0x472   : > { %v3310_v26 = vadd.f32 %v3309_v5, %v3308_v47  ;;  %v9240_v33 = vadd.f32 %v6791_v58, %v9140_v31  ;;  %v3196_v16 = vpop.f32.mrb[151].mxu0  ;;  %v3315_v17 = vsel %vm534_vm4, %v9232_v0, 0.0 }
 0x473   : > { %v3311_v34 = vsel %vm534_vm4, %v9237_v57, 0.0  ;;  %v9245_v37 = vadd.f32 %v3196_v16, %v9134_v51 }
 0x474   : > { %v3312_v45 = vadd.f32 %v3311_v34, %v3310_v26  ;;  %v3317_v1 = vsel %vm534_vm4, %v9240_v33, 0.0 }
 0x475   : > { %v3313_v30 = vsel %vm534_vm4, %v9245_v37, 0.0 }
 0x476   : > { %v3314_v9 = vadd.f32 %v3313_v30, %v3312_v45 }
 0x477   : > { %v6794_v23 = vpop.f32.mrb[152].mxu0 }
 0x478   : > { %v3316_v54 = vadd.f32 %v3315_v17, %v3314_v9  ;;  %v9252_v31 = vadd.f32 %v6794_v23, %v9149_v48  ;;  %v3209_v3 = vpop.f32.mrb[153].mxu0 }
 0x479   : > { %v9257_v51 = vadd.f32 %v3209_v3, %v9143_v53  ;;  %v6795_v43 = vpop.f32.mrb[154].mxu0 }
 0x47a   : > { %v3318_v20 = vadd.f32 %v3317_v1, %v3316_v54  ;;  %v9260_v42 = vadd.f32 %v6795_v43, %v9152_v10  ;;  %v3212_v12 = vpop.f32.mrb[155].mxu0  ;;  %v3323_v53 = vsel %vm534_vm4, %v9252_v31, 0.0 }
 0x47b   : > { %v3319_v52 = vsel %vm534_vm4, %v9257_v51, 0.0  ;;  %v9265_v62 = vadd.f32 %v3212_v12, %v9146_v21 }
 0x47c   : > { %v3320_v48 = vadd.f32 %v3319_v52, %v3318_v20  ;;  %v3325_v2 = vsel %vm534_vm4, %v9260_v42, 0.0 }
 0x47d   : > { %v3321_v6 = vsel %vm534_vm4, %v9265_v62, 0.0 }
 0x47e   : > { %v3322_v15 = vadd.f32 %v3321_v6, %v3320_v48 }
 0x47f   : > { %v6798_v44 = vpop.f32.mrb[156].mxu0 }
 0x480   : > { %v3324_v19 = vadd.f32 %v3323_v53, %v3322_v15  ;;  %v9272_v10 = vadd.f32 %v6798_v44, %v9161_v50  ;;  %v3225_v8 = vpop.f32.mrb[157].mxu0 }
 0x481   : > { %v9277_v21 = vadd.f32 %v3225_v8, %v9155_v56  ;;  %v6799_v18 = vpop.f32.mrb[158].mxu0 }
 0x482   : > { %v3326_v11 = vadd.f32 %v3325_v2, %v3324_v19  ;;  %v9280_v39 = vadd.f32 %v6799_v18, %v9164_v36  ;;  %v3228_v47 = vpop.f32.mrb[159].mxu0  ;;  %v3331_v56 = vsel %vm534_vm4, %v9272_v10, 0.0 }
 0x483   : > { %v3327_v29 = vsel %vm534_vm4, %v9277_v21, 0.0  ;;  %v9285_v5 = vadd.f32 %v3228_v47, %v9158_v61 }
 0x484   : > { %v3328_v50 = vadd.f32 %v3327_v29, %v3326_v11  ;;  %v3333_v30 = vsel %vm534_vm4, %v9280_v39, 0.0 }
 0x485   : > { %v3329_v58 = vsel %vm534_vm4, %v9285_v5, 0.0 }
 0x486   : > { %v3330_v26 = vadd.f32 %v3329_v58, %v3328_v50 }
 0x487   : > { %v6802_v16 = vpop.f32.mrb[160].mxu0 }
 0x488   : > { %v3332_v34 = vadd.f32 %v3331_v56, %v3330_v26  ;;  %v9292_v36 = vadd.f32 %v6802_v16, %v9173_v32  ;;  %v3241_v45 = vpop.f32.mrb[161].mxu0 }
 0x489   : > { %v9297_v61 = vadd.f32 %v3241_v45, %v9167_v63  ;;  %v6803_v9 = vpop.f32.mrb[162].mxu0 }
 0x48a   : > { %v3334_v17 = vadd.f32 %v3333_v30, %v3332_v34  ;;  %v9300_v23 = vadd.f32 %v6803_v9, %v9176_v46  ;;  %v3244_v54 = vpop.f32.mrb[163].mxu0  ;;  %v3339_v63 = vsel %vm534_vm4, %v9292_v36, 0.0 }
 0x48b   : > { %v3335_v3 = vsel %vm534_vm4, %v9297_v61, 0.0  ;;  %v9305_v1 = vadd.f32 %v3244_v54, %v9170_v7 }
 0x48c   : > { %v3336_v32 = vadd.f32 %v3335_v3, %v3334_v17  ;;  %v3341_v6 = vsel %vm534_vm4, %v9300_v23, 0.0 }
 0x48d   : > { %v3337_v43 = vsel %vm534_vm4, %v9305_v1, 0.0 }
 0x48e   : > { %v3338_v20 = vadd.f32 %v3337_v43, %v3336_v32 }
 0x48f   : > { %v6806_v12 = vpop.f32.mrb[164].mxu0 }
 0x490   : > { %v3340_v52 = vadd.f32 %v3339_v63, %v3338_v20  ;;  %v9312_v46 = vadd.f32 %v6806_v12, %v9185_v27  ;;  %v3257_v48 = vpop.f32.mrb[165].mxu0 }
 0x491   : > { %v9317_v7 = vadd.f32 %v3257_v48, %v9179_v40  ;;  %v6807_v15 = vpop.f32.mrb[166].mxu0 }
 0x492   : > { %v3342_v53 = vadd.f32 %v3341_v6, %v3340_v52  ;;  %v9320_v44 = vadd.f32 %v6807_v15, %v9188_v55  ;;  %v3260_v19 = vpop.f32.mrb[167].mxu0  ;;  %v3347_v40 = vsel %vm534_vm4, %v9312_v46, 0.0 }
 0x493   : > { %v3343_v8 = vsel %vm534_vm4, %v9317_v7, 0.0  ;;  %v9325_v2 = vadd.f32 %v3260_v19, %v9182_v49 }
 0x494   : > { %v3344_v27 = vadd.f32 %v3343_v8, %v3342_v53  ;;  %v3349_v58 = vsel %vm534_vm4, %v9320_v44, 0.0 }
 0x495   : > { %v3345_v18 = vsel %vm534_vm4, %v9325_v2, 0.0 }
 0x496   : > { %v3346_v11 = vadd.f32 %v3345_v18, %v3344_v27 }
 0x497   : > { %v6810_v47 = vpop.f32.mrb[168].mxu0 }
 0x498   : > { %v3348_v29 = vadd.f32 %v3347_v40, %v3346_v11  ;;  %v9332_v55 = vadd.f32 %v6810_v47, %v9197_v13  ;;  %v3273_v50 = vpop.f32.mrb[169].mxu0  ;;  %v9361_v11 = vld [vmem:[#allocation4] sm:$0xff]  ;;  %v9363_v40 = vld [vmem:[#allocation4 + $0x8] sm:$0xff] }
 0x499   : > { %v9337_v49 = vadd.f32 %v3273_v50, %v9191_v41  ;;  %v6811_v26 = vpop.f32.mrb[170].mxu0  ;;  %v3788_v47 = vrot.slane %v9361_v11, 1 }
 0x49a   : > { %v3350_v56 = vadd.f32 %v3349_v58, %v3348_v29  ;;  %v9340_v16 = vadd.f32 %v6811_v26, %v9200_v22  ;;  %v3276_v34 = vpop.f32.mrb[171].mxu0  ;;  %v3355_v41 = vsel %vm534_vm4, %v9332_v55, 0.0 }
 0x49b   : > { %v3351_v45 = vsel %vm534_vm4, %v9337_v49, 0.0  ;;  %v9345_v30 = vadd.f32 %v3276_v34, %v9194_v28 }
 0x49c   : > { %v3352_v13 = vadd.f32 %v3351_v45, %v3350_v56  ;;  %v3357_v43 = vsel %vm534_vm4, %v9340_v16, 0.0 }
 0x49d   : > { %v3353_v9 = vsel %vm534_vm4, %v9345_v30, 0.0 }
 0x49e   : > { %v3354_v17 = vadd.f32 %v3353_v9, %v3352_v13  ;;  %v3868_v9 = vrot.slane %v9361_v11, 2 }
 0x49f   : > { %v6814_v54 = vpop.f32.mrb[172].mxu0 }
 0x4a0   : > { %v3356_v3 = vadd.f32 %v3355_v41, %v3354_v17  ;;  %v3298_v22 = vadd.f32 %v6814_v54, %v9215_v4  ;;  %v3289_v32 = vpop.f32.mrb[173].mxu0  ;;  %v3869_v17 = vrot.slane %v9363_v40, 2 }
 0x4a1   : > { %v3290_v20 = vadd.f32 %v3289_v32, %v9203_v59  ;;  %v6815_v28 = vpop.f32.mrb[174].mxu0 }
 0x4a2   : > { %v3358_v63 = vadd.f32 %v3357_v43, %v3356_v3  ;;  %v3301_v12 = vadd.f32 %v6815_v28, %v9223_v24  ;;  %v3292_v52 = vpop.f32.mrb[175].mxu0  ;;  %v3363_v4 = vsel %vm534_vm4, %v3298_v22, 0.0  ;;  %v3688_v24 = vld [vmem:[#allocation4 + $0x10] sm:$0x3]  ;;  %v3870_v3 = vsel %vm1715_vm3, %v3868_v9, %v3869_v17 }
 0x4a3   : > { %v3359_v48 = vsel %vm534_vm4, %v3290_v20, 0.0  ;;  %v3293_v6 = vadd.f32 %v3292_v52, %v9206_v60  ;;  %v3789_v60 = vrot.slane %v9363_v40, 1  ;;  %v3791_v29 = vrot.slane %v3688_v24, 1 }
 0x4a4   : > { %v3360_v15 = vadd.f32 %v3359_v48, %v3358_v63  ;;  %v3365_v27 = vsel %vm534_vm4, %v3301_v12, 0.0  ;;  %v3871_v41 = vrot.slane %v3688_v24, 2 }
 0x4a5   : > { %v3361_v53 = vsel %vm534_vm4, %v3293_v6, 0.0  ;;  %v3790_v58 = vsel %vm640_vm2, %v3788_v47, %v3789_v60  ;;  %v3792_v26 = vsel %vm640_vm2, %v3789_v60, %v3791_v29 }
 0x4a6   : > { %v3362_v19 = vadd.f32 %v3361_v53, %v3360_v15  ;;  %v6949_v34 = vpack.i.bf16 %v3792_v26, %v3790_v58  ;;  %v3872_v32 = vsel %vm1715_vm3, %v3869_v17, %v3871_v41  ;;  %v9483_v26 = vld [vmem:[#allocation4 + $0x198] sm:$0xff] }
 0x4a7   : > { %v6954_v43 = vpack.i.bf16 %v3872_v32, %v3870_v3 }
 0x4a8   : > { %v3364_v8 = vadd.f32 %v3363_v4, %v3362_v19  ;;  %6950 = vrot.lane.b32.xlu1 %v6949_v34, %s7637_s15 }
 0x4aa   : > { %v3366_v18 = vadd.f32 %v3365_v27, %v3364_v8 }
 0x4ac   : > { %v3367_v59 = vrot.slane %v3366_v18, 4  ;;  %6955 = vrot.lane.b32.xlu1 %v6954_v43, %s11690_s27 }
 0x4ae   : > { %v3368_v50 = vadd.f32 %v3367_v59, %v3366_v18 }
 0x4b0   : > { %v3369_v56 = vrot.slane %v3368_v50, 2 }
 0x4b2   : > { %v3370_v45 = vadd.f32 %v3369_v56, %v3368_v50  ;;  %v9485_v56 = vld [vmem:[#allocation4 + $0x1a0] sm:$0xff] }
 0x4b4   : > { %v3371_v13 = vrot.slane %v3370_v45, 1 }
 0x4b6   : > { %v3372_v54 = vadd.f32 %v3371_v13, %v3370_v45 }
 0x4b8   : > { %v3374_v28 = vmul.f32 0.00390625, %v3372_v54 }
 0x4ba   : > { %v9376_v63 = vsub.f32 %v9265_v62, %v3374_v28  ;;  %v9379_v52 = vsub.f32 %v9260_v42, %v3374_v28  ;;  %v9382_v48 = vsub.f32 %v9277_v21, %v3374_v28  ;;  %v9385_v15 = vsub.f32 %v9285_v5, %v3374_v28 }
 0x4bb   : > { %v9388_v53 = vsub.f32 %v9272_v10, %v3374_v28  ;;  %v9391_v19 = vsub.f32 %v9280_v39, %v3374_v28  ;;  %v9394_v4 = vsub.f32 %v9297_v61, %v3374_v28  ;;  %v9397_v62 = vsub.f32 %v9305_v1, %v3374_v28 }
 0x4bc   : > { %v9400_v42 = vsub.f32 %v9292_v36, %v3374_v28  ;;  %v9403_v21 = vsub.f32 %v9300_v23, %v3374_v28  ;;  %v9406_v5 = vsub.f32 %v9317_v7, %v3374_v28  ;;  %v9409_v10 = vsub.f32 %v9325_v2, %v3374_v28 }
 0x4bd   : > { %v9412_v39 = vsub.f32 %v9312_v46, %v3374_v28  ;;  %v9415_v61 = vsub.f32 %v9320_v44, %v3374_v28  ;;  %v9418_v1 = vsub.f32 %v9337_v49, %v3374_v28  ;;  %v9421_v36 = vsub.f32 %v9345_v30, %v3374_v28 }
 0x4be   : > { %v9424_v23 = vsub.f32 %v9332_v55, %v3374_v28  ;;  %v9427_v7 = vsub.f32 %v9340_v16, %v3374_v28  ;;  %v9429_v2 = vsub.f32 %v3290_v20, %v3374_v28  ;;  %v9431_v8 = vsub.f32 %v3293_v6, %v3374_v28 }
 0x4bf   : > { %v9433_v46 = vsub.f32 %v3298_v22, %v3374_v28  ;;  %v9435_v44 = vsub.f32 %v3301_v12, %v3374_v28  ;;  %v9438_v49 = vsub.f32 %v9213_v25, %v3374_v28  ;;  %v9441_v30 = vsub.f32 %v9221_v14, %v3374_v28 }
 0x4c0   : > { %v9444_v55 = vsub.f32 %v9210_v38, %v3374_v28  ;;  %v9447_v16 = vsub.f32 %v9218_v35, %v3374_v28  ;;  %v9454_v12 = vsub.f32 %v9237_v57, %v3374_v28  ;;  %v9459_v14 = vsub.f32 %v9245_v37, %v3374_v28 }
 0x4c1   : > { %v3407_v20 = vmul.f32 %v9438_v49, %v9438_v49  ;;  %v3408_v22 = vmul.f32 %v9441_v30, %v9441_v30  ;;  %v9466_v18 = vsub.f32 %v9232_v0, %v3374_v28  ;;  %v9472_v37 = vsub.f32 %v9240_v33, %v3374_v28 }
 0x4c2   : > { %v3409_v25 = vmul.f32 %v9444_v55, %v9444_v55  ;;  %v3410_v38 = vmul.f32 %v9447_v16, %v9447_v16  ;;  %v3411_v57 = vmul.f32 %v9454_v12, %v9454_v12  ;;  %v3412_v47 = vmul.f32 %v9459_v14, %v9459_v14 }
 0x4c3   : > { %v3439_v35 = vsel %vm534_vm4, %v3407_v20, 0.0  ;;  %v3440_v6 = vsel %vm534_vm4, %v3408_v22, 0.0  ;;  %v9478_v50 = vsub.f32 %v9257_v51, %v3374_v28  ;;  %v3413_v0 = vmul.f32 %v9466_v18, %v9466_v18 }
 0x4c4   : > { %v3441_v27 = vadd.f32 %v3440_v6, %v3439_v35  ;;  %v3442_v59 = vsel %vm534_vm4, %v3409_v25, 0.0  ;;  %v3444_v60 = vsel %vm534_vm4, %v3410_v38, 0.0  ;;  %v3446_v58 = vsel %vm534_vm4, %v3411_v57, 0.0 }
 0x4c5   : > { %v3414_v34 = vmul.f32 %v9472_v37, %v9472_v37  ;;  %v3448_v45 = vsel %vm534_vm4, %v3412_v47, 0.0  ;;  %v6959_v51 = vpack.i.bf16 %v9485_v56, %v9483_v26  ;;  %v9493_v9 = vsub.f32 %v9252_v31, %v3374_v28 }
 0x4c6   : > { %v3443_v24 = vadd.f32 %v3442_v59, %v3441_v27  ;;  %v3415_v17 = vmul.f32 %v9478_v50, %v9478_v50  ;;  %v3450_v41 = vsel %vm534_vm4, %v3413_v0, 0.0  ;;  %v3416_v3 = vmul.f32 %v9376_v63, %v9376_v63 }
 0x4c7   : > { %6960 = vrot.lane.b32.xlu1 %v6959_v51, %s11690_s27  ;;  %v3452_v32 = vsel %vm534_vm4, %v3414_v34, 0.0  ;;  %v3417_v20 = vmul.f32 %v9493_v9, %v9493_v9  ;;  %v3418_v22 = vmul.f32 %v9379_v52, %v9379_v52  ;;  %v3419_v35 = vmul.f32 %v9382_v48, %v9382_v48 }
 0x4c8   : > { %v3445_v29 = vadd.f32 %v3444_v60, %v3443_v24  ;;  %v3454_v31 = vsel %vm534_vm4, %v3415_v17, 0.0  ;;  %v3456_v25 = vsel %vm534_vm4, %v3416_v3, 0.0  ;;  %v3420_v57 = vmul.f32 %v9385_v15, %v9385_v15 }
 0x4c9   : > { %v3458_v6 = vsel %vm534_vm4, %v3417_v20, 0.0  ;;  %v3460_v59 = vsel %vm534_vm4, %v3418_v22, 0.0  ;;  %v3421_v47 = vmul.f32 %v9388_v53, %v9388_v53  ;;  %v3462_v60 = vsel %vm534_vm4, %v3419_v35, 0.0 }
 0x4ca   : > { %v3447_v33 = vadd.f32 %v3446_v58, %v3445_v29  ;;  %v3422_v0 = vmul.f32 %v9391_v19, %v9391_v19  ;;  %v3464_v58 = vsel %vm534_vm4, %v3420_v57, 0.0  ;;  %v3423_v34 = vmul.f32 %v9394_v4, %v9394_v4 }
 0x4cb   : > { %v3424_v51 = vmul.f32 %v9397_v62, %v9397_v62 }
 0x4cc   : > { %v3449_v13 = vadd.f32 %v3448_v45, %v3447_v33  ;;  %v3466_v45 = vsel %vm534_vm4, %v3421_v47, 0.0  ;;  %v3468_v17 = vsel %vm534_vm4, %v3422_v0, 0.0  ;;  %v3470_v3 = vsel %vm534_vm4, %v3423_v34, 0.0 }
 0x4cd   : > { %v3472_v20 = vsel %vm534_vm4, %v3424_v51, 0.0 }
 0x4ce   : > { %v3451_v54 = vadd.f32 %v3450_v41, %v3449_v13 }
 0x4d0   : > { %v3453_v43 = vadd.f32 %v3452_v32, %v3451_v54  ;;  %v3425_v54 = vmul.f32 %v9400_v42, %v9400_v42 }
 0x4d2   : > { %v3455_v28 = vadd.f32 %v3454_v31, %v3453_v43  ;;  %v3426_v43 = vmul.f32 %v9403_v21, %v9403_v21  ;;  %v3474_v22 = vsel %vm534_vm4, %v3425_v54, 0.0 }
 0x4d4   : > { %v3457_v38 = vadd.f32 %v3456_v25, %v3455_v28  ;;  %v3427_v28 = vmul.f32 %v9406_v5, %v9406_v5  ;;  %v3476_v35 = vsel %vm534_vm4, %v3426_v43, 0.0 }
 0x4d6   : > { %v3459_v27 = vadd.f32 %v3458_v6, %v3457_v38  ;;  %v3428_v38 = vmul.f32 %v9409_v10, %v9409_v10  ;;  %v3478_v57 = vsel %vm534_vm4, %v3427_v28, 0.0 }
 0x4d8   : > { %v3461_v24 = vadd.f32 %v3460_v59, %v3459_v27  ;;  %v3429_v27 = vmul.f32 %v9412_v39, %v9412_v39  ;;  %v3480_v47 = vsel %vm534_vm4, %v3428_v38, 0.0 }
 0x4da   : > { %v3463_v29 = vadd.f32 %v3462_v60, %v3461_v24  ;;  %v3430_v24 = vmul.f32 %v9415_v61, %v9415_v61  ;;  %v3482_v0 = vsel %vm534_vm4, %v3429_v27, 0.0 }
 0x4dc   : > { %v3465_v33 = vadd.f32 %v3464_v58, %v3463_v29  ;;  %v3431_v29 = vmul.f32 %v9418_v1, %v9418_v1  ;;  %v3484_v34 = vsel %vm534_vm4, %v3430_v24, 0.0 }
 0x4de   : > { %v3467_v13 = vadd.f32 %v3466_v45, %v3465_v33  ;;  %v3432_v33 = vmul.f32 %v9421_v36, %v9421_v36  ;;  %v3486_v51 = vsel %vm534_vm4, %v3431_v29, 0.0 }
 0x4e0   : > { %v3469_v41 = vadd.f32 %v3468_v17, %v3467_v13  ;;  %v3433_v13 = vmul.f32 %v9424_v23, %v9424_v23  ;;  %v3488_v54 = vsel %vm534_vm4, %v3432_v33, 0.0 }
 0x4e2   : > { %v3471_v32 = vadd.f32 %v3470_v3, %v3469_v41  ;;  %v3434_v41 = vmul.f32 %v9427_v7, %v9427_v7  ;;  %v3490_v43 = vsel %vm534_vm4, %v3433_v13, 0.0 }
 0x4e4   : > { %v3473_v31 = vadd.f32 %v3472_v20, %v3471_v32  ;;  %v3435_v32 = vmul.f32 %v9429_v2, %v9429_v2  ;;  %v3492_v28 = vsel %vm534_vm4, %v3434_v41, 0.0 }
 0x4e6   : > { %v3475_v25 = vadd.f32 %v3474_v22, %v3473_v31  ;;  %v3436_v31 = vmul.f32 %v9431_v8, %v9431_v8  ;;  %v3494_v38 = vsel %vm534_vm4, %v3435_v32, 0.0 }
 0x4e8   : > { %v3477_v6 = vadd.f32 %v3476_v35, %v3475_v25  ;;  %v3437_v25 = vmul.f32 %v9433_v46, %v9433_v46  ;;  %v3496_v27 = vsel %vm534_vm4, %v3436_v31, 0.0 }
 0x4ea   : > { %v3479_v59 = vadd.f32 %v3478_v57, %v3477_v6  ;;  %v3438_v6 = vmul.f32 %v9435_v44, %v9435_v44 }
 0x4ec   : > { %v3481_v60 = vadd.f32 %v3480_v47, %v3479_v59  ;;  %v3498_v59 = vsel %vm534_vm4, %v3437_v25, 0.0  ;;  %v3500_v47 = vsel %vm534_vm4, %v3438_v6, 0.0  ;;  %v9594_v25 = vld [vmem:[%s11588_s8] ss:$0 sm:$0xff] }
 0x4ee   : > { %v3483_v58 = vadd.f32 %v3482_v0, %v3481_v60  ;;  %v7517_v0 = vld [vmem:[%s11589_s9 + $0x40] sm:$0xff]  }
 0x4ef   : > { %6868 = vmatprep.subr.bf16.mxu1 %v7517_v0  ;;  %6574 = vmatprep.subr.bf16.mxu0 %v7517_v0 }
 0x4f0   : > { %v3485_v45 = vadd.f32 %v3484_v34, %v3483_v58  ;;  %v7518_v58 = vld [vmem:[%s11589_s9] sm:$0xff]  }
 0x4f1   : > { %6876 = vmatpush3.bf16.msra.mxu1 %v7518_v58  ;;  %6575 = vmatpush3.bf16.msra.mxu0 %v7518_v58 }
 0x4f2   : > { %v3487_v17 = vadd.f32 %v3486_v51, %v3485_v45 }
 0x4f4   : > { %v3489_v3 = vadd.f32 %v3488_v54, %v3487_v17  ;;  %v7519_v54 = vld [vmem:[%s11589_s9 + $0x48] sm:$0xff]  }
 0x4f5   : > { %6869 = vmatprep.subr.bf16.mxu1 %v7519_v54  ;;  %6576 = vmatprep.subr.bf16.mxu0 %v7519_v54 }
 0x4f6   : > { %v3491_v20 = vadd.f32 %v3490_v43, %v3489_v3  ;;  %v7520_v3 = vld [vmem:[%s11589_s9 + $0x8] sm:$0xff]   ;;  %v9585_v43 = vld [vmem:[%s11587_s7] ss:$0 sm:$0xff] }
 0x4f7   : > { %6877 = vmatpush3.bf16.msra.mxu1 %v7520_v3  ;;  %6577 = vmatpush3.bf16.msra.mxu0 %v7520_v3 }
 0x4f8   : > { %v3493_v22 = vadd.f32 %v3492_v28, %v3491_v20 }
 0x4fa   : > { %v3495_v35 = vadd.f32 %v3494_v38, %v3493_v22 }
 0x4fc   : > { %v3497_v57 = vadd.f32 %v3496_v27, %v3495_v35 }
 0x4fe   : > { %v3499_v24 = vadd.f32 %v3498_v59, %v3497_v57 }
 0x500   : > { %v3501_v60 = vadd.f32 %v3500_v47, %v3499_v24 }
 0x502   : > { %v3502_v29 = vrot.slane %v3501_v60, 4 }
 0x504   : > { %v3503_v33 = vadd.f32 %v3502_v29, %v3501_v60 }
 0x506   : > { %v3504_v34 = vrot.slane %v3503_v33, 2 }
 0x508   : > { %v3505_v45 = vadd.f32 %v3504_v34, %v3503_v33 }
 0x50a   : > { %v3506_v13 = vrot.slane %v3505_v45, 1 }
 0x50c   : > { %v3507_v51 = vadd.f32 %v3506_v13, %v3505_v45 }
 0x50e   : > { %v3508_v17 = vmul.f32 0.00390625, %v3507_v51 }
 0x510   : > { %v3509_v41 = vadd.f32 1e-05, %v3508_v17 }
 0x512   : > { %7535 = vrsqrt.f32 %v3509_v41 }
 0x51c   : > { %v7536_v32 = vpop.eup %7535 }
 0x51d   : > { %v3540_v20 = vmul.f32 %v7536_v32, %v9431_v8  ;;  %v3511_v31 = vmul.f32 %v7536_v32, %v9438_v49  ;;  %v3512_v28 = vmul.f32 %v7536_v32, %v9441_v30  ;;  %v3513_v22 = vmul.f32 %v7536_v32, %v9444_v55 }
 0x51e   : > { %v3514_v38 = vmul.f32 %v7536_v32, %v9447_v16  ;;  %v3515_v35 = vmul.f32 %v7536_v32, %v9454_v12  ;;  %v3516_v6 = vmul.f32 %v7536_v32, %v9459_v14  ;;  %v3517_v27 = vmul.f32 %v7536_v32, %v9466_v18 }
 0x51f   : > { %v3579_v8 = vmul.f32 %v9585_v43, %v3540_v20  ;;  %v3518_v49 = vmul.f32 %v7536_v32, %v9472_v37  ;;  %v3519_v30 = vmul.f32 %v7536_v32, %v9478_v50  ;;  %v3520_v55 = vmul.f32 %v7536_v32, %v9376_v63 }
 0x520   : > { %v3521_v57 = vmul.f32 %v7536_v32, %v9493_v9  ;;  %v3522_v59 = vmul.f32 %v7536_v32, %v9379_v52  ;;  %v3523_v16 = vmul.f32 %v7536_v32, %v9382_v48  ;;  %v3524_v12 = vmul.f32 %v7536_v32, %v9385_v15  ;;  %v7521_v48 = vld [vmem:[%s11589_s9 + $0x50] sm:$0xff]  }
 0x521   : > { %v3618_v14 = vadd.f32 %v9594_v25, %v3579_v8  ;;  %v3525_v18 = vmul.f32 %v7536_v32, %v9388_v53  ;;  %v3526_v24 = vmul.f32 %v7536_v32, %v9391_v19  ;;  %v3527_v37 = vmul.f32 %v7536_v32, %v9394_v4  ;;  %v7522_v15 = vld [vmem:[%s11589_s9 + $0x10] sm:$0xff]   ;;  %6870 = vmatprep.subr.bf16.mxu1 %v7521_v48 }
 0x522   : > { %v3528_v50 = vmul.f32 %v7536_v32, %v9397_v62  ;;  %v3529_v63 = vmul.f32 %v7536_v32, %v9400_v42  ;;  %v3530_v9 = vmul.f32 %v7536_v32, %v9403_v21  ;;  %v3531_v52 = vmul.f32 %v7536_v32, %v9406_v5  ;;  %6878 = vmatpush3.bf16.msra.mxu1 %v7522_v15 }
 0x523   : > { %v3650_v53 = vmax.f32 %v3618_v14, 0.0  ;;  %v3532_v19 = vmul.f32 %v7536_v32, %v9409_v10  ;;  %v3533_v4 = vmul.f32 %v7536_v32, %v9412_v39  ;;  %v3534_v62 = vmul.f32 %v7536_v32, %v9415_v61  ;;  %6578 = vmatprep.subr.bf16.mxu0 %v7521_v48 }
 0x524   : > { %v3535_v42 = vmul.f32 %v7536_v32, %v9418_v1  ;;  %v3536_v21 = vmul.f32 %v7536_v32, %v9421_v36  ;;  %v3537_v5 = vmul.f32 %v7536_v32, %v9424_v23  ;;  %v3538_v47 = vmul.f32 %v7536_v32, %v9427_v7  ;;  %6579 = vmatpush3.bf16.msra.mxu0 %v7522_v15 }
 0x525   : > { %3683 = vst.msk [vmem:[#allocation4 + $0x171] sm:$0xff] %vm534_vm4, %v3650_v53  ;;  %v3539_v60 = vmul.f32 %v7536_v32, %v9429_v2  ;;  %v3541_v29 = vmul.f32 %v7536_v32, %v9433_v46  ;;  %v3542_v10 = vmul.f32 %v7536_v32, %v9435_v44  ;;  %v3550_v39 = vmul.f32 %v9585_v43, %v3511_v31 }
 0x526   : > { %v3551_v61 = vmul.f32 %v9585_v43, %v3512_v28  ;;  %v3552_v1 = vmul.f32 %v9585_v43, %v3513_v22  ;;  %v3553_v36 = vmul.f32 %v9585_v43, %v3514_v38  ;;  %v3554_v23 = vmul.f32 %v9585_v43, %v3515_v35 }
 0x527   : > { %v3555_v7 = vmul.f32 %v9585_v43, %v3516_v6  ;;  %v3556_v2 = vmul.f32 %v9585_v43, %v3517_v27  ;;  %v3557_v46 = vmul.f32 %v9585_v43, %v3518_v49  ;;  %v3558_v44 = vmul.f32 %v9585_v43, %v3519_v30 }
 0x528   : > { %v3559_v0 = vmul.f32 %v9585_v43, %v3520_v55  ;;  %v3560_v58 = vmul.f32 %v9585_v43, %v3521_v57  ;;  %v3561_v33 = vmul.f32 %v9585_v43, %v3522_v59  ;;  %v3562_v34 = vmul.f32 %v9585_v43, %v3523_v16 }
 0x529   : > { %v3563_v45 = vmul.f32 %v9585_v43, %v3524_v12  ;;  %v3564_v13 = vmul.f32 %v9585_v43, %v3525_v18  ;;  %v3565_v51 = vmul.f32 %v9585_v43, %v3526_v24  ;;  %v3566_v17 = vmul.f32 %v9585_v43, %v3527_v37 }
 0x52a   : > { %v3567_v41 = vmul.f32 %v9585_v43, %v3528_v50  ;;  %v3568_v54 = vmul.f32 %v9585_v43, %v3529_v63  ;;  %v3569_v3 = vmul.f32 %v9585_v43, %v3530_v9  ;;  %v3570_v32 = vmul.f32 %v9585_v43, %v3531_v52 }
 0x52b   : > { %v3571_v20 = vmul.f32 %v9585_v43, %v3532_v19  ;;  %v3572_v31 = vmul.f32 %v9585_v43, %v3533_v4  ;;  %v3573_v28 = vmul.f32 %v9585_v43, %v3534_v62  ;;  %v3574_v22 = vmul.f32 %v9585_v43, %v3535_v42 }
 0x52c   : > { %v3575_v38 = vmul.f32 %v9585_v43, %v3536_v21  ;;  %v3576_v35 = vmul.f32 %v9585_v43, %v3537_v5  ;;  %v3577_v6 = vmul.f32 %v9585_v43, %v3538_v47  ;;  %v3578_v27 = vmul.f32 %v9585_v43, %v3539_v60 }
 0x52d   : > { %v3580_v8 = vmul.f32 %v9585_v43, %v3541_v29  ;;  %v3581_v49 = vmul.f32 %v9585_v43, %v3542_v10  ;;  %v3589_v30 = vadd.f32 %v9594_v25, %v3550_v39  ;;  %v3590_v55 = vadd.f32 %v9594_v25, %v3551_v61 }
 0x52e   : > { %v3591_v57 = vadd.f32 %v9594_v25, %v3552_v1  ;;  %v3592_v59 = vadd.f32 %v9594_v25, %v3553_v36  ;;  %v3593_v16 = vadd.f32 %v9594_v25, %v3554_v23  ;;  %v3594_v12 = vadd.f32 %v9594_v25, %v3555_v7 }
 0x52f   : > { %v3595_v14 = vadd.f32 %v9594_v25, %v3556_v2  ;;  %v3596_v18 = vadd.f32 %v9594_v25, %v3557_v46  ;;  %v3597_v24 = vadd.f32 %v9594_v25, %v3558_v44  ;;  %v3598_v43 = vadd.f32 %v9594_v25, %v3559_v0  ;;  %v7523_v2 = vld [vmem:[%s11589_s9 + $0x58] sm:$0xff]  }
 0x530   : > { %v3599_v37 = vadd.f32 %v9594_v25, %v3560_v58  ;;  %v3600_v50 = vadd.f32 %v9594_v25, %v3561_v33  ;;  %v3601_v63 = vadd.f32 %v9594_v25, %v3562_v34  ;;  %v3602_v9 = vadd.f32 %v9594_v25, %v3563_v45  ;;  %v7524_v46 = vld [vmem:[%s11589_s9 + $0x18] sm:$0xff]   ;;  %6871 = vmatprep.subr.bf16.mxu1 %v7523_v2 }
 0x531   : > { %v3603_v52 = vadd.f32 %v9594_v25, %v3564_v13  ;;  %v9680_v48 = vadd.f32 %v9594_v25, %v3565_v51  ;;  %v9683_v15 = vadd.f32 %v9594_v25, %v3566_v17  ;;  %v9686_v53 = vadd.f32 %v9594_v25, %v3567_v41  ;;  %6580 = vmatprep.subr.bf16.mxu0 %v7523_v2 }
 0x532   : > { %v9689_v19 = vadd.f32 %v9594_v25, %v3568_v54  ;;  %v9692_v4 = vadd.f32 %v9594_v25, %v3569_v3  ;;  %v9695_v62 = vadd.f32 %v9594_v25, %v3570_v32  ;;  %v9698_v42 = vadd.f32 %v9594_v25, %v3571_v20  ;;  %6879 = vmatpush3.bf16.msra.mxu1 %v7524_v46 }
 0x533   : > { %v9701_v21 = vadd.f32 %v9594_v25, %v3572_v31  ;;  %v9704_v5 = vadd.f32 %v9594_v25, %v3573_v28  ;;  %v9707_v47 = vadd.f32 %v9594_v25, %v3574_v22  ;;  %v9710_v60 = vadd.f32 %v9594_v25, %v3575_v38  ;;  %6581 = vmatpush3.bf16.msra.mxu0 %v7524_v46 }
 0x534   : > { %v9713_v29 = vadd.f32 %v9594_v25, %v3576_v35  ;;  %v9716_v10 = vadd.f32 %v9594_v25, %v3577_v6  ;;  %v9719_v39 = vadd.f32 %v9594_v25, %v3578_v27  ;;  %v9722_v61 = vadd.f32 %v9594_v25, %v3580_v8 }
 0x535   : > { %v9725_v1 = vadd.f32 %v9594_v25, %v3581_v49  ;;  %v3621_v36 = vmax.f32 %v3589_v30, 0.0  ;;  %v3622_v23 = vmax.f32 %v3590_v55, 0.0  ;;  %v3623_v7 = vmax.f32 %v3591_v57, 0.0 }
 0x536   : > { %v3624_v44 = vmax.f32 %v3592_v59, 0.0  ;;  %v3625_v0 = vmax.f32 %v3593_v16, 0.0  ;;  %v3626_v58 = vmax.f32 %v3594_v12, 0.0  ;;  %v3627_v33 = vmax.f32 %v3595_v14, 0.0 }
 0x537   : > { %v3628_v34 = vmax.f32 %v3596_v18, 0.0  ;;  %v3629_v45 = vmax.f32 %v3597_v24, 0.0  ;;  %v3630_v13 = vmax.f32 %v3598_v43, 0.0  ;;  %v3631_v25 = vmax.f32 %v3599_v37, 0.0  ;;  %3654 = vst.msk [vmem:[#allocation4 + $0x19] sm:$0xff] %vm534_vm4, %v3621_v36  ;;  %3655 = vst.msk [vmem:[#allocation4 + $0x21] sm:$0xff] %vm534_vm4, %v3622_v23 }
 0x538   : > { %3656 = vst.msk [vmem:[#allocation4 + $0x31] sm:$0xff] %vm534_vm4, %v3623_v7  ;;  %v3632_v51 = vmax.f32 %v3600_v50, 0.0  ;;  %v3633_v17 = vmax.f32 %v3601_v63, 0.0  ;;  %v3634_v41 = vmax.f32 %v3602_v9, 0.0  ;;  %v3635_v54 = vmax.f32 %v3603_v52, 0.0  ;;  %3658 = vst.msk [vmem:[#allocation4 + $0x49] sm:$0xff] %vm534_vm4, %v3625_v0 }
 0x539   : > { %3659 = vst.msk [vmem:[#allocation4 + $0x51] sm:$0xff] %vm534_vm4, %v3626_v58  ;;  %3657 = vst.msk [vmem:[#allocation4 + $0x39] sm:$0xff] %vm534_vm4, %v3624_v44  ;;  %v3636_v3 = vmax.f32 %v9680_v48, 0.0  ;;  %v3637_v32 = vmax.f32 %v9683_v15, 0.0  ;;  %v3638_v20 = vmax.f32 %v9686_v53, 0.0  ;;  %v3639_v31 = vmax.f32 %v9689_v19, 0.0  ;;  %v6951_v44 = vpop.permute.xlu1 %6950 }
 0x53a   : > { %3660 = vst.msk [vmem:[#allocation4 + $0x61] sm:$0xff] %vm534_vm4, %v3627_v33  ;;  %3661 = vst.msk [vmem:[#allocation4 + $0x69] sm:$0xff] %vm534_vm4, %v3628_v34  ;;  %v3640_v28 = vmax.f32 %v9692_v4, 0.0  ;;  %v3641_v22 = vmax.f32 %v9695_v62, 0.0  ;;  %v3642_v38 = vmax.f32 %v9698_v42, 0.0  ;;  %v3643_v35 = vmax.f32 %v9701_v21, 0.0 }
 0x53b   : > { %3662 = vst.msk [vmem:[#allocation4 + $0x79] sm:$0xff] %vm534_vm4, %v3629_v45  ;;  %3663 = vst.msk [vmem:[#allocation4 + $0x81] sm:$0xff] %vm534_vm4, %v3630_v13  ;;  %v3644_v6 = vmax.f32 %v9704_v5, 0.0  ;;  %v3645_v27 = vmax.f32 %v9707_v47, 0.0  ;;  %v3646_v8 = vmax.f32 %v9710_v60, 0.0  ;;  %v3647_v49 = vmax.f32 %v9713_v29, 0.0 }
 0x53c   : > { %3664 = vst.msk [vmem:[#allocation4 + $0x91] sm:$0xff] %vm534_vm4, %v3631_v25  ;;  %3665 = vst.msk [vmem:[#allocation4 + $0x99] sm:$0xff] %vm534_vm4, %v3632_v51  ;;  %v3648_v30 = vmax.f32 %v9716_v10, 0.0  ;;  %v3649_v55 = vmax.f32 %v9719_v39, 0.0  ;;  %v3651_v57 = vmax.f32 %v9722_v61, 0.0  ;;  %v3652_v59 = vmax.f32 %v9725_v1, 0.0 }
 0x53d   : > { %3666 = vst.msk [vmem:[#allocation4 + $0xa9] sm:$0xff] %vm534_vm4, %v3633_v17  ;;  %3667 = vst.msk [vmem:[#allocation4 + $0xb1] sm:$0xff] %vm534_vm4, %v3634_v41  ;;  %v7525_v19 = vld [vmem:[%s11589_s9 + $0x60] sm:$0xff]   ;;  %v7527_v0 = vld [vmem:[%s11589_s9 + $0x68] sm:$0xff]   ;;  %v6953_v13 = vunpack.i.h.bf16 %v6951_v44  ;;  %v6952_v25 = vunpack.i.l.bf16 %v6951_v44  ;;  %v6956_v51 = vpop.permute.xlu1 %6955 }
 0x53e   : > { %3668 = vst.msk [vmem:[#allocation4 + $0xc1] sm:$0xff] %vm534_vm4, %v3635_v54  ;;  %3669 = vst.msk [vmem:[#allocation4 + $0xc9] sm:$0xff] %vm534_vm4, %v3636_v3  ;;  %v7526_v62 = vld [vmem:[%s11589_s9 + $0x20] sm:$0xff]   ;;  %6872 = vmatprep.subr.bf16.mxu1 %v7525_v19  ;;  %6582 = vmatprep.subr.bf16.mxu0 %v7525_v19  ;;  %v7528_v58 = vld [vmem:[%s11589_s9 + $0x28] sm:$0xff]   ;;  %v6958_v41 = vunpack.i.h.bf16 %v6956_v51  ;;  %v6957_v54 = vunpack.i.l.bf16 %v6956_v51 }
 0x53f   : > { %3670 = vst.msk [vmem:[#allocation4 + $0xd9] sm:$0xff] %vm534_vm4, %v3637_v32  ;;  %3671 = vst.msk [vmem:[#allocation4 + $0xe1] sm:$0xff] %vm534_vm4, %v3638_v20  ;;  %v9780_v16 = vld [vmem:[#allocation4 + $0x30] sm:$0xff]  ;;  %v9782_v12 = vld [vmem:[#allocation4 + $0x48] sm:$0xff]  ;;  %6880 = vmatpush3.bf16.msra.mxu1 %v7526_v62  ;;  %6583 = vmatpush3.bf16.msra.mxu0 %v7526_v62  ;;  %v4615_v20 = vsel %vm534_vm4, %v9363_v40, %v6953_v13 }
 0x540   : > { %3672 = vst.msk [vmem:[#allocation4 + $0xf1] sm:$0xff] %vm534_vm4, %v3639_v31  ;;  %3673 = vst.msk [vmem:[#allocation4 + $0xf9] sm:$0xff] %vm534_vm4, %v3640_v28  ;;  %v9784_v14 = vld [vmem:[#allocation4 + $0x50] sm:$0xff]  ;;  %v9786_v18 = vld [vmem:[#allocation4 + $0x38] sm:$0xff]  ;;  %v3883_v42 = vrot.slane %v9782_v12, 2  ;;  %6873 = vmatprep.subr.bf16.mxu1 %v7527_v0  ;;  %6584 = vmatprep.subr.bf16.mxu0 %v7527_v0  ;;  %v3878_v31 = vrot.slane %v9780_v16, 2 }
 0x541   : > { %3674 = vst.msk [vmem:[#allocation4 + $0x109] sm:$0xff] %vm534_vm4, %v3641_v22  ;;  %3675 = vst.msk [vmem:[#allocation4 + $0x111] sm:$0xff] %vm534_vm4, %v3642_v38  ;;  %v6964_v24 = vpack.i.bf16 %v9784_v14, %v9782_v12  ;;  %v6969_v43 = vpack.i.bf16 %v9786_v18, %v9780_v16  ;;  %v9792_v37 = vld [vmem:[#allocation4 + $0x60] sm:$0xff]  ;;  %v9794_v50 = vld [vmem:[#allocation4 + $0x68] sm:$0xff]  ;;  %v3884_v21 = vrot.slane %v9784_v14, 2  ;;  %v3879_v28 = vrot.slane %v9786_v18, 2 }
 0x542   : > { %3676 = vst.msk [vmem:[#allocation4 + $0x121] sm:$0xff] %vm534_vm4, %v3643_v35  ;;  %3677 = vst.msk [vmem:[#allocation4 + $0x129] sm:$0xff] %vm534_vm4, %v3644_v6  ;;  %v6974_v63 = vpack.i.bf16 %v9794_v50, %v9792_v37  ;;  %v9800_v9 = vld [vmem:[#allocation4 + $0x78] sm:$0xff]  ;;  %v9802_v52 = vld [vmem:[#allocation4 + $0x80] sm:$0xff]  ;;  %v4614_v35 = vsel %vm534_vm4, %v9361_v11, %v6952_v25 }
 0x543   : > { %3678 = vst.msk [vmem:[#allocation4 + $0x139] sm:$0xff] %vm534_vm4, %v3645_v27  ;;  %3679 = vst.msk [vmem:[#allocation4 + $0x141] sm:$0xff] %vm534_vm4, %v3646_v8  ;;  %6965 = vrot.lane.b32.xlu1 %v6964_v24, %s11690_s27  ;;  %6970 = vrot.lane.b32.xlu0 %v6969_v43, %s7638_s14  ;;  %v6984_v48 = vpack.i.bf16 %v9802_v52, %v9800_v9  ;;  %v9808_v15 = vld [vmem:[#allocation4 + $0x90] sm:$0xff]  ;;  %v9810_v53 = vld [vmem:[#allocation4 + $0x98] sm:$0xff]  ;;  %v9834_v10 = vsel %vm1715_vm3, %v3883_v42, %v3884_v21  ;;  %v3804_v42 = vrot.slane %v9784_v14, 1 }
 0x544   : > { %3680 = vst.msk [vmem:[#allocation4 + $0x151] sm:$0xff] %vm534_vm4, %v3647_v49  ;;  %3681 = vst.msk [vmem:[#allocation4 + $0x159] sm:$0xff] %vm534_vm4, %v3648_v30  ;;  %v9817_v4 = vld [vmem:[#allocation4 + $0x58] sm:$0x3]  ;;  %v6994_v5 = vpack.i.bf16 %v9810_v53, %v9808_v15  ;;  %v9827_v60 = vld [vmem:[#allocation4 + $0xa8] sm:$0xff]  ;;  %6881 = vmatpush3.bf16.msra.mxu1 %v7528_v58  ;;  %6585 = vmatpush3.bf16.msra.mxu0 %v7528_v58  ;;  %v9890_v40 = vsel %vm460_vm0, %v4614_v35, %v6957_v54  ;;  %v3898_v1 = vrot.slane %v9808_v15, 2 }
 0x545   : > { %3682 = vst.msk [vmem:[#allocation4 + $0x169] sm:$0xff] %vm534_vm4, %v3649_v55  ;;  %3684 = vst.msk [vmem:[#allocation4 + $0x181] sm:$0xff] %vm534_vm4, %v3651_v57  ;;  %v3886_v47 = vrot.slane %v9817_v4, 2  ;;  %v9829_v29 = vld [vmem:[#allocation4 + $0xb0] sm:$0xff]  ;;  %v9843_v36 = vld [vmem:[#allocation4 + $0xc0] sm:$0xff]  ;;  %v9893_v27 = vsel %vm460_vm0, %v4615_v20, %v6958_v41  ;;  %v9920_v62 = vsel %vm1715_vm3, %v3878_v31, %v3879_v28  ;;  %v3806_v58 = vrot.slane %v9817_v4, 1 }
 0x546   : > { %3685 = vst.msk [vmem:[#allocation4 + $0x189] sm:$0xff] %vm534_vm4, %v3652_v59  ;;  %11699 = vst [vmem:[#allocation13_spill] sm:$0xff] %v9802_v52  ;;  %v7004_v61 = vpack.i.bf16 %v9829_v29, %v9827_v60  ;;  %v9845_v23 = vld [vmem:[#allocation4 + $0xc8] sm:$0xff]  ;;  %v9851_v2 = vld [vmem:[#allocation4 + $0xd8] sm:$0xff]  ;;  %v3799_v41 = vrot.slane %v9786_v18, 1  ;;  %v3894_v18 = vrot.slane %v9802_v52, 2 }
 0x547   : > { %6975 = vrot.lane.b32.xlu1 %v6974_v63, %s11690_s27  ;;  %6980 = vrot.lane.b32.xlu0 %v6964_v24, %s7638_s14  ;;  %11700 = vst [vmem:[#allocation14_spill] sm:$0xff] %v9829_v29  ;;  %11701 = vst [vmem:[#allocation11_spill] sm:$0xff] %v9834_v10  ;;  %v9837_v39 = vsel %vm1715_vm3, %v3884_v21, %v3886_v47  ;;  %v7014_v7 = vpack.i.bf16 %v9845_v23, %v9843_v36  ;;  %v9853_v46 = vld [vmem:[#allocation4 + $0xe0] sm:$0xff]  ;;  %v9865_v34 = vld [vmem:[#allocation4 + $0x18] sm:$0xff]  ;;  %v3803_v24 = vrot.slane %v9782_v12, 1 }
 0x548   : > { %11702 = vst [vmem:[#allocation12_spill] sm:$0xff] %v9837_v39  ;;  %11703 = vst [vmem:[#allocation15_spill] sm:$0xff] %v9843_v36  ;;  %v7029_v33 = vpack.i.bf16 %v9853_v46, %v9851_v2  ;;  %v9867_v45 = vld [vmem:[#allocation4 + $0x20] sm:$0xff]  ;;  %v9873_v3 = vld [vmem:[#allocation4 + $0xf0] sm:$0xff]  ;;  %v3793_v22 = vrot.slane %v9865_v34, 1  ;;  %v3873_v12 = vrot.slane %v9865_v34, 2 }
 0x549   : > { %11704 = vst [vmem:[#allocation16_spill] sm:$0xff] %v9845_v23  ;;  %11705 = vst [vmem:[#allocation17_spill] sm:$0xff] %v9851_v2  ;;  %v7034_v17 = vpack.i.bf16 %v9867_v45, %v9865_v34  ;;  %v9875_v32 = vld [vmem:[#allocation4 + $0xf8] sm:$0xff]  ;;  %v3794_v38 = vrot.slane %v9867_v45, 1  ;;  %v9895_v8 = vld [vmem:[#allocation4 + $0x108] sm:$0xff]  ;;  %v9958_v31 = vsel %vm640_vm2, %v3803_v24, %v3804_v42  ;;  %v3909_v52 = vrot.slane %v9845_v23, 2 }
 0x54a   : > { %11706 = vst [vmem:[#allocation18_spill] sm:$0xff] %v9853_v46  ;;  %11707 = vst [vmem:[#allocation19_spill] sm:$0xff] %v9865_v34  ;;  %v7044_v6 = vpack.i.bf16 %v9875_v32, %v9873_v3  ;;  %v9897_v49 = vld [vmem:[#allocation4 + $0x110] sm:$0xff]  ;;  %v9901_v30 = vld [vmem:[#allocation4 + $0x40] sm:$0x3]  ;;  %v3904_v34 = vrot.slane %v9829_v29, 2 }
 0x54b   : > { %6985 = vrot.lane.b32.xlu1 %v6984_v48, %s11690_s27  ;;  %6990 = vrot.lane.b32.xlu0 %v6974_v63, %s7638_s14  ;;  %11708 = vst [vmem:[#allocation20_spill] sm:$0xff] %v9867_v45  ;;  %11709 = vst [vmem:[#allocation21_spill] sm:$0xff] %v9873_v3  ;;  %v3691_v11 = vld [vmem:[#allocation4 + $0x28] sm:$0x3]  ;;  %v9903_v55 = vld [vmem:[#allocation4 + $0x120] sm:$0xff]  ;;  %v9908_v59 = vsel %vm640_vm2, %v3793_v22, %v3794_v38  ;;  %v3801_v25 = vrot.slane %v9901_v30, 1 }
 0x54c   : > { %11710 = vst [vmem:[#allocation22_spill] sm:$0xff] %v9875_v32  ;;  %11711 = vst [vmem:[#allocation23_spill] sm:$0xff] %v9890_v40  ;;  %v9905_v57 = vld [vmem:[#allocation4 + $0x128] sm:$0xff]  ;;  %v9913_v63 = vld [vmem:[#allocation4 + $0x138] sm:$0xff]  ;;  %v3796_v47 = vrot.slane %v3691_v11, 1  ;;  %v3876_v13 = vrot.slane %v3691_v11, 2  ;;  %v9973_v11 = vsel %vm640_vm2, %v3804_v42, %v3806_v58 }
 0x54d   : > { %11712 = vst [vmem:[#allocation24_spill] sm:$0xff] %v9893_v27  ;;  %11713 = vst [vmem:[#allocation25_spill] sm:$0xff] %v9895_v8  ;;  %v9917_v19 = vld [vmem:[#allocation4 + $0x150] sm:$0xff]  ;;  %v9923_v21 = vld [vmem:[#allocation4 + $0x158] sm:$0xff]  ;;  %v7064_v14 = vpack.i.bf16 %v9905_v57, %v9903_v55  ;;  %v3798_v58 = vrot.slane %v9780_v16, 1  ;;  %v3888_v16 = vrot.slane %v9792_v37, 2  ;;  %v10036_v29 = vsel %vm640_vm2, %v3799_v41, %v3801_v25 }
 0x54e   : > { %11714 = vst [vmem:[#allocation26_spill] sm:$0xff] %v9897_v49  ;;  %11715 = vst [vmem:[#allocation27_spill] sm:$0xff] %v9903_v55  ;;  %v9937_v44 = vld [vmem:[#allocation4 + $0x168] sm:$0xff]  ;;  %v9939_v0 = vld [vmem:[#allocation4 + $0x170] sm:$0xff]  ;;  %v9951_v54 = vpack.i.bf16 %v9923_v21, %v9917_v19  ;;  %v3908_v27 = vrot.slane %v9843_v36, 2 }
 0x54f   : > { %6995 = vrot.lane.b32.xlu1 %v6994_v5, %s11690_s27  ;;  %7000 = vrot.lane.b32.xlu0 %v6984_v48, %s7638_s14  ;;  %11716 = vst [vmem:[#allocation28_spill] sm:$0xff] %v9905_v57  ;;  %11717 = vst [vmem:[#allocation29_spill] sm:$0xff] %v9913_v63  ;;  %v9915_v48 = vld [vmem:[#allocation4 + $0x140] sm:$0xff]  ;;  %v9955_v4 = vld [vmem:[#allocation4 + $0x188] sm:$0xff]  ;;  %v9962_v22 = vpack.i.bf16 %v9939_v0, %v9937_v44 }
 0x550   : > { %11718 = vst [vmem:[#allocation30_spill] sm:$0xff] %v9915_v48  ;;  %11719 = vst [vmem:[#allocation31_spill] sm:$0xff] %v9917_v19  ;;  %v7074_v51 = vpack.i.bf16 %v9915_v48, %v9913_v63  ;;  %v9953_v20 = vld [vmem:[#allocation4 + $0x180] sm:$0xff] }
 0x551   : > { %11720 = vst [vmem:[#allocation32_spill] sm:$0xff] %v9920_v62  ;;  %11721 = vst [vmem:[#allocation33_spill] sm:$0xff] %v9923_v21  ;;  %v10005_v42 = vld [vmem:[#allocation4 + $0xa0] sm:$0x3] }
 0x552   : > { %11722 = vst [vmem:[#allocation34_spill] sm:$0xff] %v9939_v0  ;;  %11723 = vst [vmem:[#allocation35_spill] sm:$0xff] %v9958_v31  ;;  %v10054_v25 = vld [vmem:[#allocation4 + $0x100] sm:$0x3] }
 0x553   : > { %7005 = vrot.lane.b32.xlu1 %v7004_v61, %s11690_s27  ;;  %7010 = vrot.lane.b32.xlu0 %v6994_v5, %s7638_s14  ;;  %v3881_v5 = vrot.slane %v9901_v30, 2  ;;  %11725 = vst [vmem:[#allocation37_spill] sm:$0xff] %v9973_v11  ;;  %11728 = vst [vmem:[#allocation40_spill] sm:$0xff] %v10005_v42 }
 0x554   : > { %11736 = vst [vmem:[#allocation48_spill] sm:$0xff] %v10054_v25 }
 0x555   : > { %v9965_v35 = vsel %vm1715_vm3, %v3879_v28, %v3881_v5  ;;  %v9985_v5 = vld [vmem:[#allocation4 + $0x70] sm:$0x3]  ;;  %v10007_v28 = vld [vmem:[#allocation4 + $0xb8] sm:$0x3] }
 0x556   : > { %11724 = vst [vmem:[#allocation36_spill] sm:$0xff] %v9965_v35  ;;  %11729 = vst [vmem:[#allocation41_spill] sm:$0xff] %v10007_v28 }
 0x557   : > { %7015 = vrot.lane.b32.xlu1 %v7014_v7, %s11690_s27  ;;  %7020 = vrot.lane.b32.xlu0 %v7004_v61, %s7638_s14  ;;  %v7529_v61 = vld [vmem:[%s11589_s9 + $0x70] sm:$0xff]  }
 0x558   : > { %6874 = vmatprep.subr.bf16.mxu1 %v7529_v61  ;;  %6586 = vmatprep.subr.bf16.mxu0 %v7529_v61 }
 0x55b   : > { %7025 = vrot.lane.b32.xlu1 %v6969_v43, %s11690_s27  ;;  %7030 = vrot.lane.b32.xlu0 %v7029_v33, %s11690_s27  ;;  %v7054_v43 = vpack.i.bf16 %v9897_v49, %v9895_v8 }
 0x55f   : > { %7040 = vrot.lane.b32.xlu0 %v7014_v7, %s7638_s14  ;;  %7035 = vrot.lane.b32.xlu1 %v7034_v17, %s7638_s14  ;;  %v7530_v7 = vld [vmem:[%s11589_s9 + $0x30] sm:$0xff]   ;;  %v9946_v17 = vld [vmem:[#allocation4 + $0x178] sm:$0x3] }
 0x560   : > { %6882 = vmatpush3.bf16.msra.mxu1 %v7530_v7  ;;  %6587 = vmatpush3.bf16.msra.mxu0 %v7530_v7 }
 0x563   : > { %7050 = vrot.lane.b32.xlu0 %v7029_v33, %s7638_s14  ;;  %7045 = vrot.lane.b32.xlu1 %v7044_v6, %s11690_s27  ;;  %v3874_v33 = vrot.slane %v9867_v45, 2  ;;  %v3906_v45 = vrot.slane %v10007_v28, 2 }
 0x565   : > { %v3875_v24 = vsel %vm1715_vm3, %v3873_v12, %v3874_v33  ;;  %v3877_v61 = vsel %vm1715_vm3, %v3874_v33, %v3876_v13  ;;  %v9995_v33 = vld [vmem:[#allocation4 + $0x88] sm:$0x3]  ;;  %v9999_v13 = vpack.i.bf16 %v9973_v11, %v9958_v31  ;;  %v3889_v12 = vrot.slane %v9794_v50, 2 }
 0x566   : > { %11727 = vst [vmem:[#allocation39_spill] sm:$0xff] %v9995_v33  ;;  %v10001_v7 = vpack.i.bf16 %v3877_v61, %v3875_v24  ;;  %v3893_v24 = vrot.slane %v9800_v9, 2  ;;  %v10015_v61 = vld [vmem:[#allocation4 + $0xd0] sm:$0x3]  ;;  %v3896_v30 = vrot.slane %v9995_v33, 2  ;;  %v3901_v31 = vrot.slane %v10005_v42, 2 }
 0x567   : > { %7060 = vrot.lane.b32.xlu0 %v7044_v6, %s7638_s14  ;;  %7055 = vrot.lane.b32.xlu1 %v7054_v43, %s11690_s27  ;;  %v9968_v6 = vsel %vm640_vm2, %v3794_v38, %v3796_v47  ;;  %v9982_v38 = vpack.i.bf16 %v9955_v4, %v9953_v20  ;;  %v9990_v47 = vpack.i.bf16 %v9965_v35, %v9920_v62  ;;  %v3903_v11 = vrot.slane %v9827_v60, 2 }
 0x568   : > { %11730 = vst [vmem:[#allocation42_spill] sm:$0xff] %v10015_v61  ;;  %v3911_v33 = vrot.slane %v10015_v61, 2  ;;  %v10033_v42 = vsel %vm640_vm2, %v3798_v58, %v3799_v41  ;;  %v10041_v36 = vsel %vm1715_vm3, %v3888_v16, %v3889_v12  ;;  %v10050_v23 = vsel %vm1715_vm3, %v3894_v18, %v3896_v30  ;;  %v10052_v58 = vld [vmem:[#allocation4 + $0xe8] sm:$0x3] }
 0x569   : > { %11726 = vst [vmem:[#allocation38_spill] sm:$0xff] %v9982_v38  ;;  %11731 = vst [vmem:[#allocation43_spill] sm:$0xff] %v10041_v36  ;;  %v10063_v16 = vsel %vm1715_vm3, %v3903_v11, %v3904_v34  ;;  %v3914_v30 = vrot.slane %v9853_v46, 2  ;;  %v10088_v11 = vld [vmem:[#allocation4 + $0x148] sm:$0x3] }
 0x56a   : > { %11734 = vst [vmem:[#allocation46_spill] sm:$0xff] %v10050_v23  ;;  %11735 = vst [vmem:[#allocation47_spill] sm:$0xff] %v10052_v58  ;;  %v10094_v46 = vld [vmem:[#allocation4 + $0x160] sm:$0x3] }
 0x56b   : > { %7070 = vrot.lane.b32.xlu0 %v7054_v43, %s7638_s14  ;;  %7065 = vrot.lane.b32.xlu1 %v7064_v14, %s11690_s27  ;;  %v3891_v43 = vrot.slane %v9985_v5, 2  ;;  %11739 = vst [vmem:[#allocation51_spill] sm:$0xff] %v10063_v16  ;;  %11745 = vst [vmem:[#allocation57_spill] sm:$0xff] %v10088_v11 }
 0x56d   : > { %v10044_v61 = vsel %vm1715_vm3, %v3889_v12, %v3891_v43  ;;  %v10066_v43 = vsel %vm1715_vm3, %v3904_v34, %v3906_v45  ;;  %v10068_v12 = vld [vmem:[#allocation4 + $0x118] sm:$0x3]  ;;  %v3916_v34 = vrot.slane %v10052_v58, 2  ;;  %v3918_v45 = vrot.slane %v9873_v3, 2 }
 0x56e   : > { %11732 = vst [vmem:[#allocation44_spill] sm:$0xff] %v10044_v61  ;;  %11740 = vst [vmem:[#allocation52_spill] sm:$0xff] %v10066_v43  ;;  %v3926_v28 = vrot.slane %v10068_v12, 2  ;;  %v3929_v58 = vrot.slane %v9905_v57, 2 }
 0x56f   : > { %7080 = vrot.lane.b32.xlu0 %v7064_v14, %s7638_s14  ;;  %7075 = vrot.lane.b32.xlu1 %v7074_v51, %s11690_s27  ;;  %v3899_v14 = vrot.slane %v9810_v53, 2  ;;  %11741 = vst [vmem:[#allocation53_spill] sm:$0xff] %v10068_v12  ;;  %v3939_v12 = vrot.slane %v9923_v21, 2  ;;  %v3943_v21 = vrot.slane %v9937_v44, 2 }
 0x571   : > { %v10057_v41 = vsel %vm1715_vm3, %v3898_v1, %v3899_v14  ;;  %v10060_v40 = vsel %vm1715_vm3, %v3899_v14, %v3901_v31  ;;  %v3913_v1 = vrot.slane %v9851_v2, 2  ;;  %v10078_v31 = vld [vmem:[#allocation4 + $0x130] sm:$0x3]  ;;  %v3924_v14 = vrot.slane %v9897_v49, 2 }
 0x572   : > { %11737 = vst [vmem:[#allocation49_spill] sm:$0xff] %v10057_v41  ;;  %11738 = vst [vmem:[#allocation50_spill] sm:$0xff] %v10060_v40  ;;  %v3931_v2 = vrot.slane %v10078_v31, 2  ;;  %v3938_v49 = vrot.slane %v9917_v19, 2  ;;  %v3941_v19 = vrot.slane %v10094_v46, 2 }
 0x573   : > { %7090 = vrot.lane.b32.xlu0 %v7074_v51, %s7638_s14  ;;  %7085 = vrot.lane.b32.xlu1 %v9951_v54, %s11690_s27  ;;  %v10047_v51 = vsel %vm1715_vm3, %v3893_v24, %v3894_v18  ;;  %v10071_v24 = vsel %vm1715_vm3, %v3908_v27, %v3909_v52  ;;  %v10074_v18 = vsel %vm1715_vm3, %v3909_v52, %v3911_v33  ;;  %v3919_v27 = vrot.slane %v9875_v32, 2 }
 0x574   : > { %11733 = vst [vmem:[#allocation45_spill] sm:$0xff] %v10047_v51  ;;  %11742 = vst [vmem:[#allocation54_spill] sm:$0xff] %v10071_v24  ;;  %v3921_v52 = vrot.slane %v10054_v25, 2  ;;  %v3923_v33 = vrot.slane %v9895_v8, 2  ;;  %v3933_v32 = vrot.slane %v9913_v63, 2  ;;  %v3934_v25 = vrot.slane %v9915_v48, 2 }
 0x575   : > { %11743 = vst [vmem:[#allocation55_spill] sm:$0xff] %v10074_v18  ;;  %11744 = vst [vmem:[#allocation56_spill] sm:$0xff] %v10078_v31  ;;  %v10101_v3 = vsel %vm1715_vm3, %v3913_v1, %v3914_v30  ;;  %v3936_v8 = vrot.slane %v10088_v11, 2  ;;  %v7532_v31 = vld [vmem:[%s11589_s9 + $0x38] sm:$0xff]   ;;  %v10117_v1 = vsel %vm1715_vm3, %v3914_v30, %v3916_v34  ;;  %v3944_v11 = vrot.slane %v9939_v0, 2 }
 0x576   : > { %11746 = vst [vmem:[#allocation58_spill] sm:$0xff] %v10101_v3  ;;  %11747 = vst [vmem:[#allocation59_spill] sm:$0xff] %v10117_v1  ;;  %v10122_v48 = vld [vmem:[#allocation4 + $0x190] sm:$0x3]  ;;  %v10125_v63 = vsel %vm1715_vm3, %v3918_v45, %v3919_v27  ;;  %v10128_v57 = vsel %vm1715_vm3, %v3919_v27, %v3921_v52  ;;  %v10134_v30 = vsel %vm1715_vm3, %v3924_v14, %v3926_v28  ;;  %v10136_v34 = vld [vmem:[#allocation4 + $0x1a8] sm:$0x3] }
 0x577   : > { %7100 = vrot.lane.b32.xlu0 %v9951_v54, %s7638_s14  ;;  %7095 = vrot.lane.b32.xlu1 %v9962_v22, %s11690_s27  ;;  %v3928_v54 = vrot.slane %v9903_v55, 2  ;;  %v7531_v55 = vld [vmem:[%s11589_s9 + $0x78] sm:$0xff]   ;;  %11748 = vst [vmem:[#allocation60_spill] sm:$0xff] %v10125_v63  ;;  %11749 = vst [vmem:[#allocation61_spill] sm:$0xff] %v10128_v57  ;;  %v10142_v0 = vsel %vm1715_vm3, %v3929_v58, %v3931_v2  ;;  %v10145_v45 = vsel %vm1715_vm3, %v3933_v32, %v3934_v25 }
 0x578   : > { %11751 = vst [vmem:[#allocation63_spill] sm:$0xff] %v10134_v30  ;;  %6875 = vmatprep.subr.bf16.mxu1 %v7531_v55  ;;  %11753 = vst [vmem:[#allocation65_spill] sm:$0xff] %v10142_v0  ;;  %v11755_v27 = vrot.slane %v9955_v4, 1  ;;  %v11756_v52 = vrot.slane %v9953_v20, 1  ;;  %v10155_v28 = vsel %vm1715_vm3, %v3934_v25, %v3936_v8  ;;  %v11760_v2 = vrot.slane %v9955_v4, 2  ;;  %6588 = vmatprep.subr.bf16.mxu0 %v7531_v55 }
 0x579   : > { %11754 = vst [vmem:[#allocation66_spill] sm:$0xff] %v10145_v45  ;;  %6883 = vmatpush3.bf16.msra.mxu1 %v7532_v31  ;;  %11758 = vst [vmem:[#allocation68_spill] sm:$0xff] %v10155_v28  ;;  %v11763_v8 = vpack.i.bf16 %v9968_v6, %v9908_v59  ;;  %v10178_v25 = vsel %vm1715_vm3, %v3943_v21, %v3944_v11  ;;  %6589 = vmatpush3.bf16.msra.mxu0 %v7532_v31  ;;  %v11777_v31 = vld [vmem:[#allocation13_spill] sm:$0xff] }
 0x57a   : > { %11765 = vst [vmem:[#allocation72_spill] sm:$0xff] %v10178_v25 }
 0x57b   : > { %7110 = vrot.lane.b32.xlu0 %v9962_v22, %s7638_s14  ;;  %7105 = vrot.lane.b32.xlu1 %v9982_v38, %s11690_s27  ;;  %v10131_v22 = vsel %vm1715_vm3, %v3923_v33, %v3924_v14  ;;  %v10139_v38 = vsel %vm1715_vm3, %v3928_v54, %v3929_v58  ;;  %v10152_v33 = vsel %vm640_vm2, %v11756_v52, %v11755_v27  ;;  %v11761_v58 = vrot.slane %v9953_v20, 2 }
 0x57c   : > { %11750 = vst [vmem:[#allocation62_spill] sm:$0xff] %v10131_v22  ;;  %11752 = vst [vmem:[#allocation64_spill] sm:$0xff] %v10139_v38  ;;  %v10158_v14 = vsel %vm1715_vm3, %v3938_v49, %v3939_v12  ;;  %v3991_v54 = vrot.slane %v10122_v48, 2  ;;  %v10175_v49 = vsel %vm1715_vm3, %v3939_v12, %v3941_v19  ;;  %v11766_v20 = vrot.slane %v9485_v56, 1 }
 0x57d   : > { %11757 = vst [vmem:[#allocation67_spill] sm:$0xff] %v10152_v33  ;;  %11759 = vst [vmem:[#allocation69_spill] sm:$0xff] %v10158_v14  ;;  %v10165_v32 = vsel %vm1715_vm3, %v11761_v58, %v11760_v2  ;;  %v11767_v27 = vrot.slane %v9483_v26, 1  ;;  %v3999_v52 = vrot.slane %v10136_v34, 1  ;;  %v11768_v2 = vrot.slane %v9946_v17, 2 }
 0x57e   : > { %11762 = vst [vmem:[#allocation70_spill] sm:$0xff] %v10165_v32  ;;  %11764 = vst [vmem:[#allocation71_spill] sm:$0xff] %v10175_v49  ;;  %v11770_v19 = vrot.slane %v9955_v4, 2  ;;  %v11774_v56 = vrot.slane %v9792_v37, 1  ;;  %v3813_v37 = vrot.slane %v9800_v9, 1 }
 0x57f   : > { %7115 = vrot.lane.b32.xlu1 %v9990_v47, %s7637_s15  ;;  %7120 = vrot.lane.b32.xlu0 %v11763_v8, %s7637_s15  ;;  %v10185_v55 = vsel %vm640_vm2, %v11767_v27, %v11766_v20  ;;  %v10191_v58 = vsel %vm1715_vm3, %v3944_v11, %v11768_v2  ;;  %v11772_v8 = vmov %v11766_v20  ;;  %v11773_v2 = vrot.slane %v9794_v50, 1 }
 0x580   : > { %11769 = vst [vmem:[#allocation73_spill] sm:$0xff] %v10191_v58  ;;  %v10196_v12 = vsel %vm1715_vm3, %v11770_v19, %v3991_v54  ;;  %v10205_v20 = vsel %vm640_vm2, %v11772_v8, %v3999_v52  ;;  %v7134_v52 = vpack.i.bf16 %v9837_v39, %v9834_v10  ;;  %v10241_v19 = vpack.i.bf16 %v10036_v29, %v10033_v42 }
 0x581   : > { %11771 = vst [vmem:[#allocation74_spill] sm:$0xff] %v10196_v12  ;;  %v10250_v11 = vsel %vm640_vm2, %v11774_v56, %v11773_v2  ;;  %v11775_v54 = vrot.slane %v9985_v5, 1  ;;  %v11776_v27 = vmov %v11773_v2  ;;  %v3814_v2 = vrot.slane %v11777_v31, 1  ;;  %v11778_v56 = vld [vmem:[#allocation39_spill] sm:$0xff] }
 0x582   : > { %v3816_v26 = vrot.slane %v11778_v56, 1  ;;  %v7154_v50 = vpack.i.bf16 %v10044_v61, %v10041_v36  ;;  %v3818_v31 = vrot.slane %v9808_v15, 1  ;;  %v7284_v61 = vpack.i.bf16 %v10128_v57, %v10125_v63  ;;  %v11804_v63 = vld [vmem:[#allocation28_spill] sm:$0xff] }
 0x583   : > { %7130 = vrot.lane.b32.xlu1 %v9999_v13, %s7638_s14  ;;  %7125 = vrot.lane.b32.xlu0 %v10001_v7, %s11690_s27  ;;  %v10257_v21 = vsel %vm640_vm2, %v11776_v27, %v11775_v54  ;;  %v10273_v5 = vsel %vm640_vm2, %v3813_v37, %v3814_v2  ;;  %v11779_v54 = vld [vmem:[#allocation40_spill] sm:$0xff]  ;;  %v3849_v57 = vrot.slane %v11804_v63, 1 }
 0x584   : > { %v7149_v8 = vpack.i.bf16 %v10257_v21, %v10250_v11  ;;  %v10276_v27 = vsel %vm640_vm2, %v3814_v2, %v3816_v26  ;;  %v3821_v56 = vrot.slane %v11779_v54, 1  ;;  %v7174_v26 = vpack.i.bf16 %v10050_v23, %v10047_v51  ;;  %v11780_v2 = vld [vmem:[#allocation14_spill] sm:$0xff]  ;;  %v11781_v54 = vld [vmem:[#allocation41_spill] sm:$0xff] }
 0x585   : > { %v7169_v9 = vpack.i.bf16 %v10276_v27, %v10273_v5  ;;  %v3826_v36 = vrot.slane %v11781_v54, 1  ;;  %v11783_v54 = vld [vmem:[#allocation16_spill] sm:$0xff]  ;;  %v11784_v51 = vld [vmem:[#allocation42_spill] sm:$0xff] }
 0x586   : > { %v3831_v23 = vrot.slane %v11784_v51, 1 }
 0x587   : > { %7135 = vrot.lane.b32.xlu1 %v7134_v52, %s7637_s15  ;;  %7140 = vrot.lane.b32.xlu0 %v10241_v19, %s7637_s15 }
 0x58b   : > { %7150 = vrot.lane.b32.xlu1 %v7149_v8, %s7638_s14  ;;  %7145 = vrot.lane.b32.xlu0 %v9990_v47, %s11690_s27  ;;  %v3819_v47 = vrot.slane %v9810_v53, 1  ;;  %v3823_v53 = vrot.slane %v9827_v60, 1 }
 0x58d   : > { %v10291_v37 = vsel %vm640_vm2, %v3818_v31, %v3819_v47  ;;  %v7194_v31 = vpack.i.bf16 %v10060_v40, %v10057_v41  ;;  %v11792_v41 = vld [vmem:[#allocation18_spill] sm:$0xff] }
 0x58e   : > { %v3834_v40 = vrot.slane %v11792_v41, 1 }
 0x58f   : > { %7155 = vrot.lane.b32.xlu1 %v7154_v50, %s7637_s15  ;;  %7160 = vrot.lane.b32.xlu0 %v9999_v13, %s7637_s15  ;;  %v10294_v13 = vsel %vm640_vm2, %v3819_v47, %v3821_v56  ;;  %v11782_v56 = vld [vmem:[#allocation15_spill] sm:$0xff] }
 0x590   : > { %v7189_v15 = vpack.i.bf16 %v10294_v13, %v10291_v37 }
 0x593   : > { %7170 = vrot.lane.b32.xlu1 %v7169_v9, %s7638_s14  ;;  %7165 = vrot.lane.b32.xlu0 %v7134_v52, %s11690_s27  ;;  %v3824_v52 = vrot.slane %v11780_v2, 1  ;;  %v3828_v2 = vrot.slane %v11782_v56, 1 }
 0x595   : > { %v10308_v47 = vsel %vm640_vm2, %v3823_v53, %v3824_v52 }
 0x597   : > { %7175 = vrot.lane.b32.xlu1 %v7174_v26, %s7637_s15  ;;  %7180 = vrot.lane.b32.xlu0 %v7149_v8, %s7637_s15  ;;  %v10311_v8 = vsel %vm640_vm2, %v3824_v52, %v3826_v36  ;;  %v7214_v36 = vpack.i.bf16 %v10066_v43, %v10063_v16  ;;  %v11788_v52 = vld [vmem:[#allocation21_spill] sm:$0xff] }
 0x598   : > { %v7209_v60 = vpack.i.bf16 %v10311_v8, %v10308_v47  ;;  %v3838_v56 = vrot.slane %v11788_v52, 1  ;;  %v11791_v16 = vld [vmem:[#allocation17_spill] sm:$0xff]  ;;  %v7264_v52 = vpack.i.bf16 %v10117_v1, %v10101_v3 }
 0x599   : > { %v3833_v43 = vrot.slane %v11791_v16, 1 }
 0x59b   : > { %7190 = vrot.lane.b32.xlu1 %v7189_v15, %s7638_s14  ;;  %7185 = vrot.lane.b32.xlu0 %v7154_v50, %s11690_s27  ;;  %v3829_v50 = vrot.slane %v11783_v54, 1  ;;  %v11790_v54 = vld [vmem:[#allocation48_spill] sm:$0xff]  ;;  %v10371_v41 = vsel %vm640_vm2, %v3833_v43, %v3834_v40 }
 0x59c   : > { %11796 = vst [vmem:[#allocation15_spill] sm:$0xff] %v10371_v41 }
 0x59d   : > { %v10325_v53 = vsel %vm640_vm2, %v3828_v2, %v3829_v50 }
 0x59e   : > { %11785 = vst [vmem:[#allocation13_spill] sm:$0xff] %v10325_v53 }
 0x59f   : > { %7195 = vrot.lane.b32.xlu1 %v7194_v31, %s7637_s15  ;;  %7200 = vrot.lane.b32.xlu0 %v7169_v9, %s7637_s15  ;;  %v10328_v9 = vsel %vm640_vm2, %v3829_v50, %v3831_v23  ;;  %v7239_v23 = vpack.i.bf16 %v10074_v18, %v10071_v24  ;;  %v3841_v50 = vrot.slane %v11790_v54, 1  ;;  %v11793_v24 = vld [vmem:[#allocation47_spill] sm:$0xff]  ;;  %v11798_v54 = vld [vmem:[#allocation25_spill] sm:$0xff] }
 0x5a0   : > { %v7229_v51 = vpack.i.bf16 %v10328_v9, %v10325_v53  ;;  %v3836_v18 = vrot.slane %v11793_v24, 1  ;;  %v3843_v43 = vrot.slane %v11798_v54, 1 }
 0x5a2   : > { %v10374_v24 = vsel %vm640_vm2, %v3834_v40, %v3836_v18  ;;  %v11800_v40 = vld [vmem:[#allocation53_spill] sm:$0xff] }
 0x5a3   : > { %7210 = vrot.lane.b32.xlu1 %v7209_v60, %s7638_s14  ;;  %7205 = vrot.lane.b32.xlu0 %v7174_v26, %s11690_s27  ;;  %v10339_v26 = vld [vmem:[%s11589_s9 + $0x80] sm:$0xff]   ;;  %11797 = vst [vmem:[#allocation16_spill] sm:$0xff] %v10374_v24  ;;  %v3846_v18 = vrot.slane %v11800_v40, 1 }
 0x5a4   : > { %11786 = vst [vmem:[#allocation39_spill] sm:$0xff] %v10339_v26  ;;  %6816 = vmatprep.subr.bf16.mxu0 %v10339_v26 }
 0x5a7   : > { %7215 = vrot.lane.b32.xlu1 %v7214_v36, %s7637_s15  ;;  %7220 = vrot.lane.b32.xlu0 %v7189_v15, %s7637_s15  ;;  %v10347_v15 = vpop.permute.xlu1 %6960 }
 0x5a8   : > { %11787 = vst [vmem:[#allocation40_spill] sm:$0xff] %v10347_v15 }
 0x5ab   : > { %7230 = vrot.lane.b32.xlu1 %v7229_v51, %s7638_s14  ;;  %7225 = vrot.lane.b32.xlu0 %v7194_v31, %s11690_s27  ;;  %v11789_v31 = vld [vmem:[#allocation22_spill] sm:$0xff] }
 0x5ac   : > { %v3839_v2 = vrot.slane %v11789_v31, 1 }
 0x5ae   : > { %v10365_v31 = vsel %vm640_vm2, %v3838_v56, %v3839_v2  ;;  %v10368_v16 = vsel %vm640_vm2, %v3839_v2, %v3841_v50  ;;  %v7259_v2 = vpack.i.bf16 %v10374_v24, %v10371_v41  ;;  %v11799_v50 = vld [vmem:[#allocation26_spill] sm:$0xff] }
 0x5af   : > { %7235 = vrot.lane.b32.xlu1 %v10001_v7, %s7637_s15  ;;  %7240 = vrot.lane.b32.xlu0 %v7239_v23, %s7637_s15  ;;  %11794 = vst [vmem:[#allocation14_spill] sm:$0xff] %v10365_v31  ;;  %11795 = vst [vmem:[#allocation41_spill] sm:$0xff] %v10368_v16  ;;  %v7279_v56 = vpack.i.bf16 %v10368_v16, %v10365_v31  ;;  %v3844_v3 = vrot.slane %v11799_v50, 1  ;;  %v11803_v31 = vld [vmem:[#allocation27_spill] sm:$0xff] }
 0x5b0   : > { %v3848_v16 = vrot.slane %v11803_v31, 1 }
 0x5b1   : > { %v10398_v10 = vsel %vm640_vm2, %v3843_v43, %v3844_v3  ;;  %v10401_v54 = vsel %vm640_vm2, %v3844_v3, %v3846_v18  ;;  %v11805_v43 = vld [vmem:[#allocation56_spill] sm:$0xff]  ;;  %v7304_v18 = vpack.i.bf16 %v10134_v30, %v10131_v22  ;;  %v11809_v22 = vld [vmem:[#allocation30_spill] sm:$0xff] }
 0x5b2   : > { %11801 = vst [vmem:[#allocation42_spill] sm:$0xff] %v10398_v10  ;;  %11802 = vst [vmem:[#allocation21_spill] sm:$0xff] %v10401_v54  ;;  %v7299_v39 = vpack.i.bf16 %v10401_v54, %v10398_v10  ;;  %v3851_v62 = vrot.slane %v11805_v43, 1  ;;  %v10423_v35 = vsel %vm640_vm2, %v3848_v16, %v3849_v57  ;;  %v11808_v10 = vld [vmem:[#allocation29_spill] sm:$0xff]  ;;  %v3854_v30 = vrot.slane %v11809_v22, 1 }
 0x5b3   : > { %7255 = vrot.lane.b32.xlu1 %v10241_v19, %s7638_s14  ;;  %7245 = vrot.lane.b32.xlu0 %v7209_v60, %s7637_s15  ;;  %11806 = vst [vmem:[#allocation22_spill] sm:$0xff] %v10423_v35  ;;  %v3853_v54 = vrot.slane %v11808_v10, 1  ;;  %v11810_v16 = vld [vmem:[#allocation57_spill] sm:$0xff] }
 0x5b4   : > { %v10426_v31 = vsel %vm640_vm2, %v3849_v57, %v3851_v62  ;;  %v3856_v26 = vrot.slane %v11810_v16, 1 }
 0x5b5   : > { %v10358_v7 = vpop.permute.xlu1 %6965  ;;  %v10360_v15 = vpop.permute.xlu0 %6970  ;;  %11807 = vst [vmem:[#allocation48_spill] sm:$0xff] %v10426_v31  ;;  %v7319_v43 = vpack.i.bf16 %v10426_v31, %v10423_v35  ;;  %v10448_v41 = vsel %vm640_vm2, %v3853_v54, %v3854_v30  ;;  %v11813_v35 = vld [vmem:[#allocation31_spill] sm:$0xff]  ;;  %v11814_v54 = vld [vmem:[#allocation33_spill] sm:$0xff] }
 0x5b6   : > { %11811 = vst [vmem:[#allocation17_spill] sm:$0xff] %v10448_v41  ;;  %v10451_v10 = vsel %vm640_vm2, %v3854_v30, %v3856_v26  ;;  %v3858_v31 = vrot.slane %v11813_v35, 1  ;;  %v3859_v24 = vrot.slane %v11814_v54, 1  ;;  %v3861_v30 = vrot.slane %v10094_v46, 1  ;;  %v11815_v26 = vld [vmem:[#allocation24_spill] sm:$0xff] }
 0x5b7   : > { %7265 = vrot.lane.b32.xlu1 %v7264_v52, %s7637_s15  ;;  %7250 = vrot.lane.b32.xlu0 %v7214_v36, %s11690_s27  ;;  %v7339_v16 = vpack.i.bf16 %v10451_v10, %v10448_v41  ;;  %v7344_v46 = vpack.i.bf16 %v10155_v28, %v10145_v45  ;;  %v3863_v35 = vrot.slane %v9937_v44, 1  ;;  %v11818_v45 = vld [vmem:[#allocation34_spill] sm:$0xff] }
 0x5b8   : > { %v3864_v28 = vrot.slane %v11818_v45, 1 }
 0x5b9   : > { %v10378_v19 = vpop.permute.xlu1 %6975  ;;  %v10380_v60 = vpop.permute.xlu0 %6980 }
 0x5ba   : > { %v10506_v41 = vsel %vm640_vm2, %v3863_v35, %v3864_v28 }
 0x5bb   : > { %7280 = vrot.lane.b32.xlu1 %v7279_v56, %s7638_s14  ;;  %7260 = vrot.lane.b32.xlu0 %v7259_v2, %s7638_s14  ;;  %11819 = vst [vmem:[#allocation25_spill] sm:$0xff] %v10506_v41 }
 0x5bd   : > { %v10391_v36 = vpop.permute.xlu1 %6985  ;;  %v10393_v1 = vpop.permute.xlu0 %6990 }
 0x5bf   : > { %7285 = vrot.lane.b32.xlu1 %v7284_v61, %s7637_s15  ;;  %7270 = vrot.lane.b32.xlu0 %v7229_v51, %s7637_s15 }
 0x5c1   : > { %v10405_v50 = vpop.permute.xlu1 %6995  ;;  %v10407_v40 = vpop.permute.xlu0 %7000 }
 0x5c3   : > { %7300 = vrot.lane.b32.xlu1 %v7299_v39, %s7638_s14  ;;  %7275 = vrot.lane.b32.xlu0 %v7239_v23, %s11690_s27 }
 0x5c5   : > { %v10416_v3 = vpop.permute.xlu1 %7005  ;;  %v10418_v51 = vpop.permute.xlu0 %7010 }
 0x5c7   : > { %7305 = vrot.lane.b32.xlu1 %v7304_v18, %s7637_s15  ;;  %7290 = vrot.lane.b32.xlu0 %v7259_v2, %s7637_s15  ;;  %v7324_v2 = vpack.i.bf16 %v10142_v0, %v10139_v38 }
 0x5c9   : > { %v10430_v63 = vpop.permute.xlu1 %7015  ;;  %v10432_v23 = vpop.permute.xlu0 %7020 }
 0x5cb   : > { %7320 = vrot.lane.b32.xlu1 %v7319_v43, %s7638_s14  ;;  %7295 = vrot.lane.b32.xlu0 %v7264_v52, %s11690_s27 }
 0x5cd   : > { %v10441_v57 = vpop.permute.xlu1 %7025  ;;  %v10443_v62 = vpop.permute.xlu0 %7030 }
 0x5cf   : > { %7325 = vrot.lane.b32.xlu1 %v7324_v2, %s7637_s15  ;;  %7310 = vrot.lane.b32.xlu0 %v7279_v56, %s7637_s15 }
 0x5d1   : > { %v10455_v22 = vpop.permute.xlu0 %7040  ;;  %v7036_v52 = vpop.permute.xlu1 %7035 }
 0x5d2   : > { %11812 = vst [vmem:[#allocation18_spill] sm:$0xff] %v10455_v22  ;;  %v7038_v38 = vunpack.i.h.bf16 %v7036_v52  ;;  %v7037_v0 = vunpack.i.l.bf16 %v7036_v52  ;;  %v11816_v22 = vld [vmem:[#allocation23_spill] sm:$0xff] }
 0x5d3   : > { %7340 = vrot.lane.b32.xlu1 %v7339_v16, %s7638_s14  ;;  %7315 = vrot.lane.b32.xlu0 %v7284_v61, %s11690_s27  ;;  %v10481_v61 = vsel %vm640_vm2, %v3858_v31, %v3859_v24  ;;  %v3866_v31 = vrot.slane %v9946_v17, 1 }
 0x5d4   : > { %v10466_v56 = vsel %vm4678_vm6, %v11815_v26, %v7038_v38  ;;  %v10470_v53 = vsel %vm4678_vm6, %v11816_v22, %v7037_v0  ;;  %11817 = vst [vmem:[#allocation47_spill] sm:$0xff] %v10481_v61  ;;  %v10484_v38 = vsel %vm640_vm2, %v3859_v24, %v3861_v30  ;;  %v7364_v30 = vpack.i.bf16 %v10175_v49, %v10158_v14 }
 0x5d5   : > { %v10474_v52 = vpop.permute.xlu0 %7050  ;;  %v10476_v54 = vpop.permute.xlu1 %7045  ;;  %v7359_v26 = vpack.i.bf16 %v10484_v38, %v10481_v61  ;;  %v10509_v44 = vsel %vm640_vm2, %v3864_v28, %v3866_v31  ;;  %v3954_v61 = vrot.slane %v10122_v48, 1  ;;  %v11821_v31 = vrot.slane %v9955_v4, 1 }
 0x5d6   : > { %11820 = vst [vmem:[#allocation26_spill] sm:$0xff] %v10509_v44 }
 0x5d7   : > { %7345 = vrot.lane.b32.xlu1 %v7344_v46, %s7637_s15  ;;  %7330 = vrot.lane.b32.xlu0 %v7299_v39, %s7637_s15  ;;  %v10531_v14 = vsel %vm640_vm2, %v11821_v31, %v3954_v61 }
 0x5d8   : > { %11822 = vst [vmem:[#allocation53_spill] sm:$0xff] %v10531_v14 }
 0x5d9   : > { %v10488_v0 = vpop.permute.xlu0 %7060  ;;  %v10490_v22 = vpop.permute.xlu1 %7055 }
 0x5db   : > { %7360 = vrot.lane.b32.xlu1 %v7359_v26, %s7638_s14  ;;  %7335 = vrot.lane.b32.xlu0 %v7304_v18, %s11690_s27  ;;  %v7379_v18 = vpack.i.bf16 %v10509_v44, %v10506_v41  ;;  %v11828_v44 = vpack.i.bf16 %v10205_v20, %v10185_v55  ;;  %v6972_v55 = vunpack.i.l.bf16 %v10360_v15 }
 0x5dd   : > { %v10499_v24 = vpop.permute.xlu0 %7070  ;;  %v10501_v39 = vpop.permute.xlu1 %7065 }
 0x5df   : > { %7365 = vrot.lane.b32.xlu1 %v7364_v30, %s7637_s15  ;;  %7350 = vrot.lane.b32.xlu0 %v7319_v43, %s7637_s15  ;;  %v7384_v43 = vpack.i.bf16 %v10191_v58, %v10178_v25  ;;  %v7541_v25 = vld [vmem:[#allocation4 + $0x1a0] sm:$0xff]  ;;  %v7542_v58 = vld [vmem:[#allocation4 + $0x198] sm:$0xff] }
 0x5e0   : > { %v4002_v4 = vrot.slane %v7541_v25, 2  ;;  %v4001_v61 = vrot.slane %v7542_v58, 2 }
 0x5e1   : > { %v10513_v17 = vpop.permute.xlu0 %7080  ;;  %v10515_v45 = vpop.permute.xlu1 %7075 }
 0x5e3   : > { %7380 = vrot.lane.b32.xlu1 %v7379_v18, %s7638_s14  ;;  %7355 = vrot.lane.b32.xlu0 %v7324_v2, %s11690_s27  ;;  %v7399_v2 = vpack.i.bf16 %v10531_v14, %v10152_v33  ;;  %v10553_v33 = vsel %vm1715_vm3, %v4001_v61, %v4002_v4  ;;  %v6968_v61 = vunpack.i.h.bf16 %v10358_v7 }
 0x5e4   : > { %11827 = vst [vmem:[#allocation29_spill] sm:$0xff] %v10553_v33 }
 0x5e5   : > { %v10522_v35 = vpop.permute.xlu0 %7090  ;;  %v10524_v28 = vpop.permute.xlu1 %7085 }
 0x5e7   : > { %7385 = vrot.lane.b32.xlu1 %v7384_v43, %s7637_s15  ;;  %7370 = vrot.lane.b32.xlu0 %v7339_v16, %s7637_s15  ;;  %v11826_v16 = vpack.i.bf16 %v10196_v12, %v10165_v32 }
 0x5e9   : > { %v10535_v48 = vpop.permute.xlu0 %7100  ;;  %v10537_v49 = vpop.permute.xlu1 %7095 }
 0x5ea   : > { %11823 = vst [vmem:[#allocation27_spill] sm:$0xff] %v10535_v48 }
 0x5eb   : > { %7400 = vrot.lane.b32.xlu1 %v7399_v2, %s7638_s14  ;;  %7375 = vrot.lane.b32.xlu0 %v7344_v46, %s11690_s27  ;;  %v4004_v46 = vrot.slane %v10136_v34, 2 }
 0x5ed   : > { %v10543_v31 = vpop.permute.xlu0 %7110  ;;  %v10545_v41 = vpop.permute.xlu1 %7105 }
 0x5ee   : > { %11824 = vst [vmem:[#allocation28_spill] sm:$0xff] %v10543_v31  ;;  %11825 = vst [vmem:[#allocation56_spill] sm:$0xff] %v10545_v41  ;;  %v11830_v41 = vld [vmem:[#allocation20_spill] sm:$0xff] }
 0x5ef   : > { %7405 = vrot.lane.b32.xlu1 %v11826_v16, %s7637_s15  ;;  %7390 = vrot.lane.b32.xlu0 %v7359_v26, %s7637_s15  ;;  %v10562_v26 = vsel %vm1715_vm3, %v4002_v4, %v4004_v46 }
 0x5f0   : > { %11829 = vst [vmem:[#allocation30_spill] sm:$0xff] %v10562_v26 }
 0x5f1   : > { %v7116_v2 = vpop.permute.xlu1 %7115  ;;  %v7121_v25 = vpop.permute.xlu0 %7120 }
 0x5f2   : > { %v7118_v14 = vunpack.i.h.bf16 %v7116_v2  ;;  %v7117_v58 = vunpack.i.l.bf16 %v7116_v2  ;;  %v7123_v48 = vunpack.i.h.bf16 %v7121_v25  ;;  %v7122_v31 = vunpack.i.l.bf16 %v7121_v25 }
 0x5f3   : > { %7420 = vrot.lane.b32.xlu1 %v11828_v44, %s7638_s14  ;;  %7395 = vrot.lane.b32.xlu0 %v7364_v30, %s11690_s27  ;;  %v6967_v2 = vunpack.i.l.bf16 %v10358_v7  ;;  %v6973_v25 = vunpack.i.h.bf16 %v10360_v15 }
 0x5f4   : > { %v4714_v34 = vsel %vm534_vm4, %v10036_v29, %v7118_v14  ;;  %v4713_v16 = vsel %vm534_vm4, %v10033_v42, %v7117_v58  ;;  %v4617_v29 = vsel %vm534_vm4, %v11830_v41, %v7123_v48  ;;  %v11831_v14 = vld [vmem:[#allocation19_spill] sm:$0xff] }
 0x5f5   : > { %v7131_v20 = vpop.permute.xlu1 %7130  ;;  %v7126_v44 = vpop.permute.xlu0 %7125  ;;  %v4616_v42 = vsel %vm534_vm4, %v11831_v14, %v7122_v31  ;;  %v4745_v7 = vsel %vm460_vm0, %v4713_v16, %v6967_v2  ;;  %v4746_v15 = vsel %vm460_vm0, %v4714_v34, %v6968_v61  ;;  %v11833_v34 = vld [vmem:[#allocation35_spill] sm:$0xff] }
 0x5f6   : > { %v7133_v4 = vunpack.i.h.bf16 %v7131_v20  ;;  %v7132_v46 = vunpack.i.l.bf16 %v7131_v20  ;;  %v7128_v32 = vunpack.i.h.bf16 %v7126_v44  ;;  %v7127_v12 = vunpack.i.l.bf16 %v7126_v44 }
 0x5f7   : > { %7410 = vrot.lane.b32.xlu0 %v7379_v18, %s7637_s15  ;;  %s5770_s15 = sshll.u32 %s11361_s23, 4  ;;  %s11507_s15 = int_to_ptr.vmem [resolvable:$true] %s5770_s15 }
 0x5f8   : > { %v4648_v58 = vsel %vm460_vm0, %v4616_v42, %v7127_v12  ;;  %v4649_v30 = vsel %vm460_vm0, %v4617_v29, %v7128_v32  ;;  %v4777_v20 = vsel %vm4678_vm6, %v4745_v7, %v7132_v46  ;;  %v4778_v44 = vsel %vm4678_vm6, %v4746_v15, %v7133_v4  ;;  %v11832_v32 = vld [vmem:[#allocation37_spill] sm:$0xff]  ;;  %s7571_s30 = scalar_lea.vmem %s11507_s15, 4096  ;;  %p7578_p0 = scmp.lt.s32.totalorder %s11507_s15, %s7576_s20 }
 0x5f9   : > { %v4681_v33 = vsel %vm4678_vm6, %v4648_v58, %v6972_v55  ;;  %v4682_v41 = vsel %vm4678_vm6, %v4649_v30, %v6973_v25  ;;  %v7136_v48 = vpop.permute.xlu1 %7135  ;;  %v7141_v31 = vpop.permute.xlu0 %7140  ;;  %v4811_v14 = vpack.c.bf16 %v4778_v44, %v4777_v20  ;;  %v6978_v25 = vunpack.i.h.bf16 %v10378_v19  ;;  %v7543_v58 = vld [vmem:[#allocation4 + $0x38] sm:$0xff]  ;;  %v7544_v20 = vld [vmem:[#allocation4 + $0x30] sm:$0xff]  ;;  %p7572_p11 = scmp.ne.s32.totalorder %s11507_s15, %s7571_s30  ;;  %p7579_p1 = scmp.lt.s32.totalorder %s7577_s21, %s7571_s30 }
 0x5fa   : > { %v4810_v18 = vpack.c.bf16 %v4682_v41, %v4681_v33  ;;  %v7138_v26 = vunpack.i.h.bf16 %v7136_v48  ;;  %v7137_v16 = vunpack.i.l.bf16 %v7136_v48  ;;  %v7143_v2 = vunpack.i.h.bf16 %v7141_v31  ;;  %v11834_v41 = vld [vmem:[#allocation38_spill] sm:$0xff] }
 0x5fb   : > { %v7142_v61 = vunpack.i.l.bf16 %v7141_v31  ;;  %5094 = vmatprep.mubr.bf16.mxu1 %v4811_v14  ;;  %7415 = vrot.lane.b32.xlu0 %v7384_v43, %s11690_s27  ;;  %v6977_v55 = vunpack.i.l.bf16 %v10378_v19  ;;  %v6983_v33 = vunpack.i.h.bf16 %v10380_v60  ;;  %v6982_v30 = vunpack.i.l.bf16 %v10380_v60  ;;  %s6021_s27 = sshll.u32 %s7733_s29, 12  ;;  %p7573_p12 = pnand %p7572_p11, %p7750_p5 }
 0x5fc   : > { %v4716_v12 = vsel %vm534_vm4, %v11832_v32, %v7138_v26  ;;  %v4715_v4 = vsel %vm534_vm4, %v11833_v34, %v7137_v16  ;;  %5095 = vmatmul.mubr.bf16.vlgmr.msra.gmra.mrb[160].mxu1 %v4810_v18  ;;  %v4619_v26 = vsel %vm534_vm4, %v7543_v58, %v7143_v2  ;;  %s11505_s24 = scalar_lea.hbm %s11593_s13, %s6021_s27  ;;  %p7580_p2 = por %p7579_p1, %p7578_p0 }
 0x5fd   : > { %v7151_v46 = vpop.permute.xlu1 %7150  ;;  %v7146_v29 = vpop.permute.xlu0 %7145  ;;  %v4618_v44 = vsel %vm534_vm4, %v7544_v20, %v7142_v61  ;;  %v4747_v19 = vsel %vm460_vm0, %v4715_v4, %v6977_v55  ;;  %v4748_v48 = vsel %vm460_vm0, %v4716_v12, %v6978_v25  ;;  %p7574_p13 = pneg %p7573_p12 }
 0x5fe   : > { %v7153_v42 = vunpack.i.h.bf16 %v7151_v46  ;;  %v7152_v7 = vunpack.i.l.bf16 %v7151_v46  ;;  %v7148_v43 = vunpack.i.h.bf16 %v7146_v29  ;;  %v7147_v15 = vunpack.i.l.bf16 %v7146_v29 }
 0x5ff   : > { %7425 = vrot.lane.b32.xlu0 %v11834_v41, %s7638_s14  ;;  %p7581_p3 = pnand %p7580_p2, %p7574_p13 }
 0x600   : > { %v4650_v60 = vsel %vm460_vm0, %v4618_v44, %v7147_v15  ;;  %v4651_v31 = vsel %vm460_vm0, %v4619_v26, %v7148_v43  ;;  %v4779_v14 = vsel %vm4678_vm6, %v4747_v19, %v7152_v7  ;;  %v4780_v18 = vsel %vm4678_vm6, %v4748_v48, %v7153_v42  ;;  %v7545_v19 = vld [vmem:[#allocation4 + $0x50] sm:$0xff]  ;;  %v7546_v48 = vld [vmem:[#allocation4 + $0x48] sm:$0xff] }
 0x601   : > { %v7156_v16 = vpop.permute.xlu1 %7155  ;;  %v7161_v2 = vpop.permute.xlu0 %7160  ;;  %v4814_v32 = vpack.c.bf16 %v4780_v18, %v4779_v14  ;;  %v4683_v61 = vsel %vm4678_vm6, %v4650_v60, %v6982_v30  ;;  %v4684_v34 = vsel %vm4678_vm6, %v4651_v31, %v6983_v33  ;;  %v6988_v42 = vunpack.i.h.bf16 %v10391_v36 }
 0x602   : > { %v7158_v46 = vunpack.i.h.bf16 %v7156_v16  ;;  %v7157_v29 = vunpack.i.l.bf16 %v7156_v16  ;;  %v7163_v4 = vunpack.i.h.bf16 %v7161_v2  ;;  %v7162_v55 = vunpack.i.l.bf16 %v7161_v2 }
 0x603   : > { %5102 = vmatprep.mubr.bf16.mxu1 %v4814_v32  ;;  %v4813_v12 = vpack.c.bf16 %v4684_v34, %v4683_v61  ;;  %v6987_v43 = vunpack.i.l.bf16 %v10391_v36  ;;  %v6993_v30 = vunpack.i.h.bf16 %v10393_v1  ;;  %v6992_v33 = vunpack.i.l.bf16 %v10393_v1 }
 0x604   : > { %v4718_v25 = vsel %vm534_vm4, %v10257_v21, %v7158_v46  ;;  %v4717_v7 = vsel %vm534_vm4, %v10250_v11, %v7157_v29  ;;  %v4621_v21 = vsel %vm534_vm4, %v7545_v19, %v7163_v4  ;;  %v4620_v11 = vsel %vm534_vm4, %v7546_v48, %v7162_v55  ;;  %v7547_v19 = vld [vmem:[#allocation4 + $0x68] sm:$0xff] }
 0x605   : > { %5103 = vmatmul.mubr.bf16.gmra.mrb[164].mxu1 %v4813_v12  ;;  %v7171_v15 = vpop.permute.xlu1 %7170  ;;  %v7166_v58 = vpop.permute.xlu0 %7165  ;;  %v4749_v60 = vsel %vm460_vm0, %v4717_v7, %v6987_v43  ;;  %v4750_v36 = vsel %vm460_vm0, %v4718_v25, %v6988_v42  ;;  %v6998_v42 = vunpack.i.h.bf16 %v10405_v50  ;;  %v6997_v43 = vunpack.i.l.bf16 %v10405_v50 }
 0x606   : > { %v7173_v26 = vunpack.i.h.bf16 %v7171_v15  ;;  %v7172_v20 = vunpack.i.l.bf16 %v7171_v15  ;;  %v7168_v44 = vunpack.i.h.bf16 %v7166_v58  ;;  %v7167_v41 = vunpack.i.l.bf16 %v7166_v58 }
 0x608   : > { %v4652_v31 = vsel %vm460_vm0, %v4620_v11, %v7167_v41  ;;  %v4653_v1 = vsel %vm460_vm0, %v4621_v21, %v7168_v44  ;;  %v4781_v14 = vsel %vm4678_vm6, %v4749_v60, %v7172_v20  ;;  %v4782_v18 = vsel %vm4678_vm6, %v4750_v36, %v7173_v26  ;;  %v7548_v21 = vld [vmem:[#allocation4 + $0x60] sm:$0xff] }
 0x609   : > { %v7176_v16 = vpop.permute.xlu1 %7175  ;;  %v7181_v2 = vpop.permute.xlu0 %7180  ;;  %v4817_v32 = vpack.c.bf16 %v4782_v18, %v4781_v14  ;;  %v4685_v61 = vsel %vm4678_vm6, %v4652_v31, %v6992_v33  ;;  %v4686_v34 = vsel %vm4678_vm6, %v4653_v1, %v6993_v30  ;;  %v7003_v33 = vunpack.i.h.bf16 %v10407_v40 }
 0x60a   : > { %v7178_v46 = vunpack.i.h.bf16 %v7176_v16  ;;  %v7177_v29 = vunpack.i.l.bf16 %v7176_v16  ;;  %v7183_v4 = vunpack.i.h.bf16 %v7181_v2  ;;  %v7182_v55 = vunpack.i.l.bf16 %v7181_v2 }
 0x60b   : > { %5110 = vmatprep.mubr.bf16.mxu1 %v4817_v32  ;;  %v4816_v12 = vpack.c.bf16 %v4686_v34, %v4685_v61  ;;  %v7002_v30 = vunpack.i.l.bf16 %v10407_v40 }
 0x60c   : > { %v4720_v25 = vsel %vm534_vm4, %v10276_v27, %v7178_v46  ;;  %v4719_v7 = vsel %vm534_vm4, %v10273_v5, %v7177_v29  ;;  %v4623_v27 = vsel %vm534_vm4, %v7547_v19, %v7183_v4  ;;  %v4622_v5 = vsel %vm534_vm4, %v7548_v21, %v7182_v55 }
 0x60d   : > { %5111 = vmatmul.mubr.bf16.gmra.mrb[168].mxu1 %v4816_v12  ;;  %v7191_v15 = vpop.permute.xlu1 %7190  ;;  %v7186_v58 = vpop.permute.xlu0 %7185  ;;  %v4751_v48 = vsel %vm460_vm0, %v4719_v7, %v6997_v43  ;;  %v4752_v50 = vsel %vm460_vm0, %v4720_v25, %v6998_v42  ;;  %v7008_v55 = vunpack.i.h.bf16 %v10416_v3  ;;  %v7007_v12 = vunpack.i.l.bf16 %v10416_v3 }
 0x60e   : > { %v7193_v26 = vunpack.i.h.bf16 %v7191_v15  ;;  %v7192_v20 = vunpack.i.l.bf16 %v7191_v15  ;;  %v7188_v44 = vunpack.i.h.bf16 %v7186_v58  ;;  %v7187_v41 = vunpack.i.l.bf16 %v7186_v58 }
 0x60f   : > { %v7013_v25 = vunpack.i.h.bf16 %v10418_v51  ;;  %v7012_v7 = vunpack.i.l.bf16 %v10418_v51 }
 0x610   : > { %v4654_v11 = vsel %vm460_vm0, %v4622_v5, %v7187_v41  ;;  %v4655_v40 = vsel %vm460_vm0, %v4623_v27, %v7188_v44  ;;  %v4783_v60 = vsel %vm4678_vm6, %v4751_v48, %v7192_v20  ;;  %v4784_v36 = vsel %vm4678_vm6, %v4752_v50, %v7193_v26  ;;  %v7549_v26 = vld [vmem:[#allocation4 + $0x80] sm:$0xff]  ;;  %v7550_v20 = vld [vmem:[#allocation4 + $0x78] sm:$0xff] }
 0x611   : > { %v7196_v31 = vpop.permute.xlu1 %7195  ;;  %v7201_v1 = vpop.permute.xlu0 %7200  ;;  %v4820_v14 = vpack.c.bf16 %v4784_v36, %v4783_v60  ;;  %v4687_v18 = vsel %vm4678_vm6, %v4654_v11, %v7002_v30  ;;  %v4688_v16 = vsel %vm4678_vm6, %v4655_v40, %v7003_v33 }
 0x612   : > { %v7198_v2 = vunpack.i.h.bf16 %v7196_v31  ;;  %v7197_v32 = vunpack.i.l.bf16 %v7196_v31  ;;  %v7203_v61 = vunpack.i.h.bf16 %v7201_v1  ;;  %v7202_v34 = vunpack.i.l.bf16 %v7201_v1 }
 0x613   : > { %5118 = vmatprep.mubr.bf16.mxu1 %v4820_v14  ;;  %v4819_v46 = vpack.c.bf16 %v4688_v16, %v4687_v18  ;;  %v7018_v16 = vunpack.i.h.bf16 %v10430_v63 }
 0x614   : > { %v4722_v29 = vsel %vm534_vm4, %v10294_v13, %v7198_v2  ;;  %v4721_v4 = vsel %vm534_vm4, %v10291_v37, %v7197_v32  ;;  %v4625_v13 = vsel %vm534_vm4, %v7549_v26, %v7203_v61  ;;  %v4624_v37 = vsel %vm534_vm4, %v7550_v20, %v7202_v34 }
 0x615   : > { %5119 = vmatmul.mubr.bf16.gmra.mrb[172].mxu1 %v4819_v46  ;;  %v7211_v42 = vpop.permute.xlu1 %7210  ;;  %v7206_v43 = vpop.permute.xlu0 %7205  ;;  %v4753_v44 = vsel %vm460_vm0, %v4721_v4, %v7007_v12  ;;  %v4754_v3 = vsel %vm460_vm0, %v4722_v29, %v7008_v55  ;;  %v7017_v2 = vunpack.i.l.bf16 %v10430_v63  ;;  %v7023_v32 = vunpack.i.h.bf16 %v10432_v23 }
 0x616   : > { %v7213_v33 = vunpack.i.h.bf16 %v7211_v42  ;;  %v7212_v30 = vunpack.i.l.bf16 %v7211_v42  ;;  %v7208_v15 = vunpack.i.h.bf16 %v7206_v43  ;;  %v7207_v58 = vunpack.i.l.bf16 %v7206_v43 }
 0x617   : > { %v7022_v61 = vunpack.i.l.bf16 %v10432_v23 }
 0x618   : > { %v4656_v41 = vsel %vm460_vm0, %v4624_v37, %v7207_v58  ;;  %v4657_v51 = vsel %vm460_vm0, %v4625_v13, %v7208_v15  ;;  %v4785_v19 = vsel %vm4678_vm6, %v4753_v44, %v7212_v30  ;;  %v4786_v27 = vsel %vm4678_vm6, %v4754_v3, %v7213_v33 }
 0x619   : > { %v7216_v21 = vpop.permute.xlu1 %7215  ;;  %v7221_v5 = vpop.permute.xlu0 %7220  ;;  %v4823_v48 = vpack.c.bf16 %v4786_v27, %v4785_v19  ;;  %v4689_v50 = vsel %vm4678_vm6, %v4656_v41, %v7012_v7  ;;  %v4690_v11 = vsel %vm4678_vm6, %v4657_v51, %v7013_v25  ;;  %v7551_v25 = vld [vmem:[#allocation4 + $0x98] sm:$0xff]  ;;  %v7552_v7 = vld [vmem:[#allocation4 + $0x90] sm:$0xff]  ;;  %v7028_v19 = vunpack.i.h.bf16 %v10441_v57 }
 0x61a   : > { %v7218_v40 = vunpack.i.h.bf16 %v7216_v21  ;;  %v7217_v60 = vunpack.i.l.bf16 %v7216_v21  ;;  %v7223_v36 = vunpack.i.h.bf16 %v7221_v5  ;;  %v7222_v31 = vunpack.i.l.bf16 %v7221_v5 }
 0x61b   : > { %5126 = vmatprep.mubr.bf16.mxu1 %v4823_v48  ;;  %v4822_v1 = vpack.c.bf16 %v4690_v11, %v4689_v50  ;;  %v7027_v27 = vunpack.i.l.bf16 %v10441_v57  ;;  %v7032_v57 = vunpack.i.l.bf16 %v10443_v62 }
 0x61c   : > { %v4724_v14 = vsel %vm534_vm4, %v10311_v8, %v7218_v40  ;;  %v4723_v18 = vsel %vm534_vm4, %v10308_v47, %v7217_v60  ;;  %v4627_v8 = vsel %vm534_vm4, %v7551_v25, %v7223_v36  ;;  %v4626_v47 = vsel %vm534_vm4, %v7552_v7, %v7222_v31  ;;  %v11836_v25 = vld [vmem:[#allocation18_spill] sm:$0xff]  ;;  %v7553_v7 = vld [vmem:[#allocation4 + $0xb0] sm:$0xff] }
 0x61d   : > { %5127 = vmatmul.mubr.bf16.gmra.mrb[176].mxu1 %v4822_v1  ;;  %v7231_v34 = vpop.permute.xlu1 %7230  ;;  %v7226_v46 = vpop.permute.xlu0 %7225  ;;  %v4755_v42 = vsel %vm460_vm0, %v4723_v18, %v7017_v2  ;;  %v4756_v63 = vsel %vm460_vm0, %v4724_v14, %v7018_v16  ;;  %v7033_v1 = vunpack.i.h.bf16 %v10443_v62  ;;  %v11835_v16 = vld [vmem:[#allocation13_spill] sm:$0xff]  ;;  %v7042_v62 = vunpack.i.l.bf16 %v11836_v25 }
 0x61e   : > { %v7233_v29 = vunpack.i.h.bf16 %v7231_v34  ;;  %v7232_v4 = vunpack.i.l.bf16 %v7231_v34  ;;  %v7228_v55 = vunpack.i.h.bf16 %v7226_v46  ;;  %v7227_v12 = vunpack.i.l.bf16 %v7226_v46 }
 0x620   : > { %v4658_v43 = vsel %vm460_vm0, %v4626_v47, %v7227_v12  ;;  %v4659_v23 = vsel %vm460_vm0, %v4627_v8, %v7228_v55  ;;  %v4787_v33 = vsel %vm4678_vm6, %v4755_v42, %v7232_v4  ;;  %v4788_v30 = vsel %vm4678_vm6, %v4756_v63, %v7233_v29  ;;  %v7534_v12 = vld [vmem:[%s11589_s9 + $0x88] sm:$0xff]   ;;  %v11837_v63 = vld [vmem:[#allocation16_spill] sm:$0xff] }
 0x621   : > { %v7236_v15 = vpop.permute.xlu1 %7235  ;;  %v7241_v58 = vpop.permute.xlu0 %7240  ;;  %v4826_v26 = vpack.c.bf16 %v4788_v30, %v4787_v33  ;;  %v4691_v13 = vsel %vm4678_vm6, %v4658_v43, %v7022_v61  ;;  %v4692_v20 = vsel %vm4678_vm6, %v4659_v23, %v7023_v32  ;;  %v7043_v8 = vunpack.i.h.bf16 %v11836_v25  ;;  %v7554_v47 = vld [vmem:[#allocation4 + $0xa8] sm:$0xff]  ;;  %v11838_v23 = vld [vmem:[#allocation15_spill] sm:$0xff] }
 0x622   : > { %v7238_v37 = vunpack.i.h.bf16 %v7236_v15  ;;  %v7237_v44 = vunpack.i.l.bf16 %v7236_v15  ;;  %v4825_v3 = vpack.c.bf16 %v4692_v20, %v4691_v13  ;;  %v7243_v21 = vunpack.i.h.bf16 %v7241_v58  ;;  %v11847_v25 = vld [vmem:[#allocation11_spill] sm:$0xff] }
 0x623   : > { %5134 = vmatprep.mubr.bf16.mxu1 %v4826_v26  ;;  %v7242_v5 = vunpack.i.l.bf16 %v7241_v58  ;;  %v11839_v58 = vpack.c.bf16 %v10466_v56, %v10470_v53  ;;  %v7048_v26 = vunpack.i.h.bf16 %v10476_v54  ;;  %v7047_v13 = vunpack.i.l.bf16 %v10476_v54 }
 0x624   : > { %v4712_v41 = vsel %vm534_vm4, %v9968_v6, %v7238_v37  ;;  %v4711_v51 = vsel %vm534_vm4, %v9908_v59, %v7237_v44  ;;  %v4726_v18 = vsel %vm534_vm4, %v10328_v9, %v7243_v21  ;;  %v11840_v44 = vld [vmem:[#allocation39_spill] sm:$0xff] }
 0x625   : > { %5135 = vmatmul.mubr.bf16.gmra.mrb[180].mxu1 %v4825_v3  ;;  %v7256_v48 = vpop.permute.xlu1 %7255  ;;  %v7246_v50 = vpop.permute.xlu0 %7245  ;;  %v4743_v31 = vsel %vm460_vm0, %v4711_v51, %v7027_v27  ;;  %v4744_v6 = vsel %vm460_vm0, %v4712_v41, %v7028_v19  ;;  %v4725_v2 = vsel %vm534_vm4, %v11835_v16, %v7242_v5  ;;  %v11841_v3 = vld [vmem:[#allocation36_spill] sm:$0xff]  ;;  %v4758_v27 = vsel %vm460_vm0, %v4726_v18, %v7033_v1 }
 0x626   : > { %v7258_v11 = vunpack.i.h.bf16 %v7256_v48  ;;  %v7257_v40 = vunpack.i.l.bf16 %v7256_v48  ;;  %v7248_v60 = vunpack.i.h.bf16 %v7246_v50  ;;  %v7247_v36 = vunpack.i.l.bf16 %v7246_v50  ;;  %v11842_v41 = vld [vmem:[#allocation32_spill] sm:$0xff] }
 0x627   : > { %v11843_v51 = vpack.c.bf16 %v11841_v3, %v11842_v41  ;;  %v4757_v19 = vsel %vm460_vm0, %v4725_v2, %v7032_v57 }
 0x628   : > { %v4775_v59 = vsel %vm4678_vm6, %v4743_v31, %v7257_v40  ;;  %v4776_v14 = vsel %vm4678_vm6, %v4744_v6, %v7258_v11  ;;  %v4629_v9 = vsel %vm534_vm4, %v7553_v7, %v7248_v60  ;;  %v4628_v42 = vsel %vm534_vm4, %v7554_v47, %v7247_v36 }
 0x629   : > { %v7266_v32 = vpop.permute.xlu1 %7265  ;;  %v7251_v61 = vpop.permute.xlu0 %7250  ;;  %v4808_v34 = vpack.c.bf16 %v4776_v14, %v4775_v59 }
 0x62a   : > { %v7268_v46 = vunpack.i.h.bf16 %v7266_v32  ;;  %v7267_v29 = vunpack.i.l.bf16 %v7266_v32  ;;  %v7253_v4 = vunpack.i.h.bf16 %v7251_v61  ;;  %v7252_v55 = vunpack.i.l.bf16 %v7251_v61 }
 0x62b   : > { %5086 = vmatprep.mubr.bf16.mxu0 %v4808_v34  ;;  %v7058_v61 = vunpack.i.h.bf16 %v10490_v22  ;;  %v7057_v34 = vunpack.i.l.bf16 %v10490_v22  ;;  %v11850_v22 = vld [vmem:[#allocation43_spill] sm:$0xff] }
 0x62c   : > { %v4728_v43 = vsel %vm534_vm4, %v11837_v63, %v7268_v46  ;;  %v4727_v33 = vsel %vm534_vm4, %v11838_v23, %v7267_v29  ;;  %v4660_v30 = vsel %vm460_vm0, %v4628_v42, %v7252_v55  ;;  %v4661_v15 = vsel %vm460_vm0, %v4629_v9, %v7253_v4  ;;  %5087 = vmatmul.mubr.bf16.vlgmr.msra.gmra.mrb[176].mxu0 %v11839_v58  ;;  %v11844_v46 = vld [vmem:[#allocation41_spill] sm:$0xff]  ;;  %v11845_v4 = vld [vmem:[#allocation14_spill] sm:$0xff] }
 0x62d   : > { %v7281_v20 = vpop.permute.xlu1 %7280  ;;  %v7261_v37 = vpop.permute.xlu0 %7260  ;;  %6817 = vmatpush3.bf16.msra.mxu0 %v11840_v44  ;;  %6820 = vmatprep.mubr.msk.bf16.mxu0 %vm534_vm4, %v11843_v51  ;;  %v4693_v54 = vsel %vm4678_vm6, %v4660_v30, %v7042_v62  ;;  %v4694_v48 = vsel %vm4678_vm6, %v4661_v15, %v7043_v8  ;;  %v4759_v50 = vsel %vm460_vm0, %v4727_v33, %v7047_v13  ;;  %v7053_v33 = vunpack.i.h.bf16 %v10474_v52  ;;  %v7555_v15 = vld [vmem:[#allocation4 + $0xc8] sm:$0xff] }
 0x62e   : > { %v7283_v21 = vunpack.i.h.bf16 %v7281_v20  ;;  %v7282_v53 = vunpack.i.l.bf16 %v7281_v20  ;;  %v7263_v56 = vunpack.i.h.bf16 %v7261_v37  ;;  %v7262_v5 = vunpack.i.l.bf16 %v7261_v37  ;;  %6818 = vmatprep.subr.bf16.mxu0 %v7534_v12 }
 0x62f   : > { %v4760_v11 = vsel %vm460_vm0, %v4728_v43, %v7048_v26  ;;  %v4828_v18 = vpack.c.bf16 %v4694_v48, %v4693_v54  ;;  %v11849_v43 = vld [vmem:[#allocation44_spill] sm:$0xff]  ;;  %v7052_v30 = vunpack.i.l.bf16 %v10474_v52  ;;  %v7556_v26 = vld [vmem:[#allocation4 + $0xc0] sm:$0xff] }
 0x630   : > { %v4789_v40 = vsel %vm4678_vm6, %v4757_v19, %v7262_v5  ;;  %v4790_v60 = vsel %vm4678_vm6, %v4758_v27, %v7263_v56  ;;  %v4791_v36 = vsel %vm4678_vm6, %v4759_v50, %v7282_v53  ;;  %v4792_v31 = vsel %vm4678_vm6, %v4760_v11, %v7283_v21 }
 0x631   : > { %v7286_v6 = vpop.permute.xlu1 %7285  ;;  %v7271_v1 = vpop.permute.xlu0 %7270  ;;  %6819 = vmatpush3.bf16.msra.mxu0 %v7534_v12  ;;  %v4829_v59 = vpack.c.bf16 %v4790_v60, %v4789_v40  ;;  %v4832_v32 = vpack.c.bf16 %v4792_v31, %v4791_v36  ;;  %v11846_v12 = vld [vmem:[#allocation12_spill] sm:$0xff]  ;;  %v11851_v23 = vpack.c.bf16 %v11849_v43, %v11850_v22  ;;  %v7068_v11 = vunpack.i.h.bf16 %v10501_v39  ;;  %v11852_v60 = vld [vmem:[#allocation21_spill] sm:$0xff]  ;;  %v11853_v31 = vld [vmem:[#allocation42_spill] sm:$0xff] }
 0x632   : > { %v7288_v14 = vunpack.i.h.bf16 %v7286_v6  ;;  %v7287_v57 = vunpack.i.l.bf16 %v7286_v6  ;;  %v7273_v16 = vunpack.i.h.bf16 %v7271_v1  ;;  %v7272_v2 = vunpack.i.l.bf16 %v7271_v1  ;;  %v11854_v1 = vld [vmem:[#allocation46_spill] sm:$0xff] }
 0x633   : > { %5142 = vmatprep.mubr.bf16.mxu1 %v4829_v59  ;;  %v11848_v8 = vpack.c.bf16 %v11846_v12, %v11847_v25  ;;  %v7067_v40 = vunpack.i.l.bf16 %v10501_v39  ;;  %v11855_v59 = vld [vmem:[#allocation45_spill] sm:$0xff]  ;;  %v11857_v39 = vld [vmem:[#allocation50_spill] sm:$0xff]  ;;  %v7558_v25 = vld [vmem:[#allocation4 + $0xd8] sm:$0xff] }
 0x634   : > { %5143 = vmatmul.mubr.bf16.gmra.mrb[184].mxu1 %v4828_v18  ;;  %v4730_v29 = vsel %vm534_vm4, %v11844_v46, %v7288_v14  ;;  %v4729_v55 = vsel %vm534_vm4, %v11845_v4, %v7287_v57  ;;  %v4631_v58 = vsel %vm534_vm4, %v7555_v15, %v7273_v16  ;;  %v4630_v13 = vsel %vm534_vm4, %v7556_v26, %v7272_v2 }
 0x635   : > { %6821 = vmatmul.mubr.msk.bf16.vlgmr.msra.gmra.mrb[180].mxu0 %vm534_vm4, %v11848_v8  ;;  %v7301_v62 = vpop.permute.xlu1 %7300  ;;  %v7276_v7 = vpop.permute.xlu0 %7275  ;;  %5150 = vmatprep.mubr.bf16.mxu1 %v4832_v32  ;;  %v4761_v44 = vsel %vm460_vm0, %v4729_v55, %v7057_v34  ;;  %v4762_v3 = vsel %vm460_vm0, %v4730_v29, %v7058_v61  ;;  %v11856_v14 = vpack.c.bf16 %v11854_v1, %v11855_v59  ;;  %v11858_v34 = vld [vmem:[#allocation49_spill] sm:$0xff]  ;;  %v7063_v29 = vunpack.i.h.bf16 %v10488_v0 }
 0x636   : > { %v7303_v9 = vunpack.i.h.bf16 %v7301_v62  ;;  %v7302_v47 = vunpack.i.l.bf16 %v7301_v62  ;;  %v7278_v42 = vunpack.i.h.bf16 %v7276_v7  ;;  %v7277_v63 = vunpack.i.l.bf16 %v7276_v7  ;;  %6824 = vmatprep.mubr.msk.bf16.mxu0 %vm534_vm4, %v11851_v23  ;;  %v7557_v55 = vld [vmem:[#allocation4 + $0xe0] sm:$0xff] }
 0x637   : > { %v11859_v46 = vpack.c.bf16 %v11857_v39, %v11858_v34  ;;  %v7062_v4 = vunpack.i.l.bf16 %v10488_v0 }
 0x638   : > { %v4662_v20 = vsel %vm460_vm0, %v4630_v13, %v7277_v63  ;;  %v4663_v37 = vsel %vm460_vm0, %v4631_v58, %v7278_v42  ;;  %v4793_v27 = vsel %vm4678_vm6, %v4761_v44, %v7302_v47  ;;  %v4794_v21 = vsel %vm4678_vm6, %v4762_v3, %v7303_v9  ;;  %v11860_v44 = vld [vmem:[#allocation48_spill] sm:$0xff] }
 0x639   : > { %v7306_v41 = vpop.permute.xlu1 %7305  ;;  %v7291_v51 = vpop.permute.xlu0 %7290  ;;  %v4695_v19 = vsel %vm4678_vm6, %v4662_v20, %v7052_v30  ;;  %v4696_v52 = vsel %vm4678_vm6, %v4663_v37, %v7053_v33  ;;  %v4835_v50 = vpack.c.bf16 %v4794_v21, %v4793_v27  ;;  %v7078_v20 = vunpack.i.h.bf16 %v10515_v45 }
 0x63a   : > { %v7308_v53 = vunpack.i.h.bf16 %v7306_v41  ;;  %v7307_v56 = vunpack.i.l.bf16 %v7306_v41  ;;  %v7293_v5 = vunpack.i.h.bf16 %v7291_v51  ;;  %v7292_v54 = vunpack.i.l.bf16 %v7291_v51  ;;  %v11861_v41 = vld [vmem:[#allocation22_spill] sm:$0xff] }
 0x63b   : > { %v4831_v48 = vpack.c.bf16 %v4696_v52, %v4695_v19  ;;  %v7077_v37 = vunpack.i.l.bf16 %v10515_v45  ;;  %v11862_v19 = vld [vmem:[#allocation52_spill] sm:$0xff]  ;;  %v11863_v52 = vld [vmem:[#allocation51_spill] sm:$0xff] }
 0x63c   : > { %v4732_v36 = vsel %vm534_vm4, %v11852_v60, %v7308_v53  ;;  %v4731_v6 = vsel %vm534_vm4, %v11853_v31, %v7307_v56  ;;  %v4633_v12 = vsel %vm534_vm4, %v7557_v55, %v7293_v5  ;;  %v4632_v8 = vsel %vm534_vm4, %v7558_v25, %v7292_v54  ;;  %v11865_v45 = vld [vmem:[#allocation55_spill] sm:$0xff] }
 0x63d   : > { %5151 = vmatmul.mubr.bf16.gmra.mrb[188].mxu1 %v4831_v48  ;;  %6825 = vmatmul.mubr.msk.bf16.gmra.mrb[184].mxu0 %vm534_vm4, %v11856_v14  ;;  %v7321_v57 = vpop.permute.xlu1 %7320  ;;  %v7296_v18 = vpop.permute.xlu0 %7295  ;;  %v4763_v9 = vsel %vm460_vm0, %v4731_v6, %v7067_v40  ;;  %v4764_v47 = vsel %vm460_vm0, %v4732_v36, %v7068_v11  ;;  %v11864_v27 = vpack.c.bf16 %v11862_v19, %v11863_v52  ;;  %v7073_v40 = vunpack.i.h.bf16 %v10499_v24  ;;  %v7559_v36 = vld [vmem:[#allocation4 + $0xf8] sm:$0xff]  ;;  %v7560_v6 = vld [vmem:[#allocation4 + $0xf0] sm:$0xff] }
 0x63e   : > { %v7323_v16 = vunpack.i.h.bf16 %v7321_v57  ;;  %v7322_v2 = vunpack.i.l.bf16 %v7321_v57  ;;  %v7298_v32 = vunpack.i.h.bf16 %v7296_v18  ;;  %v7297_v61 = vunpack.i.l.bf16 %v7296_v18  ;;  %5158 = vmatprep.mubr.bf16.mxu1 %v4835_v50  ;;  %6828 = vmatprep.mubr.msk.bf16.mxu0 %vm534_vm4, %v11859_v46  ;;  %v11866_v50 = vld [vmem:[#allocation54_spill] sm:$0xff] }
 0x63f   : > { %v11867_v11 = vpack.c.bf16 %v11865_v45, %v11866_v50  ;;  %v7072_v60 = vunpack.i.l.bf16 %v10499_v24  ;;  %v7088_v25 = vunpack.i.h.bf16 %v10524_v28 }
 0x640   : > { %v4664_v62 = vsel %vm460_vm0, %v4632_v8, %v7297_v61  ;;  %v4665_v7 = vsel %vm460_vm0, %v4633_v12, %v7298_v32  ;;  %v4795_v22 = vsel %vm4678_vm6, %v4763_v9, %v7322_v2  ;;  %v4796_v23 = vsel %vm4678_vm6, %v4764_v47, %v7323_v16  ;;  %v11869_v47 = vld [vmem:[#allocation59_spill] sm:$0xff] }
 0x641   : > { %v7326_v42 = vpop.permute.xlu1 %7325  ;;  %v7311_v63 = vpop.permute.xlu0 %7310  ;;  %v4697_v43 = vsel %vm4678_vm6, %v4664_v62, %v7062_v4  ;;  %v4698_v0 = vsel %vm4678_vm6, %v4665_v7, %v7063_v29  ;;  %v4838_v13 = vpack.c.bf16 %v4796_v23, %v4795_v22  ;;  %v7087_v8 = vunpack.i.l.bf16 %v10524_v28  ;;  %v11868_v7 = vld [vmem:[#allocation17_spill] sm:$0xff] }
 0x642   : > { %v7328_v33 = vunpack.i.h.bf16 %v7326_v42  ;;  %v7327_v30 = vunpack.i.l.bf16 %v7326_v42  ;;  %v7313_v15 = vunpack.i.h.bf16 %v7311_v63  ;;  %v7312_v58 = vunpack.i.l.bf16 %v7311_v63  ;;  %v11870_v42 = vld [vmem:[#allocation58_spill] sm:$0xff]  ;;  %v11872_v28 = vld [vmem:[#allocation61_spill] sm:$0xff] }
 0x643   : > { %v4834_v26 = vpack.c.bf16 %v4698_v0, %v4697_v43  ;;  %v11871_v63 = vpack.c.bf16 %v11869_v47, %v11870_v42 }
 0x644   : > { %v4734_v3 = vsel %vm534_vm4, %v11860_v44, %v7328_v33  ;;  %v4733_v51 = vsel %vm534_vm4, %v11861_v41, %v7327_v30  ;;  %v4635_v31 = vsel %vm534_vm4, %v7559_v36, %v7313_v15  ;;  %v4634_v1 = vsel %vm534_vm4, %v7560_v6, %v7312_v58  ;;  %v11873_v15 = vld [vmem:[#allocation60_spill] sm:$0xff] }
 0x645   : > { %5159 = vmatmul.mubr.bf16.gmra.mrb[192].mxu1 %v4834_v26  ;;  %6829 = vmatmul.mubr.msk.bf16.gmra.mrb[188].mxu0 %vm534_vm4, %v11864_v27  ;;  %v7341_v21 = vpop.permute.xlu1 %7340  ;;  %v7316_v53 = vpop.permute.xlu0 %7315  ;;  %v4765_v57 = vsel %vm460_vm0, %v4733_v51, %v7077_v37  ;;  %v4766_v18 = vsel %vm460_vm0, %v4734_v3, %v7078_v20  ;;  %v11874_v58 = vpack.c.bf16 %v11872_v28, %v11873_v15  ;;  %v7082_v26 = vunpack.i.l.bf16 %v10513_v17  ;;  %v7562_v37 = vld [vmem:[#allocation4 + $0x108] sm:$0xff]  ;;  %v11882_v28 = vld [vmem:[#allocation56_spill] sm:$0xff] }
 0x646   : > { %v7343_v56 = vunpack.i.h.bf16 %v7341_v21  ;;  %v7342_v5 = vunpack.i.l.bf16 %v7341_v21  ;;  %v7318_v54 = vunpack.i.h.bf16 %v7316_v53  ;;  %v7317_v48 = vunpack.i.l.bf16 %v7316_v53  ;;  %5166 = vmatprep.mubr.bf16.mxu1 %v4838_v13  ;;  %6832 = vmatprep.mubr.msk.bf16.mxu0 %vm534_vm4, %v11867_v11  ;;  %v7561_v13 = vld [vmem:[#allocation4 + $0x110] sm:$0xff] }
 0x647   : > { %v7108_v15 = vunpack.i.h.bf16 %v11882_v28 }
 0x648   : > { %v4666_v59 = vsel %vm460_vm0, %v4634_v1, %v7317_v48  ;;  %v4667_v14 = vsel %vm460_vm0, %v4635_v31, %v7318_v54  ;;  %v4797_v61 = vsel %vm4678_vm6, %v4765_v57, %v7342_v5  ;;  %v4798_v39 = vsel %vm4678_vm6, %v4766_v18, %v7343_v56  ;;  %v11875_v31 = vld [vmem:[#allocation47_spill] sm:$0xff] }
 0x649   : > { %v7346_v16 = vpop.permute.xlu1 %7345  ;;  %v7331_v2 = vpop.permute.xlu0 %7330  ;;  %v4699_v32 = vsel %vm4678_vm6, %v4666_v59, %v7072_v60  ;;  %v4700_v24 = vsel %vm4678_vm6, %v4667_v14, %v7073_v40  ;;  %v4841_v12 = vpack.c.bf16 %v4798_v39, %v4797_v61  ;;  %v7098_v40 = vunpack.i.h.bf16 %v10537_v49  ;;  %v11876_v1 = vld [vmem:[#allocation63_spill] sm:$0xff]  ;;  %v11877_v59 = vld [vmem:[#allocation62_spill] sm:$0xff]  ;;  %v11880_v61 = vld [vmem:[#allocation64_spill] sm:$0xff] }
 0x64a   : > { %v7348_v34 = vunpack.i.h.bf16 %v7346_v16  ;;  %v7347_v46 = vunpack.i.l.bf16 %v7346_v16  ;;  %v7333_v29 = vunpack.i.h.bf16 %v7331_v2  ;;  %v7332_v4 = vunpack.i.l.bf16 %v7331_v2 }
 0x64b   : > { %v4837_v55 = vpack.c.bf16 %v4700_v24, %v4699_v32  ;;  %v7097_v60 = vunpack.i.l.bf16 %v10537_v49  ;;  %v11878_v14 = vpack.c.bf16 %v11876_v1, %v11877_v59  ;;  %v11879_v49 = vld [vmem:[#allocation65_spill] sm:$0xff] }
 0x64c   : > { %v4736_v62 = vsel %vm534_vm4, %v10451_v10, %v7348_v34  ;;  %v4735_v9 = vsel %vm534_vm4, %v11868_v7, %v7347_v46  ;;  %v7083_v10 = vunpack.i.h.bf16 %v10513_v17  ;;  %v4637_v20 = vsel %vm534_vm4, %v7561_v13, %v7333_v29  ;;  %v7563_v46 = vld [vmem:[#allocation4 + $0x128] sm:$0xff]  ;;  %v11884_v13 = vld [vmem:[#allocation25_spill] sm:$0xff] }
 0x64d   : > { %5167 = vmatmul.mubr.bf16.gmra.mrb[196].mxu1 %v4837_v55  ;;  %6833 = vmatmul.mubr.msk.bf16.gmra.mrb[192].mxu0 %vm534_vm4, %v11871_v63  ;;  %v7361_v43 = vpop.permute.xlu1 %7360  ;;  %v7336_v0 = vpop.permute.xlu0 %7335  ;;  %v4636_v44 = vsel %vm534_vm4, %v7562_v37, %v7332_v4  ;;  %v4767_v51 = vsel %vm460_vm0, %v4735_v9, %v7087_v8  ;;  %v4768_v19 = vsel %vm460_vm0, %v4736_v62, %v7088_v25  ;;  %v7092_v34 = vunpack.i.l.bf16 %v10522_v35  ;;  %v7564_v4 = vld [vmem:[#allocation4 + $0x120] sm:$0xff]  ;;  %v11885_v37 = vld [vmem:[#allocation68_spill] sm:$0xff] }
 0x64e   : > { %v7363_v22 = vunpack.i.h.bf16 %v7361_v43  ;;  %v7362_v23 = vunpack.i.l.bf16 %v7361_v43  ;;  %v7338_v33 = vunpack.i.h.bf16 %v7336_v0  ;;  %v7337_v30 = vunpack.i.l.bf16 %v7336_v0  ;;  %5174 = vmatprep.mubr.bf16.mxu1 %v4841_v12  ;;  %6836 = vmatprep.mubr.msk.bf16.mxu0 %vm534_vm4, %v11874_v58 }
 0x64f   : > { %v11881_v39 = vpack.c.bf16 %v11879_v49, %v11880_v61  ;;  %v7107_v58 = vunpack.i.l.bf16 %v11882_v28  ;;  %v7567_v28 = vld [vmem:[#allocation4 + $0x158] sm:$0xff] }
 0x650   : > { %v4668_v3 = vsel %vm460_vm0, %v4636_v44, %v7337_v30  ;;  %v4669_v41 = vsel %vm460_vm0, %v4637_v20, %v7338_v33  ;;  %v4799_v53 = vsel %vm4678_vm6, %v4767_v51, %v7362_v23  ;;  %v4800_v56 = vsel %vm4678_vm6, %v4768_v19, %v7363_v22  ;;  %v11886_v44 = vld [vmem:[#allocation66_spill] sm:$0xff] }
 0x651   : > { %v7366_v52 = vpop.permute.xlu1 %7365  ;;  %v7351_v27 = vpop.permute.xlu0 %7350  ;;  %v4701_v21 = vsel %vm4678_vm6, %v4668_v3, %v7082_v26  ;;  %v4702_v17 = vsel %vm4678_vm6, %v4669_v41, %v7083_v10  ;;  %v4844_v11 = vpack.c.bf16 %v4800_v56, %v4799_v53  ;;  %v11883_v10 = vld [vmem:[#allocation26_spill] sm:$0xff]  ;;  %v11887_v3 = vpack.c.bf16 %v11885_v37, %v11886_v44  ;;  %v11889_v53 = vld [vmem:[#allocation69_spill] sm:$0xff] }
 0x652   : > { %v7368_v5 = vunpack.i.h.bf16 %v7366_v52  ;;  %v7367_v54 = vunpack.i.l.bf16 %v7366_v52  ;;  %v7353_v48 = vunpack.i.h.bf16 %v7351_v27  ;;  %v7352_v45 = vunpack.i.l.bf16 %v7351_v27 }
 0x653   : > { %v4840_v50 = vpack.c.bf16 %v4702_v17, %v4701_v21  ;;  %v11888_v17 = vld [vmem:[#allocation71_spill] sm:$0xff] }
 0x654   : > { %v4738_v36 = vsel %vm534_vm4, %v10484_v38, %v7368_v5  ;;  %v4737_v6 = vsel %vm534_vm4, %v11875_v31, %v7367_v54  ;;  %v7093_v38 = vunpack.i.h.bf16 %v10522_v35  ;;  %v4639_v29 = vsel %vm534_vm4, %v7563_v46, %v7353_v48  ;;  %v11891_v5 = vld [vmem:[#allocation27_spill] sm:$0xff] }
 0x655   : > { %5175 = vmatmul.mubr.bf16.gmra.mrb[200].mxu1 %v4840_v50  ;;  %6837 = vmatmul.mubr.msk.bf16.gmra.mrb[196].mxu0 %vm534_vm4, %v11878_v14  ;;  %v7381_v57 = vpop.permute.xlu1 %7380  ;;  %v7356_v18 = vpop.permute.xlu0 %7355  ;;  %v4638_v55 = vsel %vm534_vm4, %v7564_v4, %v7352_v45  ;;  %v4769_v8 = vsel %vm460_vm0, %v4737_v6, %v7097_v60  ;;  %v4770_v62 = vsel %vm460_vm0, %v4738_v36, %v7098_v40  ;;  %v7103_v54 = vunpack.i.h.bf16 %v11891_v5  ;;  %v7565_v45 = vld [vmem:[#allocation4 + $0x140] sm:$0xff] }
 0x656   : > { %v7383_v16 = vunpack.i.h.bf16 %v7381_v57  ;;  %v7382_v2 = vunpack.i.l.bf16 %v7381_v57  ;;  %v7358_v32 = vunpack.i.h.bf16 %v7356_v18  ;;  %v7357_v24 = vunpack.i.l.bf16 %v7356_v18  ;;  %5182 = vmatprep.mubr.bf16.mxu1 %v4844_v11  ;;  %6840 = vmatprep.mubr.msk.bf16.mxu0 %vm534_vm4, %v11881_v39  ;;  %v7566_v11 = vld [vmem:[#allocation4 + $0x138] sm:$0xff] }
 0x657   : > { %v11890_v56 = vpack.c.bf16 %v11888_v17, %v11889_v53  ;;  %v7102_v48 = vunpack.i.l.bf16 %v11891_v5  ;;  %v11902_v17 = vld [vmem:[#allocation30_spill] sm:$0xff]  ;;  %v11903_v53 = vld [vmem:[#allocation29_spill] sm:$0xff] }
 0x658   : > { %v4670_v12 = vsel %vm460_vm0, %v4638_v55, %v7357_v24  ;;  %v4671_v25 = vsel %vm460_vm0, %v4639_v29, %v7358_v32  ;;  %v4801_v42 = vsel %vm4678_vm6, %v4769_v8, %v7382_v2  ;;  %v4802_v63 = vsel %vm4678_vm6, %v4770_v62, %v7383_v16  ;;  %v11893_v29 = vld [vmem:[#allocation53_spill] sm:$0xff]  ;;  %v11894_v55 = vld [vmem:[#allocation67_spill] sm:$0xff]  ;;  %v11896_v8 = vld [vmem:[#allocation72_spill] sm:$0xff] }
 0x659   : > { %v7386_v7 = vpop.permute.xlu1 %7385  ;;  %v7371_v9 = vpop.permute.xlu0 %7370  ;;  %v4703_v47 = vsel %vm4678_vm6, %v4670_v12, %v7092_v34  ;;  %v4704_v35 = vsel %vm4678_vm6, %v4671_v25, %v7093_v38  ;;  %v4847_v30 = vpack.c.bf16 %v4802_v63, %v4801_v42  ;;  %v11892_v38 = vld [vmem:[#allocation40_spill] sm:$0xff]  ;;  %v11895_v25 = vld [vmem:[#allocation73_spill] sm:$0xff] }
 0x65a   : > { %v7388_v43 = vunpack.i.h.bf16 %v7386_v7  ;;  %v7387_v0 = vunpack.i.l.bf16 %v7386_v7  ;;  %v7373_v22 = vunpack.i.h.bf16 %v7371_v9  ;;  %v7372_v23 = vunpack.i.l.bf16 %v7371_v9 }
 0x65b   : > { %v4843_v33 = vpack.c.bf16 %v4704_v35, %v4703_v47  ;;  %v6963_v34 = vunpack.i.h.bf16 %v11892_v38  ;;  %v6962_v46 = vunpack.i.l.bf16 %v11892_v38  ;;  %v11897_v62 = vpack.c.bf16 %v11895_v25, %v11896_v8 }
 0x65c   : > { %v4740_v26 = vsel %vm534_vm4, %v11883_v10, %v7388_v43  ;;  %v4739_v20 = vsel %vm534_vm4, %v11884_v13, %v7387_v0  ;;  %v4641_v50 = vsel %vm534_vm4, %v7565_v45, %v7373_v22  ;;  %v4640_v40 = vsel %vm534_vm4, %v7566_v11, %v7372_v23  ;;  %v11898_v43 = vld [vmem:[#allocation74_spill] sm:$0xff]  ;;  %v11901_v23 = vld [vmem:[#allocation28_spill] sm:$0xff]  ;;  %v7569_v11 = vld [vmem:[#allocation4 + $0x170] sm:$0xff] }
 0x65d   : > { %5183 = vmatmul.mubr.bf16.gmra.mrb[204].mxu1 %v4843_v33  ;;  %6841 = vmatmul.mubr.msk.bf16.gmra.mrb[200].mxu0 %vm534_vm4, %v11887_v3  ;;  %v7401_v41 = vpop.permute.xlu1 %7400  ;;  %v7376_v51 = vpop.permute.xlu0 %7375  ;;  %v4771_v31 = vsel %vm460_vm0, %v4739_v20, %v7107_v58  ;;  %v4772_v6 = vsel %vm460_vm0, %v4740_v26, %v7108_v15  ;;  %v11899_v0 = vld [vmem:[#allocation70_spill] sm:$0xff]  ;;  %v7113_v33 = vunpack.i.h.bf16 %v11901_v23  ;;  %v7568_v58 = vld [vmem:[#allocation4 + $0x150] sm:$0xff] }
 0x65e   : > { %v7403_v19 = vunpack.i.h.bf16 %v7401_v41  ;;  %v7402_v52 = vunpack.i.l.bf16 %v7401_v41  ;;  %v7378_v27 = vunpack.i.h.bf16 %v7376_v51  ;;  %v7377_v21 = vunpack.i.l.bf16 %v7376_v51  ;;  %5190 = vmatprep.mubr.bf16.mxu1 %v4847_v30  ;;  %6844 = vmatprep.mubr.msk.bf16.mxu0 %vm534_vm4, %v11890_v56 }
 0x65f   : > { %v11900_v22 = vpack.c.bf16 %v11898_v43, %v11899_v0  ;;  %v7112_v30 = vunpack.i.l.bf16 %v11901_v23  ;;  %v11904_v56 = vpack.c.bf16 %v11902_v17, %v11903_v53 }
 0x660   : > { %v4672_v60 = vsel %vm460_vm0, %v4640_v40, %v7377_v21  ;;  %v4673_v36 = vsel %vm460_vm0, %v4641_v50, %v7378_v27  ;;  %v4803_v18 = vsel %vm4678_vm6, %v4771_v31, %v7402_v52  ;;  %v4804_v16 = vsel %vm4678_vm6, %v4772_v6, %v7403_v19 }
 0x661   : > { %v7406_v1 = vpop.permute.xlu1 %7405  ;;  %v7391_v59 = vpop.permute.xlu0 %7390  ;;  %v4705_v14 = vsel %vm4678_vm6, %v4672_v60, %v7102_v48  ;;  %v4706_v57 = vsel %vm4678_vm6, %v4673_v36, %v7103_v54  ;;  %v4850_v39 = vpack.c.bf16 %v4804_v16, %v4803_v18  ;;  %v7570_v60 = vld [vmem:[#allocation4 + $0x168] sm:$0xff] }
 0x662   : > { %v7408_v2 = vunpack.i.h.bf16 %v7406_v1  ;;  %v7407_v32 = vunpack.i.l.bf16 %v7406_v1  ;;  %v7393_v24 = vunpack.i.h.bf16 %v7391_v59  ;;  %v7392_v49 = vunpack.i.l.bf16 %v7391_v59 }
 0x663   : > { %v4846_v61 = vpack.c.bf16 %v4706_v57, %v4705_v14 }
 0x664   : > { %v4742_v4 = vsel %vm534_vm4, %v11893_v29, %v7408_v2  ;;  %v4741_v12 = vsel %vm534_vm4, %v11894_v55, %v7407_v32  ;;  %v4643_v15 = vsel %vm534_vm4, %v7567_v28, %v7393_v24  ;;  %v4642_v10 = vsel %vm534_vm4, %v7568_v58, %v7392_v49 }
 0x665   : > { %5191 = vmatmul.mubr.bf16.gmra.mrb[208].mxu1 %v4846_v61  ;;  %6845 = vmatmul.mubr.msk.bf16.gmra.mrb[204].mxu0 %vm534_vm4, %v11897_v62  ;;  %v7421_v7 = vpop.permute.xlu1 %7420  ;;  %v7396_v9 = vpop.permute.xlu0 %7395  ;;  %v4773_v20 = vsel %vm460_vm0, %v4741_v12, %v6962_v46  ;;  %v4774_v37 = vsel %vm460_vm0, %v4742_v4, %v6963_v34 }
 0x666   : > { %v7423_v47 = vunpack.i.h.bf16 %v7421_v7  ;;  %v7422_v35 = vunpack.i.l.bf16 %v7421_v7  ;;  %v7398_v42 = vunpack.i.h.bf16 %v7396_v9  ;;  %v7397_v63 = vunpack.i.l.bf16 %v7396_v9  ;;  %5198 = vmatprep.mubr.bf16.mxu1 %v4850_v39  ;;  %6848 = vmatprep.mubr.msk.bf16.mxu0 %vm534_vm4, %v11900_v22 }
 0x668   : > { %v4674_v26 = vsel %vm460_vm0, %v4642_v10, %v7397_v63  ;;  %v4675_v13 = vsel %vm460_vm0, %v4643_v15, %v7398_v42  ;;  %v4805_v51 = vsel %vm4678_vm6, %v4773_v20, %v7422_v35  ;;  %v4806_v19 = vsel %vm4678_vm6, %v4774_v37, %v7423_v47 }
 0x669   : > { %v7411_v44 = vpop.permute.xlu0 %7410  ;;  %v4707_v3 = vsel %vm4678_vm6, %v4674_v26, %v7112_v30  ;;  %v4708_v41 = vsel %vm4678_vm6, %v4675_v13, %v7113_v33  ;;  %v4853_v27 = vpack.c.bf16 %v4806_v19, %v4805_v51 }
 0x66a   : > { %v4849_v52 = vpack.c.bf16 %v4708_v41, %v4707_v3  ;;  %v7413_v5 = vunpack.i.h.bf16 %v7411_v44  ;;  %v7412_v54 = vunpack.i.l.bf16 %v7411_v44 }
 0x66c   : > { %v4645_v40 = vsel %vm534_vm4, %v7569_v11, %v7413_v5  ;;  %v4644_v36 = vsel %vm534_vm4, %v7570_v60, %v7412_v54 }
 0x66d   : > { %5199 = vmatmul.mubr.bf16.gmra.mrb[212].mxu1 %v4849_v52  ;;  %v7416_v21 = vpop.permute.xlu0 %7415  ;;  %6849 = vmatmul.mubr.msk.bf16.gmra.mrb[208].mxu0 %vm534_vm4, %v11904_v56  ;;  %v10938_v52 = vld [vmem:[%s11590_s10] ss:$0 sm:$0xff] }
 0x66e   : > { %5206 = vmatprep.mubr.bf16.mxu1 %v4853_v27  ;;  %v7418_v48 = vunpack.i.h.bf16 %v7416_v21  ;;  %v7417_v45 = vunpack.i.l.bf16 %v7416_v21 }
 0x670   : > { %v4676_v1 = vsel %vm460_vm0, %v4644_v36, %v7417_v45  ;;  %v4677_v59 = vsel %vm460_vm0, %v4645_v40, %v7418_v48 }
 0x671   : > { %v7426_v50 = vpop.permute.xlu0 %7425 }
 0x672   : > { %v7428_v31 = vunpack.i.h.bf16 %v7426_v50  ;;  %v7427_v6 = vunpack.i.l.bf16 %v7426_v50 }
 0x674   : > { %v4709_v14 = vsel %vm4678_vm6, %v4676_v1, %v7427_v6  ;;  %v4710_v57 = vsel %vm4678_vm6, %v4677_v59, %v7428_v31 }
 0x675   : > { %v4852_v18 = vpack.c.bf16 %v4710_v57, %v4709_v14 }
 0x677   : > { %5207 = vmatmul.mubr.bf16.gmra.mrb[216].mxu1 %v4852_v18 }
 0x6cf   : > { %v6596_v16 = vpop.f32.mrb[160].mxu1 }
 0x6d0   : > { %v6597_v2 = vpop.f32.mrb[161].mxu1 }
 0x6d1   : > { %v6598_v32 = vadd.f32 %v6597_v2, %v6596_v16  ;;  %v6599_v24 = vpop.f32.mrb[162].mxu1 }
 0x6d2   : > { %v6600_v49 = vpop.f32.mrb[163].mxu1 }
 0x6d3   : > { %v6601_v61 = vadd.f32 %v6600_v49, %v6599_v24  ;;  %v5097_v21 = vadd.f32 %v6598_v32, %v10938_v52 }
 0x6d5   : > { %v5100_v50 = vadd.f32 %v6601_v61, %v10938_v52 }
 0x6d8   : > { %v6602_v39 = vpop.f32.mrb[164].mxu1 }
 0x6d9   : > { %v6603_v38 = vpop.f32.mrb[165].mxu1 }
 0x6da   : > { %v6604_v34 = vadd.f32 %v6603_v38, %v6602_v39  ;;  %v6605_v46 = vpop.f32.mrb[166].mxu1 }
 0x6db   : > { %v6606_v29 = vpop.f32.mrb[167].mxu1 }
 0x6dc   : > { %v10921_v4 = vadd.f32 %v6606_v29, %v6605_v46  ;;  %v5105_v49 = vadd.f32 %v6604_v34, %v10938_v52 }
 0x6e0   : > { %v6608_v55 = vpop.f32.mrb[168].mxu1 }
 0x6e1   : > { %v6609_v12 = vpop.f32.mrb[169].mxu1 }
 0x6e2   : > { %v6610_v25 = vadd.f32 %v6609_v12, %v6608_v55  ;;  %v6611_v8 = vpop.f32.mrb[170].mxu1 }
 0x6e3   : > { %v6612_v62 = vpop.f32.mrb[171].mxu1 }
 0x6e4   : > { %v6613_v7 = vadd.f32 %v6612_v62, %v6611_v8  ;;  %v5113_v16 = vadd.f32 %v6610_v25, %v10938_v52 }
 0x6e6   : > { %v5116_v29 = vadd.f32 %v6613_v7, %v10938_v52 }
 0x6e8   : > { %v6614_v9 = vpop.f32.mrb[172].mxu1 }
 0x6e9   : > { %v6615_v47 = vpop.f32.mrb[173].mxu1 }
 0x6ea   : > { %v10923_v35 = vadd.f32 %v6615_v47, %v6614_v9  ;;  %v6617_v42 = vpop.f32.mrb[174].mxu1  ;;  %v5108_v9 = vadd.f32 %v10921_v4, %v10938_v52 }
 0x6eb   : > { %v6618_v63 = vpop.f32.mrb[175].mxu1 }
 0x6ec   : > { %v10925_v43 = vadd.f32 %v6618_v63, %v6617_v42 }
 0x6f0   : > { %v6620_v0 = vpop.f32.mrb[176].mxu1 }
 0x6f1   : > { %v6621_v22 = vpop.f32.mrb[177].mxu1 }
 0x6f2   : > { %v10927_v23 = vadd.f32 %v6621_v22, %v6620_v0  ;;  %v6623_v33 = vpop.f32.mrb[178].mxu1 }
 0x6f3   : > { %v6624_v30 = vpop.f32.mrb[179].mxu1 }
 0x6f4   : > { %v10929_v28 = vadd.f32 %v6624_v30, %v6623_v33  ;;  %v5129_v4 = vadd.f32 %v10927_v23, %v10938_v52 }
 0x6f8   : > { %v6626_v15 = vpop.f32.mrb[180].mxu1 }
 0x6f9   : > { %v6627_v58 = vpop.f32.mrb[181].mxu1 }
 0x6fa   : > { %v10931_v10 = vadd.f32 %v6627_v58, %v6626_v15  ;;  %v6629_v26 = vpop.f32.mrb[182].mxu1 }
 0x6fb   : > { %v6630_v13 = vpop.f32.mrb[183].mxu1 }
 0x6fc   : > { %v10933_v20 = vadd.f32 %v6630_v13, %v6629_v26 }
 0x6ff   : > { %v6590_v37 = vpop.f32.mrb[176].mxu0 }
 0x700   : > { %v6591_v44 = vpop.f32.mrb[177].mxu0 }
 0x701   : > { %v6592_v3 = vadd.f32 %v6591_v44, %v6590_v37  ;;  %v6593_v41 = vpop.f32.mrb[178].mxu0  ;;  %v5121_v37 = vadd.f32 %v10923_v35, %v10938_v52 }
 0x702   : > { %v6594_v51 = vpop.f32.mrb[179].mxu0 }
 0x703   : > { %v6595_v19 = vadd.f32 %v6594_v51, %v6593_v41  ;;  %v5089_v56 = vadd.f32 %v6592_v3, %v10938_v52 }
 0x705   : > { %v5092_v36 = vadd.f32 %v6595_v19, %v10938_v52  ;;  %v5132_v19 = vadd.f32 %v10929_v28, %v10938_v52 }
 0x707   : > { %v6632_v27 = vpop.f32.mrb[184].mxu1 }
 0x708   : > { %v6822_v17 = vpop.f32.mrb[180].mxu0  ;;  %v6633_v53 = vpop.f32.mrb[185].mxu1 }
 0x709   : > { %v10942_v5 = vadd.f32 %v6822_v17, %v5097_v21  ;;  %v10944_v54 = vadd.f32 %v6633_v53, %v6632_v27  ;;  %v5249_v48 = vpop.f32.mrb[181].mxu0  ;;  %v6635_v45 = vpop.f32.mrb[186].mxu1 }
 0x70a   : > { %v10947_v11 = vadd.f32 %v5249_v48, %v5089_v56  ;;  %v6823_v40 = vpop.f32.mrb[182].mxu0  ;;  %v6636_v60 = vpop.f32.mrb[187].mxu1  ;;  %v5124_v56 = vadd.f32 %v10925_v43, %v10938_v52 }
 0x70b   : > { %v10950_v31 = vadd.f32 %v6823_v40, %v5100_v50  ;;  %v10952_v6 = vadd.f32 %v6636_v60, %v6635_v45  ;;  %v5252_v1 = vpop.f32.mrb[183].mxu0  ;;  %v5379_v2 = vsel %vm534_vm4, %v10942_v5, 0.0 }
 0x70c   : > { %v10954_v59 = vadd.f32 %v5252_v1, %v5092_v36  ;;  %v5376_v14 = vsel %vm534_vm4, %v10947_v11, 0.0 }
 0x70d   : > { %v5381_v55 = vsel %vm534_vm4, %v10950_v31, 0.0 }
 0x70e   : > { %v5377_v57 = vsel %vm534_vm4, %v10954_v59, 0.0 }
 0x70f   : > { %v5378_v18 = vadd.f32 %v5377_v57, %v5376_v14  ;;  %v5145_v57 = vadd.f32 %v10944_v54, %v10938_v52 }
 0x710   : > { %v6638_v32 = vpop.f32.mrb[188].mxu1  ;;  %v6826_v24 = vpop.f32.mrb[184].mxu0 }
 0x711   : > { %v5380_v61 = vadd.f32 %v5379_v2, %v5378_v18  ;;  %v10964_v39 = vadd.f32 %v6826_v24, %v5113_v16  ;;  %v6639_v38 = vpop.f32.mrb[189].mxu1  ;;  %v5265_v46 = vpop.f32.mrb[185].mxu0  ;;  %v5137_v2 = vadd.f32 %v10931_v10, %v10938_v52 }
 0x712   : > { %v10969_v12 = vadd.f32 %v6639_v38, %v6638_v32  ;;  %v10971_v25 = vadd.f32 %v5265_v46, %v5105_v49  ;;  %v6641_v8 = vpop.f32.mrb[190].mxu1  ;;  %v6827_v62 = vpop.f32.mrb[186].mxu0  ;;  %v5148_v38 = vadd.f32 %v10952_v6, %v10938_v52 }
 0x713   : > { %v5382_v34 = vadd.f32 %v5381_v55, %v5380_v61  ;;  %v10975_v47 = vadd.f32 %v6827_v62, %v5116_v29  ;;  %v6642_v42 = vpop.f32.mrb[191].mxu1  ;;  %v5268_v63 = vpop.f32.mrb[187].mxu0  ;;  %v5387_v58 = vsel %vm534_vm4, %v10964_v39, 0.0  ;;  %v5140_v62 = vadd.f32 %v10933_v20, %v10938_v52 }
 0x714   : > { %v5383_v7 = vsel %vm534_vm4, %v10971_v25, 0.0  ;;  %v10979_v0 = vadd.f32 %v6642_v42, %v6641_v8  ;;  %v10981_v22 = vadd.f32 %v5268_v63, %v5108_v9 }
 0x715   : > { %v5384_v33 = vadd.f32 %v5383_v7, %v5382_v34  ;;  %v5389_v27 = vsel %vm534_vm4, %v10975_v47, 0.0 }
 0x716   : > { %v5385_v30 = vsel %vm534_vm4, %v10981_v22, 0.0 }
 0x717   : > { %v5386_v15 = vadd.f32 %v5385_v30, %v5384_v33 }
 0x718   : > { %v6644_v26 = vpop.f32.mrb[192].mxu1  ;;  %v6830_v13 = vpop.f32.mrb[188].mxu0 }
 0x719   : > { %v5388_v44 = vadd.f32 %v5387_v58, %v5386_v15  ;;  %v10991_v3 = vadd.f32 %v6830_v13, %v5129_v4  ;;  %v6645_v41 = vpop.f32.mrb[193].mxu1  ;;  %v5281_v51 = vpop.f32.mrb[189].mxu0  ;;  %v5153_v13 = vadd.f32 %v10969_v12, %v10938_v52 }
 0x71a   : > { %v6646_v23 = vadd.f32 %v6645_v41, %v6644_v26  ;;  %v10997_v21 = vadd.f32 %v5281_v51, %v5121_v37  ;;  %v6647_v17 = vpop.f32.mrb[194].mxu1  ;;  %v6831_v53 = vpop.f32.mrb[190].mxu0 }
 0x71b   : > { %v5390_v35 = vadd.f32 %v5389_v27, %v5388_v44  ;;  %v11001_v48 = vadd.f32 %v6831_v53, %v5132_v19  ;;  %v6648_v45 = vpop.f32.mrb[195].mxu1  ;;  %v5284_v50 = vpop.f32.mrb[191].mxu0  ;;  %v5395_v43 = vsel %vm534_vm4, %v10991_v3, 0.0 }
 0x71c   : > { %v5391_v40 = vsel %vm534_vm4, %v10997_v21, 0.0  ;;  %v6649_v28 = vadd.f32 %v6648_v45, %v6647_v17  ;;  %v11005_v60 = vadd.f32 %v5284_v50, %v5124_v56  ;;  %v5161_v4 = vadd.f32 %v6646_v23, %v10938_v52 }
 0x71d   : > { %v5392_v36 = vadd.f32 %v5391_v40, %v5390_v35  ;;  %v5397_v46 = vsel %vm534_vm4, %v11001_v48, 0.0  ;;  %v5156_v35 = vadd.f32 %v10979_v0, %v10938_v52 }
 0x71e   : > { %v5393_v1 = vsel %vm534_vm4, %v11005_v60, 0.0  ;;  %v5164_v19 = vadd.f32 %v6649_v28, %v10938_v52 }
 0x71f   : > { %v5394_v14 = vadd.f32 %v5393_v1, %v5392_v36 }
 0x720   : > { %v6650_v18 = vpop.f32.mrb[196].mxu1  ;;  %v6834_v16 = vpop.f32.mrb[192].mxu0 }
 0x721   : > { %v5396_v32 = vadd.f32 %v5395_v43, %v5394_v14  ;;  %v11015_v24 = vadd.f32 %v6834_v16, %v5145_v57  ;;  %v6651_v49 = vpop.f32.mrb[197].mxu1  ;;  %v5297_v61 = vpop.f32.mrb[193].mxu0 }
 0x722   : > { %v6652_v54 = vadd.f32 %v6651_v49, %v6650_v18  ;;  %v11021_v29 = vadd.f32 %v5297_v61, %v5137_v2  ;;  %v6653_v55 = vpop.f32.mrb[198].mxu1  ;;  %v6835_v8 = vpop.f32.mrb[194].mxu0 }
 0x723   : > { %v5398_v10 = vadd.f32 %v5397_v46, %v5396_v32  ;;  %v11025_v9 = vadd.f32 %v6835_v8, %v5148_v38  ;;  %v6654_v34 = vpop.f32.mrb[199].mxu1  ;;  %v5300_v42 = vpop.f32.mrb[195].mxu0  ;;  %v5403_v20 = vsel %vm534_vm4, %v11015_v24, 0.0 }
 0x724   : > { %v5399_v63 = vsel %vm534_vm4, %v11021_v29, 0.0  ;;  %v6655_v6 = vadd.f32 %v6654_v34, %v6653_v55  ;;  %v11029_v7 = vadd.f32 %v5300_v42, %v5140_v62  ;;  %v5169_v32 = vadd.f32 %v6652_v54, %v10938_v52 }
 0x725   : > { %v5400_v33 = vadd.f32 %v5399_v63, %v5398_v10  ;;  %v5405_v27 = vsel %vm534_vm4, %v11025_v9, 0.0 }
 0x726   : > { %v5401_v30 = vsel %vm534_vm4, %v11029_v7, 0.0  ;;  %v5172_v63 = vadd.f32 %v6655_v6, %v10938_v52 }
 0x727   : > { %v5402_v15 = vadd.f32 %v5401_v30, %v5400_v33 }
 0x728   : > { %v6656_v58 = vpop.f32.mrb[200].mxu1  ;;  %v6838_v26 = vpop.f32.mrb[196].mxu0 }
 0x729   : > { %v5404_v37 = vadd.f32 %v5403_v20, %v5402_v15  ;;  %v11038_v44 = vadd.f32 %v6838_v26, %v5161_v4  ;;  %v6657_v41 = vpop.f32.mrb[201].mxu1  ;;  %v5313_v51 = vpop.f32.mrb[197].mxu0 }
 0x72a   : > { %v6658_v17 = vadd.f32 %v6657_v41, %v6656_v58  ;;  %v11043_v23 = vadd.f32 %v5313_v51, %v5153_v13  ;;  %v6659_v53 = vpop.f32.mrb[202].mxu1  ;;  %v6839_v56 = vpop.f32.mrb[198].mxu0 }
 0x72b   : > { %v5406_v45 = vadd.f32 %v5405_v27, %v5404_v37  ;;  %v11047_v12 = vadd.f32 %v6839_v56, %v5164_v19  ;;  %v6660_v50 = vpop.f32.mrb[203].mxu1  ;;  %v5316_v40 = vpop.f32.mrb[199].mxu0  ;;  %v5411_v0 = vsel %vm534_vm4, %v11038_v44, 0.0 }
 0x72c   : > { %v5407_v36 = vsel %vm534_vm4, %v11043_v23, 0.0  ;;  %v6661_v28 = vadd.f32 %v6660_v50, %v6659_v53  ;;  %v11051_v1 = vadd.f32 %v5316_v40, %v5156_v35  ;;  %v5177_v18 = vadd.f32 %v6658_v17, %v10938_v52 }
 0x72d   : > { %v5408_v14 = vadd.f32 %v5407_v36, %v5406_v45  ;;  %v5413_v8 = vsel %vm534_vm4, %v11047_v12, 0.0 }
 0x72e   : > { %v5409_v57 = vsel %vm534_vm4, %v11051_v1, 0.0  ;;  %v5180_v55 = vadd.f32 %v6661_v28, %v10938_v52 }
 0x72f   : > { %v5410_v43 = vadd.f32 %v5409_v57, %v5408_v14 }
 0x730   : > { %v6662_v16 = vpop.f32.mrb[204].mxu1  ;;  %v6842_v2 = vpop.f32.mrb[200].mxu0 }
 0x731   : > { %v5412_v49 = vadd.f32 %v5411_v0, %v5410_v43  ;;  %v11059_v61 = vadd.f32 %v6842_v2, %v5177_v18  ;;  %v6663_v38 = vpop.f32.mrb[205].mxu1  ;;  %v5329_v46 = vpop.f32.mrb[201].mxu0 }
 0x732   : > { %v6664_v62 = vadd.f32 %v6663_v38, %v6662_v16  ;;  %v11064_v10 = vadd.f32 %v5329_v46, %v5169_v32  ;;  %v6665_v34 = vpop.f32.mrb[206].mxu1  ;;  %v6843_v42 = vpop.f32.mrb[202].mxu0 }
 0x733   : > { %v5414_v33 = vadd.f32 %v5413_v8, %v5412_v49  ;;  %v11067_v30 = vadd.f32 %v6843_v42, %v5180_v55  ;;  %v6666_v54 = vpop.f32.mrb[207].mxu1  ;;  %v5332_v15 = vpop.f32.mrb[203].mxu0  ;;  %v5419_v41 = vsel %vm534_vm4, %v11059_v61, 0.0 }
 0x734   : > { %v5415_v4 = vsel %vm534_vm4, %v11064_v10, 0.0  ;;  %v6667_v20 = vadd.f32 %v6666_v54, %v6665_v34  ;;  %v11071_v58 = vadd.f32 %v5332_v15, %v5172_v63  ;;  %v5185_v19 = vadd.f32 %v6664_v62, %v10938_v52 }
 0x735   : > { %v5416_v26 = vadd.f32 %v5415_v4, %v5414_v33  ;;  %v5421_v56 = vsel %vm534_vm4, %v11067_v30, 0.0 }
 0x736   : > { %v5417_v13 = vsel %vm534_vm4, %v11071_v58, 0.0  ;;  %v5188_v36 = vadd.f32 %v6667_v20, %v10938_v52 }
 0x737   : > { %v5418_v37 = vadd.f32 %v5417_v13, %v5416_v26 }
 0x738   : > { %v6668_v6 = vpop.f32.mrb[208].mxu1  ;;  %v6846_v51 = vpop.f32.mrb[204].mxu0 }
 0x739   : > { %v5420_v27 = vadd.f32 %v5419_v41, %v5418_v37  ;;  %v6669_v17 = vpop.f32.mrb[209].mxu1  ;;  %v5345_v53 = vpop.f32.mrb[205].mxu0 }
 0x73a   : > { %v6670_v35 = vadd.f32 %v6669_v17, %v6668_v6  ;;  %v11080_v45 = vadd.f32 %v5345_v53, %v5185_v19  ;;  %v6671_v50 = vpop.f32.mrb[210].mxu1  ;;  %v6847_v40 = vpop.f32.mrb[206].mxu0 }
 0x73b   : > { %v5422_v28 = vadd.f32 %v5421_v56, %v5420_v27  ;;  %v6672_v14 = vpop.f32.mrb[211].mxu1  ;;  %v5348_v57 = vpop.f32.mrb[207].mxu0 }
 0x73c   : > { %v5193_v43 = vadd.f32 %v6670_v35, %v10938_v52  ;;  %v5423_v18 = vsel %vm534_vm4, %v11080_v45, 0.0  ;;  %v6673_v0 = vadd.f32 %v6672_v14, %v6671_v50  ;;  %v5349_v16 = vadd.f32 %v5348_v57, %v5188_v36 }
 0x73d   : > { %v5424_v2 = vadd.f32 %v5423_v18, %v5422_v28 }
 0x73e   : > { %v5354_v32 = vadd.f32 %v6846_v51, %v5193_v43  ;;  %v5196_v49 = vadd.f32 %v6673_v0, %v10938_v52  ;;  %v5425_v38 = vsel %vm534_vm4, %v5349_v16, 0.0 }
 0x73f   : > { %v5426_v46 = vadd.f32 %v5425_v38, %v5424_v2 }
 0x740   : > { %v5357_v55 = vadd.f32 %v6847_v40, %v5196_v49  ;;  %v5427_v8 = vsel %vm534_vm4, %v5354_v32, 0.0  ;;  %v6674_v62 = vpop.f32.mrb[212].mxu1  ;;  %v6850_v34 = vpop.f32.mrb[208].mxu0 }
 0x741   : > { %v5428_v42 = vadd.f32 %v5427_v8, %v5426_v46  ;;  %v6675_v63 = vpop.f32.mrb[213].mxu1  ;;  %v5361_v33 = vpop.f32.mrb[209].mxu0 }
 0x742   : > { %v6676_v54 = vadd.f32 %v6675_v63, %v6674_v62  ;;  %v6677_v15 = vpop.f32.mrb[214].mxu1  ;;  %v5429_v4 = vsel %vm534_vm4, %v5357_v55, 0.0  ;;  %v6851_v20 = vpop.f32.mrb[210].mxu0 }
 0x743   : > { %v6678_v26 = vpop.f32.mrb[215].mxu1  ;;  %v5430_v13 = vadd.f32 %v5429_v4, %v5428_v42  ;;  %v5364_v37 = vpop.f32.mrb[211].mxu0 }
 0x744   : > { %v6679_v41 = vadd.f32 %v6678_v26, %v6677_v15  ;;  %v5201_v6 = vadd.f32 %v6676_v54, %v10938_v52 }
 0x746   : > { %v5362_v51 = vadd.f32 %v5361_v33, %v5201_v6  ;;  %v5204_v19 = vadd.f32 %v6679_v41, %v10938_v52 }
 0x748   : > { %v5431_v27 = vsel %vm534_vm4, %v5362_v51, 0.0  ;;  %v5365_v17 = vadd.f32 %v5364_v37, %v5204_v19 }
 0x749   : > { %v5432_v53 = vadd.f32 %v5431_v27, %v5430_v13 }
 0x74a   : > { %v5433_v56 = vsel %vm534_vm4, %v5365_v17, 0.0  ;;  %v6680_v35 = vpop.f32.mrb[216].mxu1 }
 0x74b   : > { %v5434_v50 = vadd.f32 %v5433_v56, %v5432_v53  ;;  %v6681_v40 = vpop.f32.mrb[217].mxu1 }
 0x74c   : > { %v6682_v36 = vadd.f32 %v6681_v40, %v6680_v35  ;;  %v6683_v28 = vpop.f32.mrb[218].mxu1 }
 0x74d   : > { %v6684_v14 = vpop.f32.mrb[219].mxu1 }
 0x74e   : > { %v5209_v57 = vadd.f32 %v6682_v36, %v10938_v52  ;;  %v6685_v43 = vadd.f32 %v6684_v14, %v6683_v28 }
 0x750   : > { %v5370_v18 = vadd.f32 %v6850_v34, %v5209_v57  ;;  %v5212_v0 = vadd.f32 %v6685_v43, %v10938_v52 }
 0x752   : > { %v5435_v2 = vsel %vm534_vm4, %v5370_v18, 0.0  ;;  %v5373_v49 = vadd.f32 %v6851_v20, %v5212_v0 }
 0x753   : > { %v5436_v38 = vadd.f32 %v5435_v2, %v5434_v50 }
 0x754   : > { %v5437_v46 = vsel %vm534_vm4, %v5373_v49, 0.0 }
 0x755   : > { %v5438_v8 = vadd.f32 %v5437_v46, %v5436_v38 }
 0x757   : > { %v5439_v62 = vrot.slane %v5438_v8, 4 }
 0x759   : > { %v5440_v42 = vadd.f32 %v5439_v62, %v5438_v8 }
 0x75b   : > { %v5441_v63 = vrot.slane %v5440_v42, 2 }
 0x75d   : > { %v5442_v33 = vadd.f32 %v5441_v63, %v5440_v42 }
 0x75f   : > { %v5443_v54 = vrot.slane %v5442_v33, 1 }
 0x761   : > { %v5444_v15 = vadd.f32 %v5443_v54, %v5442_v33 }
 0x763   : > { %v11098_v4 = vmul.f32 0.00390625, %v5444_v15 }
 0x765   : > { %v11102_v34 = vsub.f32 %v11043_v23, %v11098_v4  ;;  %v11106_v52 = vsub.f32 %v11051_v1, %v11098_v4  ;;  %v11110_v20 = vsub.f32 %v11038_v44, %v11098_v4  ;;  %v11114_v26 = vsub.f32 %v11047_v12, %v11098_v4 }
 0x766   : > { %v11118_v13 = vsub.f32 %v11064_v10, %v11098_v4  ;;  %v11122_v23 = vsub.f32 %v11071_v58, %v11098_v4  ;;  %v11126_v1 = vsub.f32 %v11059_v61, %v11098_v4  ;;  %v11130_v44 = vsub.f32 %v11067_v30, %v11098_v4 }
 0x767   : > { %v11134_v12 = vsub.f32 %v11080_v45, %v11098_v4  ;;  %v11137_v37 = vsub.f32 %v5349_v16, %v11098_v4  ;;  %v11140_v10 = vsub.f32 %v5354_v32, %v11098_v4  ;;  %v11143_v58 = vsub.f32 %v5357_v55, %v11098_v4 }
 0x768   : > { %v11146_v61 = vsub.f32 %v5362_v51, %v11098_v4  ;;  %v11149_v41 = vsub.f32 %v5365_v17, %v11098_v4  ;;  %v11152_v30 = vsub.f32 %v5370_v18, %v11098_v4  ;;  %v11155_v45 = vsub.f32 %v5373_v49, %v11098_v4 }
 0x769   : > { %v11159_v16 = vsub.f32 %v10947_v11, %v11098_v4  ;;  %v11163_v32 = vsub.f32 %v10954_v59, %v11098_v4  ;;  %v11167_v55 = vsub.f32 %v10942_v5, %v11098_v4  ;;  %v11171_v6 = vsub.f32 %v10950_v31, %v11098_v4 }
 0x76a   : > { %v11179_v11 = vsub.f32 %v10971_v25, %v11098_v4  ;;  %v11185_v5 = vsub.f32 %v10981_v22, %v11098_v4  ;;  %v11193_v56 = vsub.f32 %v10964_v39, %v11098_v4  ;;  %v11200_v22 = vsub.f32 %v10975_v47, %v11098_v4 }
 0x76b   : > { %v5478_v51 = vmul.f32 %v11159_v16, %v11159_v16  ;;  %v5479_v19 = vmul.f32 %v11163_v32, %v11163_v32  ;;  %v5480_v59 = vmul.f32 %v11167_v55, %v11167_v55  ;;  %v5481_v31 = vmul.f32 %v11171_v6, %v11171_v6 }
 0x76c   : > { %v5482_v25 = vmul.f32 %v11179_v11, %v11179_v11  ;;  %v5483_v40 = vmul.f32 %v11185_v5, %v11185_v5  ;;  %v11207_v39 = vsub.f32 %v10997_v21, %v11098_v4  ;;  %v5484_v14 = vmul.f32 %v11193_v56, %v11193_v56 }
 0x76d   : > { %v5510_v27 = vsel %vm534_vm4, %v5478_v51, 0.0  ;;  %v5511_v17 = vsel %vm534_vm4, %v5479_v19, 0.0  ;;  %v5513_v35 = vsel %vm534_vm4, %v5480_v59, 0.0  ;;  %v5515_v36 = vsel %vm534_vm4, %v5481_v31, 0.0 }
 0x76e   : > { %v5512_v53 = vadd.f32 %v5511_v17, %v5510_v27  ;;  %v5517_v57 = vsel %vm534_vm4, %v5482_v25, 0.0  ;;  %v11214_v47 = vsub.f32 %v11005_v60, %v11098_v4  ;;  %v5485_v18 = vmul.f32 %v11200_v22, %v11200_v22 }
 0x76f   : > { %v5519_v0 = vsel %vm534_vm4, %v5483_v40, 0.0  ;;  %v11221_v21 = vsub.f32 %v10991_v3, %v11098_v4  ;;  %v5486_v49 = vmul.f32 %v11207_v39, %v11207_v39  ;;  %v5521_v38 = vsel %vm534_vm4, %v5484_v14, 0.0 }
 0x770   : > { %v5514_v50 = vadd.f32 %v5513_v35, %v5512_v53  ;;  %v11228_v60 = vsub.f32 %v11001_v48, %v11098_v4  ;;  %v5487_v8 = vmul.f32 %v11214_v47, %v11214_v47  ;;  %v5523_v62 = vsel %vm534_vm4, %v5485_v18, 0.0 }
 0x771   : > { %v11235_v3 = vsub.f32 %v11021_v29, %v11098_v4  ;;  %v5488_v63 = vmul.f32 %v11221_v21, %v11221_v21  ;;  %v5525_v33 = vsel %vm534_vm4, %v5486_v49, 0.0  ;;  %v11242_v48 = vsub.f32 %v11029_v7, %v11098_v4 }
 0x772   : > { %v5516_v28 = vadd.f32 %v5515_v36, %v5514_v50  ;;  %v5489_v15 = vmul.f32 %v11228_v60, %v11228_v60  ;;  %v5527_v51 = vsel %vm534_vm4, %v5487_v8, 0.0  ;;  %v11249_v29 = vsub.f32 %v11015_v24, %v11098_v4 }
 0x773   : > { %v5490_v59 = vmul.f32 %v11235_v3, %v11235_v3  ;;  %v5529_v31 = vsel %vm534_vm4, %v5488_v63, 0.0  ;;  %v11256_v7 = vsub.f32 %v11025_v9, %v11098_v4  ;;  %v5491_v17 = vmul.f32 %v11242_v48, %v11242_v48 }
 0x774   : > { %v5518_v43 = vadd.f32 %v5517_v57, %v5516_v28  ;;  %v5531_v53 = vsel %vm534_vm4, %v5489_v15, 0.0  ;;  %v5492_v24 = vmul.f32 %v11249_v29, %v11249_v29  ;;  %v5494_v9 = vmul.f32 %v11102_v34, %v11102_v34 }
 0x775   : > { %v5533_v35 = vsel %vm534_vm4, %v5490_v59, 0.0  ;;  %v5493_v40 = vmul.f32 %v11256_v7, %v11256_v7  ;;  %v5535_v36 = vsel %vm534_vm4, %v5491_v17, 0.0  ;;  %v5495_v57 = vmul.f32 %v11106_v52, %v11106_v52 }
 0x776   : > { %v5520_v2 = vadd.f32 %v5519_v0, %v5518_v43  ;;  %v5537_v4 = vsel %vm534_vm4, %v5492_v24, 0.0  ;;  %v5496_v0 = vmul.f32 %v11110_v20, %v11110_v20 }
 0x777   : > { %v5539_v43 = vsel %vm534_vm4, %v5493_v40, 0.0 }
 0x778   : > { %v5522_v46 = vadd.f32 %v5521_v38, %v5520_v2  ;;  %v5541_v2 = vsel %vm534_vm4, %v5494_v9, 0.0  ;;  %v5497_v38 = vmul.f32 %v11114_v26, %v11114_v26 }
 0x77a   : > { %v5524_v42 = vadd.f32 %v5523_v62, %v5522_v46  ;;  %v5543_v46 = vsel %vm534_vm4, %v5495_v57, 0.0  ;;  %v5498_v62 = vmul.f32 %v11118_v13, %v11118_v13 }
 0x77c   : > { %v5526_v54 = vadd.f32 %v5525_v33, %v5524_v42  ;;  %v5545_v42 = vsel %vm534_vm4, %v5496_v0, 0.0  ;;  %v5499_v33 = vmul.f32 %v11122_v23, %v11122_v23 }
 0x77e   : > { %v5528_v19 = vadd.f32 %v5527_v51, %v5526_v54  ;;  %v5547_v54 = vsel %vm534_vm4, %v5497_v38, 0.0  ;;  %v5500_v51 = vmul.f32 %v11126_v1, %v11126_v1 }
 0x780   : > { %v5530_v27 = vadd.f32 %v5529_v31, %v5528_v19  ;;  %v5549_v19 = vsel %vm534_vm4, %v5498_v62, 0.0  ;;  %v5501_v31 = vmul.f32 %v11130_v44, %v11130_v44 }
 0x782   : > { %v5532_v25 = vadd.f32 %v5531_v53, %v5530_v27  ;;  %v5551_v27 = vsel %vm534_vm4, %v5499_v33, 0.0  ;;  %v5502_v53 = vmul.f32 %v11134_v12, %v11134_v12 }
 0x784   : > { %v5534_v50 = vadd.f32 %v5533_v35, %v5532_v25  ;;  %v5553_v25 = vsel %vm534_vm4, %v5500_v51, 0.0  ;;  %v5503_v35 = vmul.f32 %v11137_v37, %v11137_v37 }
 0x786   : > { %v5536_v28 = vadd.f32 %v5535_v36, %v5534_v50  ;;  %v5555_v50 = vsel %vm534_vm4, %v5501_v31, 0.0  ;;  %v5504_v36 = vmul.f32 %v11140_v10, %v11140_v10 }
 0x788   : > { %v5538_v14 = vadd.f32 %v5537_v4, %v5536_v28  ;;  %v5557_v28 = vsel %vm534_vm4, %v5502_v53, 0.0  ;;  %v5505_v4 = vmul.f32 %v11143_v58, %v11143_v58 }
 0x78a   : > { %v5540_v18 = vadd.f32 %v5539_v43, %v5538_v14  ;;  %v5559_v14 = vsel %vm534_vm4, %v5503_v35, 0.0  ;;  %v5506_v43 = vmul.f32 %v11146_v61, %v11146_v61 }
 0x78c   : > { %v5542_v49 = vadd.f32 %v5541_v2, %v5540_v18  ;;  %v5561_v18 = vsel %vm534_vm4, %v5504_v36, 0.0  ;;  %v5507_v2 = vmul.f32 %v11149_v41, %v11149_v41 }
 0x78e   : > { %v5544_v8 = vadd.f32 %v5543_v46, %v5542_v49  ;;  %v5563_v49 = vsel %vm534_vm4, %v5505_v4, 0.0  ;;  %v5508_v46 = vmul.f32 %v11152_v30, %v11152_v30 }
 0x790   : > { %v5546_v63 = vadd.f32 %v5545_v42, %v5544_v8  ;;  %v5565_v8 = vsel %vm534_vm4, %v5506_v43, 0.0  ;;  %v5509_v42 = vmul.f32 %v11155_v45, %v11155_v45 }
 0x792   : > { %v5548_v15 = vadd.f32 %v5547_v54, %v5546_v63  ;;  %v5567_v63 = vsel %vm534_vm4, %v5507_v2, 0.0  ;;  %v5569_v54 = vsel %vm534_vm4, %v5508_v46, 0.0  ;;  %v5571_v51 = vsel %vm534_vm4, %v5509_v42, 0.0 }
 0x794   : > { %v5550_v59 = vadd.f32 %v5549_v19, %v5548_v15 }
 0x796   : > { %v5552_v17 = vadd.f32 %v5551_v27, %v5550_v59 }
 0x798   : > { %v5554_v24 = vadd.f32 %v5553_v25, %v5552_v17 }
 0x79a   : > { %v5556_v40 = vadd.f32 %v5555_v50, %v5554_v24 }
 0x79c   : > { %v5558_v9 = vadd.f32 %v5557_v28, %v5556_v40  ;;  %v11321_v40 = vld [vmem:[%s11591_s11] ss:$0 sm:$0xff] }
 0x79e   : > { %v5560_v57 = vadd.f32 %v5559_v14, %v5558_v9  ;;  %v11330_v14 = vld [vmem:[%s11592_s12] ss:$0 sm:$0xff] }
 0x7a0   : > { %v5562_v0 = vadd.f32 %v5561_v18, %v5560_v57 }
 0x7a2   : > { %v5564_v38 = vadd.f32 %v5563_v49, %v5562_v0 }
 0x7a4   : > { %v5566_v62 = vadd.f32 %v5565_v8, %v5564_v38 }
 0x7a6   : > { %v5568_v33 = vadd.f32 %v5567_v63, %v5566_v62 }
 0x7a8   : > { %v5570_v15 = vadd.f32 %v5569_v54, %v5568_v33 }
 0x7aa   : > { %v5572_v19 = vadd.f32 %v5571_v51, %v5570_v15 }
 0x7ac   : > { %v5573_v59 = vrot.slane %v5572_v19, 4 }
 0x7ae   : > { %v5574_v31 = vadd.f32 %v5573_v59, %v5572_v19 }
 0x7b0   : > { %v5575_v27 = vrot.slane %v5574_v31, 2 }
 0x7b2   : > { %v5576_v17 = vadd.f32 %v5575_v27, %v5574_v31 }
 0x7b4   : > { %v5577_v53 = vrot.slane %v5576_v17, 1 }
 0x7b6   : > { %v5578_v25 = vadd.f32 %v5577_v53, %v5576_v17 }
 0x7b8   : > { %v5579_v24 = vmul.f32 0.00390625, %v5578_v25 }
 0x7ba   : > { %v5580_v35 = vadd.f32 1e-05, %v5579_v24 }
 0x7bc   : > { %7537 = vrsqrt.f32 %v5580_v35 }
 0x7c6   : > { %v7538_v50 = vpop.eup %7537 }
 0x7c7   : > { %v5613_v36 = vmul.f32 %v7538_v50, %v11155_v45  ;;  %v5582_v28 = vmul.f32 %v7538_v50, %v11159_v16  ;;  %v5583_v9 = vmul.f32 %v7538_v50, %v11163_v32  ;;  %v5584_v4 = vmul.f32 %v7538_v50, %v11167_v55 }
 0x7c8   : > { %v5585_v57 = vmul.f32 %v7538_v50, %v11171_v6  ;;  %v5586_v43 = vmul.f32 %v7538_v50, %v11179_v11  ;;  %v5587_v18 = vmul.f32 %v7538_v50, %v11185_v5  ;;  %v5588_v0 = vmul.f32 %v7538_v50, %v11193_v56 }
 0x7c9   : > { %v5652_v45 = vmul.f32 %v11321_v40, %v5613_v36  ;;  %v5589_v16 = vmul.f32 %v7538_v50, %v11200_v22  ;;  %v5590_v32 = vmul.f32 %v7538_v50, %v11207_v39  ;;  %v5591_v55 = vmul.f32 %v7538_v50, %v11214_v47 }
 0x7ca   : > { %v5592_v2 = vmul.f32 %v7538_v50, %v11221_v21  ;;  %v5593_v6 = vmul.f32 %v7538_v50, %v11228_v60  ;;  %v5594_v11 = vmul.f32 %v7538_v50, %v11235_v3  ;;  %v5595_v5 = vmul.f32 %v7538_v50, %v11242_v48 }
 0x7cb   : > { %v5691_v56 = vadd.f32 %v11330_v14, %v5652_v45  ;;  %v5596_v49 = vmul.f32 %v7538_v50, %v11249_v29  ;;  %v5597_v38 = vmul.f32 %v7538_v50, %v11256_v7  ;;  %v5598_v22 = vmul.f32 %v7538_v50, %v11102_v34 }
 0x7cc   : > { %v5599_v39 = vmul.f32 %v7538_v50, %v11106_v52  ;;  %v5600_v47 = vmul.f32 %v7538_v50, %v11110_v20  ;;  %v5601_v21 = vmul.f32 %v7538_v50, %v11114_v26  ;;  %v5602_v60 = vmul.f32 %v7538_v50, %v11118_v13 }
 0x7cd   : > { %v5723_v46 = vmax.f32 %v5691_v56, 0.0  ;;  %v5603_v3 = vmul.f32 %v7538_v50, %v11122_v23  ;;  %v5604_v48 = vmul.f32 %v7538_v50, %v11126_v1  ;;  %v5605_v8 = vmul.f32 %v7538_v50, %v11130_v44 }
 0x7ce   : > { %v5606_v29 = vmul.f32 %v7538_v50, %v11134_v12  ;;  %v5607_v7 = vmul.f32 %v7538_v50, %v11137_v37  ;;  %v5608_v34 = vmul.f32 %v7538_v50, %v11140_v10  ;;  %v5609_v52 = vmul.f32 %v7538_v50, %v11143_v58 }
 0x7cf   : > { %5755 = vst.msk [vmem:[%s11361_s23 + $0xf8] sm:$0xff] %vm534_vm4, %v5723_v46  ;;  %v5610_v20 = vmul.f32 %v7538_v50, %v11146_v61  ;;  %v5611_v26 = vmul.f32 %v7538_v50, %v11149_v41  ;;  %v5612_v13 = vmul.f32 %v7538_v50, %v11152_v30  ;;  %v5621_v23 = vmul.f32 %v11321_v40, %v5582_v28 }
 0x7d0   : > { %v5622_v1 = vmul.f32 %v11321_v40, %v5583_v9  ;;  %v5623_v44 = vmul.f32 %v11321_v40, %v5584_v4  ;;  %v5624_v12 = vmul.f32 %v11321_v40, %v5585_v57  ;;  %v5625_v37 = vmul.f32 %v11321_v40, %v5586_v43 }
 0x7d1   : > { %v5626_v10 = vmul.f32 %v11321_v40, %v5587_v18  ;;  %v5627_v58 = vmul.f32 %v11321_v40, %v5588_v0  ;;  %v5628_v61 = vmul.f32 %v11321_v40, %v5589_v16  ;;  %v5629_v41 = vmul.f32 %v11321_v40, %v5590_v32 }
 0x7d2   : > { %v5630_v30 = vmul.f32 %v11321_v40, %v5591_v55  ;;  %v5631_v62 = vmul.f32 %v11321_v40, %v5592_v2  ;;  %v5632_v42 = vmul.f32 %v11321_v40, %v5593_v6  ;;  %v5633_v63 = vmul.f32 %v11321_v40, %v5594_v11 }
 0x7d3   : > { %v5634_v33 = vmul.f32 %v11321_v40, %v5595_v5  ;;  %v5635_v54 = vmul.f32 %v11321_v40, %v5596_v49  ;;  %v5636_v15 = vmul.f32 %v11321_v40, %v5597_v38  ;;  %v5637_v51 = vmul.f32 %v11321_v40, %v5598_v22 }
 0x7d4   : > { %v5638_v19 = vmul.f32 %v11321_v40, %v5599_v39  ;;  %v5639_v59 = vmul.f32 %v11321_v40, %v5600_v47  ;;  %v5640_v31 = vmul.f32 %v11321_v40, %v5601_v21  ;;  %v5641_v27 = vmul.f32 %v11321_v40, %v5602_v60 }
 0x7d5   : > { %v5642_v17 = vmul.f32 %v11321_v40, %v5603_v3  ;;  %v5643_v53 = vmul.f32 %v11321_v40, %v5604_v48  ;;  %v5644_v25 = vmul.f32 %v11321_v40, %v5605_v8  ;;  %v5645_v24 = vmul.f32 %v11321_v40, %v5606_v29 }
 0x7d6   : > { %v5646_v35 = vmul.f32 %v11321_v40, %v5607_v7  ;;  %v5647_v50 = vmul.f32 %v11321_v40, %v5608_v34  ;;  %v5648_v36 = vmul.f32 %v11321_v40, %v5609_v52  ;;  %v5649_v28 = vmul.f32 %v11321_v40, %v5610_v20 }
 0x7d7   : > { %v5650_v9 = vmul.f32 %v11321_v40, %v5611_v26  ;;  %v5651_v4 = vmul.f32 %v11321_v40, %v5612_v13  ;;  %v5660_v57 = vadd.f32 %v11330_v14, %v5621_v23  ;;  %v5661_v43 = vadd.f32 %v11330_v14, %v5622_v1 }
 0x7d8   : > { %v5662_v18 = vadd.f32 %v11330_v14, %v5623_v44  ;;  %v5663_v0 = vadd.f32 %v11330_v14, %v5624_v12  ;;  %v5664_v45 = vadd.f32 %v11330_v14, %v5625_v37  ;;  %v5665_v16 = vadd.f32 %v11330_v14, %v5626_v10 }
 0x7d9   : > { %v5666_v32 = vadd.f32 %v11330_v14, %v5627_v58  ;;  %v5667_v55 = vadd.f32 %v11330_v14, %v5628_v61  ;;  %v5668_v2 = vadd.f32 %v11330_v14, %v5629_v41  ;;  %v5669_v40 = vadd.f32 %v11330_v14, %v5630_v30 }
 0x7da   : > { %v5670_v6 = vadd.f32 %v11330_v14, %v5631_v62  ;;  %v5671_v11 = vadd.f32 %v11330_v14, %v5632_v42  ;;  %v5672_v5 = vadd.f32 %v11330_v14, %v5633_v63  ;;  %v5673_v56 = vadd.f32 %v11330_v14, %v5634_v33 }
 0x7db   : > { %v5674_v49 = vadd.f32 %v11330_v14, %v5635_v54  ;;  %v5675_v38 = vadd.f32 %v11330_v14, %v5636_v15  ;;  %v5676_v22 = vadd.f32 %v11330_v14, %v5637_v51  ;;  %v5677_v39 = vadd.f32 %v11330_v14, %v5638_v19 }
 0x7dc   : > { %v5678_v47 = vadd.f32 %v11330_v14, %v5639_v59  ;;  %v11419_v21 = vadd.f32 %v11330_v14, %v5640_v31  ;;  %v11422_v60 = vadd.f32 %v11330_v14, %v5641_v27  ;;  %v11425_v46 = vadd.f32 %v11330_v14, %v5642_v17 }
 0x7dd   : > { %v11428_v3 = vadd.f32 %v11330_v14, %v5643_v53  ;;  %v11431_v48 = vadd.f32 %v11330_v14, %v5644_v25  ;;  %v11434_v8 = vadd.f32 %v11330_v14, %v5645_v24  ;;  %v11437_v29 = vadd.f32 %v11330_v14, %v5646_v35 }
 0x7de   : > { %v11440_v7 = vadd.f32 %v11330_v14, %v5647_v50  ;;  %v11443_v34 = vadd.f32 %v11330_v14, %v5648_v36  ;;  %v11446_v52 = vadd.f32 %v11330_v14, %v5649_v28  ;;  %v11449_v20 = vadd.f32 %v11330_v14, %v5650_v9 }
 0x7df   : > { %v11452_v26 = vadd.f32 %v11330_v14, %v5651_v4  ;;  %v5692_v13 = vmax.f32 %v5660_v57, 0.0  ;;  %v5693_v23 = vmax.f32 %v5661_v43, 0.0  ;;  %v5694_v1 = vmax.f32 %v5662_v18, 0.0 }
 0x7e0   : > { %v5695_v44 = vmax.f32 %v5663_v0, 0.0  ;;  %v5696_v12 = vmax.f32 %v5664_v45, 0.0  ;;  %v5697_v37 = vmax.f32 %v5665_v16, 0.0  ;;  %v5698_v10 = vmax.f32 %v5666_v32, 0.0 }
 0x7e1   : > { %v5699_v58 = vmax.f32 %v5667_v55, 0.0  ;;  %v5700_v61 = vmax.f32 %v5668_v2, 0.0  ;;  %v5701_v41 = vmax.f32 %v5669_v40, 0.0  ;;  %v5702_v30 = vmax.f32 %v5670_v6, 0.0  ;;  %5724 = vst.msk [vmem:[%s11361_s23] sm:$0xff] %vm534_vm4, %v5692_v13  ;;  %5725 = vst.msk [vmem:[%s11361_s23 + $0x8] sm:$0xff] %vm534_vm4, %v5693_v23 }
 0x7e2   : > { %5726 = vst.msk [vmem:[%s11361_s23 + $0x10] sm:$0xff] %vm534_vm4, %v5694_v1  ;;  %v5703_v14 = vmax.f32 %v5671_v11, 0.0  ;;  %v5704_v62 = vmax.f32 %v5672_v5, 0.0  ;;  %v5705_v42 = vmax.f32 %v5673_v56, 0.0  ;;  %v5706_v63 = vmax.f32 %v5674_v49, 0.0  ;;  %5727 = vst.msk [vmem:[%s11361_s23 + $0x18] sm:$0xff] %vm534_vm4, %v5695_v44 }
 0x7e3   : > { %5728 = vst.msk [vmem:[%s11361_s23 + $0x20] sm:$0xff] %vm534_vm4, %v5696_v12  ;;  %5729 = vst.msk [vmem:[%s11361_s23 + $0x28] sm:$0xff] %vm534_vm4, %v5697_v37  ;;  %v5707_v33 = vmax.f32 %v5675_v38, 0.0  ;;  %v5708_v54 = vmax.f32 %v5676_v22, 0.0  ;;  %v5709_v15 = vmax.f32 %v5677_v39, 0.0  ;;  %v5710_v51 = vmax.f32 %v5678_v47, 0.0 }
 0x7e4   : > { %5730 = vst.msk [vmem:[%s11361_s23 + $0x30] sm:$0xff] %vm534_vm4, %v5698_v10  ;;  %5731 = vst.msk [vmem:[%s11361_s23 + $0x38] sm:$0xff] %vm534_vm4, %v5699_v58  ;;  %v5711_v19 = vmax.f32 %v11419_v21, 0.0  ;;  %v5712_v59 = vmax.f32 %v11422_v60, 0.0  ;;  %v5713_v31 = vmax.f32 %v11425_v46, 0.0  ;;  %v5714_v27 = vmax.f32 %v11428_v3, 0.0 }
 0x7e5   : > { %5732 = vst.msk [vmem:[%s11361_s23 + $0x40] sm:$0xff] %vm534_vm4, %v5700_v61  ;;  %5733 = vst.msk [vmem:[%s11361_s23 + $0x48] sm:$0xff] %vm534_vm4, %v5701_v41  ;;  %v5715_v17 = vmax.f32 %v11431_v48, 0.0  ;;  %v5716_v53 = vmax.f32 %v11434_v8, 0.0  ;;  %v5717_v25 = vmax.f32 %v11437_v29, 0.0  ;;  %v5718_v24 = vmax.f32 %v11440_v7, 0.0 }
 0x7e6   : > { %5734 = vst.msk [vmem:[%s11361_s23 + $0x50] sm:$0xff] %vm534_vm4, %v5702_v30  ;;  %5735 = vst.msk [vmem:[%s11361_s23 + $0x58] sm:$0xff] %vm534_vm4, %v5703_v14  ;;  %v5719_v35 = vmax.f32 %v11443_v34, 0.0  ;;  %v5720_v50 = vmax.f32 %v11446_v52, 0.0  ;;  %v5721_v36 = vmax.f32 %v11449_v20, 0.0  ;;  %v5722_v28 = vmax.f32 %v11452_v26, 0.0 }
 0x7e7   : > { %5736 = vst.msk [vmem:[%s11361_s23 + $0x60] sm:$0xff] %vm534_vm4, %v5704_v62  ;;  %5737 = vst.msk [vmem:[%s11361_s23 + $0x68] sm:$0xff] %vm534_vm4, %v5705_v42 }
 0x7e8   : > { %5738 = vst.msk [vmem:[%s11361_s23 + $0x70] sm:$0xff] %vm534_vm4, %v5706_v63  ;;  %5739 = vst.msk [vmem:[%s11361_s23 + $0x78] sm:$0xff] %vm534_vm4, %v5707_v33 }
 0x7e9   : > { %5740 = vst.msk [vmem:[%s11361_s23 + $0x80] sm:$0xff] %vm534_vm4, %v5708_v54  ;;  %5741 = vst.msk [vmem:[%s11361_s23 + $0x88] sm:$0xff] %vm534_vm4, %v5709_v15 }
 0x7ea   : > { %5742 = vst.msk [vmem:[%s11361_s23 + $0x90] sm:$0xff] %vm534_vm4, %v5710_v51  ;;  %5743 = vst.msk [vmem:[%s11361_s23 + $0x98] sm:$0xff] %vm534_vm4, %v5711_v19 }
 0x7eb   : > { %5744 = vst.msk [vmem:[%s11361_s23 + $0xa0] sm:$0xff] %vm534_vm4, %v5712_v59  ;;  %5745 = vst.msk [vmem:[%s11361_s23 + $0xa8] sm:$0xff] %vm534_vm4, %v5713_v31 }
 0x7ec   : > { %5746 = vst.msk [vmem:[%s11361_s23 + $0xb0] sm:$0xff] %vm534_vm4, %v5714_v27  ;;  %5747 = vst.msk [vmem:[%s11361_s23 + $0xb8] sm:$0xff] %vm534_vm4, %v5715_v17 }
 0x7ed   : > { %5748 = vst.msk [vmem:[%s11361_s23 + $0xc0] sm:$0xff] %vm534_vm4, %v5716_v53  ;;  %5749 = vst.msk [vmem:[%s11361_s23 + $0xc8] sm:$0xff] %vm534_vm4, %v5717_v25 }
 0x7ee   : > { %5750 = vst.msk [vmem:[%s11361_s23 + $0xd0] sm:$0xff] %vm534_vm4, %v5718_v24  ;;  %5751 = vst.msk [vmem:[%s11361_s23 + $0xd8] sm:$0xff] %vm534_vm4, %v5719_v35 }
 0x7ef   : > { %5752 = vst.msk [vmem:[%s11361_s23 + $0xe0] sm:$0xff] %vm534_vm4, %v5720_v50  ;;  %5753 = vst.msk [vmem:[%s11361_s23 + $0xe8] sm:$0xff] %vm534_vm4, %v5721_v36 }
 0x7f0   : > { %5754 = vst.msk [vmem:[%s11361_s23 + $0xf0] sm:$0xff] %vm534_vm4, %v5722_v28 }
 0x7f1   : > { %7584 = shalt.err (!%p7581_p3)
}
 0x7f2   : > { %s7585_s22 = scalar_lea.hbm %s11505_s24, 4096  ;;  %s7589_s29 = scalar_lea.hbm %s11593_s13, 8192 }
 0x7f3   : > { %p7586_p4 = scmp.ne.s32.totalorder %s11505_s24, %s7585_s22  ;;  %p7590_p9 = scmp.lt.u32.totalorder %s11505_s24, %s11593_s13 }
 0x7f4   : > { %p7591_p10 = scmp.lt.u32.totalorder %s7589_s29, %s7585_s22  ;;  %p7593_p12 = scmp.lt.u32.totalorder %s7585_s22, %s11505_s24 }
 0x7f5   : > { %p7587_p7 = pnand %p7586_p4, %p7750_p5 }
 0x7f6   : > { %p7592_p11 = por %p7591_p10, %p7590_p9 }
 0x7f7   : > { %p7588_p8 = pneg %p7587_p7 }
 0x7f8   : > { %p7594_p13 = por %p7593_p12, %p7592_p11 }
 0x7fa   : > { %p7595_p0 = pnand %p7594_p13, %p7588_p8 }
 0x7fc   : > { %7598 = shalt.err (!%p7595_p0)
}
 0x7fd   : > { %s7640_s30 = smov 128   ;;  %s7641_s20 = smov 8  }
 0x7fe   : > { %6884 = dma.vmem_to_hbm [thread:$0]  (%p7750_p5), %s11507_s15, 4096, %s11505_s24, %s11539_s17, %s7640_s30, %s7640_s30, %s7641_s20  }
 0x7ff PF: > { %p6890_p1 = scmp.ge.s32.totalorder %s7633_s28, 2  ;;  %s5785_s21 = sand.u32 1, %s7621_s25  }
 0x800   : > { %s5786_s22 = scalar_lea.sflag [#allocation6], %s5785_s21 }
 0x801   : > { %p6887_p2 = pnand %p6890_p1, %p7754_p6 }
 0x803   : > { %7616 = dma.done.wait (!%p6887_p2), %s5786_s22, 4096  }
 0x804   : > { %7618 = vsyncadd (!%p6887_p2), %s5786_s22, 4294963200  ;;  %s11905_s28 = sld [smem:[#allocation9_spill]]  ;;  %s11906_s23 = sld [smem:[#allocation8_spill]] }
 0x805   : > { %s11907_s27 = sld [smem:[#allocation10_spill]]  ;;  %s11908_s25 = smov %s7625_s26 }
 0x80a   : > { %p23_p3 = scmp.ge.s32.totalorder %s11905_s28, 4   ;;  %s11909_s26 = smov %s11906_s23 }
 0x80c   :  { %25 = sbr.rel (!%p23_p3) target bundleno = 3 (0x3), region = 112 }
 0x813   :  { %5791 = vsyncpa [#allocation6], 1 }
 0x814   :  { %5793 = vsyncpa [#allocation6 + $0x1], 1 }

</bundles_post_ra>
